<compile_context>
chip_gen: v7x
topology: tpu7x:2x2x1
jax: 0.10.0
libtpu: 0.0.40
codegen_flags: <defaults>
</compile_context>

<pallas_src>
import functools

import jax
import jax.numpy as jnp
import numpy as np
from jax.experimental import pallas as pl
from jax.experimental.pallas import tpu as pltpu


def _round_up(x, m):
    return (x + m - 1) // m * m


def _choose_tile(total, unit, max_tile):
    """Largest t such that t % unit == 0, t divides total, t <= max_tile."""
    u = total // unit
    for parts in range(1, u + 1):
        if u % parts == 0 and (u // parts) * unit <= max_tile:
            return (u // parts) * unit
    return unit


_MAX_TM, _MAX_TN, _MAX_TK = 256, 256, 2048


# --------------------------------------------------------------------------
# Pallas kernels
# --------------------------------------------------------------------------
def _conv_matmul_kernel(apply_relu, has_res, x_ref, w_ref, b_ref, *rest):
    """Tiled: acc += x@w over K grid; epilogue: +bias [+res] [relu] -> bf16."""
    if has_res:
        r_ref, o_ref, acc_ref = rest
    else:
        o_ref, acc_ref = rest

    k = pl.program_id(2)

    @pl.when(k == 0)
    def _init():
        acc_ref[...] = jnp.zeros_like(acc_ref)

    acc_ref[...] += jnp.dot(x_ref[...], w_ref[...],
                            preferred_element_type=jnp.float32)

    @pl.when(k == pl.num_programs(2) - 1)
    def _epilogue():
        acc = acc_ref[...] + b_ref[...]
        if has_res:
            acc = acc + r_ref[...].astype(jnp.float32)
        if apply_relu:
            acc = jnp.maximum(acc, 0.0)
        o_ref[...] = acc.astype(o_ref.dtype)


def _max9_kernel(*refs):
    """Chained elementwise max over 9 input blocks (lane-dense)."""
    o_ref = refs[-1]
    m = refs[0][...]
    for r in refs[1:-1]:
        m = jnp.maximum(m, r[...])
    o_ref[...] = m


# --------------------------------------------------------------------------
# Kernel wrappers
# --------------------------------------------------------------------------
def fused_matmul_bias(xm, w_pre, b_pre, n_valid, residual=None, relu=True):
    """xm:(M,K) bf16, w_pre:(Kp,Np) bf16 (BN folded), b_pre:(1,Np) f32,
    residual:(M,n_valid) bf16 | None  ->  (M, n_valid) bf16."""
    M, K = xm.shape
    Kp, Np = w_pre.shape
    Mp = _round_up(M, 8)

    TM = _choose_tile(Mp, 8, _MAX_TM)
    TN = _choose_tile(Np, 128, _MAX_TN)
    TK = _choose_tile(Kp, 128, _MAX_TK)
    grid = (Mp // TM, Np // TN, Kp // TK)

    xp = jnp.pad(xm, ((0, Mp - M), (0, Kp - K)))
    args = [xp, w_pre, b_pre]
    in_specs = [
        pl.BlockSpec((TM, TK), lambda i, j, k: (i, k)),
        pl.BlockSpec((TK, TN), lambda i, j, k: (k, j)),
        pl.BlockSpec((1, TN), lambda i, j, k: (0, j)),
    ]
    has_res = residual is not None
    if has_res:
        rp = jnp.pad(residual, ((0, Mp - M), (0, Np - n_valid)))
        args.append(rp)
        in_specs.append(pl.BlockSpec((TM, TN), lambda i, j, k: (i, j)))

    kernel = functools.partial(_conv_matmul_kernel, relu, has_res)
    out = pl.pallas_call(
        kernel,
        out_shape=jax.ShapeDtypeStruct((Mp, Np), jnp.bfloat16),
        grid=grid,
        in_specs=in_specs,
        out_specs=pl.BlockSpec((TM, TN), lambda i, j, k: (i, j)),
        scratch_shapes=[pltpu.VMEM((TM, TN), jnp.float32)],
        compiler_params=pltpu.CompilerParams(
            dimension_semantics=("parallel", "parallel", "arbitrary"),
            vmem_limit_bytes=48 * 1024 * 1024),
    )(*args)
    return out[:M, :n_valid]


def conv2d_bn(x_nhwc, wb, stride, padding, relu=True, residual=None):
    """Conv (bias=False) + folded BatchNorm (+residual) (+relu), all bf16."""
    N, H, W, Cin = x_nhwc.shape
    KH, KW, Cout = wb["kh"], wb["kw"], wb["cout"]
    Ho = (H + 2 * padding - KH) // stride + 1
    Wo = (W + 2 * padding - KW) // stride + 1

    xp = jnp.pad(x_nhwc, ((0, 0), (padding, padding), (padding, padding), (0, 0)))
    views = [xp[:, kh:kh + stride * Ho:stride, kw:kw + stride * Wo:stride, :]
             for kh in range(KH) for kw in range(KW)]
    patches = views[0] if len(views) == 1 else jnp.concatenate(views, axis=-1)
    xm = patches.reshape(N * Ho * Wo, KH * KW * Cin)

    resm = None
    if residual is not None:
        resm = residual.reshape(N * Ho * Wo, Cout)

    out = fused_matmul_bias(xm, wb["w"], wb["b"], Cout, residual=resm, relu=relu)
    return out.reshape(N, Ho, Wo, Cout)


def maxpool_3x3_s2_p1(x_nhwc):
    N, H, W, C = x_nhwc.shape
    Ho = (H + 2 - 3) // 2 + 1
    Wo = (W + 2 - 3) // 2 + 1
    xp = jnp.pad(x_nhwc, ((0, 0), (1, 1), (1, 1), (0, 0)),
                 constant_values=-jnp.inf)
    views = [xp[:, kh:kh + 2 * Ho:2, kw:kw + 2 * Wo:2, :]
             for kh in range(3) for kw in range(3)]

    total = N * Ho * Wo * C
    if total % 128 == 0:
        # Lane-dense repacking: elementwise max doesn't care how rows fold.
        R, Cl = total // 128, 128
        flat = [v.reshape(R, Cl) for v in views]
    else:
        R, Cl = N * Ho * Wo, _round_up(C, 128)
        flat = [jnp.pad(v.reshape(N * Ho * Wo, C), ((0, 0), (0, Cl - C)),
                        constant_values=-jnp.inf) for v in views]
    Rp = _round_up(R, 8)
    flat = [jnp.pad(v, ((0, Rp - R), (0, 0))) for v in flat]

    TR = _choose_tile(Rp, 8, 512)
    out = pl.pallas_call(
        _max9_kernel,
        out_shape=jax.ShapeDtypeStruct((Rp, Cl), x_nhwc.dtype),
        grid=(Rp // TR,),
        in_specs=[pl.BlockSpec((TR, Cl), lambda i: (i, 0)) for _ in range(9)],
        out_specs=pl.BlockSpec((TR, Cl), lambda i: (i, 0)),
        compiler_params=pltpu.CompilerParams(dimension_semantics=("parallel",)),
    )(*flat)
    out = out[:R]
    if total % 128 == 0:
        return out.reshape(N, Ho, Wo, C)
    return out[:, :C].reshape(N, Ho, Wo, C)


# --------------------------------------------------------------------------
# Parameter initialization (matches nn.Module __init__ scheme) + offline prep
# --------------------------------------------------------------------------
def _kaiming_conv(key, cout, cin, kh, kw):
    fan_out = cout * kh * kw
    std = np.sqrt(2.0 / fan_out)
    return jax.random.normal(key, (cout, cin, kh, kw), jnp.float32) * std


def _bn_params(c):
    # (gamma, beta, running_mean, running_var) — BatchNorm2d defaults (eval)
    return (jnp.ones((c,), jnp.float32), jnp.zeros((c,), jnp.float32),
            jnp.zeros((c,), jnp.float32), jnp.ones((c,), jnp.float32))


def init_resnet_params(key, layers=(1, 1, 1, 1)):
    keys = iter(jax.random.split(key, 128))
    params = {"conv1": _kaiming_conv(next(keys), 64, 3, 7, 7),
              "bn1": _bn_params(64)}
    inplanes = 64
    layer_planes = (64, 128, 256, 512)
    layer_strides = (1, 2, 2, 2)
    for li in range(4):
        planes, nblocks, lstride = layer_planes[li], layers[li], layer_strides[li]
        blocks = []
        for b in range(nblocks):
            s = lstride if b == 0 else 1
            blk = {
                "stride": s,
                "conv1": _kaiming_conv(next(keys), planes, inplanes, 3, 3),
                "bn1": _bn_params(planes),
                "conv2": _kaiming_conv(next(keys), planes, planes, 3, 3),
                "bn2": _bn_params(planes),
            }
            if s != 1 or inplanes != planes:  # BasicBlock.expansion == 1
                blk["down_conv"] = _kaiming_conv(next(keys), planes, inplanes, 1, 1)
                blk["down_bn"] = _bn_params(planes)
            blocks.append(blk)
            inplanes = planes
        params[f"layer{li + 1}"] = blocks
    return params


def _fold_conv_bn(w_oihw, bn, eps=1e-5):
    """Transpose to (K,Cout), fold BN scale into weights, pad, cast bf16."""
    cout, cin, kh, kw = w_oihw.shape
    gamma, beta, mean, var = bn
    scale = gamma / jnp.sqrt(var + eps)
    bias = beta - mean * scale
    wm = jnp.transpose(w_oihw, (2, 3, 1, 0)).reshape(kh * kw * cin, cout)
    wm = wm * scale[None, :]                       # BN scale folded into W
    K, Np = kh * kw * cin, _round_up(cout, 128)
    Kp = _round_up(K, 128)
    w_pre = jnp.pad(wm, ((0, Kp - K), (0, Np - cout))).astype(jnp.bfloat16)
    b_pre = jnp.pad(bias, (0, Np - cout)).reshape(1, Np).astype(jnp.float32)
    return {"w": w_pre, "b": b_pre, "kh": kh, "kw": kw, "cin": cin, "cout": cout}


def prepare_inference_params(params):
    prep = {"conv1": _fold_conv_bn(params["conv1"], params["bn1"])}
    for li in range(1, 5):
        blocks = []
        for blk in params[f"layer{li}"]:
            p = {"stride": blk["stride"],
                 "conv1": _fold_conv_bn(blk["conv1"], blk["bn1"]),
                 "conv2": _fold_conv_bn(blk["conv2"], blk["bn2"])}
            if "down_conv" in blk:
                p["down"] = _fold_conv_bn(blk["down_conv"], blk["down_bn"])
            blocks.append(p)
        prep[f"layer{li}"] = blocks
    return prep


# --------------------------------------------------------------------------
# Forward pass (matches ResNet.forward: conv1/bn1/relu/maxpool/layer1..4)
# --------------------------------------------------------------------------
def basic_block(x, blk):
    s = blk["stride"]
    if "down" in blk:
        identity = conv2d_bn(x, blk["down"], stride=s, padding=0, relu=False)
    else:
        identity = x
    out = conv2d_bn(x, blk["conv1"], stride=s, padding=1, relu=True)
    out = conv2d_bn(out, blk["conv2"], stride=1, padding=1, relu=True,
                    residual=identity)
    return out


def resnet_forward(prep, x_nchw):
    x = jnp.transpose(x_nchw, (0, 2, 3, 1)).astype(jnp.bfloat16)  # NCHW -> NHWC
    x = conv2d_bn(x, prep["conv1"], stride=2, padding=3, relu=True)
    x = maxpool_3x3_s2_p1(x)
    for li in range(1, 5):
        for blk in prep[f"layer{li}"]:
            x = basic_block(x, blk)
    return jnp.transpose(x, (0, 3, 1, 2)).astype(jnp.float32)     # NHWC -> NCHW


# --------------------------------------------------------------------------
if __name__ == "__main__":
    key = jax.random.PRNGKey(0)
    pkey, xkey = jax.random.split(key)

    params = init_resnet_params(pkey, layers=(1, 1, 1, 1))
    prep = prepare_inference_params(params)          # one-time offline prep
    x = jax.random.normal(xkey, (2, 3, 32, 32), jnp.float32)  # NCHW like PyTorch

    fwd = jax.jit(functools.partial(resnet_forward, prep))
    out = jax.block_until_ready(fwd(x))

    assert out.shape == (2, 512, 1, 1), out.shape
    assert out.dtype == jnp.float32
    assert bool(jnp.all(jnp.isfinite(out)))
    print("KERNEL_OK")
</pallas_src>

<mosaic_0001>
module attributes {stable_mosaic.version = 11 : i64} {
  func.func @_conv_matmul_kernel(%arg0: i32, %arg1: i32, %arg2: i32, %arg3: memref<256x256xbf16, #tpu.memory_space<vmem>>, %arg4: memref<256x128xbf16, #tpu.memory_space<vmem>>, %arg5: memref<1x128xf32, #tpu.memory_space<vmem>>, %arg6: memref<256x128xbf16, #tpu.memory_space<vmem>>, %arg7: memref<256x128xf32, #tpu.memory_space<vmem>>) attributes {dimension_semantics = [#tpu.dimension_semantics<parallel>, #tpu.dimension_semantics<parallel>, #tpu.dimension_semantics<arbitrary>], iteration_bounds = array<i64: 2, 1, 1>, scalar_prefetch = 0 : i64, scratch_operands = 1 : i64, tpu.core_type = #tpu.core_type<tc>, window_params = [{transform_indices = @transform_0, window_bounds = array<i64: 256, 256>}, {transform_indices = @transform_1, window_bounds = array<i64: 256, 128>}, {transform_indices = @transform_2, window_bounds = array<i64: 1, 128>}, {transform_indices = @transform_3, window_bounds = array<i64: 256, 128>}]} {
    %c0_i32 = arith.constant 0 : i32
    %0 = arith.cmpi eq, %arg2, %c0_i32 : i32
    %1 = arith.extui %0 : i1 to i32
    %c0_i32_0 = arith.constant 0 : i32
    %2 = arith.cmpi ne, %1, %c0_i32_0 : i32
    scf.if %2 {
      %cst_10 = arith.constant 0.000000e+00 : f32
      %12 = vector.broadcast %cst_10 : f32 to vector<256x128xf32>
      %c0_11 = arith.constant 0 : index
      %c0_12 = arith.constant 0 : index
      %13 = vector.load %arg7[%c0_11, %c0_12] : memref<256x128xf32, #tpu.memory_space<vmem>>, vector<256x128xf32>
      tpu.vector_store %arg7[%c0_11, %c0_12], %12 {strides = array<i32>} : memref<256x128xf32, #tpu.memory_space<vmem>>, vector<256x128xf32>,
    } else {
    }
    %c0 = arith.constant 0 : index
    %c0_1 = arith.constant 0 : index
    %3 = vector.load %arg7[%c0, %c0_1] : memref<256x128xf32, #tpu.memory_space<vmem>>, vector<256x128xf32>
    %c0_2 = arith.constant 0 : index
    %c0_3 = arith.constant 0 : index
    %4 = vector.load %arg3[%c0_2, %c0_3] : memref<256x256xbf16, #tpu.memory_space<vmem>>, vector<256x256xbf16>
    %c0_4 = arith.constant 0 : index
    %c0_5 = arith.constant 0 : index
    %5 = vector.load %arg4[%c0_4, %c0_5] : memref<256x128xbf16, #tpu.memory_space<vmem>>, vector<256x128xbf16>
    %cst = arith.constant dense<0.000000e+00> : vector<256x128xf32>
    %6 = tpu.matmul %4, %5, %cst {dimension_numbers = #tpu.dot_dimension_numbers<[1], [0], [0], [1], [0, 0, 1, 1], [], []>} : vector<256x256xbf16>, vector<256x128xbf16>, vector<256x128xf32> -> vector<256x128xf32>
    %7 = arith.addf %3, %6 : vector<256x128xf32>
    %c0_6 = arith.constant 0 : index
    %c0_7 = arith.constant 0 : index
    %8 = vector.load %arg7[%c0_6, %c0_7] : memref<256x128xf32, #tpu.memory_space<vmem>>, vector<256x128xf32>
    tpu.vector_store %arg7[%c0_6, %c0_7], %7 {strides = array<i32>} : memref<256x128xf32, #tpu.memory_space<vmem>>, vector<256x128xf32>,
    %c0_i32_8 = arith.constant 0 : i32
    %9 = arith.cmpi eq, %arg2, %c0_i32_8 : i32
    %10 = arith.extui %9 : i1 to i32
    %c0_i32_9 = arith.constant 0 : i32
    %11 = arith.cmpi ne, %10, %c0_i32_9 : i32
    scf.if %11 {
      %c0_10 = arith.constant 0 : index
      %c0_11 = arith.constant 0 : index
      %12 = vector.load %arg7[%c0_10, %c0_11] : memref<256x128xf32, #tpu.memory_space<vmem>>, vector<256x128xf32>
      %c0_12 = arith.constant 0 : index
      %c0_13 = arith.constant 0 : index
      %13 = vector.load %arg5[%c0_12, %c0_13] : memref<1x128xf32, #tpu.memory_space<vmem>>, vector<1x128xf32>
      %14 = vector.broadcast %13 : vector<1x128xf32> to vector<256x128xf32>
      %15 = arith.addf %12, %14 : vector<256x128xf32>
      %cst_14 = arith.constant 0.000000e+00 : f32
      %16 = vector.broadcast %cst_14 : f32 to vector<256x128xf32>
      %17 = arith.maximumf %15, %16 : vector<256x128xf32>
      %18 = arith.truncf %17 : vector<256x128xf32> to vector<256x128xbf16>
      %c0_15 = arith.constant 0 : index
      %c0_16 = arith.constant 0 : index
      %19 = vector.load %arg6[%c0_15, %c0_16] : memref<256x128xbf16, #tpu.memory_space<vmem>>, vector<256x128xbf16>
      tpu.vector_store %arg6[%c0_15, %c0_16], %18 {strides = array<i32>} : memref<256x128xbf16, #tpu.memory_space<vmem>>, vector<256x128xbf16>,
    } else {
    }
    return
  }
  func.func @transform_0(%arg0: i32, %arg1: i32, %arg2: i32) -> (i32, i32) {
    %c0_i32 = arith.constant 0 : i32
    return %arg0, %arg2 : i32, i32
  }
  func.func @transform_1(%arg0: i32, %arg1: i32, %arg2: i32) -> (i32, i32) {
    %c0_i32 = arith.constant 0 : i32
    return %arg2, %arg1 : i32, i32
  }
  func.func @transform_2(%arg0: i32, %arg1: i32, %arg2: i32) -> (i32, i32) {
    %c0_i32 = arith.constant 0 : i32
    %c0_i32_0 = arith.constant 0 : i32
    return %c0_i32, %arg1 : i32, i32
  }
  func.func @transform_3(%arg0: i32, %arg1: i32, %arg2: i32) -> (i32, i32) {
    %c0_i32 = arith.constant 0 : i32
    return %arg0, %arg1 : i32, i32
  }
}

module attributes {stable_mosaic.version = 11 : i64} {
  func.func @_max9_kernel(%arg0: i32, %arg1: memref<64x128xbf16, #tpu.memory_space<vmem>>, %arg2: memref<64x128xbf16, #tpu.memory_space<vmem>>, %arg3: memref<64x128xbf16, #tpu.memory_space<vmem>>, %arg4: memref<64x128xbf16, #tpu.memory_space<vmem>>, %arg5: memref<64x128xbf16, #tpu.memory_space<vmem>>, %arg6: memref<64x128xbf16, #tpu.memory_space<vmem>>, %arg7: memref<64x128xbf16, #tpu.memory_space<vmem>>, %arg8: memref<64x128xbf16, #tpu.memory_space<vmem>>, %arg9: memref<64x128xbf16, #tpu.memory_space<vmem>>, %arg10: memref<64x128xbf16, #tpu.memory_space<vmem>>) attributes {dimension_semantics = [#tpu.dimension_semantics<parallel>], iteration_bounds = array<i64: 1>, scalar_prefetch = 0 : i64, scratch_operands = 0 : i64, tpu.core_type = #tpu.core_type<tc>, window_params = [{transform_indices = @transform_0, window_bounds = array<i64: 64, 128>}, {transform_indices = @transform_1, window_bounds = array<i64: 64, 128>}, {transform_indices = @transform_2, window_bounds = array<i64: 64, 128>}, {transform_indices = @transform_3, window_bounds = array<i64: 64, 128>}, {transform_indices = @transform_4, window_bounds = array<i64: 64, 128>}, {transform_indices = @transform_5, window_bounds = array<i64: 64, 128>}, {transform_indices = @transform_6, window_bounds = array<i64: 64, 128>}, {transform_indices = @transform_7, window_bounds = array<i64: 64, 128>}, {transform_indices = @transform_8, window_bounds = array<i64: 64, 128>}, {transform_indices = @transform_9, window_bounds = array<i64: 64, 128>}]} {
    %c0 = arith.constant 0 : index
    %c0_0 = arith.constant 0 : index
    %0 = vector.load %arg1[%c0, %c0_0] : memref<64x128xbf16, #tpu.memory_space<vmem>>, vector<64x128xbf16>
    %c0_1 = arith.constant 0 : index
    %c0_2 = arith.constant 0 : index
    %1 = vector.load %arg2[%c0_1, %c0_2] : memref<64x128xbf16, #tpu.memory_space<vmem>>, vector<64x128xbf16>
    %2 = arith.maximumf %0, %1 : vector<64x128xbf16>
    %c0_3 = arith.constant 0 : index
    %c0_4 = arith.constant 0 : index
    %3 = vector.load %arg3[%c0_3, %c0_4] : memref<64x128xbf16, #tpu.memory_space<vmem>>, vector<64x128xbf16>
    %4 = arith.maximumf %2, %3 : vector<64x128xbf16>
    %c0_5 = arith.constant 0 : index
    %c0_6 = arith.constant 0 : index
    %5 = vector.load %arg4[%c0_5, %c0_6] : memref<64x128xbf16, #tpu.memory_space<vmem>>, vector<64x128xbf16>
    %6 = arith.maximumf %4, %5 : vector<64x128xbf16>
    %c0_7 = arith.constant 0 : index
    %c0_8 = arith.constant 0 : index
    %7 = vector.load %arg5[%c0_7, %c0_8] : memref<64x128xbf16, #tpu.memory_space<vmem>>, vector<64x128xbf16>
    %8 = arith.maximumf %6, %7 : vector<64x128xbf16>
    %c0_9 = arith.constant 0 : index
    %c0_10 = arith.constant 0 : index
    %9 = vector.load %arg6[%c0_9, %c0_10] : memref<64x128xbf16, #tpu.memory_space<vmem>>, vector<64x128xbf16>
    %10 = arith.maximumf %8, %9 : vector<64x128xbf16>
    %c0_11 = arith.constant 0 : index
    %c0_12 = arith.constant 0 : index
    %11 = vector.load %arg7[%c0_11, %c0_12] : memref<64x128xbf16, #tpu.memory_space<vmem>>, vector<64x128xbf16>
    %12 = arith.maximumf %10, %11 : vector<64x128xbf16>
    %c0_13 = arith.constant 0 : index
    %c0_14 = arith.constant 0 : index
    %13 = vector.load %arg8[%c0_13, %c0_14] : memref<64x128xbf16, #tpu.memory_space<vmem>>, vector<64x128xbf16>
    %14 = arith.maximumf %12, %13 : vector<64x128xbf16>
    %c0_15 = arith.constant 0 : index
    %c0_16 = arith.constant 0 : index
    %15 = vector.load %arg9[%c0_15, %c0_16] : memref<64x128xbf16, #tpu.memory_space<vmem>>, vector<64x128xbf16>
    %16 = arith.maximumf %14, %15 : vector<64x128xbf16>
    %c0_17 = arith.constant 0 : index
    %c0_18 = arith.constant 0 : index
    %17 = vector.load %arg10[%c0_17, %c0_18] : memref<64x128xbf16, #tpu.memory_space<vmem>>, vector<64x128xbf16>
    tpu.vector_store %arg10[%c0_17, %c0_18], %16 {strides = array<i32>} : memref<64x128xbf16, #tpu.memory_space<vmem>>, vector<64x128xbf16>,
    return
  }
  func.func @transform_0(%arg0: i32) -> (i32, i32) {
    %c0_i32 = arith.constant 0 : i32
    %c0_i32_0 = arith.constant 0 : i32
    return %arg0, %c0_i32 : i32, i32
  }
  func.func @transform_1(%arg0: i32) -> (i32, i32) {
    %c0_i32 = arith.constant 0 : i32
    %c0_i32_0 = arith.constant 0 : i32
    return %arg0, %c0_i32 : i32, i32
  }
  func.func @transform_2(%arg0: i32) -> (i32, i32) {
    %c0_i32 = arith.constant 0 : i32
    %c0_i32_0 = arith.constant 0 : i32
    return %arg0, %c0_i32 : i32, i32
  }
  func.func @transform_3(%arg0: i32) -> (i32, i32) {
    %c0_i32 = arith.constant 0 : i32
    %c0_i32_0 = arith.constant 0 : i32
    return %arg0, %c0_i32 : i32, i32
  }
  func.func @transform_4(%arg0: i32) -> (i32, i32) {
    %c0_i32 = arith.constant 0 : i32
    %c0_i32_0 = arith.constant 0 : i32
    return %arg0, %c0_i32 : i32, i32
  }
  func.func @transform_5(%arg0: i32) -> (i32, i32) {
    %c0_i32 = arith.constant 0 : i32
    %c0_i32_0 = arith.constant 0 : i32
    return %arg0, %c0_i32 : i32, i32
  }
  func.func @transform_6(%arg0: i32) -> (i32, i32) {
    %c0_i32 = arith.constant 0 : i32
    %c0_i32_0 = arith.constant 0 : i32
    return %arg0, %c0_i32 : i32, i32
  }
  func.func @transform_7(%arg0: i32) -> (i32, i32) {
    %c0_i32 = arith.constant 0 : i32
    %c0_i32_0 = arith.constant 0 : i32
    return %arg0, %c0_i32 : i32, i32
  }
  func.func @transform_8(%arg0: i32) -> (i32, i32) {
    %c0_i32 = arith.constant 0 : i32
    %c0_i32_0 = arith.constant 0 : i32
    return %arg0, %c0_i32 : i32, i32
  }
  func.func @transform_9(%arg0: i32) -> (i32, i32) {
    %c0_i32 = arith.constant 0 : i32
    %c0_i32_0 = arith.constant 0 : i32
    return %arg0, %c0_i32 : i32, i32
  }
}

module attributes {stable_mosaic.version = 11 : i64} {
  func.func @_conv_matmul_kernel(%arg0: i32, %arg1: i32, %arg2: i32, %arg3: memref<128x640xbf16, #tpu.memory_space<vmem>>, %arg4: memref<640x128xbf16, #tpu.memory_space<vmem>>, %arg5: memref<1x128xf32, #tpu.memory_space<vmem>>, %arg6: memref<128x128xbf16, #tpu.memory_space<vmem>>, %arg7: memref<128x128xf32, #tpu.memory_space<vmem>>) attributes {dimension_semantics = [#tpu.dimension_semantics<parallel>, #tpu.dimension_semantics<parallel>, #tpu.dimension_semantics<arbitrary>], iteration_bounds = array<i64: 1, 1, 1>, scalar_prefetch = 0 : i64, scratch_operands = 1 : i64, tpu.core_type = #tpu.core_type<tc>, window_params = [{transform_indices = @transform_0, window_bounds = array<i64: 128, 640>}, {transform_indices = @transform_1, window_bounds = array<i64: 640, 128>}, {transform_indices = @transform_2, window_bounds = array<i64: 1, 128>}, {transform_indices = @transform_3, window_bounds = array<i64: 128, 128>}]} {
    %c0_i32 = arith.constant 0 : i32
    %0 = arith.cmpi eq, %arg2, %c0_i32 : i32
    %1 = arith.extui %0 : i1 to i32
    %c0_i32_0 = arith.constant 0 : i32
    %2 = arith.cmpi ne, %1, %c0_i32_0 : i32
    scf.if %2 {
      %cst_10 = arith.constant 0.000000e+00 : f32
      %12 = vector.broadcast %cst_10 : f32 to vector<128x128xf32>
      %c0_11 = arith.constant 0 : index
      %c0_12 = arith.constant 0 : index
      %13 = vector.load %arg7[%c0_11, %c0_12] : memref<128x128xf32, #tpu.memory_space<vmem>>, vector<128x128xf32>
      tpu.vector_store %arg7[%c0_11, %c0_12], %12 {strides = array<i32>} : memref<128x128xf32, #tpu.memory_space<vmem>>, vector<128x128xf32>,
    } else {
    }
    %c0 = arith.constant 0 : index
    %c0_1 = arith.constant 0 : index
    %3 = vector.load %arg7[%c0, %c0_1] : memref<128x128xf32, #tpu.memory_space<vmem>>, vector<128x128xf32>
    %c0_2 = arith.constant 0 : index
    %c0_3 = arith.constant 0 : index
    %4 = vector.load %arg3[%c0_2, %c0_3] : memref<128x640xbf16, #tpu.memory_space<vmem>>, vector<128x640xbf16>
    %c0_4 = arith.constant 0 : index
    %c0_5 = arith.constant 0 : index
    %5 = vector.load %arg4[%c0_4, %c0_5] : memref<640x128xbf16, #tpu.memory_space<vmem>>, vector<640x128xbf16>
    %cst = arith.constant dense<0.000000e+00> : vector<128x128xf32>
    %6 = tpu.matmul %4, %5, %cst {dimension_numbers = #tpu.dot_dimension_numbers<[1], [0], [0], [1], [0, 0, 1, 1], [], []>} : vector<128x640xbf16>, vector<640x128xbf16>, vector<128x128xf32> -> vector<128x128xf32>
    %7 = arith.addf %3, %6 : vector<128x128xf32>
    %c0_6 = arith.constant 0 : index
    %c0_7 = arith.constant 0 : index
    %8 = vector.load %arg7[%c0_6, %c0_7] : memref<128x128xf32, #tpu.memory_space<vmem>>, vector<128x128xf32>
    tpu.vector_store %arg7[%c0_6, %c0_7], %7 {strides = array<i32>} : memref<128x128xf32, #tpu.memory_space<vmem>>, vector<128x128xf32>,
    %c0_i32_8 = arith.constant 0 : i32
    %9 = arith.cmpi eq, %arg2, %c0_i32_8 : i32
    %10 = arith.extui %9 : i1 to i32
    %c0_i32_9 = arith.constant 0 : i32
    %11 = arith.cmpi ne, %10, %c0_i32_9 : i32
    scf.if %11 {
      %c0_10 = arith.constant 0 : index
      %c0_11 = arith.constant 0 : index
      %12 = vector.load %arg7[%c0_10, %c0_11] : memref<128x128xf32, #tpu.memory_space<vmem>>, vector<128x128xf32>
      %c0_12 = arith.constant 0 : index
      %c0_13 = arith.constant 0 : index
      %13 = vector.load %arg5[%c0_12, %c0_13] : memref<1x128xf32, #tpu.memory_space<vmem>>, vector<1x128xf32>
      %14 = vector.broadcast %13 : vector<1x128xf32> to vector<128x128xf32>
      %15 = arith.addf %12, %14 : vector<128x128xf32>
      %cst_14 = arith.constant 0.000000e+00 : f32
      %16 = vector.broadcast %cst_14 : f32 to vector<128x128xf32>
      %17 = arith.maximumf %15, %16 : vector<128x128xf32>
      %18 = arith.truncf %17 : vector<128x128xf32> to vector<128x128xbf16>
      %c0_15 = arith.constant 0 : index
      %c0_16 = arith.constant 0 : index
      %19 = vector.load %arg6[%c0_15, %c0_16] : memref<128x128xbf16, #tpu.memory_space<vmem>>, vector<128x128xbf16>
      tpu.vector_store %arg6[%c0_15, %c0_16], %18 {strides = array<i32>} : memref<128x128xbf16, #tpu.memory_space<vmem>>, vector<128x128xbf16>,
    } else {
    }
    return
  }
  func.func @transform_0(%arg0: i32, %arg1: i32, %arg2: i32) -> (i32, i32) {
    %c0_i32 = arith.constant 0 : i32
    return %arg0, %arg2 : i32, i32
  }
  func.func @transform_1(%arg0: i32, %arg1: i32, %arg2: i32) -> (i32, i32) {
    %c0_i32 = arith.constant 0 : i32
    return %arg2, %arg1 : i32, i32
  }
  func.func @transform_2(%arg0: i32, %arg1: i32, %arg2: i32) -> (i32, i32) {
    %c0_i32 = arith.constant 0 : i32
    %c0_i32_0 = arith.constant 0 : i32
    return %c0_i32, %arg1 : i32, i32
  }
  func.func @transform_3(%arg0: i32, %arg1: i32, %arg2: i32) -> (i32, i32) {
    %c0_i32 = arith.constant 0 : i32
    return %arg0, %arg1 : i32, i32
  }
}

module attributes {stable_mosaic.version = 11 : i64} {
  func.func @_conv_matmul_kernel(%arg0: i32, %arg1: i32, %arg2: i32, %arg3: memref<128x640xbf16, #tpu.memory_space<vmem>>, %arg4: memref<640x128xbf16, #tpu.memory_space<vmem>>, %arg5: memref<1x128xf32, #tpu.memory_space<vmem>>, %arg6: memref<128x128xbf16, #tpu.memory_space<vmem>>, %arg7: memref<128x128xbf16, #tpu.memory_space<vmem>>, %arg8: memref<128x128xf32, #tpu.memory_space<vmem>>) attributes {dimension_semantics = [#tpu.dimension_semantics<parallel>, #tpu.dimension_semantics<parallel>, #tpu.dimension_semantics<arbitrary>], iteration_bounds = array<i64: 1, 1, 1>, scalar_prefetch = 0 : i64, scratch_operands = 1 : i64, tpu.core_type = #tpu.core_type<tc>, window_params = [{transform_indices = @transform_0, window_bounds = array<i64: 128, 640>}, {transform_indices = @transform_1, window_bounds = array<i64: 640, 128>}, {transform_indices = @transform_2, window_bounds = array<i64: 1, 128>}, {transform_indices = @transform_3, window_bounds = array<i64: 128, 128>}, {transform_indices = @transform_4, window_bounds = array<i64: 128, 128>}]} {
    %c0_i32 = arith.constant 0 : i32
    %0 = arith.cmpi eq, %arg2, %c0_i32 : i32
    %1 = arith.extui %0 : i1 to i32
    %c0_i32_0 = arith.constant 0 : i32
    %2 = arith.cmpi ne, %1, %c0_i32_0 : i32
    scf.if %2 {
      %cst_10 = arith.constant 0.000000e+00 : f32
      %12 = vector.broadcast %cst_10 : f32 to vector<128x128xf32>
      %c0_11 = arith.constant 0 : index
      %c0_12 = arith.constant 0 : index
      %13 = vector.load %arg8[%c0_11, %c0_12] : memref<128x128xf32, #tpu.memory_space<vmem>>, vector<128x128xf32>
      tpu.vector_store %arg8[%c0_11, %c0_12], %12 {strides = array<i32>} : memref<128x128xf32, #tpu.memory_space<vmem>>, vector<128x128xf32>,
    } else {
    }
    %c0 = arith.constant 0 : index
    %c0_1 = arith.constant 0 : index
    %3 = vector.load %arg8[%c0, %c0_1] : memref<128x128xf32, #tpu.memory_space<vmem>>, vector<128x128xf32>
    %c0_2 = arith.constant 0 : index
    %c0_3 = arith.constant 0 : index
    %4 = vector.load %arg3[%c0_2, %c0_3] : memref<128x640xbf16, #tpu.memory_space<vmem>>, vector<128x640xbf16>
    %c0_4 = arith.constant 0 : index
    %c0_5 = arith.constant 0 : index
    %5 = vector.load %arg4[%c0_4, %c0_5] : memref<640x128xbf16, #tpu.memory_space<vmem>>, vector<640x128xbf16>
    %cst = arith.constant dense<0.000000e+00> : vector<128x128xf32>
    %6 = tpu.matmul %4, %5, %cst {dimension_numbers = #tpu.dot_dimension_numbers<[1], [0], [0], [1], [0, 0, 1, 1], [], []>} : vector<128x640xbf16>, vector<640x128xbf16>, vector<128x128xf32> -> vector<128x128xf32>
    %7 = arith.addf %3, %6 : vector<128x128xf32>
    %c0_6 = arith.constant 0 : index
    %c0_7 = arith.constant 0 : index
    %8 = vector.load %arg8[%c0_6, %c0_7] : memref<128x128xf32, #tpu.memory_space<vmem>>, vector<128x128xf32>
    tpu.vector_store %arg8[%c0_6, %c0_7], %7 {strides = array<i32>} : memref<128x128xf32, #tpu.memory_space<vmem>>, vector<128x128xf32>,
    %c0_i32_8 = arith.constant 0 : i32
    %9 = arith.cmpi eq, %arg2, %c0_i32_8 : i32
    %10 = arith.extui %9 : i1 to i32
    %c0_i32_9 = arith.constant 0 : i32
    %11 = arith.cmpi ne, %10, %c0_i32_9 : i32
    scf.if %11 {
      %c0_10 = arith.constant 0 : index
      %c0_11 = arith.constant 0 : index
      %12 = vector.load %arg8[%c0_10, %c0_11] : memref<128x128xf32, #tpu.memory_space<vmem>>, vector<128x128xf32>
      %c0_12 = arith.constant 0 : index
      %c0_13 = arith.constant 0 : index
      %13 = vector.load %arg5[%c0_12, %c0_13] : memref<1x128xf32, #tpu.memory_space<vmem>>, vector<1x128xf32>
      %14 = vector.broadcast %13 : vector<1x128xf32> to vector<128x128xf32>
      %15 = arith.addf %12, %14 : vector<128x128xf32>
      %c0_14 = arith.constant 0 : index
      %c0_15 = arith.constant 0 : index
      %16 = vector.load %arg6[%c0_14, %c0_15] : memref<128x128xbf16, #tpu.memory_space<vmem>>, vector<128x128xbf16>
      %17 = arith.extf %16 : vector<128x128xbf16> to vector<128x128xf32>
      %18 = arith.addf %15, %17 : vector<128x128xf32>
      %cst_16 = arith.constant 0.000000e+00 : f32
      %19 = vector.broadcast %cst_16 : f32 to vector<128x128xf32>
      %20 = arith.maximumf %18, %19 : vector<128x128xf32>
      %21 = arith.truncf %20 : vector<128x128xf32> to vector<128x128xbf16>
      %c0_17 = arith.constant 0 : index
      %c0_18 = arith.constant 0 : index
      %22 = vector.load %arg7[%c0_17, %c0_18] : memref<128x128xbf16, #tpu.memory_space<vmem>>, vector<128x128xbf16>
      tpu.vector_store %arg7[%c0_17, %c0_18], %21 {strides = array<i32>} : memref<128x128xbf16, #tpu.memory_space<vmem>>, vector<128x128xbf16>,
    } else {
    }
    return
  }
  func.func @transform_0(%arg0: i32, %arg1: i32, %arg2: i32) -> (i32, i32) {
    %c0_i32 = arith.constant 0 : i32
    return %arg0, %arg2 : i32, i32
  }
  func.func @transform_1(%arg0: i32, %arg1: i32, %arg2: i32) -> (i32, i32) {
    %c0_i32 = arith.constant 0 : i32
    return %arg2, %arg1 : i32, i32
  }
  func.func @transform_2(%arg0: i32, %arg1: i32, %arg2: i32) -> (i32, i32) {
    %c0_i32 = arith.constant 0 : i32
    %c0_i32_0 = arith.constant 0 : i32
    return %c0_i32, %arg1 : i32, i32
  }
  func.func @transform_3(%arg0: i32, %arg1: i32, %arg2: i32) -> (i32, i32) {
    %c0_i32 = arith.constant 0 : i32
    return %arg0, %arg1 : i32, i32
  }
  func.func @transform_4(%arg0: i32, %arg1: i32, %arg2: i32) -> (i32, i32) {
    %c0_i32 = arith.constant 0 : i32
    return %arg0, %arg1 : i32, i32
  }
}

module attributes {stable_mosaic.version = 11 : i64} {
  func.func @_conv_matmul_kernel(%arg0: i32, %arg1: i32, %arg2: i32, %arg3: memref<32x640xbf16, #tpu.memory_space<vmem>>, %arg4: memref<640x128xbf16, #tpu.memory_space<vmem>>, %arg5: memref<1x128xf32, #tpu.memory_space<vmem>>, %arg6: memref<32x128xbf16, #tpu.memory_space<vmem>>, %arg7: memref<32x128xf32, #tpu.memory_space<vmem>>) attributes {dimension_semantics = [#tpu.dimension_semantics<parallel>, #tpu.dimension_semantics<parallel>, #tpu.dimension_semantics<arbitrary>], iteration_bounds = array<i64: 1, 1, 1>, scalar_prefetch = 0 : i64, scratch_operands = 1 : i64, tpu.core_type = #tpu.core_type<tc>, window_params = [{transform_indices = @transform_0, window_bounds = array<i64: 32, 640>}, {transform_indices = @transform_1, window_bounds = array<i64: 640, 128>}, {transform_indices = @transform_2, window_bounds = array<i64: 1, 128>}, {transform_indices = @transform_3, window_bounds = array<i64: 32, 128>}]} {
    %c0_i32 = arith.constant 0 : i32
    %0 = arith.cmpi eq, %arg2, %c0_i32 : i32
    %1 = arith.extui %0 : i1 to i32
    %c0_i32_0 = arith.constant 0 : i32
    %2 = arith.cmpi ne, %1, %c0_i32_0 : i32
    scf.if %2 {
      %cst_10 = arith.constant 0.000000e+00 : f32
      %12 = vector.broadcast %cst_10 : f32 to vector<32x128xf32>
      %c0_11 = arith.constant 0 : index
      %c0_12 = arith.constant 0 : index
      %13 = vector.load %arg7[%c0_11, %c0_12] : memref<32x128xf32, #tpu.memory_space<vmem>>, vector<32x128xf32>
      tpu.vector_store %arg7[%c0_11, %c0_12], %12 {strides = array<i32>} : memref<32x128xf32, #tpu.memory_space<vmem>>, vector<32x128xf32>,
    } else {
    }
    %c0 = arith.constant 0 : index
    %c0_1 = arith.constant 0 : index
    %3 = vector.load %arg7[%c0, %c0_1] : memref<32x128xf32, #tpu.memory_space<vmem>>, vector<32x128xf32>
    %c0_2 = arith.constant 0 : index
    %c0_3 = arith.constant 0 : index
    %4 = vector.load %arg3[%c0_2, %c0_3] : memref<32x640xbf16, #tpu.memory_space<vmem>>, vector<32x640xbf16>
    %c0_4 = arith.constant 0 : index
    %c0_5 = arith.constant 0 : index
    %5 = vector.load %arg4[%c0_4, %c0_5] : memref<640x128xbf16, #tpu.memory_space<vmem>>, vector<640x128xbf16>
    %cst = arith.constant dense<0.000000e+00> : vector<32x128xf32>
    %6 = tpu.matmul %4, %5, %cst {dimension_numbers = #tpu.dot_dimension_numbers<[1], [0], [0], [1], [0, 0, 1, 1], [], []>} : vector<32x640xbf16>, vector<640x128xbf16>, vector<32x128xf32> -> vector<32x128xf32>
    %7 = arith.addf %3, %6 : vector<32x128xf32>
    %c0_6 = arith.constant 0 : index
    %c0_7 = arith.constant 0 : index
    %8 = vector.load %arg7[%c0_6, %c0_7] : memref<32x128xf32, #tpu.memory_space<vmem>>, vector<32x128xf32>
    tpu.vector_store %arg7[%c0_6, %c0_7], %7 {strides = array<i32>} : memref<32x128xf32, #tpu.memory_space<vmem>>, vector<32x128xf32>,
    %c0_i32_8 = arith.constant 0 : i32
    %9 = arith.cmpi eq, %arg2, %c0_i32_8 : i32
    %10 = arith.extui %9 : i1 to i32
    %c0_i32_9 = arith.constant 0 : i32
    %11 = arith.cmpi ne, %10, %c0_i32_9 : i32
    scf.if %11 {
      %c0_10 = arith.constant 0 : index
      %c0_11 = arith.constant 0 : index
      %12 = vector.load %arg7[%c0_10, %c0_11] : memref<32x128xf32, #tpu.memory_space<vmem>>, vector<32x128xf32>
      %c0_12 = arith.constant 0 : index
      %c0_13 = arith.constant 0 : index
      %13 = vector.load %arg5[%c0_12, %c0_13] : memref<1x128xf32, #tpu.memory_space<vmem>>, vector<1x128xf32>
      %14 = vector.broadcast %13 : vector<1x128xf32> to vector<32x128xf32>
      %15 = arith.addf %12, %14 : vector<32x128xf32>
      %cst_14 = arith.constant 0.000000e+00 : f32
      %16 = vector.broadcast %cst_14 : f32 to vector<32x128xf32>
      %17 = arith.maximumf %15, %16 : vector<32x128xf32>
      %18 = arith.truncf %17 : vector<32x128xf32> to vector<32x128xbf16>
      %c0_15 = arith.constant 0 : index
      %c0_16 = arith.constant 0 : index
      %19 = vector.load %arg6[%c0_15, %c0_16] : memref<32x128xbf16, #tpu.memory_space<vmem>>, vector<32x128xbf16>
      tpu.vector_store %arg6[%c0_15, %c0_16], %18 {strides = array<i32>} : memref<32x128xbf16, #tpu.memory_space<vmem>>, vector<32x128xbf16>,
    } else {
    }
    return
  }
  func.func @transform_0(%arg0: i32, %arg1: i32, %arg2: i32) -> (i32, i32) {
    %c0_i32 = arith.constant 0 : i32
    return %arg0, %arg2 : i32, i32
  }
  func.func @transform_1(%arg0: i32, %arg1: i32, %arg2: i32) -> (i32, i32) {
    %c0_i32 = arith.constant 0 : i32
    return %arg2, %arg1 : i32, i32
  }
  func.func @transform_2(%arg0: i32, %arg1: i32, %arg2: i32) -> (i32, i32) {
    %c0_i32 = arith.constant 0 : i32
    %c0_i32_0 = arith.constant 0 : i32
    return %c0_i32, %arg1 : i32, i32
  }
  func.func @transform_3(%arg0: i32, %arg1: i32, %arg2: i32) -> (i32, i32) {
    %c0_i32 = arith.constant 0 : i32
    return %arg0, %arg1 : i32, i32
  }
}

module attributes {stable_mosaic.version = 11 : i64} {
  func.func @_conv_matmul_kernel(%arg0: i32, %arg1: i32, %arg2: i32, %arg3: memref<32x128xbf16, #tpu.memory_space<vmem>>, %arg4: memref<128x128xbf16, #tpu.memory_space<vmem>>, %arg5: memref<1x128xf32, #tpu.memory_space<vmem>>, %arg6: memref<32x128xbf16, #tpu.memory_space<vmem>>, %arg7: memref<32x128xf32, #tpu.memory_space<vmem>>) attributes {dimension_semantics = [#tpu.dimension_semantics<parallel>, #tpu.dimension_semantics<parallel>, #tpu.dimension_semantics<arbitrary>], iteration_bounds = array<i64: 1, 1, 1>, scalar_prefetch = 0 : i64, scratch_operands = 1 : i64, tpu.core_type = #tpu.core_type<tc>, window_params = [{transform_indices = @transform_0, window_bounds = array<i64: 32, 128>}, {transform_indices = @transform_1, window_bounds = array<i64: 128, 128>}, {transform_indices = @transform_2, window_bounds = array<i64: 1, 128>}, {transform_indices = @transform_3, window_bounds = array<i64: 32, 128>}]} {
    %c0_i32 = arith.constant 0 : i32
    %0 = arith.cmpi eq, %arg2, %c0_i32 : i32
    %1 = arith.extui %0 : i1 to i32
    %c0_i32_0 = arith.constant 0 : i32
    %2 = arith.cmpi ne, %1, %c0_i32_0 : i32
    scf.if %2 {
      %cst_10 = arith.constant 0.000000e+00 : f32
      %12 = vector.broadcast %cst_10 : f32 to vector<32x128xf32>
      %c0_11 = arith.constant 0 : index
      %c0_12 = arith.constant 0 : index
      %13 = vector.load %arg7[%c0_11, %c0_12] : memref<32x128xf32, #tpu.memory_space<vmem>>, vector<32x128xf32>
      tpu.vector_store %arg7[%c0_11, %c0_12], %12 {strides = array<i32>} : memref<32x128xf32, #tpu.memory_space<vmem>>, vector<32x128xf32>,
    } else {
    }
    %c0 = arith.constant 0 : index
    %c0_1 = arith.constant 0 : index
    %3 = vector.load %arg7[%c0, %c0_1] : memref<32x128xf32, #tpu.memory_space<vmem>>, vector<32x128xf32>
    %c0_2 = arith.constant 0 : index
    %c0_3 = arith.constant 0 : index
    %4 = vector.load %arg3[%c0_2, %c0_3] : memref<32x128xbf16, #tpu.memory_space<vmem>>, vector<32x128xbf16>
    %c0_4 = arith.constant 0 : index
    %c0_5 = arith.constant 0 : index
    %5 = vector.load %arg4[%c0_4, %c0_5] : memref<128x128xbf16, #tpu.memory_space<vmem>>, vector<128x128xbf16>
    %cst = arith.constant dense<0.000000e+00> : vector<32x128xf32>
    %6 = tpu.matmul %4, %5, %cst {dimension_numbers = #tpu.dot_dimension_numbers<[1], [0], [0], [1], [0, 0, 1, 1], [], []>} : vector<32x128xbf16>, vector<128x128xbf16>, vector<32x128xf32> -> vector<32x128xf32>
    %7 = arith.addf %3, %6 : vector<32x128xf32>
    %c0_6 = arith.constant 0 : index
    %c0_7 = arith.constant 0 : index
    %8 = vector.load %arg7[%c0_6, %c0_7] : memref<32x128xf32, #tpu.memory_space<vmem>>, vector<32x128xf32>
    tpu.vector_store %arg7[%c0_6, %c0_7], %7 {strides = array<i32>} : memref<32x128xf32, #tpu.memory_space<vmem>>, vector<32x128xf32>,
    %c0_i32_8 = arith.constant 0 : i32
    %9 = arith.cmpi eq, %arg2, %c0_i32_8 : i32
    %10 = arith.extui %9 : i1 to i32
    %c0_i32_9 = arith.constant 0 : i32
    %11 = arith.cmpi ne, %10, %c0_i32_9 : i32
    scf.if %11 {
      %c0_10 = arith.constant 0 : index
      %c0_11 = arith.constant 0 : index
      %12 = vector.load %arg7[%c0_10, %c0_11] : memref<32x128xf32, #tpu.memory_space<vmem>>, vector<32x128xf32>
      %c0_12 = arith.constant 0 : index
      %c0_13 = arith.constant 0 : index
      %13 = vector.load %arg5[%c0_12, %c0_13] : memref<1x128xf32, #tpu.memory_space<vmem>>, vector<1x128xf32>
      %14 = vector.broadcast %13 : vector<1x128xf32> to vector<32x128xf32>
      %15 = arith.addf %12, %14 : vector<32x128xf32>
      %16 = arith.truncf %15 : vector<32x128xf32> to vector<32x128xbf16>
      %c0_14 = arith.constant 0 : index
      %c0_15 = arith.constant 0 : index
      %17 = vector.load %arg6[%c0_14, %c0_15] : memref<32x128xbf16, #tpu.memory_space<vmem>>, vector<32x128xbf16>
      tpu.vector_store %arg6[%c0_14, %c0_15], %16 {strides = array<i32>} : memref<32x128xbf16, #tpu.memory_space<vmem>>, vector<32x128xbf16>,
    } else {
    }
    return
  }
  func.func @transform_0(%arg0: i32, %arg1: i32, %arg2: i32) -> (i32, i32) {
    %c0_i32 = arith.constant 0 : i32
    return %arg0, %arg2 : i32, i32
  }
  func.func @transform_1(%arg0: i32, %arg1: i32, %arg2: i32) -> (i32, i32) {
    %c0_i32 = arith.constant 0 : i32
    return %arg2, %arg1 : i32, i32
  }
  func.func @transform_2(%arg0: i32, %arg1: i32, %arg2: i32) -> (i32, i32) {
    %c0_i32 = arith.constant 0 : i32
    %c0_i32_0 = arith.constant 0 : i32
    return %c0_i32, %arg1 : i32, i32
  }
  func.func @transform_3(%arg0: i32, %arg1: i32, %arg2: i32) -> (i32, i32) {
    %c0_i32 = arith.constant 0 : i32
    return %arg0, %arg1 : i32, i32
  }
}

module attributes {stable_mosaic.version = 11 : i64} {
  func.func @_conv_matmul_kernel(%arg0: i32, %arg1: i32, %arg2: i32, %arg3: memref<32x1152xbf16, #tpu.memory_space<vmem>>, %arg4: memref<1152x128xbf16, #tpu.memory_space<vmem>>, %arg5: memref<1x128xf32, #tpu.memory_space<vmem>>, %arg6: memref<32x128xbf16, #tpu.memory_space<vmem>>, %arg7: memref<32x128xbf16, #tpu.memory_space<vmem>>, %arg8: memref<32x128xf32, #tpu.memory_space<vmem>>) attributes {dimension_semantics = [#tpu.dimension_semantics<parallel>, #tpu.dimension_semantics<parallel>, #tpu.dimension_semantics<arbitrary>], iteration_bounds = array<i64: 1, 1, 1>, scalar_prefetch = 0 : i64, scratch_operands = 1 : i64, tpu.core_type = #tpu.core_type<tc>, window_params = [{transform_indices = @transform_0, window_bounds = array<i64: 32, 1152>}, {transform_indices = @transform_1, window_bounds = array<i64: 1152, 128>}, {transform_indices = @transform_2, window_bounds = array<i64: 1, 128>}, {transform_indices = @transform_3, window_bounds = array<i64: 32, 128>}, {transform_indices = @transform_4, window_bounds = array<i64: 32, 128>}]} {
    %c0_i32 = arith.constant 0 : i32
    %0 = arith.cmpi eq, %arg2, %c0_i32 : i32
    %1 = arith.extui %0 : i1 to i32
    %c0_i32_0 = arith.constant 0 : i32
    %2 = arith.cmpi ne, %1, %c0_i32_0 : i32
    scf.if %2 {
      %cst_10 = arith.constant 0.000000e+00 : f32
      %12 = vector.broadcast %cst_10 : f32 to vector<32x128xf32>
      %c0_11 = arith.constant 0 : index
      %c0_12 = arith.constant 0 : index
      %13 = vector.load %arg8[%c0_11, %c0_12] : memref<32x128xf32, #tpu.memory_space<vmem>>, vector<32x128xf32>
      tpu.vector_store %arg8[%c0_11, %c0_12], %12 {strides = array<i32>} : memref<32x128xf32, #tpu.memory_space<vmem>>, vector<32x128xf32>,
    } else {
    }
    %c0 = arith.constant 0 : index
    %c0_1 = arith.constant 0 : index
    %3 = vector.load %arg8[%c0, %c0_1] : memref<32x128xf32, #tpu.memory_space<vmem>>, vector<32x128xf32>
    %c0_2 = arith.constant 0 : index
    %c0_3 = arith.constant 0 : index
    %4 = vector.load %arg3[%c0_2, %c0_3] : memref<32x1152xbf16, #tpu.memory_space<vmem>>, vector<32x1152xbf16>
    %c0_4 = arith.constant 0 : index
    %c0_5 = arith.constant 0 : index
    %5 = vector.load %arg4[%c0_4, %c0_5] : memref<1152x128xbf16, #tpu.memory_space<vmem>>, vector<1152x128xbf16>
    %cst = arith.constant dense<0.000000e+00> : vector<32x128xf32>
    %6 = tpu.matmul %4, %5, %cst {dimension_numbers = #tpu.dot_dimension_numbers<[1], [0], [0], [1], [0, 0, 1, 1], [], []>} : vector<32x1152xbf16>, vector<1152x128xbf16>, vector<32x128xf32> -> vector<32x128xf32>
    %7 = arith.addf %3, %6 : vector<32x128xf32>
    %c0_6 = arith.constant 0 : index
    %c0_7 = arith.constant 0 : index
    %8 = vector.load %arg8[%c0_6, %c0_7] : memref<32x128xf32, #tpu.memory_space<vmem>>, vector<32x128xf32>
    tpu.vector_store %arg8[%c0_6, %c0_7], %7 {strides = array<i32>} : memref<32x128xf32, #tpu.memory_space<vmem>>, vector<32x128xf32>,
    %c0_i32_8 = arith.constant 0 : i32
    %9 = arith.cmpi eq, %arg2, %c0_i32_8 : i32
    %10 = arith.extui %9 : i1 to i32
    %c0_i32_9 = arith.constant 0 : i32
    %11 = arith.cmpi ne, %10, %c0_i32_9 : i32
    scf.if %11 {
      %c0_10 = arith.constant 0 : index
      %c0_11 = arith.constant 0 : index
      %12 = vector.load %arg8[%c0_10, %c0_11] : memref<32x128xf32, #tpu.memory_space<vmem>>, vector<32x128xf32>
      %c0_12 = arith.constant 0 : index
      %c0_13 = arith.constant 0 : index
      %13 = vector.load %arg5[%c0_12, %c0_13] : memref<1x128xf32, #tpu.memory_space<vmem>>, vector<1x128xf32>
      %14 = vector.broadcast %13 : vector<1x128xf32> to vector<32x128xf32>
      %15 = arith.addf %12, %14 : vector<32x128xf32>
      %c0_14 = arith.constant 0 : index
      %c0_15 = arith.constant 0 : index
      %16 = vector.load %arg6[%c0_14, %c0_15] : memref<32x128xbf16, #tpu.memory_space<vmem>>, vector<32x128xbf16>
      %17 = arith.extf %16 : vector<32x128xbf16> to vector<32x128xf32>
      %18 = arith.addf %15, %17 : vector<32x128xf32>
      %cst_16 = arith.constant 0.000000e+00 : f32
      %19 = vector.broadcast %cst_16 : f32 to vector<32x128xf32>
      %20 = arith.maximumf %18, %19 : vector<32x128xf32>
      %21 = arith.truncf %20 : vector<32x128xf32> to vector<32x128xbf16>
      %c0_17 = arith.constant 0 : index
      %c0_18 = arith.constant 0 : index
      %22 = vector.load %arg7[%c0_17, %c0_18] : memref<32x128xbf16, #tpu.memory_space<vmem>>, vector<32x128xbf16>
      tpu.vector_store %arg7[%c0_17, %c0_18], %21 {strides = array<i32>} : memref<32x128xbf16, #tpu.memory_space<vmem>>, vector<32x128xbf16>,
    } else {
    }
    return
  }
  func.func @transform_0(%arg0: i32, %arg1: i32, %arg2: i32) -> (i32, i32) {
    %c0_i32 = arith.constant 0 : i32
    return %arg0, %arg2 : i32, i32
  }
  func.func @transform_1(%arg0: i32, %arg1: i32, %arg2: i32) -> (i32, i32) {
    %c0_i32 = arith.constant 0 : i32
    return %arg2, %arg1 : i32, i32
  }
  func.func @transform_2(%arg0: i32, %arg1: i32, %arg2: i32) -> (i32, i32) {
    %c0_i32 = arith.constant 0 : i32
    %c0_i32_0 = arith.constant 0 : i32
    return %c0_i32, %arg1 : i32, i32
  }
  func.func @transform_3(%arg0: i32, %arg1: i32, %arg2: i32) -> (i32, i32) {
    %c0_i32 = arith.constant 0 : i32
    return %arg0, %arg1 : i32, i32
  }
  func.func @transform_4(%arg0: i32, %arg1: i32, %arg2: i32) -> (i32, i32) {
    %c0_i32 = arith.constant 0 : i32
    return %arg0, %arg1 : i32, i32
  }
}

module attributes {stable_mosaic.version = 11 : i64} {
  func.func @_conv_matmul_kernel(%arg0: i32, %arg1: i32, %arg2: i32, %arg3: memref<8x1152xbf16, #tpu.memory_space<vmem>>, %arg4: memref<1152x256xbf16, #tpu.memory_space<vmem>>, %arg5: memref<1x256xf32, #tpu.memory_space<vmem>>, %arg6: memref<8x256xbf16, #tpu.memory_space<vmem>>, %arg7: memref<8x256xbf16, #tpu.memory_space<vmem>>, %arg8: memref<8x256xf32, #tpu.memory_space<vmem>>) attributes {dimension_semantics = [#tpu.dimension_semantics<parallel>, #tpu.dimension_semantics<parallel>, #tpu.dimension_semantics<arbitrary>], iteration_bounds = array<i64: 1, 1, 2>, scalar_prefetch = 0 : i64, scratch_operands = 1 : i64, tpu.core_type = #tpu.core_type<tc>, window_params = [{transform_indices = @transform_0, window_bounds = array<i64: 8, 1152>}, {transform_indices = @transform_1, window_bounds = array<i64: 1152, 256>}, {transform_indices = @transform_2, window_bounds = array<i64: 1, 256>}, {transform_indices = @transform_3, window_bounds = array<i64: 8, 256>}, {transform_indices = @transform_4, window_bounds = array<i64: 8, 256>}]} {
    %c0_i32 = arith.constant 0 : i32
    %0 = arith.cmpi eq, %arg2, %c0_i32 : i32
    %1 = arith.extui %0 : i1 to i32
    %c0_i32_0 = arith.constant 0 : i32
    %2 = arith.cmpi ne, %1, %c0_i32_0 : i32
    scf.if %2 {
      %cst_9 = arith.constant 0.000000e+00 : f32
      %12 = vector.broadcast %cst_9 : f32 to vector<8x256xf32>
      %c0_10 = arith.constant 0 : index
      %c0_11 = arith.constant 0 : index
      %13 = vector.load %arg8[%c0_10, %c0_11] : memref<8x256xf32, #tpu.memory_space<vmem>>, vector<8x256xf32>
      tpu.vector_store %arg8[%c0_10, %c0_11], %12 {strides = array<i32>} : memref<8x256xf32, #tpu.memory_space<vmem>>, vector<8x256xf32>,
    } else {
    }
    %c0 = arith.constant 0 : index
    %c0_1 = arith.constant 0 : index
    %3 = vector.load %arg8[%c0, %c0_1] : memref<8x256xf32, #tpu.memory_space<vmem>>, vector<8x256xf32>
    %c0_2 = arith.constant 0 : index
    %c0_3 = arith.constant 0 : index
    %4 = vector.load %arg3[%c0_2, %c0_3] : memref<8x1152xbf16, #tpu.memory_space<vmem>>, vector<8x1152xbf16>
    %c0_4 = arith.constant 0 : index
    %c0_5 = arith.constant 0 : index
    %5 = vector.load %arg4[%c0_4, %c0_5] : memref<1152x256xbf16, #tpu.memory_space<vmem>>, vector<1152x256xbf16>
    %cst = arith.constant dense<0.000000e+00> : vector<8x256xf32>
    %6 = tpu.matmul %4, %5, %cst {dimension_numbers = #tpu.dot_dimension_numbers<[1], [0], [0], [1], [0, 0, 1, 1], [], []>} : vector<8x1152xbf16>, vector<1152x256xbf16>, vector<8x256xf32> -> vector<8x256xf32>
    %7 = arith.addf %3, %6 : vector<8x256xf32>
    %c0_6 = arith.constant 0 : index
    %c0_7 = arith.constant 0 : index
    %8 = vector.load %arg8[%c0_6, %c0_7] : memref<8x256xf32, #tpu.memory_space<vmem>>, vector<8x256xf32>
    tpu.vector_store %arg8[%c0_6, %c0_7], %7 {strides = array<i32>} : memref<8x256xf32, #tpu.memory_space<vmem>>, vector<8x256xf32>,
    %c1_i32 = arith.constant 1 : i32
    %9 = arith.cmpi eq, %arg2, %c1_i32 : i32
    %10 = arith.extui %9 : i1 to i32
    %c0_i32_8 = arith.constant 0 : i32
    %11 = arith.cmpi ne, %10, %c0_i32_8 : i32
    scf.if %11 {
      %c0_9 = arith.constant 0 : index
      %c0_10 = arith.constant 0 : index
      %12 = vector.load %arg8[%c0_9, %c0_10] : memref<8x256xf32, #tpu.memory_space<vmem>>, vector<8x256xf32>
      %c0_11 = arith.constant 0 : index
      %c0_12 = arith.constant 0 : index
      %13 = vector.load %arg5[%c0_11, %c0_12] : memref<1x256xf32, #tpu.memory_space<vmem>>, vector<1x256xf32>
      %14 = vector.broadcast %13 : vector<1x256xf32> to vector<8x256xf32>
      %15 = arith.addf %12, %14 : vector<8x256xf32>
      %c0_13 = arith.constant 0 : index
      %c0_14 = arith.constant 0 : index
      %16 = vector.load %arg6[%c0_13, %c0_14] : memref<8x256xbf16, #tpu.memory_space<vmem>>, vector<8x256xbf16>
      %17 = arith.extf %16 : vector<8x256xbf16> to vector<8x256xf32>
      %18 = arith.addf %15, %17 : vector<8x256xf32>
      %cst_15 = arith.constant 0.000000e+00 : f32
      %19 = vector.broadcast %cst_15 : f32 to vector<8x256xf32>
      %20 = arith.maximumf %18, %19 : vector<8x256xf32>
      %21 = arith.truncf %20 : vector<8x256xf32> to vector<8x256xbf16>
      %c0_16 = arith.constant 0 : index
      %c0_17 = arith.constant 0 : index
      %22 = vector.load %arg7[%c0_16, %c0_17] : memref<8x256xbf16, #tpu.memory_space<vmem>>, vector<8x256xbf16>
      tpu.vector_store %arg7[%c0_16, %c0_17], %21 {strides = array<i32>} : memref<8x256xbf16, #tpu.memory_space<vmem>>, vector<8x256xbf16>,
    } else {
    }
    return
  }
  func.func @transform_0(%arg0: i32, %arg1: i32, %arg2: i32) -> (i32, i32) {
    %c0_i32 = arith.constant 0 : i32
    return %arg0, %arg2 : i32, i32
  }
  func.func @transform_1(%arg0: i32, %arg1: i32, %arg2: i32) -> (i32, i32) {
    %c0_i32 = arith.constant 0 : i32
    return %arg2, %arg1 : i32, i32
  }
  func.func @transform_2(%arg0: i32, %arg1: i32, %arg2: i32) -> (i32, i32) {
    %c0_i32 = arith.constant 0 : i32
    %c0_i32_0 = arith.constant 0 : i32
    return %c0_i32, %arg1 : i32, i32
  }
  func.func @transform_3(%arg0: i32, %arg1: i32, %arg2: i32) -> (i32, i32) {
    %c0_i32 = arith.constant 0 : i32
    return %arg0, %arg1 : i32, i32
  }
  func.func @transform_4(%arg0: i32, %arg1: i32, %arg2: i32) -> (i32, i32) {
    %c0_i32 = arith.constant 0 : i32
    return %arg0, %arg1 : i32, i32
  }
}

module attributes {stable_mosaic.version = 11 : i64} {
  func.func @_conv_matmul_kernel(%arg0: i32, %arg1: i32, %arg2: i32, %arg3: memref<8x1152xbf16, #tpu.memory_space<vmem>>, %arg4: memref<1152x256xbf16, #tpu.memory_space<vmem>>, %arg5: memref<1x256xf32, #tpu.memory_space<vmem>>, %arg6: memref<8x256xbf16, #tpu.memory_space<vmem>>, %arg7: memref<8x256xf32, #tpu.memory_space<vmem>>) attributes {dimension_semantics = [#tpu.dimension_semantics<parallel>, #tpu.dimension_semantics<parallel>, #tpu.dimension_semantics<arbitrary>], iteration_bounds = array<i64: 1, 1, 1>, scalar_prefetch = 0 : i64, scratch_operands = 1 : i64, tpu.core_type = #tpu.core_type<tc>, window_params = [{transform_indices = @transform_0, window_bounds = array<i64: 8, 1152>}, {transform_indices = @transform_1, window_bounds = array<i64: 1152, 256>}, {transform_indices = @transform_2, window_bounds = array<i64: 1, 256>}, {transform_indices = @transform_3, window_bounds = array<i64: 8, 256>}]} {
    %c0_i32 = arith.constant 0 : i32
    %0 = arith.cmpi eq, %arg2, %c0_i32 : i32
    %1 = arith.extui %0 : i1 to i32
    %c0_i32_0 = arith.constant 0 : i32
    %2 = arith.cmpi ne, %1, %c0_i32_0 : i32
    scf.if %2 {
      %cst_10 = arith.constant 0.000000e+00 : f32
      %12 = vector.broadcast %cst_10 : f32 to vector<8x256xf32>
      %c0_11 = arith.constant 0 : index
      %c0_12 = arith.constant 0 : index
      %13 = vector.load %arg7[%c0_11, %c0_12] : memref<8x256xf32, #tpu.memory_space<vmem>>, vector<8x256xf32>
      tpu.vector_store %arg7[%c0_11, %c0_12], %12 {strides = array<i32>} : memref<8x256xf32, #tpu.memory_space<vmem>>, vector<8x256xf32>,
    } else {
    }
    %c0 = arith.constant 0 : index
    %c0_1 = arith.constant 0 : index
    %3 = vector.load %arg7[%c0, %c0_1] : memref<8x256xf32, #tpu.memory_space<vmem>>, vector<8x256xf32>
    %c0_2 = arith.constant 0 : index
    %c0_3 = arith.constant 0 : index
    %4 = vector.load %arg3[%c0_2, %c0_3] : memref<8x1152xbf16, #tpu.memory_space<vmem>>, vector<8x1152xbf16>
    %c0_4 = arith.constant 0 : index
    %c0_5 = arith.constant 0 : index
    %5 = vector.load %arg4[%c0_4, %c0_5] : memref<1152x256xbf16, #tpu.memory_space<vmem>>, vector<1152x256xbf16>
    %cst = arith.constant dense<0.000000e+00> : vector<8x256xf32>
    %6 = tpu.matmul %4, %5, %cst {dimension_numbers = #tpu.dot_dimension_numbers<[1], [0], [0], [1], [0, 0, 1, 1], [], []>} : vector<8x1152xbf16>, vector<1152x256xbf16>, vector<8x256xf32> -> vector<8x256xf32>
    %7 = arith.addf %3, %6 : vector<8x256xf32>
    %c0_6 = arith.constant 0 : index
    %c0_7 = arith.constant 0 : index
    %8 = vector.load %arg7[%c0_6, %c0_7] : memref<8x256xf32, #tpu.memory_space<vmem>>, vector<8x256xf32>
    tpu.vector_store %arg7[%c0_6, %c0_7], %7 {strides = array<i32>} : memref<8x256xf32, #tpu.memory_space<vmem>>, vector<8x256xf32>,
    %c0_i32_8 = arith.constant 0 : i32
    %9 = arith.cmpi eq, %arg2, %c0_i32_8 : i32
    %10 = arith.extui %9 : i1 to i32
    %c0_i32_9 = arith.constant 0 : i32
    %11 = arith.cmpi ne, %10, %c0_i32_9 : i32
    scf.if %11 {
      %c0_10 = arith.constant 0 : index
      %c0_11 = arith.constant 0 : index
      %12 = vector.load %arg7[%c0_10, %c0_11] : memref<8x256xf32, #tpu.memory_space<vmem>>, vector<8x256xf32>
      %c0_12 = arith.constant 0 : index
      %c0_13 = arith.constant 0 : index
      %13 = vector.load %arg5[%c0_12, %c0_13] : memref<1x256xf32, #tpu.memory_space<vmem>>, vector<1x256xf32>
      %14 = vector.broadcast %13 : vector<1x256xf32> to vector<8x256xf32>
      %15 = arith.addf %12, %14 : vector<8x256xf32>
      %cst_14 = arith.constant 0.000000e+00 : f32
      %16 = vector.broadcast %cst_14 : f32 to vector<8x256xf32>
      %17 = arith.maximumf %15, %16 : vector<8x256xf32>
      %18 = arith.truncf %17 : vector<8x256xf32> to vector<8x256xbf16>
      %c0_15 = arith.constant 0 : index
      %c0_16 = arith.constant 0 : index
      %19 = vector.load %arg6[%c0_15, %c0_16] : memref<8x256xbf16, #tpu.memory_space<vmem>>, vector<8x256xbf16>
      tpu.vector_store %arg6[%c0_15, %c0_16], %18 {strides = array<i32>} : memref<8x256xbf16, #tpu.memory_space<vmem>>, vector<8x256xbf16>,
    } else {
    }
    return
  }
  func.func @transform_0(%arg0: i32, %arg1: i32, %arg2: i32) -> (i32, i32) {
    %c0_i32 = arith.constant 0 : i32
    return %arg0, %arg2 : i32, i32
  }
  func.func @transform_1(%arg0: i32, %arg1: i32, %arg2: i32) -> (i32, i32) {
    %c0_i32 = arith.constant 0 : i32
    return %arg2, %arg1 : i32, i32
  }
  func.func @transform_2(%arg0: i32, %arg1: i32, %arg2: i32) -> (i32, i32) {
    %c0_i32 = arith.constant 0 : i32
    %c0_i32_0 = arith.constant 0 : i32
    return %c0_i32, %arg1 : i32, i32
  }
  func.func @transform_3(%arg0: i32, %arg1: i32, %arg2: i32) -> (i32, i32) {
    %c0_i32 = arith.constant 0 : i32
    return %arg0, %arg1 : i32, i32
  }
}

module attributes {stable_mosaic.version = 11 : i64} {
  func.func @_conv_matmul_kernel(%arg0: i32, %arg1: i32, %arg2: i32, %arg3: memref<8x128xbf16, #tpu.memory_space<vmem>>, %arg4: memref<128x256xbf16, #tpu.memory_space<vmem>>, %arg5: memref<1x256xf32, #tpu.memory_space<vmem>>, %arg6: memref<8x256xbf16, #tpu.memory_space<vmem>>, %arg7: memref<8x256xf32, #tpu.memory_space<vmem>>) attributes {dimension_semantics = [#tpu.dimension_semantics<parallel>, #tpu.dimension_semantics<parallel>, #tpu.dimension_semantics<arbitrary>], iteration_bounds = array<i64: 1, 1, 1>, scalar_prefetch = 0 : i64, scratch_operands = 1 : i64, tpu.core_type = #tpu.core_type<tc>, window_params = [{transform_indices = @transform_0, window_bounds = array<i64: 8, 128>}, {transform_indices = @transform_1, window_bounds = array<i64: 128, 256>}, {transform_indices = @transform_2, window_bounds = array<i64: 1, 256>}, {transform_indices = @transform_3, window_bounds = array<i64: 8, 256>}]} {
    %c0_i32 = arith.constant 0 : i32
    %0 = arith.cmpi eq, %arg2, %c0_i32 : i32
    %1 = arith.extui %0 : i1 to i32
    %c0_i32_0 = arith.constant 0 : i32
    %2 = arith.cmpi ne, %1, %c0_i32_0 : i32
    scf.if %2 {
      %cst_10 = arith.constant 0.000000e+00 : f32
      %12 = vector.broadcast %cst_10 : f32 to vector<8x256xf32>
      %c0_11 = arith.constant 0 : index
      %c0_12 = arith.constant 0 : index
      %13 = vector.load %arg7[%c0_11, %c0_12] : memref<8x256xf32, #tpu.memory_space<vmem>>, vector<8x256xf32>
      tpu.vector_store %arg7[%c0_11, %c0_12], %12 {strides = array<i32>} : memref<8x256xf32, #tpu.memory_space<vmem>>, vector<8x256xf32>,
    } else {
    }
    %c0 = arith.constant 0 : index
    %c0_1 = arith.constant 0 : index
    %3 = vector.load %arg7[%c0, %c0_1] : memref<8x256xf32, #tpu.memory_space<vmem>>, vector<8x256xf32>
    %c0_2 = arith.constant 0 : index
    %c0_3 = arith.constant 0 : index
    %4 = vector.load %arg3[%c0_2, %c0_3] : memref<8x128xbf16, #tpu.memory_space<vmem>>, vector<8x128xbf16>
    %c0_4 = arith.constant 0 : index
    %c0_5 = arith.constant 0 : index
    %5 = vector.load %arg4[%c0_4, %c0_5] : memref<128x256xbf16, #tpu.memory_space<vmem>>, vector<128x256xbf16>
    %cst = arith.constant dense<0.000000e+00> : vector<8x256xf32>
    %6 = tpu.matmul %4, %5, %cst {dimension_numbers = #tpu.dot_dimension_numbers<[1], [0], [0], [1], [0, 0, 1, 1], [], []>} : vector<8x128xbf16>, vector<128x256xbf16>, vector<8x256xf32> -> vector<8x256xf32>
    %7 = arith.addf %3, %6 : vector<8x256xf32>
    %c0_6 = arith.constant 0 : index
    %c0_7 = arith.constant 0 : index
    %8 = vector.load %arg7[%c0_6, %c0_7] : memref<8x256xf32, #tpu.memory_space<vmem>>, vector<8x256xf32>
    tpu.vector_store %arg7[%c0_6, %c0_7], %7 {strides = array<i32>} : memref<8x256xf32, #tpu.memory_space<vmem>>, vector<8x256xf32>,
    %c0_i32_8 = arith.constant 0 : i32
    %9 = arith.cmpi eq, %arg2, %c0_i32_8 : i32
    %10 = arith.extui %9 : i1 to i32
    %c0_i32_9 = arith.constant 0 : i32
    %11 = arith.cmpi ne, %10, %c0_i32_9 : i32
    scf.if %11 {
      %c0_10 = arith.constant 0 : index
      %c0_11 = arith.constant 0 : index
      %12 = vector.load %arg7[%c0_10, %c0_11] : memref<8x256xf32, #tpu.memory_space<vmem>>, vector<8x256xf32>
      %c0_12 = arith.constant 0 : index
      %c0_13 = arith.constant 0 : index
      %13 = vector.load %arg5[%c0_12, %c0_13] : memref<1x256xf32, #tpu.memory_space<vmem>>, vector<1x256xf32>
      %14 = vector.broadcast %13 : vector<1x256xf32> to vector<8x256xf32>
      %15 = arith.addf %12, %14 : vector<8x256xf32>
      %16 = arith.truncf %15 : vector<8x256xf32> to vector<8x256xbf16>
      %c0_14 = arith.constant 0 : index
      %c0_15 = arith.constant 0 : index
      %17 = vector.load %arg6[%c0_14, %c0_15] : memref<8x256xbf16, #tpu.memory_space<vmem>>, vector<8x256xbf16>
      tpu.vector_store %arg6[%c0_14, %c0_15], %16 {strides = array<i32>} : memref<8x256xbf16, #tpu.memory_space<vmem>>, vector<8x256xbf16>,
    } else {
    }
    return
  }
  func.func @transform_0(%arg0: i32, %arg1: i32, %arg2: i32) -> (i32, i32) {
    %c0_i32 = arith.constant 0 : i32
    return %arg0, %arg2 : i32, i32
  }
  func.func @transform_1(%arg0: i32, %arg1: i32, %arg2: i32) -> (i32, i32) {
    %c0_i32 = arith.constant 0 : i32
    return %arg2, %arg1 : i32, i32
  }
  func.func @transform_2(%arg0: i32, %arg1: i32, %arg2: i32) -> (i32, i32) {
    %c0_i32 = arith.constant 0 : i32
    %c0_i32_0 = arith.constant 0 : i32
    return %c0_i32, %arg1 : i32, i32
  }
  func.func @transform_3(%arg0: i32, %arg1: i32, %arg2: i32) -> (i32, i32) {
    %c0_i32 = arith.constant 0 : i32
    return %arg0, %arg1 : i32, i32
  }
}

module attributes {stable_mosaic.version = 11 : i64} {
  func.func @_conv_matmul_kernel(%arg0: i32, %arg1: i32, %arg2: i32, %arg3: memref<8x1152xbf16, #tpu.memory_space<vmem>>, %arg4: memref<1152x256xbf16, #tpu.memory_space<vmem>>, %arg5: memref<1x256xf32, #tpu.memory_space<vmem>>, %arg6: memref<8x256xbf16, #tpu.memory_space<vmem>>, %arg7: memref<8x256xf32, #tpu.memory_space<vmem>>) attributes {dimension_semantics = [#tpu.dimension_semantics<parallel>, #tpu.dimension_semantics<parallel>, #tpu.dimension_semantics<arbitrary>], iteration_bounds = array<i64: 1, 2, 2>, scalar_prefetch = 0 : i64, scratch_operands = 1 : i64, tpu.core_type = #tpu.core_type<tc>, window_params = [{transform_indices = @transform_0, window_bounds = array<i64: 8, 1152>}, {transform_indices = @transform_1, window_bounds = array<i64: 1152, 256>}, {transform_indices = @transform_2, window_bounds = array<i64: 1, 256>}, {transform_indices = @transform_3, window_bounds = array<i64: 8, 256>}]} {
    %c0_i32 = arith.constant 0 : i32
    %0 = arith.cmpi eq, %arg2, %c0_i32 : i32
    %1 = arith.extui %0 : i1 to i32
    %c0_i32_0 = arith.constant 0 : i32
    %2 = arith.cmpi ne, %1, %c0_i32_0 : i32
    scf.if %2 {
      %cst_9 = arith.constant 0.000000e+00 : f32
      %12 = vector.broadcast %cst_9 : f32 to vector<8x256xf32>
      %c0_10 = arith.constant 0 : index
      %c0_11 = arith.constant 0 : index
      %13 = vector.load %arg7[%c0_10, %c0_11] : memref<8x256xf32, #tpu.memory_space<vmem>>, vector<8x256xf32>
      tpu.vector_store %arg7[%c0_10, %c0_11], %12 {strides = array<i32>} : memref<8x256xf32, #tpu.memory_space<vmem>>, vector<8x256xf32>,
    } else {
    }
    %c0 = arith.constant 0 : index
    %c0_1 = arith.constant 0 : index
    %3 = vector.load %arg7[%c0, %c0_1] : memref<8x256xf32, #tpu.memory_space<vmem>>, vector<8x256xf32>
    %c0_2 = arith.constant 0 : index
    %c0_3 = arith.constant 0 : index
    %4 = vector.load %arg3[%c0_2, %c0_3] : memref<8x1152xbf16, #tpu.memory_space<vmem>>, vector<8x1152xbf16>
    %c0_4 = arith.constant 0 : index
    %c0_5 = arith.constant 0 : index
    %5 = vector.load %arg4[%c0_4, %c0_5] : memref<1152x256xbf16, #tpu.memory_space<vmem>>, vector<1152x256xbf16>
    %cst = arith.constant dense<0.000000e+00> : vector<8x256xf32>
    %6 = tpu.matmul %4, %5, %cst {dimension_numbers = #tpu.dot_dimension_numbers<[1], [0], [0], [1], [0, 0, 1, 1], [], []>} : vector<8x1152xbf16>, vector<1152x256xbf16>, vector<8x256xf32> -> vector<8x256xf32>
    %7 = arith.addf %3, %6 : vector<8x256xf32>
    %c0_6 = arith.constant 0 : index
    %c0_7 = arith.constant 0 : index
    %8 = vector.load %arg7[%c0_6, %c0_7] : memref<8x256xf32, #tpu.memory_space<vmem>>, vector<8x256xf32>
    tpu.vector_store %arg7[%c0_6, %c0_7], %7 {strides = array<i32>} : memref<8x256xf32, #tpu.memory_space<vmem>>, vector<8x256xf32>,
    %c1_i32 = arith.constant 1 : i32
    %9 = arith.cmpi eq, %arg2, %c1_i32 : i32
    %10 = arith.extui %9 : i1 to i32
    %c0_i32_8 = arith.constant 0 : i32
    %11 = arith.cmpi ne, %10, %c0_i32_8 : i32
    scf.if %11 {
      %c0_9 = arith.constant 0 : index
      %c0_10 = arith.constant 0 : index
      %12 = vector.load %arg7[%c0_9, %c0_10] : memref<8x256xf32, #tpu.memory_space<vmem>>, vector<8x256xf32>
      %c0_11 = arith.constant 0 : index
      %c0_12 = arith.constant 0 : index
      %13 = vector.load %arg5[%c0_11, %c0_12] : memref<1x256xf32, #tpu.memory_space<vmem>>, vector<1x256xf32>
      %14 = vector.broadcast %13 : vector<1x256xf32> to vector<8x256xf32>
      %15 = arith.addf %12, %14 : vector<8x256xf32>
      %cst_13 = arith.constant 0.000000e+00 : f32
      %16 = vector.broadcast %cst_13 : f32 to vector<8x256xf32>
      %17 = arith.maximumf %15, %16 : vector<8x256xf32>
      %18 = arith.truncf %17 : vector<8x256xf32> to vector<8x256xbf16>
      %c0_14 = arith.constant 0 : index
      %c0_15 = arith.constant 0 : index
      %19 = vector.load %arg6[%c0_14, %c0_15] : memref<8x256xbf16, #tpu.memory_space<vmem>>, vector<8x256xbf16>
      tpu.vector_store %arg6[%c0_14, %c0_15], %18 {strides = array<i32>} : memref<8x256xbf16, #tpu.memory_space<vmem>>, vector<8x256xbf16>,
    } else {
    }
    return
  }
  func.func @transform_0(%arg0: i32, %arg1: i32, %arg2: i32) -> (i32, i32) {
    %c0_i32 = arith.constant 0 : i32
    return %arg0, %arg2 : i32, i32
  }
  func.func @transform_1(%arg0: i32, %arg1: i32, %arg2: i32) -> (i32, i32) {
    %c0_i32 = arith.constant 0 : i32
    return %arg2, %arg1 : i32, i32
  }
  func.func @transform_2(%arg0: i32, %arg1: i32, %arg2: i32) -> (i32, i32) {
    %c0_i32 = arith.constant 0 : i32
    %c0_i32_0 = arith.constant 0 : i32
    return %c0_i32, %arg1 : i32, i32
  }
  func.func @transform_3(%arg0: i32, %arg1: i32, %arg2: i32) -> (i32, i32) {
    %c0_i32 = arith.constant 0 : i32
    return %arg0, %arg1 : i32, i32
  }
}

module attributes {stable_mosaic.version = 11 : i64} {
  func.func @_conv_matmul_kernel(%arg0: i32, %arg1: i32, %arg2: i32, %arg3: memref<8x256xbf16, #tpu.memory_space<vmem>>, %arg4: memref<256x256xbf16, #tpu.memory_space<vmem>>, %arg5: memref<1x256xf32, #tpu.memory_space<vmem>>, %arg6: memref<8x256xbf16, #tpu.memory_space<vmem>>, %arg7: memref<8x256xf32, #tpu.memory_space<vmem>>) attributes {dimension_semantics = [#tpu.dimension_semantics<parallel>, #tpu.dimension_semantics<parallel>, #tpu.dimension_semantics<arbitrary>], iteration_bounds = array<i64: 1, 2, 1>, scalar_prefetch = 0 : i64, scratch_operands = 1 : i64, tpu.core_type = #tpu.core_type<tc>, window_params = [{transform_indices = @transform_0, window_bounds = array<i64: 8, 256>}, {transform_indices = @transform_1, window_bounds = array<i64: 256, 256>}, {transform_indices = @transform_2, window_bounds = array<i64: 1, 256>}, {transform_indices = @transform_3, window_bounds = array<i64: 8, 256>}]} {
    %c0_i32 = arith.constant 0 : i32
    %0 = arith.cmpi eq, %arg2, %c0_i32 : i32
    %1 = arith.extui %0 : i1 to i32
    %c0_i32_0 = arith.constant 0 : i32
    %2 = arith.cmpi ne, %1, %c0_i32_0 : i32
    scf.if %2 {
      %cst_10 = arith.constant 0.000000e+00 : f32
      %12 = vector.broadcast %cst_10 : f32 to vector<8x256xf32>
      %c0_11 = arith.constant 0 : index
      %c0_12 = arith.constant 0 : index
      %13 = vector.load %arg7[%c0_11, %c0_12] : memref<8x256xf32, #tpu.memory_space<vmem>>, vector<8x256xf32>
      tpu.vector_store %arg7[%c0_11, %c0_12], %12 {strides = array<i32>} : memref<8x256xf32, #tpu.memory_space<vmem>>, vector<8x256xf32>,
    } else {
    }
    %c0 = arith.constant 0 : index
    %c0_1 = arith.constant 0 : index
    %3 = vector.load %arg7[%c0, %c0_1] : memref<8x256xf32, #tpu.memory_space<vmem>>, vector<8x256xf32>
    %c0_2 = arith.constant 0 : index
    %c0_3 = arith.constant 0 : index
    %4 = vector.load %arg3[%c0_2, %c0_3] : memref<8x256xbf16, #tpu.memory_space<vmem>>, vector<8x256xbf16>
    %c0_4 = arith.constant 0 : index
    %c0_5 = arith.constant 0 : index
    %5 = vector.load %arg4[%c0_4, %c0_5] : memref<256x256xbf16, #tpu.memory_space<vmem>>, vector<256x256xbf16>
    %cst = arith.constant dense<0.000000e+00> : vector<8x256xf32>
    %6 = tpu.matmul %4, %5, %cst {dimension_numbers = #tpu.dot_dimension_numbers<[1], [0], [0], [1], [0, 0, 1, 1], [], []>} : vector<8x256xbf16>, vector<256x256xbf16>, vector<8x256xf32> -> vector<8x256xf32>
    %7 = arith.addf %3, %6 : vector<8x256xf32>
    %c0_6 = arith.constant 0 : index
    %c0_7 = arith.constant 0 : index
    %8 = vector.load %arg7[%c0_6, %c0_7] : memref<8x256xf32, #tpu.memory_space<vmem>>, vector<8x256xf32>
    tpu.vector_store %arg7[%c0_6, %c0_7], %7 {strides = array<i32>} : memref<8x256xf32, #tpu.memory_space<vmem>>, vector<8x256xf32>,
    %c0_i32_8 = arith.constant 0 : i32
    %9 = arith.cmpi eq, %arg2, %c0_i32_8 : i32
    %10 = arith.extui %9 : i1 to i32
    %c0_i32_9 = arith.constant 0 : i32
    %11 = arith.cmpi ne, %10, %c0_i32_9 : i32
    scf.if %11 {
      %c0_10 = arith.constant 0 : index
      %c0_11 = arith.constant 0 : index
      %12 = vector.load %arg7[%c0_10, %c0_11] : memref<8x256xf32, #tpu.memory_space<vmem>>, vector<8x256xf32>
      %c0_12 = arith.constant 0 : index
      %c0_13 = arith.constant 0 : index
      %13 = vector.load %arg5[%c0_12, %c0_13] : memref<1x256xf32, #tpu.memory_space<vmem>>, vector<1x256xf32>
      %14 = vector.broadcast %13 : vector<1x256xf32> to vector<8x256xf32>
      %15 = arith.addf %12, %14 : vector<8x256xf32>
      %16 = arith.truncf %15 : vector<8x256xf32> to vector<8x256xbf16>
      %c0_14 = arith.constant 0 : index
      %c0_15 = arith.constant 0 : index
      %17 = vector.load %arg6[%c0_14, %c0_15] : memref<8x256xbf16, #tpu.memory_space<vmem>>, vector<8x256xbf16>
      tpu.vector_store %arg6[%c0_14, %c0_15], %16 {strides = array<i32>} : memref<8x256xbf16, #tpu.memory_space<vmem>>, vector<8x256xbf16>,
    } else {
    }
    return
  }
  func.func @transform_0(%arg0: i32, %arg1: i32, %arg2: i32) -> (i32, i32) {
    %c0_i32 = arith.constant 0 : i32
    return %arg0, %arg2 : i32, i32
  }
  func.func @transform_1(%arg0: i32, %arg1: i32, %arg2: i32) -> (i32, i32) {
    %c0_i32 = arith.constant 0 : i32
    return %arg2, %arg1 : i32, i32
  }
  func.func @transform_2(%arg0: i32, %arg1: i32, %arg2: i32) -> (i32, i32) {
    %c0_i32 = arith.constant 0 : i32
    %c0_i32_0 = arith.constant 0 : i32
    return %c0_i32, %arg1 : i32, i32
  }
  func.func @transform_3(%arg0: i32, %arg1: i32, %arg2: i32) -> (i32, i32) {
    %c0_i32 = arith.constant 0 : i32
    return %arg0, %arg1 : i32, i32
  }
}

module attributes {stable_mosaic.version = 11 : i64} {
  func.func @_conv_matmul_kernel(%arg0: i32, %arg1: i32, %arg2: i32, %arg3: memref<8x1536xbf16, #tpu.memory_space<vmem>>, %arg4: memref<1536x256xbf16, #tpu.memory_space<vmem>>, %arg5: memref<1x256xf32, #tpu.memory_space<vmem>>, %arg6: memref<8x256xbf16, #tpu.memory_space<vmem>>, %arg7: memref<8x256xbf16, #tpu.memory_space<vmem>>, %arg8: memref<8x256xf32, #tpu.memory_space<vmem>>) attributes {dimension_semantics = [#tpu.dimension_semantics<parallel>, #tpu.dimension_semantics<parallel>, #tpu.dimension_semantics<arbitrary>], iteration_bounds = array<i64: 1, 2, 3>, scalar_prefetch = 0 : i64, scratch_operands = 1 : i64, tpu.core_type = #tpu.core_type<tc>, window_params = [{transform_indices = @transform_0, window_bounds = array<i64: 8, 1536>}, {transform_indices = @transform_1, window_bounds = array<i64: 1536, 256>}, {transform_indices = @transform_2, window_bounds = array<i64: 1, 256>}, {transform_indices = @transform_3, window_bounds = array<i64: 8, 256>}, {transform_indices = @transform_4, window_bounds = array<i64: 8, 256>}]} {
    %c0_i32 = arith.constant 0 : i32
    %0 = arith.cmpi eq, %arg2, %c0_i32 : i32
    %1 = arith.extui %0 : i1 to i32
    %c0_i32_0 = arith.constant 0 : i32
    %2 = arith.cmpi ne, %1, %c0_i32_0 : i32
    scf.if %2 {
      %cst_9 = arith.constant 0.000000e+00 : f32
      %12 = vector.broadcast %cst_9 : f32 to vector<8x256xf32>
      %c0_10 = arith.constant 0 : index
      %c0_11 = arith.constant 0 : index
      %13 = vector.load %arg8[%c0_10, %c0_11] : memref<8x256xf32, #tpu.memory_space<vmem>>, vector<8x256xf32>
      tpu.vector_store %arg8[%c0_10, %c0_11], %12 {strides = array<i32>} : memref<8x256xf32, #tpu.memory_space<vmem>>, vector<8x256xf32>,
    } else {
    }
    %c0 = arith.constant 0 : index
    %c0_1 = arith.constant 0 : index
    %3 = vector.load %arg8[%c0, %c0_1] : memref<8x256xf32, #tpu.memory_space<vmem>>, vector<8x256xf32>
    %c0_2 = arith.constant 0 : index
    %c0_3 = arith.constant 0 : index
    %4 = vector.load %arg3[%c0_2, %c0_3] : memref<8x1536xbf16, #tpu.memory_space<vmem>>, vector<8x1536xbf16>
    %c0_4 = arith.constant 0 : index
    %c0_5 = arith.constant 0 : index
    %5 = vector.load %arg4[%c0_4, %c0_5] : memref<1536x256xbf16, #tpu.memory_space<vmem>>, vector<1536x256xbf16>
    %cst = arith.constant dense<0.000000e+00> : vector<8x256xf32>
    %6 = tpu.matmul %4, %5, %cst {dimension_numbers = #tpu.dot_dimension_numbers<[1], [0], [0], [1], [0, 0, 1, 1], [], []>} : vector<8x1536xbf16>, vector<1536x256xbf16>, vector<8x256xf32> -> vector<8x256xf32>
    %7 = arith.addf %3, %6 : vector<8x256xf32>
    %c0_6 = arith.constant 0 : index
    %c0_7 = arith.constant 0 : index
    %8 = vector.load %arg8[%c0_6, %c0_7] : memref<8x256xf32, #tpu.memory_space<vmem>>, vector<8x256xf32>
    tpu.vector_store %arg8[%c0_6, %c0_7], %7 {strides = array<i32>} : memref<8x256xf32, #tpu.memory_space<vmem>>, vector<8x256xf32>,
    %c2_i32 = arith.constant 2 : i32
    %9 = arith.cmpi eq, %arg2, %c2_i32 : i32
    %10 = arith.extui %9 : i1 to i32
    %c0_i32_8 = arith.constant 0 : i32
    %11 = arith.cmpi ne, %10, %c0_i32_8 : i32
    scf.if %11 {
      %c0_9 = arith.constant 0 : index
      %c0_10 = arith.constant 0 : index
      %12 = vector.load %arg8[%c0_9, %c0_10] : memref<8x256xf32, #tpu.memory_space<vmem>>, vector<8x256xf32>
      %c0_11 = arith.constant 0 : index
      %c0_12 = arith.constant 0 : index
      %13 = vector.load %arg5[%c0_11, %c0_12] : memref<1x256xf32, #tpu.memory_space<vmem>>, vector<1x256xf32>
      %14 = vector.broadcast %13 : vector<1x256xf32> to vector<8x256xf32>
      %15 = arith.addf %12, %14 : vector<8x256xf32>
      %c0_13 = arith.constant 0 : index
      %c0_14 = arith.constant 0 : index
      %16 = vector.load %arg6[%c0_13, %c0_14] : memref<8x256xbf16, #tpu.memory_space<vmem>>, vector<8x256xbf16>
      %17 = arith.extf %16 : vector<8x256xbf16> to vector<8x256xf32>
      %18 = arith.addf %15, %17 : vector<8x256xf32>
      %cst_15 = arith.constant 0.000000e+00 : f32
      %19 = vector.broadcast %cst_15 : f32 to vector<8x256xf32>
      %20 = arith.maximumf %18, %19 : vector<8x256xf32>
      %21 = arith.truncf %20 : vector<8x256xf32> to vector<8x256xbf16>
      %c0_16 = arith.constant 0 : index
      %c0_17 = arith.constant 0 : index
      %22 = vector.load %arg7[%c0_16, %c0_17] : memref<8x256xbf16, #tpu.memory_space<vmem>>, vector<8x256xbf16>
      tpu.vector_store %arg7[%c0_16, %c0_17], %21 {strides = array<i32>} : memref<8x256xbf16, #tpu.memory_space<vmem>>, vector<8x256xbf16>,
    } else {
    }
    return
  }
  func.func @transform_0(%arg0: i32, %arg1: i32, %arg2: i32) -> (i32, i32) {
    %c0_i32 = arith.constant 0 : i32
    return %arg0, %arg2 : i32, i32
  }
  func.func @transform_1(%arg0: i32, %arg1: i32, %arg2: i32) -> (i32, i32) {
    %c0_i32 = arith.constant 0 : i32
    return %arg2, %arg1 : i32, i32
  }
  func.func @transform_2(%arg0: i32, %arg1: i32, %arg2: i32) -> (i32, i32) {
    %c0_i32 = arith.constant 0 : i32
    %c0_i32_0 = arith.constant 0 : i32
    return %c0_i32, %arg1 : i32, i32
  }
  func.func @transform_3(%arg0: i32, %arg1: i32, %arg2: i32) -> (i32, i32) {
    %c0_i32 = arith.constant 0 : i32
    return %arg0, %arg1 : i32, i32
  }
  func.func @transform_4(%arg0: i32, %arg1: i32, %arg2: i32) -> (i32, i32) {
    %c0_i32 = arith.constant 0 : i32
    return %arg0, %arg1 : i32, i32
  }
}

</mosaic_0001>

<bundles_post_ra>
// kernel: resnet_forward.14
= control target key start
LH: loop header
LB: loop body
LE: loop exit
PB: predicated region body
PF: predicated region fallthrough
CT: control target
= control target key end

     0   :  { %s485_s0 = inlined_call_operand.vmem [shape: bf16[64,128], index: 0, kind: input, shape index: {}]   ;;  %s486_s1 = inlined_call_operand.vmem [shape: bf16[64,128], index: 1, kind: input, shape index: {}]   ;;  %s487_s2 = inlined_call_operand.vmem [shape: bf16[64,128], index: 2, kind: input, shape index: {}]   ;;  %s488_s3 = inlined_call_operand.vmem [shape: bf16[64,128], index: 3, kind: input, shape index: {}]   ;;  %s489_s4 = inlined_call_operand.vmem [shape: bf16[64,128], index: 4, kind: input, shape index: {}]   ;;  %s490_s5 = inlined_call_operand.vmem [shape: bf16[64,128], index: 5, kind: input, shape index: {}]   ;;  %s491_s6 = inlined_call_operand.vmem [shape: bf16[64,128], index: 6, kind: input, shape index: {}]   ;;  %s492_s7 = inlined_call_operand.vmem [shape: bf16[64,128], index: 7, kind: input, shape index: {}]   ;;  %s493_s8 = inlined_call_operand.vmem [shape: bf16[64,128], index: 8, kind: input, shape index: {}]   ;;  %s494_s9 = inlined_call_operand.vmem [shape: bf16[64,128], index: 9, kind: output, shape index: {}]  }
   0x1   :  { %v32_v0 = vld [vmem:[%s485_s0] sm:$0xf]  ;;  %v33_v1 = vld [vmem:[%s485_s0 + $0x4] sm:$0xf]  ;;  %v34_v18 = vld [vmem:[%s485_s0 + $0x8] sm:$0xf] }
   0x2   :  { %v40_v2 = vld [vmem:[%s486_s1] sm:$0xf]  ;;  %v41_v3 = vld [vmem:[%s486_s1 + $0x4] sm:$0xf]  ;;  %v35_v19 = vld [vmem:[%s485_s0 + $0xc] sm:$0xf] }
   0x3   :  { %v48_v4 = vmax.bf16 %v40_v2, %v32_v0  ;;  %v56_v5 = vld [vmem:[%s487_s2] sm:$0xf]  ;;  %v57_v6 = vld [vmem:[%s487_s2 + $0x4] sm:$0xf]  ;;  %v49_v7 = vmax.bf16 %v41_v3, %v33_v1  ;;  %v42_v20 = vld [vmem:[%s486_s1 + $0x8] sm:$0xf] }
   0x4   :  { %v72_v8 = vld [vmem:[%s488_s3] sm:$0xf]  ;;  %v73_v10 = vld [vmem:[%s488_s3 + $0x4] sm:$0xf]  ;;  %v43_v22 = vld [vmem:[%s486_s1 + $0xc] sm:$0xf]  ;;  %v50_v23 = vmax.bf16 %v42_v20, %v34_v18 }
   0x5   :  { %v64_v9 = vmax.bf16 %v56_v5, %v48_v4  ;;  %v65_v11 = vmax.bf16 %v57_v6, %v49_v7  ;;  %v88_v12 = vld [vmem:[%s489_s4] sm:$0xf]  ;;  %v89_v14 = vld [vmem:[%s489_s4 + $0x4] sm:$0xf]  ;;  %v58_v24 = vld [vmem:[%s487_s2 + $0x8] sm:$0xf]  ;;  %v51_v28 = vmax.bf16 %v43_v22, %v35_v19 }
   0x6   :  { %v104_v15 = vld [vmem:[%s490_s5] sm:$0xf]  ;;  %v105_v16 = vld [vmem:[%s490_s5 + $0x4] sm:$0xf]  ;;  %v59_v25 = vld [vmem:[%s487_s2 + $0xc] sm:$0xf]  ;;  %v66_v33 = vmax.bf16 %v58_v24, %v50_v23 }
   0x7   :  { %v80_v13 = vmax.bf16 %v72_v8, %v64_v9  ;;  %v81_v17 = vmax.bf16 %v73_v10, %v65_v11  ;;  %v120_v27 = vld [vmem:[%s491_s6] sm:$0xf]  ;;  %v74_v29 = vld [vmem:[%s488_s3 + $0x8] sm:$0xf]  ;;  %v121_v31 = vld [vmem:[%s491_s6 + $0x4] sm:$0xf]  ;;  %v67_v38 = vmax.bf16 %v59_v25, %v51_v28 }
   0x8   :  { %v136_v32 = vld [vmem:[%s492_s7] sm:$0xf]  ;;  %v75_v34 = vld [vmem:[%s488_s3 + $0xc] sm:$0xf]  ;;  %v137_v36 = vld [vmem:[%s492_s7 + $0x4] sm:$0xf]  ;;  %v82_v42 = vmax.bf16 %v74_v29, %v66_v33 }
   0x9   :  { %v96_v21 = vmax.bf16 %v88_v12, %v80_v13  ;;  %v97_v26 = vmax.bf16 %v89_v14, %v81_v17  ;;  %v152_v37 = vld [vmem:[%s493_s8] sm:$0xf]  ;;  %v90_v39 = vld [vmem:[%s489_s4 + $0x8] sm:$0xf]  ;;  %v153_v41 = vld [vmem:[%s493_s8 + $0x4] sm:$0xf]  ;;  %v83_v47 = vmax.bf16 %v75_v34, %v67_v38 }
   0xa   :  { %v91_v43 = vld [vmem:[%s489_s4 + $0xc] sm:$0xf]  ;;  %v106_v44 = vld [vmem:[%s490_s5 + $0x8] sm:$0xf]  ;;  %v36_v48 = vld [vmem:[%s485_s0 + $0x10] sm:$0xf]  ;;  %v98_v52 = vmax.bf16 %v90_v39, %v82_v42 }
   0xb   :  { %v112_v30 = vmax.bf16 %v104_v15, %v96_v21  ;;  %v113_v35 = vmax.bf16 %v105_v16, %v97_v26  ;;  %v107_v45 = vld [vmem:[%s490_s5 + $0xc] sm:$0xf]  ;;  %v37_v49 = vld [vmem:[%s485_s0 + $0x14] sm:$0xf]  ;;  %v44_v50 = vld [vmem:[%s486_s1 + $0x10] sm:$0xf]  ;;  %v99_v58 = vmax.bf16 %v91_v43, %v83_v47 }
   0xc   :  { %v45_v53 = vld [vmem:[%s486_s1 + $0x14] sm:$0xf]  ;;  %v52_v54 = vmax.bf16 %v44_v50, %v36_v48  ;;  %v60_v55 = vld [vmem:[%s487_s2 + $0x10] sm:$0xf]  ;;  %v122_v59 = vld [vmem:[%s491_s6 + $0x8] sm:$0xf]  ;;  %v114_v63 = vmax.bf16 %v106_v44, %v98_v52 }
   0xd   :  { %v128_v40 = vmax.bf16 %v120_v27, %v112_v30  ;;  %v129_v46 = vmax.bf16 %v121_v31, %v113_v35  ;;  %v61_v56 = vld [vmem:[%s487_s2 + $0x14] sm:$0xf]  ;;  %v53_v60 = vmax.bf16 %v45_v53, %v37_v49  ;;  %v76_v61 = vld [vmem:[%s488_s3 + $0x10] sm:$0xf]  ;;  %v123_v0 = vld [vmem:[%s491_s6 + $0xc] sm:$0xf]  ;;  %v115_v5 = vmax.bf16 %v107_v45, %v99_v58 }
   0xe   :  { %v138_v1 = vld [vmem:[%s492_s7 + $0x8] sm:$0xf]  ;;  %v68_v2 = vmax.bf16 %v60_v55, %v52_v54  ;;  %v77_v3 = vld [vmem:[%s488_s3 + $0x14] sm:$0xf]  ;;  %v139_v6 = vld [vmem:[%s492_s7 + $0xc] sm:$0xf]  ;;  %v130_v10 = vmax.bf16 %v122_v59, %v114_v63 }
   0xf   :  { %v144_v51 = vmax.bf16 %v136_v32, %v128_v40  ;;  %v145_v57 = vmax.bf16 %v137_v36, %v129_v46  ;;  %v154_v7 = vld [vmem:[%s493_s8 + $0x8] sm:$0xf]  ;;  %v69_v8 = vmax.bf16 %v61_v56, %v53_v60  ;;  %v92_v9 = vld [vmem:[%s489_s4 + $0x10] sm:$0xf]  ;;  %v155_v11 = vld [vmem:[%s493_s8 + $0xc] sm:$0xf]  ;;  %v131_v17 = vmax.bf16 %v123_v0, %v115_v5 }
  0x10   :  { %v84_v12 = vmax.bf16 %v76_v61, %v68_v2  ;;  %v93_v13 = vld [vmem:[%s489_s4 + $0x14] sm:$0xf]  ;;  %v108_v14 = vld [vmem:[%s490_s5 + $0x10] sm:$0xf]  ;;  %v38_v19 = vld [vmem:[%s485_s0 + $0x18] sm:$0xf]  ;;  %v146_v22 = vmax.bf16 %v138_v1, %v130_v10 }
  0x11   :  { %v160_v62 = vmax.bf16 %v152_v37, %v144_v51  ;;  %v161_v4 = vmax.bf16 %v153_v41, %v145_v57  ;;  %v109_v15 = vld [vmem:[%s490_s5 + $0x14] sm:$0xf]  ;;  %v85_v18 = vmax.bf16 %v77_v3, %v69_v8  ;;  %v39_v20 = vld [vmem:[%s485_s0 + $0x1c] sm:$0xf]  ;;  %v46_v21 = vld [vmem:[%s486_s1 + $0x18] sm:$0xf]  ;;  %v147_v28 = vmax.bf16 %v139_v6, %v131_v17 }
  0x12   :  { %v100_v23 = vmax.bf16 %v92_v9, %v84_v12  ;;  %v47_v24 = vld [vmem:[%s486_s1 + $0x1c] sm:$0xf]  ;;  %v54_v25 = vmax.bf16 %v46_v21, %v38_v19  ;;  %v62_v26 = vld [vmem:[%s487_s2 + $0x18] sm:$0xf]  ;;  %v124_v30 = vld [vmem:[%s491_s6 + $0x10] sm:$0xf]  ;;  %v162_v33 = vmax.bf16 %v154_v7, %v146_v22 }
  0x13   :  { %v200_v16 = vcombine.low %v160_v62, %v161_v4  ;;  %v63_v27 = vld [vmem:[%s487_s2 + $0x1c] sm:$0xf]  ;;  %v101_v29 = vmax.bf16 %v93_v13, %v85_v18  ;;  %v55_v31 = vmax.bf16 %v47_v24, %v39_v20  ;;  %v78_v32 = vld [vmem:[%s488_s3 + $0x18] sm:$0xf]  ;;  %v125_v35 = vld [vmem:[%s491_s6 + $0x14] sm:$0xf]  ;;  %v163_v38 = vmax.bf16 %v155_v11, %v147_v28 }
  0x14   :  { %v116_v34 = vmax.bf16 %v108_v14, %v100_v23  ;;  %v70_v36 = vmax.bf16 %v62_v26, %v54_v25  ;;  %v79_v37 = vld [vmem:[%s488_s3 + $0x1c] sm:$0xf]  ;;  %v140_v40 = vld [vmem:[%s492_s7 + $0x10] sm:$0xf]  ;;  %v94_v42 = vld [vmem:[%s489_s4 + $0x18] sm:$0xf] }
  0x15   :  { %184 = vst [vmem:[%s494_s9] sm:$0xff] %v200_v16   ;;  %v117_v39 = vmax.bf16 %v109_v15, %v101_v29  ;;  %v71_v41 = vmax.bf16 %v63_v27, %v55_v31  ;;  %v141_v44 = vld [vmem:[%s492_s7 + $0x14] sm:$0xf]  ;;  %v95_v46 = vld [vmem:[%s489_s4 + $0x1c] sm:$0xf]  ;;  %v201_v47 = vcombine.low %v162_v33, %v163_v38  ;;  %v156_v49 = vld [vmem:[%s493_s8 + $0x10] sm:$0xf] }
  0x16   :  { %v132_v43 = vmax.bf16 %v124_v30, %v116_v34  ;;  %v86_v45 = vmax.bf16 %v78_v32, %v70_v36  ;;  %v110_v51 = vld [vmem:[%s490_s5 + $0x18] sm:$0xf]  ;;  %v157_v53 = vld [vmem:[%s493_s8 + $0x14] sm:$0xf]  ;;  %v111_v55 = vld [vmem:[%s490_s5 + $0x1c] sm:$0xf] }
  0x17   :  { %v133_v48 = vmax.bf16 %v125_v35, %v117_v39  ;;  %v87_v50 = vmax.bf16 %v79_v37, %v71_v41  ;;  %202 = vst [vmem:[%s494_s9 + $0x8] sm:$0xff] %v201_v47   ;;  %v126_v58 = vld [vmem:[%s491_s6 + $0x18] sm:$0xf]  ;;  %v127_v61 = vld [vmem:[%s491_s6 + $0x1c] sm:$0xf] }
  0x18   :  { %v148_v52 = vmax.bf16 %v140_v40, %v132_v43  ;;  %v102_v54 = vmax.bf16 %v94_v42, %v86_v45  ;;  %v142_v0 = vld [vmem:[%s492_s7 + $0x18] sm:$0xf]  ;;  %v143_v2 = vld [vmem:[%s492_s7 + $0x1c] sm:$0xf] }
  0x19   :  { %v149_v56 = vmax.bf16 %v141_v44, %v133_v48  ;;  %v103_v57 = vmax.bf16 %v95_v46, %v87_v50  ;;  %v158_v5 = vld [vmem:[%s493_s8 + $0x18] sm:$0xf]  ;;  %v159_v7 = vld [vmem:[%s493_s8 + $0x1c] sm:$0xf] }
  0x1a   :  { %v164_v59 = vmax.bf16 %v156_v49, %v148_v52  ;;  %v118_v60 = vmax.bf16 %v110_v51, %v102_v54 }
  0x1b   :  { %v165_v62 = vmax.bf16 %v157_v53, %v149_v56  ;;  %v119_v63 = vmax.bf16 %v111_v55, %v103_v57 }
  0x1c   :  { %v134_v1 = vmax.bf16 %v126_v58, %v118_v60 }
  0x1d   :  { %v203_v3 = vcombine.low %v164_v59, %v165_v62  ;;  %v135_v4 = vmax.bf16 %v127_v61, %v119_v63 }
  0x1e   :  { %v150_v6 = vmax.bf16 %v142_v0, %v134_v1 }
  0x1f   :  { %204 = vst [vmem:[%s494_s9 + $0x10] sm:$0xff] %v203_v3   ;;  %v151_v8 = vmax.bf16 %v143_v2, %v135_v4 }
  0x20   :  { %v166_v9 = vmax.bf16 %v158_v5, %v150_v6 }
  0x21   :  { %v167_v10 = vmax.bf16 %v159_v7, %v151_v8 }
  0x23   :  { %v205_v11 = vcombine.low %v166_v9, %v167_v10 }
  0x25   :  { %206 = vst [vmem:[%s494_s9 + $0x18] sm:$0xff] %v205_v11  }

// kernel: resnet_forward.13
= control target key start
LH: loop header
LB: loop body
LE: loop exit
PB: predicated region body
PF: predicated region fallthrough
CT: control target
= control target key end

     0   :  { %s1744_s12 = smov 0   ;;  %s1746_s13 = smov 0   ;;  %s1918_s0 = inlined_call_operand.vmem [shape: bf16[512,256], index: 0, kind: input, shape index: {}]   ;;  %s1919_s1 = inlined_call_operand.vmem [shape: bf16[256,128], index: 1, kind: input, shape index: {}]   ;;  %s1920_s2 = inlined_call_operand.vmem [shape: f32[1,128], index: 2, kind: input, shape index: {}]   ;;  %s1921_s3 = inlined_call_operand.vmem [shape: bf16[512,128], index: 3, kind: output, shape index: {}]  }
   0x1   :  { %s1748_s14 = smov 0  }
   0x2 LB: > { %s32_s15 = sadd.s32 1, %s1718_s13  ;;  %p1267_p0 = scmp.ge.s32.totalorder %s1722_s14, 1  ;;  %s1722_s14 = sphi %s1748_s14, %s13_s14   ;;  %s1718_s13 = sphi %s1746_s13, %s1923_s13   ;;  %s1714_s12 = sphi %s1744_s12, %s1922_s12  }
   0x3   : > { %p34_p1 = scmp.ge.s32.totalorder %s32_s15, 2  ;;  %p191_p2 = scmp.lt.s32.totalorder %s1722_s14, 3 }
   0x5   : > { %s1925_s15 = smov (%p34_p1, %s32_s15), 0  ;;  %p192_p3 = pnand %p1267_p0, %p191_p2 }
   0x6   : > { %v1636_v0 = vld [vmem:[%s1919_s1 + $0x40] sm:$0xff] (!%p192_p3)   ;;  %s1268_s18 = sshll.u32 (!%p192_p3), %s1714_s12, 5  ;;  %v1638_v2 = vld [vmem:[%s1919_s1 + $0x48] sm:$0xff] (!%p192_p3)   ;;  %v1640_v4 = vld [vmem:[%s1919_s1 + $0x50] sm:$0xff] (!%p192_p3)  }
   0x7   : > { %195 = sbr.rel (%p192_p3) target bundleno = 320 (0x140), region = 32  ;;  %v1637_v1 = vld [vmem:[%s1919_s1] sm:$0xff] (!%p192_p3)   ;;  %1484 = vmatprep.subr.bf16.mxu0 (!%p192_p3), %v1636_v0  ;;  %1596 = vmatprep.subr.bf16.mxu1 (!%p192_p3), %v1636_v0  ;;  %v1639_v3 = vld [vmem:[%s1919_s1 + $0x8] sm:$0xff] (!%p192_p3)   ;;  %p236_p4 = scmp.lt.s32.totalorder (!%p192_p3), %s1268_s18, 63  ;;  %v1641_v5 = vld [vmem:[%s1919_s1 + $0x10] sm:$0xff] (!%p192_p3)  }
   0x8   : > { %1485 = vmatpush3.bf16.msra.mxu0 (!%p192_p3), %v1637_v1  ;;  %1604 = vmatpush3.bf16.msra.mxu1 (!%p192_p3), %v1637_v1  ;;  %v1642_v6 = vld [vmem:[%s1919_s1 + $0x58] sm:$0xff] (!%p192_p3)   ;;  %v1644_v8 = vld [vmem:[%s1919_s1 + $0x60] sm:$0xff] (!%p192_p3)   ;;  %v1646_v10 = vld [vmem:[%s1919_s1 + $0x68] sm:$0xff] (!%p192_p3)  }
   0x9   : > { %1486 = vmatprep.subr.bf16.mxu0 (!%p192_p3), %v1638_v2  ;;  %1597 = vmatprep.subr.bf16.mxu1 (!%p192_p3), %v1638_v2  ;;  %v1643_v7 = vld [vmem:[%s1919_s1 + $0x18] sm:$0xff] (!%p192_p3)   ;;  %v1645_v9 = vld [vmem:[%s1919_s1 + $0x20] sm:$0xff] (!%p192_p3)   ;;  %v1647_v13 = vld [vmem:[%s1919_s1 + $0x28] sm:$0xff] (!%p192_p3)  }
   0xa   : > { %v1648_v14 = vld [vmem:[%s1919_s1 + $0x70] sm:$0xff] (!%p192_p3)   ;;  %v1650_v16 = vld [vmem:[%s1919_s1 + $0x78] sm:$0xff] (!%p192_p3)   ;;  %v1853_v51 = vld [vmem:[%s1920_s2] ss:$0 sm:$0xff] (!%p192_p3) }
   0xb   : > { %v1649_v15 = vld [vmem:[%s1919_s1 + $0x30] sm:$0xff] (!%p192_p3)   ;;  %v1651_v17 = vld [vmem:[%s1919_s1 + $0x38] sm:$0xff] (!%p192_p3)  }
   0xc   : > { %1487 = vmatpush3.bf16.msra.mxu0 (!%p192_p3), %v1639_v3  ;;  %1605 = vmatpush3.bf16.msra.mxu1 (!%p192_p3), %v1639_v3 }
   0xd   : > { %1488 = vmatprep.subr.bf16.mxu0 (!%p192_p3), %v1640_v4  ;;  %1598 = vmatprep.subr.bf16.mxu1 (!%p192_p3), %v1640_v4 }
   0xe   : > { %s1927_s18 = smov (!%p236_p4, %s1268_s18), 63 }
   0xf   : > { %s1356_s6 = sshll.u32 %s1927_s18, 3  ;;  %s1272_s5 = sshll.u32 %s1927_s18, 2 }
  0x10   : > { %1489 = vmatpush3.bf16.msra.mxu0 %v1641_v5  ;;  %1606 = vmatpush3.bf16.msra.mxu1 %v1641_v5  ;;  %s1795_s11 = scalar_lea.vmem %s1918_s0, %s1356_s6  ;;  %s1863_s8 = scalar_lea.vmem %s1921_s3, %s1272_s5 }
  0x11   : > { %1490 = vmatprep.subr.bf16.mxu0 %v1642_v6  ;;  %1599 = vmatprep.subr.bf16.mxu1 %v1642_v6  ;;  %v1654_v11 = vld [vmem:[%s1795_s11 + $0x4] ss:$8 sps:$4 sm:$0xff]   ;;  %v1652_v18 = vld [vmem:[%s1795_s11] ss:$8 sps:$4 sm:$0xff]   ;;  %v1658_v20 = vld [vmem:[%s1795_s11 + $0x14] ss:$8 sps:$4 sm:$0xff]  }
  0x12   : > { %v1657_v12 = vld [vmem:[%s1795_s11 + $0x84] ss:$8 sps:$4 sm:$0xff]   ;;  %688 = vmatprep.mubr.bf16.mxu0 %v1654_v11  ;;  %v1655_v19 = vld [vmem:[%s1795_s11 + $0x80] ss:$8 sps:$4 sm:$0xff]   ;;  %v1660_v21 = vld [vmem:[%s1795_s11 + $0x94] ss:$8 sps:$4 sm:$0xff]  }
  0x13   : > { %752 = vmatprep.mubr.bf16.mxu1 %v1657_v12  ;;  %v1662_v22 = vld [vmem:[%s1795_s11 + $0x10] ss:$8 sps:$4 sm:$0xff]   ;;  %v1664_v24 = vld [vmem:[%s1795_s11 + $0x24] ss:$8 sps:$4 sm:$0xff]   ;;  %v1668_v26 = vld [vmem:[%s1795_s11 + $0x20] ss:$8 sps:$4 sm:$0xff]  }
  0x14   : > { %1491 = vmatpush3.bf16.msra.mxu0 %v1643_v7  ;;  %1607 = vmatpush3.bf16.msra.mxu1 %v1643_v7  ;;  %v1663_v23 = vld [vmem:[%s1795_s11 + $0x90] ss:$8 sps:$4 sm:$0xff]   ;;  %v1666_v25 = vld [vmem:[%s1795_s11 + $0xa4] ss:$8 sps:$4 sm:$0xff]   ;;  %v1669_v27 = vld [vmem:[%s1795_s11 + $0xa0] ss:$8 sps:$4 sm:$0xff]  }
  0x15   : > { %1492 = vmatprep.subr.bf16.mxu0 %v1644_v8  ;;  %1600 = vmatprep.subr.bf16.mxu1 %v1644_v8  ;;  %v1670_v28 = vld [vmem:[%s1795_s11 + $0x34] ss:$8 sps:$4 sm:$0xff]   ;;  %v1674_v30 = vld [vmem:[%s1795_s11 + $0x30] ss:$8 sps:$4 sm:$0xff]   ;;  %v1676_v32 = vld [vmem:[%s1795_s11 + $0x44] ss:$8 sps:$4 sm:$0xff]  }
  0x16   : > { %v1672_v29 = vld [vmem:[%s1795_s11 + $0xb4] ss:$8 sps:$4 sm:$0xff]   ;;  %v1675_v31 = vld [vmem:[%s1795_s11 + $0xb0] ss:$8 sps:$4 sm:$0xff]   ;;  %v1678_v33 = vld [vmem:[%s1795_s11 + $0xc4] ss:$8 sps:$4 sm:$0xff]  }
  0x17   : > { %v1680_v34 = vld [vmem:[%s1795_s11 + $0x40] ss:$8 sps:$4 sm:$0xff]   ;;  %v1682_v36 = vld [vmem:[%s1795_s11 + $0x54] ss:$8 sps:$4 sm:$0xff]   ;;  %v1686_v38 = vld [vmem:[%s1795_s11 + $0x50] ss:$8 sps:$4 sm:$0xff]  }
  0x18   : > { %1493 = vmatpush3.bf16.msra.mxu0 %v1645_v9  ;;  %1608 = vmatpush3.bf16.msra.mxu1 %v1645_v9  ;;  %v1681_v35 = vld [vmem:[%s1795_s11 + $0xc0] ss:$8 sps:$4 sm:$0xff]   ;;  %v1684_v37 = vld [vmem:[%s1795_s11 + $0xd4] ss:$8 sps:$4 sm:$0xff]   ;;  %v1687_v39 = vld [vmem:[%s1795_s11 + $0xd0] ss:$8 sps:$4 sm:$0xff]  }
  0x19   : > { %1494 = vmatprep.subr.bf16.mxu0 %v1646_v10  ;;  %1601 = vmatprep.subr.bf16.mxu1 %v1646_v10  ;;  %v1688_v40 = vld [vmem:[%s1795_s11 + $0x64] ss:$8 sps:$4 sm:$0xff]   ;;  %v1692_v42 = vld [vmem:[%s1795_s11 + $0x60] ss:$8 sps:$4 sm:$0xff]   ;;  %v1694_v44 = vld [vmem:[%s1795_s11 + $0x74] ss:$8 sps:$4 sm:$0xff]  }
  0x1a   : > { %v1690_v41 = vld [vmem:[%s1795_s11 + $0xe4] ss:$8 sps:$4 sm:$0xff]   ;;  %v1693_v43 = vld [vmem:[%s1795_s11 + $0xe0] ss:$8 sps:$4 sm:$0xff]   ;;  %v1696_v45 = vld [vmem:[%s1795_s11 + $0xf4] ss:$8 sps:$4 sm:$0xff]  }
  0x1b   : > { %v1698_v46 = vld [vmem:[%s1795_s11 + $0x70] ss:$8 sps:$4 sm:$0xff]  }
  0x1c   : > { %1495 = vmatpush3.bf16.msra.mxu0 %v1647_v13  ;;  %1609 = vmatpush3.bf16.msra.mxu1 %v1647_v13  ;;  %v1699_v47 = vld [vmem:[%s1795_s11 + $0xf0] ss:$8 sps:$4 sm:$0xff]  }
  0x1d   : > { %1496 = vmatprep.subr.bf16.mxu0 %v1648_v14  ;;  %1602 = vmatprep.subr.bf16.mxu1 %v1648_v14 }
  0x20   : > { %1497 = vmatpush3.bf16.msra.mxu0 %v1649_v15  ;;  %1610 = vmatpush3.bf16.msra.mxu1 %v1649_v15 }
  0x21   : > { %1498 = vmatprep.subr.bf16.mxu0 %v1650_v16  ;;  %1603 = vmatprep.subr.bf16.mxu1 %v1650_v16 }
  0x24   : > { %1499 = vmatpush3.bf16.msra.mxu0 %v1651_v17  ;;  %1611 = vmatpush3.bf16.msra.mxu1 %v1651_v17 }
  0x27   : > { %689 = vmatmul.mubr.bf16.vlgmr.msra.gmra.mrb[0].mxu0 %v1652_v18  ;;  %753 = vmatmul.mubr.bf16.vlgmr.msra.gmra.mrb[0].mxu1 %v1655_v19 }
  0x28   : > { %696 = vmatprep.mubr.bf16.mxu0 %v1658_v20  ;;  %760 = vmatprep.mubr.bf16.mxu1 %v1660_v21 }
  0x2f   : > { %697 = vmatmul.mubr.bf16.gmra.mrb[4].mxu0 %v1662_v22  ;;  %761 = vmatmul.mubr.bf16.gmra.mrb[4].mxu1 %v1663_v23 }
  0x30   : > { %704 = vmatprep.mubr.bf16.mxu0 %v1664_v24  ;;  %768 = vmatprep.mubr.bf16.mxu1 %v1666_v25 }
  0x37   : > { %705 = vmatmul.mubr.bf16.gmra.mrb[8].mxu0 %v1668_v26  ;;  %769 = vmatmul.mubr.bf16.gmra.mrb[8].mxu1 %v1669_v27 }
  0x38   : > { %712 = vmatprep.mubr.bf16.mxu0 %v1670_v28  ;;  %776 = vmatprep.mubr.bf16.mxu1 %v1672_v29 }
  0x3f   : > { %713 = vmatmul.mubr.bf16.gmra.mrb[12].mxu0 %v1674_v30  ;;  %777 = vmatmul.mubr.bf16.gmra.mrb[12].mxu1 %v1675_v31 }
  0x40   : > { %720 = vmatprep.mubr.bf16.mxu0 %v1676_v32  ;;  %784 = vmatprep.mubr.bf16.mxu1 %v1678_v33 }
  0x47   : > { %721 = vmatmul.mubr.bf16.gmra.mrb[16].mxu0 %v1680_v34  ;;  %785 = vmatmul.mubr.bf16.gmra.mrb[16].mxu1 %v1681_v35 }
  0x48   : > { %728 = vmatprep.mubr.bf16.mxu0 %v1682_v36  ;;  %792 = vmatprep.mubr.bf16.mxu1 %v1684_v37 }
  0x4f   : > { %729 = vmatmul.mubr.bf16.gmra.mrb[20].mxu0 %v1686_v38  ;;  %793 = vmatmul.mubr.bf16.gmra.mrb[20].mxu1 %v1687_v39 }
  0x50   : > { %736 = vmatprep.mubr.bf16.mxu0 %v1688_v40  ;;  %800 = vmatprep.mubr.bf16.mxu1 %v1690_v41 }
  0x57   : > { %737 = vmatmul.mubr.bf16.gmra.mrb[24].mxu0 %v1692_v42  ;;  %801 = vmatmul.mubr.bf16.gmra.mrb[24].mxu1 %v1693_v43 }
  0x58   : > { %744 = vmatprep.mubr.bf16.mxu0 %v1694_v44  ;;  %808 = vmatprep.mubr.bf16.mxu1 %v1696_v45 }
  0x5f   : > { %745 = vmatmul.mubr.bf16.gmra.mrb[28].mxu0 %v1698_v46  ;;  %809 = vmatmul.mubr.bf16.gmra.mrb[28].mxu1 %v1699_v47 }
  0xfa   : > { %v1500_v48 = vpop.f32.mrb[0].mxu0  ;;  %v1548_v49 = vpop.f32.mrb[0].mxu1 }
  0xfb   : > { %v1501_v50 = vpop.f32.mrb[1].mxu0  ;;  %v1549_v52 = vpop.f32.mrb[1].mxu1 }
  0xfc   : > { %v1502_v53 = vadd.f32 %v1501_v50, %v1500_v48  ;;  %v1550_v54 = vadd.f32 %v1549_v52, %v1548_v49  ;;  %v1503_v55 = vpop.f32.mrb[2].mxu0  ;;  %v1551_v56 = vpop.f32.mrb[2].mxu1 }
  0xfd   : > { %v1504_v57 = vpop.f32.mrb[3].mxu0  ;;  %v1552_v58 = vpop.f32.mrb[3].mxu1 }
  0xfe   : > { %v923_v59 = vadd.f32 %v1502_v53, %v1853_v51  ;;  %v939_v60 = vadd.f32 %v1550_v54, %v1853_v51  ;;  %v1505_v61 = vadd.f32 %v1504_v57, %v1503_v55  ;;  %v1553_v62 = vadd.f32 %v1552_v58, %v1551_v56 }
 0x100   : > { %v924_v63 = vadd.f32 %v1505_v61, %v1853_v51  ;;  %v940_v0 = vadd.f32 %v1553_v62, %v1853_v51  ;;  %v955_v1 = vmax.f32 %v923_v59, 0.0  ;;  %v971_v2 = vmax.f32 %v939_v60, 0.0 }
 0x102   : > { %v956_v3 = vmax.f32 %v924_v63, 0.0  ;;  %v972_v4 = vmax.f32 %v940_v0, 0.0  ;;  %v1506_v5 = vpop.f32.mrb[4].mxu0  ;;  %v1554_v6 = vpop.f32.mrb[4].mxu1 }
 0x103   : > { %v1507_v7 = vpop.f32.mrb[5].mxu0  ;;  %v1555_v8 = vpop.f32.mrb[5].mxu1 }
 0x104   : > { %v1392_v9 = vpack.c.bf16 %v956_v3, %v955_v1  ;;  %v1432_v10 = vpack.c.bf16 %v972_v4, %v971_v2  ;;  %v1508_v11 = vadd.f32 %v1507_v7, %v1506_v5  ;;  %v1556_v12 = vadd.f32 %v1555_v8, %v1554_v6  ;;  %v1509_v13 = vpop.f32.mrb[6].mxu0  ;;  %v1557_v14 = vpop.f32.mrb[6].mxu1 }
 0x105   : > { %v1510_v15 = vpop.f32.mrb[7].mxu0  ;;  %v1558_v16 = vpop.f32.mrb[7].mxu1 }
 0x106   : > { %1393 = vst [vmem:[%s1863_s8] sm:$0xff] %v1392_v9   ;;  %1476 = vst [vmem:[%s1863_s8 + $0x40] sm:$0xff] %v1432_v10   ;;  %v925_v17 = vadd.f32 %v1508_v11, %v1853_v51  ;;  %v941_v18 = vadd.f32 %v1556_v12, %v1853_v51  ;;  %v1511_v19 = vadd.f32 %v1510_v15, %v1509_v13 }
 0x107   : > { %v1559_v20 = vadd.f32 %v1558_v16, %v1557_v14 }
 0x108   : > { %v926_v21 = vadd.f32 %v1511_v19, %v1853_v51  ;;  %v957_v23 = vmax.f32 %v925_v17, 0.0  ;;  %v973_v24 = vmax.f32 %v941_v18, 0.0 }
 0x109   : > { %v942_v22 = vadd.f32 %v1559_v20, %v1853_v51 }
 0x10a   : > { %v958_v25 = vmax.f32 %v926_v21, 0.0  ;;  %v1512_v27 = vpop.f32.mrb[8].mxu0  ;;  %v1560_v28 = vpop.f32.mrb[8].mxu1 }
 0x10b   : > { %v974_v26 = vmax.f32 %v942_v22, 0.0  ;;  %v1513_v29 = vpop.f32.mrb[9].mxu0  ;;  %v1561_v30 = vpop.f32.mrb[9].mxu1 }
 0x10c   : > { %v1397_v31 = vpack.c.bf16 %v958_v25, %v957_v23  ;;  %v1514_v33 = vadd.f32 %v1513_v29, %v1512_v27  ;;  %v1562_v34 = vadd.f32 %v1561_v30, %v1560_v28  ;;  %v1515_v35 = vpop.f32.mrb[10].mxu0  ;;  %v1563_v36 = vpop.f32.mrb[10].mxu1 }
 0x10d   : > { %v1437_v32 = vpack.c.bf16 %v974_v26, %v973_v24  ;;  %v1516_v37 = vpop.f32.mrb[11].mxu0  ;;  %v1564_v38 = vpop.f32.mrb[11].mxu1 }
 0x10e   : > { %1469 = vst [vmem:[%s1863_s8 + $0x8] sm:$0xff] %v1397_v31   ;;  %v927_v39 = vadd.f32 %v1514_v33, %v1853_v51  ;;  %v943_v40 = vadd.f32 %v1562_v34, %v1853_v51  ;;  %v1517_v41 = vadd.f32 %v1516_v37, %v1515_v35  ;;  %v1565_v42 = vadd.f32 %v1564_v38, %v1563_v36 }
 0x10f   : > { %1477 = vst [vmem:[%s1863_s8 + $0x48] sm:$0xff] %v1437_v32  }
 0x110   : > { %v928_v43 = vadd.f32 %v1517_v41, %v1853_v51  ;;  %v944_v44 = vadd.f32 %v1565_v42, %v1853_v51  ;;  %v959_v45 = vmax.f32 %v927_v39, 0.0  ;;  %v975_v46 = vmax.f32 %v943_v40, 0.0 }
 0x112   : > { %v960_v47 = vmax.f32 %v928_v43, 0.0  ;;  %v976_v48 = vmax.f32 %v944_v44, 0.0  ;;  %v1518_v49 = vpop.f32.mrb[12].mxu0  ;;  %v1566_v50 = vpop.f32.mrb[12].mxu1 }
 0x113   : > { %v1519_v52 = vpop.f32.mrb[13].mxu0  ;;  %v1567_v53 = vpop.f32.mrb[13].mxu1 }
 0x114   : > { %v1402_v54 = vpack.c.bf16 %v960_v47, %v959_v45  ;;  %v1442_v55 = vpack.c.bf16 %v976_v48, %v975_v46  ;;  %v1520_v56 = vadd.f32 %v1519_v52, %v1518_v49  ;;  %v1568_v57 = vadd.f32 %v1567_v53, %v1566_v50  ;;  %v1521_v58 = vpop.f32.mrb[14].mxu0  ;;  %v1569_v59 = vpop.f32.mrb[14].mxu1 }
 0x115   : > { %v1522_v60 = vpop.f32.mrb[15].mxu0  ;;  %v1570_v61 = vpop.f32.mrb[15].mxu1 }
 0x116   : > { %1470 = vst [vmem:[%s1863_s8 + $0x10] sm:$0xff] %v1402_v54   ;;  %1478 = vst [vmem:[%s1863_s8 + $0x50] sm:$0xff] %v1442_v55   ;;  %v929_v62 = vadd.f32 %v1520_v56, %v1853_v51  ;;  %v945_v63 = vadd.f32 %v1568_v57, %v1853_v51  ;;  %v1523_v0 = vadd.f32 %v1522_v60, %v1521_v58 }
 0x117   : > { %v1571_v1 = vadd.f32 %v1570_v61, %v1569_v59 }
 0x118   : > { %v930_v2 = vadd.f32 %v1523_v0, %v1853_v51  ;;  %v961_v4 = vmax.f32 %v929_v62, 0.0  ;;  %v977_v5 = vmax.f32 %v945_v63, 0.0 }
 0x119   : > { %v946_v3 = vadd.f32 %v1571_v1, %v1853_v51 }
 0x11a   : > { %v962_v6 = vmax.f32 %v930_v2, 0.0  ;;  %v1524_v8 = vpop.f32.mrb[16].mxu0  ;;  %v1572_v9 = vpop.f32.mrb[16].mxu1 }
 0x11b   : > { %v978_v7 = vmax.f32 %v946_v3, 0.0  ;;  %v1525_v10 = vpop.f32.mrb[17].mxu0  ;;  %v1573_v11 = vpop.f32.mrb[17].mxu1 }
 0x11c   : > { %v1407_v12 = vpack.c.bf16 %v962_v6, %v961_v4  ;;  %v1526_v14 = vadd.f32 %v1525_v10, %v1524_v8  ;;  %v1574_v15 = vadd.f32 %v1573_v11, %v1572_v9  ;;  %v1527_v16 = vpop.f32.mrb[18].mxu0  ;;  %v1575_v17 = vpop.f32.mrb[18].mxu1 }
 0x11d   : > { %v1447_v13 = vpack.c.bf16 %v978_v7, %v977_v5  ;;  %v1528_v18 = vpop.f32.mrb[19].mxu0  ;;  %v1576_v19 = vpop.f32.mrb[19].mxu1 }
 0x11e   : > { %1471 = vst [vmem:[%s1863_s8 + $0x18] sm:$0xff] %v1407_v12   ;;  %v931_v20 = vadd.f32 %v1526_v14, %v1853_v51  ;;  %v947_v21 = vadd.f32 %v1574_v15, %v1853_v51  ;;  %v1529_v22 = vadd.f32 %v1528_v18, %v1527_v16  ;;  %v1577_v23 = vadd.f32 %v1576_v19, %v1575_v17 }
 0x11f   : > { %1479 = vst [vmem:[%s1863_s8 + $0x58] sm:$0xff] %v1447_v13  }
 0x120   : > { %v932_v24 = vadd.f32 %v1529_v22, %v1853_v51  ;;  %v948_v25 = vadd.f32 %v1577_v23, %v1853_v51  ;;  %v963_v26 = vmax.f32 %v931_v20, 0.0  ;;  %v979_v27 = vmax.f32 %v947_v21, 0.0 }
 0x122   : > { %v964_v28 = vmax.f32 %v932_v24, 0.0  ;;  %v980_v29 = vmax.f32 %v948_v25, 0.0  ;;  %v1530_v30 = vpop.f32.mrb[20].mxu0  ;;  %v1578_v31 = vpop.f32.mrb[20].mxu1 }
 0x123   : > { %v1531_v32 = vpop.f32.mrb[21].mxu0  ;;  %v1579_v33 = vpop.f32.mrb[21].mxu1 }
 0x124   : > { %v1412_v34 = vpack.c.bf16 %v964_v28, %v963_v26  ;;  %v1452_v35 = vpack.c.bf16 %v980_v29, %v979_v27  ;;  %v1532_v36 = vadd.f32 %v1531_v32, %v1530_v30  ;;  %v1580_v37 = vadd.f32 %v1579_v33, %v1578_v31  ;;  %v1533_v38 = vpop.f32.mrb[22].mxu0  ;;  %v1581_v39 = vpop.f32.mrb[22].mxu1 }
 0x125   : > { %v1534_v40 = vpop.f32.mrb[23].mxu0  ;;  %v1582_v41 = vpop.f32.mrb[23].mxu1 }
 0x126   : > { %1472 = vst [vmem:[%s1863_s8 + $0x20] sm:$0xff] %v1412_v34   ;;  %1480 = vst [vmem:[%s1863_s8 + $0x60] sm:$0xff] %v1452_v35   ;;  %v933_v42 = vadd.f32 %v1532_v36, %v1853_v51  ;;  %v949_v43 = vadd.f32 %v1580_v37, %v1853_v51  ;;  %v1535_v44 = vadd.f32 %v1534_v40, %v1533_v38 }
 0x127   : > { %v1583_v45 = vadd.f32 %v1582_v41, %v1581_v39 }
 0x128   : > { %v934_v46 = vadd.f32 %v1535_v44, %v1853_v51  ;;  %v965_v48 = vmax.f32 %v933_v42, 0.0  ;;  %v981_v49 = vmax.f32 %v949_v43, 0.0 }
 0x129   : > { %v950_v47 = vadd.f32 %v1583_v45, %v1853_v51 }
 0x12a   : > { %v966_v50 = vmax.f32 %v934_v46, 0.0  ;;  %v1536_v53 = vpop.f32.mrb[24].mxu0  ;;  %v1584_v54 = vpop.f32.mrb[24].mxu1 }
 0x12b   : > { %v982_v52 = vmax.f32 %v950_v47, 0.0  ;;  %v1537_v55 = vpop.f32.mrb[25].mxu0  ;;  %v1585_v56 = vpop.f32.mrb[25].mxu1 }
 0x12c   : > { %v1417_v57 = vpack.c.bf16 %v966_v50, %v965_v48  ;;  %v1538_v59 = vadd.f32 %v1537_v55, %v1536_v53  ;;  %v1586_v60 = vadd.f32 %v1585_v56, %v1584_v54  ;;  %v1539_v61 = vpop.f32.mrb[26].mxu0  ;;  %v1587_v62 = vpop.f32.mrb[26].mxu1 }
 0x12d   : > { %v1457_v58 = vpack.c.bf16 %v982_v52, %v981_v49  ;;  %v1540_v63 = vpop.f32.mrb[27].mxu0  ;;  %v1588_v0 = vpop.f32.mrb[27].mxu1 }
 0x12e   : > { %1473 = vst [vmem:[%s1863_s8 + $0x28] sm:$0xff] %v1417_v57   ;;  %v935_v1 = vadd.f32 %v1538_v59, %v1853_v51  ;;  %v951_v2 = vadd.f32 %v1586_v60, %v1853_v51  ;;  %v1541_v3 = vadd.f32 %v1540_v63, %v1539_v61  ;;  %v1589_v4 = vadd.f32 %v1588_v0, %v1587_v62 }
 0x12f   : > { %1481 = vst [vmem:[%s1863_s8 + $0x68] sm:$0xff] %v1457_v58  }
 0x130   : > { %v936_v5 = vadd.f32 %v1541_v3, %v1853_v51  ;;  %v952_v6 = vadd.f32 %v1589_v4, %v1853_v51  ;;  %v967_v7 = vmax.f32 %v935_v1, 0.0  ;;  %v983_v8 = vmax.f32 %v951_v2, 0.0 }
 0x132   : > { %v968_v9 = vmax.f32 %v936_v5, 0.0  ;;  %v984_v10 = vmax.f32 %v952_v6, 0.0  ;;  %v1542_v11 = vpop.f32.mrb[28].mxu0  ;;  %v1590_v12 = vpop.f32.mrb[28].mxu1 }
 0x133   : > { %v1543_v13 = vpop.f32.mrb[29].mxu0  ;;  %v1591_v14 = vpop.f32.mrb[29].mxu1 }
 0x134   : > { %v1422_v15 = vpack.c.bf16 %v968_v9, %v967_v7  ;;  %v1462_v16 = vpack.c.bf16 %v984_v10, %v983_v8  ;;  %v1544_v17 = vadd.f32 %v1543_v13, %v1542_v11  ;;  %v1592_v18 = vadd.f32 %v1591_v14, %v1590_v12  ;;  %v1545_v19 = vpop.f32.mrb[30].mxu0  ;;  %v1593_v20 = vpop.f32.mrb[30].mxu1 }
 0x135   : > { %v1546_v21 = vpop.f32.mrb[31].mxu0  ;;  %v1594_v22 = vpop.f32.mrb[31].mxu1 }
 0x136   : > { %1474 = vst [vmem:[%s1863_s8 + $0x30] sm:$0xff] %v1422_v15   ;;  %1482 = vst [vmem:[%s1863_s8 + $0x70] sm:$0xff] %v1462_v16   ;;  %v937_v23 = vadd.f32 %v1544_v17, %v1853_v51  ;;  %v953_v24 = vadd.f32 %v1592_v18, %v1853_v51  ;;  %v1547_v25 = vadd.f32 %v1546_v21, %v1545_v19 }
 0x137   : > { %v1595_v26 = vadd.f32 %v1594_v22, %v1593_v20 }
 0x138   : > { %v938_v27 = vadd.f32 %v1547_v25, %v1853_v51  ;;  %v969_v29 = vmax.f32 %v937_v23, 0.0  ;;  %v985_v30 = vmax.f32 %v953_v24, 0.0 }
 0x139   : > { %v954_v28 = vadd.f32 %v1595_v26, %v1853_v51 }
 0x13a   : > { %v970_v31 = vmax.f32 %v938_v27, 0.0 }
 0x13b   : > { %v986_v32 = vmax.f32 %v954_v28, 0.0 }
 0x13c   : > { %v1427_v33 = vpack.c.bf16 %v970_v31, %v969_v29 }
 0x13d   : > { %v1467_v34 = vpack.c.bf16 %v986_v32, %v985_v30 }
 0x13e   : > { %1475 = vst [vmem:[%s1863_s8 + $0x38] sm:$0xff] %v1427_v33  }
 0x13f   : > { %1483 = vst [vmem:[%s1863_s8 + $0x78] sm:$0xff] %v1467_v34  }
 0x140 PF: > { %s13_s14 = sadd.s32 1, %s1722_s14   ;;  %s1922_s12 = smov %s1718_s13 }
 0x141   : > { %p10_p5 = scmp.ge.s32.totalorder %s13_s14, 4   ;;  %s1923_s13 = smov %s1925_s15 }
 0x143   :  { %12 = sbr.rel (!%p10_p5) target bundleno = 2 (0x2), region = 76 }

// kernel: resnet_forward.15
= control target key start
LH: loop header
LB: loop body
LE: loop exit
PB: predicated region body
PF: predicated region fallthrough
CT: control target
= control target key end

     0   :  { %s1878_s1 = inlined_call_operand.vmem [shape: bf16[640,128], index: 1, kind: input, shape index: {}]   ;;  %s1879_s0 = inlined_call_operand.vmem [shape: bf16[128,640], index: 0, kind: input, shape index: {}]   ;;  %s1880_s2 = inlined_call_operand.vmem [shape: f32[1,128], index: 2, kind: input, shape index: {}]   ;;  %s1881_s3 = inlined_call_operand.vmem [shape: bf16[128,128], index: 3, kind: output, shape index: {}]  }
   0x1   :  { %v1444_v0 = vld [vmem:[%s1878_s1 + $0x40] sm:$0xff]   ;;  %v1448_v4 = vld [vmem:[%s1878_s1 + $0x48] sm:$0xff]   ;;  %v1452_v8 = vld [vmem:[%s1878_s1 + $0x50] sm:$0xff]  }
   0x2   :  { %v1445_v1 = vld [vmem:[%s1878_s1 + $0xc0] sm:$0xff]   ;;  %1252 = vmatprep.subr.bf16.mxu0 %v1444_v0  ;;  %v1449_v5 = vld [vmem:[%s1878_s1 + $0xc8] sm:$0xff]   ;;  %v1453_v9 = vld [vmem:[%s1878_s1 + $0xd0] sm:$0xff]  }
   0x3   :  { %v1446_v2 = vld [vmem:[%s1878_s1] sm:$0xff]   ;;  %1316 = vmatprep.subr.bf16.mxu1 %v1445_v1  ;;  %v1450_v6 = vld [vmem:[%s1878_s1 + $0x8] sm:$0xff]   ;;  %v1454_v10 = vld [vmem:[%s1878_s1 + $0x10] sm:$0xff]  }
   0x4   :  { %v1447_v3 = vld [vmem:[%s1878_s1 + $0x80] sm:$0xff]   ;;  %1253 = vmatpush3.bf16.msra.mxu0 %v1446_v2  ;;  %v1451_v7 = vld [vmem:[%s1878_s1 + $0x88] sm:$0xff]   ;;  %v1455_v11 = vld [vmem:[%s1878_s1 + $0x90] sm:$0xff]  }
   0x5   :  { %1317 = vmatpush3.bf16.msra.mxu1 %v1447_v3  ;;  %1254 = vmatprep.subr.bf16.mxu0 %v1448_v4  ;;  %v1456_v12 = vld [vmem:[%s1878_s1 + $0x58] sm:$0xff]   ;;  %v1460_v16 = vld [vmem:[%s1878_s1 + $0x60] sm:$0xff]   ;;  %v1464_v20 = vld [vmem:[%s1878_s1 + $0x68] sm:$0xff]  }
   0x6   :  { %1318 = vmatprep.subr.bf16.mxu1 %v1449_v5  ;;  %v1457_v13 = vld [vmem:[%s1878_s1 + $0xd8] sm:$0xff]   ;;  %v1461_v17 = vld [vmem:[%s1878_s1 + $0xe0] sm:$0xff]   ;;  %v1465_v21 = vld [vmem:[%s1878_s1 + $0xe8] sm:$0xff]  }
   0x7   :  { %v1458_v14 = vld [vmem:[%s1878_s1 + $0x18] sm:$0xff]   ;;  %v1462_v18 = vld [vmem:[%s1878_s1 + $0x20] sm:$0xff]   ;;  %v1466_v22 = vld [vmem:[%s1878_s1 + $0x28] sm:$0xff]  }
   0x8   :  { %1255 = vmatpush3.bf16.msra.mxu0 %v1450_v6  ;;  %v1459_v15 = vld [vmem:[%s1878_s1 + $0x98] sm:$0xff]   ;;  %v1463_v19 = vld [vmem:[%s1878_s1 + $0xa0] sm:$0xff]   ;;  %v1467_v23 = vld [vmem:[%s1878_s1 + $0xa8] sm:$0xff]  }
   0x9   :  { %1319 = vmatpush3.bf16.msra.mxu1 %v1451_v7  ;;  %1256 = vmatprep.subr.bf16.mxu0 %v1452_v8  ;;  %v1468_v24 = vld [vmem:[%s1878_s1 + $0x70] sm:$0xff]   ;;  %v1472_v28 = vld [vmem:[%s1878_s1 + $0x78] sm:$0xff]   ;;  %v1481_v35 = vld [vmem:[%s1879_s0 + $0xc] ss:$20 sps:$4 sm:$0xff]  }
   0xa   :  { %1320 = vmatprep.subr.bf16.mxu1 %v1453_v9  ;;  %v1469_v25 = vld [vmem:[%s1878_s1 + $0xf0] sm:$0xff]   ;;  %v1473_v29 = vld [vmem:[%s1878_s1 + $0xf8] sm:$0xff]   ;;  %v1482_v36 = vld [vmem:[%s1878_s1 + $0x100] sm:$0xff]   ;;  %756 = vmatprep.mubr.bf16.mxu1 %v1481_v35 }
   0xb   :  { %v1470_v26 = vld [vmem:[%s1878_s1 + $0x30] sm:$0xff]   ;;  %v1474_v30 = vld [vmem:[%s1878_s1 + $0x38] sm:$0xff]   ;;  %v1483_v37 = vld [vmem:[%s1879_s0 + $0x2c] ss:$20 sps:$4 sm:$0xff]  }
   0xc   :  { %1257 = vmatpush3.bf16.msra.mxu0 %v1454_v10  ;;  %v1471_v27 = vld [vmem:[%s1878_s1 + $0xb0] sm:$0xff]   ;;  %v1475_v31 = vld [vmem:[%s1878_s1 + $0xb8] sm:$0xff]   ;;  %v1489_v39 = vld [vmem:[%s1878_s1 + $0x108] sm:$0xff]  }
   0xd   :  { %1321 = vmatpush3.bf16.msra.mxu1 %v1455_v11  ;;  %1258 = vmatprep.subr.bf16.mxu0 %v1456_v12  ;;  %v1476_v32 = vld [vmem:[%s1879_s0] ss:$20 sps:$4 sm:$0xff]   ;;  %v1478_v33 = vld [vmem:[%s1879_s0 + $0x4] ss:$20 sps:$4 sm:$0xff]   ;;  %v1479_v34 = vld [vmem:[%s1879_s0 + $0x8] ss:$20 sps:$4 sm:$0xff]  }
   0xe   :  { %1322 = vmatprep.subr.bf16.mxu1 %v1457_v13  ;;  %659 = vmatprep.mubr.bf16.mxu0 %v1478_v33  ;;  %v1485_v38 = vld [vmem:[%s1879_s0 + $0x34] ss:$20 sps:$4 sm:$0xff]   ;;  %v1488_v41 = vld [vmem:[%s1879_s0 + $0x30] ss:$20 sps:$4 sm:$0xff]   ;;  %v1503_v45 = vld [vmem:[%s1878_s1 + $0x118] sm:$0xff]  }
   0xf   :  { %v1487_v40 = vld [vmem:[%s1879_s0 + $0x28] ss:$20 sps:$4 sm:$0xff]   ;;  %v1496_v44 = vld [vmem:[%s1878_s1 + $0x110] sm:$0xff]   ;;  %v1495_v47 = vld [vmem:[%s1879_s0 + $0x58] ss:$20 sps:$4 sm:$0xff]  }
  0x10   :  { %1259 = vmatpush3.bf16.msra.mxu0 %v1458_v14  ;;  %v1490_v42 = vld [vmem:[%s1879_s0 + $0x54] ss:$20 sps:$4 sm:$0xff]   ;;  %v1492_v43 = vld [vmem:[%s1879_s0 + $0x5c] ss:$20 sps:$4 sm:$0xff]   ;;  %v1499_v49 = vld [vmem:[%s1879_s0 + $0x84] ss:$20 sps:$4 sm:$0xff]  }
  0x11   :  { %1323 = vmatpush3.bf16.msra.mxu1 %v1459_v15  ;;  %1260 = vmatprep.subr.bf16.mxu0 %v1460_v16  ;;  %v1494_v46 = vld [vmem:[%s1879_s0 + $0x50] ss:$20 sps:$4 sm:$0xff]   ;;  %v1517_v51 = vld [vmem:[%s1878_s1 + $0x128] sm:$0xff]   ;;  %v1502_v53 = vld [vmem:[%s1879_s0 + $0x80] ss:$20 sps:$4 sm:$0xff]  }
  0x12   :  { %1324 = vmatprep.subr.bf16.mxu1 %v1461_v17  ;;  %v1497_v48 = vld [vmem:[%s1879_s0 + $0x7c] ss:$20 sps:$4 sm:$0xff]   ;;  %v1510_v50 = vld [vmem:[%s1878_s1 + $0x120] sm:$0xff]   ;;  %v1501_v52 = vld [vmem:[%s1879_s0 + $0x78] ss:$20 sps:$4 sm:$0xff]  }
  0x13   :  { %v1504_v54 = vld [vmem:[%s1879_s0 + $0xa4] ss:$20 sps:$4 sm:$0xff]   ;;  %v1524_v55 = vld [vmem:[%s1878_s1 + $0x130] sm:$0xff]   ;;  %v1506_v56 = vld [vmem:[%s1879_s0 + $0xac] ss:$20 sps:$4 sm:$0xff]  }
  0x14   :  { %1261 = vmatpush3.bf16.msra.mxu0 %v1462_v18  ;;  %v1531_v57 = vld [vmem:[%s1878_s1 + $0x138] sm:$0xff]   ;;  %v1508_v58 = vld [vmem:[%s1879_s0 + $0xa0] ss:$20 sps:$4 sm:$0xff]   ;;  %v1516_v63 = vld [vmem:[%s1879_s0 + $0xd0] ss:$20 sps:$4 sm:$0xff]  }
  0x15   :  { %1325 = vmatpush3.bf16.msra.mxu1 %v1463_v19  ;;  %1262 = vmatprep.subr.bf16.mxu0 %v1464_v20  ;;  %v1509_v59 = vld [vmem:[%s1879_s0 + $0xa8] ss:$20 sps:$4 sm:$0xff]   ;;  %v1511_v60 = vld [vmem:[%s1879_s0 + $0xcc] ss:$20 sps:$4 sm:$0xff]   ;;  %v1522_v2 = vld [vmem:[%s1879_s0 + $0xf0] ss:$20 sps:$4 sm:$0xff]  }
  0x16   :  { %1326 = vmatprep.subr.bf16.mxu1 %v1465_v21  ;;  %v1513_v61 = vld [vmem:[%s1879_s0 + $0xd4] ss:$20 sps:$4 sm:$0xff]   ;;  %v1520_v1 = vld [vmem:[%s1879_s0 + $0xfc] ss:$20 sps:$4 sm:$0xff]   ;;  %v1523_v3 = vld [vmem:[%s1879_s0 + $0xf8] ss:$20 sps:$4 sm:$0xff]  }
  0x17   :  { %v1515_v62 = vld [vmem:[%s1879_s0 + $0xc8] ss:$20 sps:$4 sm:$0xff]   ;;  %v1527_v5 = vld [vmem:[%s1879_s0 + $0x124] ss:$20 sps:$4 sm:$0xff]   ;;  %v1530_v7 = vld [vmem:[%s1879_s0 + $0x120] ss:$20 sps:$4 sm:$0xff]  }
  0x18   :  { %1263 = vmatpush3.bf16.msra.mxu0 %v1466_v22  ;;  %v1518_v0 = vld [vmem:[%s1879_s0 + $0xf4] ss:$20 sps:$4 sm:$0xff]   ;;  %v1525_v4 = vld [vmem:[%s1879_s0 + $0x11c] ss:$20 sps:$4 sm:$0xff]   ;;  %v1529_v6 = vld [vmem:[%s1879_s0 + $0x118] ss:$20 sps:$4 sm:$0xff]  }
  0x19   :  { %1327 = vmatpush3.bf16.msra.mxu1 %v1467_v23  ;;  %1264 = vmatprep.subr.bf16.mxu0 %v1468_v24  ;;  %v1532_v8 = vld [vmem:[%s1879_s0 + $0x10] ss:$20 sps:$4 sm:$0xff]   ;;  %v1534_v10 = vld [vmem:[%s1879_s0 + $0x38] ss:$20 sps:$4 sm:$0xff]   ;;  %v1536_v12 = vld [vmem:[%s1879_s0 + $0x60] ss:$20 sps:$4 sm:$0xff]  }
  0x1a   :  { %1328 = vmatprep.subr.bf16.mxu1 %v1469_v25  ;;  %v1533_v9 = vld [vmem:[%s1879_s0 + $0xb0] ss:$20 sps:$4 sm:$0xff]   ;;  %v1535_v11 = vld [vmem:[%s1879_s0 + $0xd8] ss:$20 sps:$4 sm:$0xff]   ;;  %v1537_v13 = vld [vmem:[%s1879_s0 + $0x100] ss:$20 sps:$4 sm:$0xff]  }
  0x1b   :  { %v1538_v14 = vld [vmem:[%s1879_s0 + $0x88] ss:$20 sps:$4 sm:$0xff]  }
  0x1c   :  { %1265 = vmatpush3.bf16.msra.mxu0 %v1470_v26  ;;  %v1539_v15 = vld [vmem:[%s1879_s0 + $0x128] ss:$20 sps:$4 sm:$0xff]  }
  0x1d   :  { %1329 = vmatpush3.bf16.msra.mxu1 %v1471_v27  ;;  %1266 = vmatprep.subr.bf16.mxu0 %v1472_v28 }
  0x1e   :  { %1330 = vmatprep.subr.bf16.mxu1 %v1473_v29 }
  0x20   :  { %1267 = vmatpush3.bf16.msra.mxu0 %v1474_v30 }
  0x21   :  { %1331 = vmatpush3.bf16.msra.mxu1 %v1475_v31  ;;  %1396 = vmatprep.subr.bf16.mxu0 %v1482_v36 }
  0x22   :  { %1428 = vmatprep.subr.bf16.mxu1 %v1482_v36 }
  0x23   :  { %660 = vmatmul.mubr.bf16.vlgmr.msra.gmra.mrb[0].mxu0 %v1476_v32 }
  0x24   :  { %757 = vmatmul.mubr.bf16.vlgmr.msra.gmra.mrb[0].mxu1 %v1479_v34  ;;  %1397 = vmatpush3.bf16.msra.mxu0 %v1482_v36 }
  0x25   :  { %1436 = vmatpush3.bf16.msra.mxu1 %v1482_v36  ;;  %667 = vmatprep.mubr.bf16.mxu0 %v1483_v37 }
  0x26   :  { %764 = vmatprep.mubr.bf16.mxu1 %v1485_v38  ;;  %1398 = vmatprep.subr.bf16.mxu0 %v1489_v39 }
  0x27   :  { %1429 = vmatprep.subr.bf16.mxu1 %v1489_v39 }
  0x28   :  { %1399 = vmatpush3.bf16.msra.mxu0 %v1489_v39 }
  0x29   :  { %1437 = vmatpush3.bf16.msra.mxu1 %v1489_v39  ;;  %1400 = vmatprep.subr.bf16.mxu0 %v1496_v44 }
  0x2a   :  { %1430 = vmatprep.subr.bf16.mxu1 %v1496_v44 }
  0x2b   :  { %668 = vmatmul.mubr.bf16.gmra.mrb[4].mxu0 %v1487_v40 }
  0x2c   :  { %765 = vmatmul.mubr.bf16.gmra.mrb[4].mxu1 %v1488_v41  ;;  %675 = vmatprep.mubr.bf16.mxu0 %v1490_v42 }
  0x2d   :  { %772 = vmatprep.mubr.bf16.mxu1 %v1492_v43  ;;  %1401 = vmatpush3.bf16.msra.mxu0 %v1496_v44 }
  0x2e   :  { %1438 = vmatpush3.bf16.msra.mxu1 %v1496_v44  ;;  %1402 = vmatprep.subr.bf16.mxu0 %v1503_v45 }
  0x2f   :  { %1431 = vmatprep.subr.bf16.mxu1 %v1503_v45 }
  0x31   :  { %1403 = vmatpush3.bf16.msra.mxu0 %v1503_v45 }
  0x32   :  { %1439 = vmatpush3.bf16.msra.mxu1 %v1503_v45  ;;  %1404 = vmatprep.subr.bf16.mxu0 %v1510_v50 }
  0x33   :  { %676 = vmatmul.mubr.bf16.gmra.mrb[8].mxu0 %v1494_v46  ;;  %1432 = vmatprep.subr.bf16.mxu1 %v1510_v50 }
  0x34   :  { %773 = vmatmul.mubr.bf16.gmra.mrb[8].mxu1 %v1495_v47  ;;  %683 = vmatprep.mubr.bf16.mxu0 %v1497_v48 }
  0x35   :  { %780 = vmatprep.mubr.bf16.mxu1 %v1499_v49  ;;  %1405 = vmatpush3.bf16.msra.mxu0 %v1510_v50 }
  0x36   :  { %1440 = vmatpush3.bf16.msra.mxu1 %v1510_v50  ;;  %1406 = vmatprep.subr.bf16.mxu0 %v1517_v51 }
  0x37   :  { %1433 = vmatprep.subr.bf16.mxu1 %v1517_v51 }
  0x39   :  { %1407 = vmatpush3.bf16.msra.mxu0 %v1517_v51 }
  0x3a   :  { %1441 = vmatpush3.bf16.msra.mxu1 %v1517_v51  ;;  %1408 = vmatprep.subr.bf16.mxu0 %v1524_v55 }
  0x3b   :  { %684 = vmatmul.mubr.bf16.gmra.mrb[12].mxu0 %v1501_v52  ;;  %1434 = vmatprep.subr.bf16.mxu1 %v1524_v55 }
  0x3c   :  { %781 = vmatmul.mubr.bf16.gmra.mrb[12].mxu1 %v1502_v53  ;;  %691 = vmatprep.mubr.bf16.mxu0 %v1504_v54 }
  0x3d   :  { %788 = vmatprep.mubr.bf16.mxu1 %v1506_v56  ;;  %1409 = vmatpush3.bf16.msra.mxu0 %v1524_v55 }
  0x3e   :  { %1442 = vmatpush3.bf16.msra.mxu1 %v1524_v55  ;;  %1410 = vmatprep.subr.bf16.mxu0 %v1531_v57 }
  0x3f   :  { %1435 = vmatprep.subr.bf16.mxu1 %v1531_v57 }
  0x41   :  { %1411 = vmatpush3.bf16.msra.mxu0 %v1531_v57 }
  0x42   :  { %1443 = vmatpush3.bf16.msra.mxu1 %v1531_v57 }
  0x43   :  { %692 = vmatmul.mubr.bf16.gmra.mrb[16].mxu0 %v1508_v58 }
  0x44   :  { %789 = vmatmul.mubr.bf16.gmra.mrb[16].mxu1 %v1509_v59  ;;  %699 = vmatprep.mubr.bf16.mxu0 %v1511_v60 }
  0x45   :  { %796 = vmatprep.mubr.bf16.mxu1 %v1513_v61 }
  0x4b   :  { %700 = vmatmul.mubr.bf16.gmra.mrb[20].mxu0 %v1515_v62 }
  0x4c   :  { %797 = vmatmul.mubr.bf16.gmra.mrb[20].mxu1 %v1516_v63  ;;  %707 = vmatprep.mubr.bf16.mxu0 %v1518_v0 }
  0x4d   :  { %804 = vmatprep.mubr.bf16.mxu1 %v1520_v1 }
  0x53   :  { %708 = vmatmul.mubr.bf16.gmra.mrb[24].mxu0 %v1522_v2 }
  0x54   :  { %805 = vmatmul.mubr.bf16.gmra.mrb[24].mxu1 %v1523_v3  ;;  %715 = vmatprep.mubr.bf16.mxu0 %v1525_v4 }
  0x55   :  { %812 = vmatprep.mubr.bf16.mxu1 %v1527_v5 }
  0x5b   :  { %716 = vmatmul.mubr.bf16.gmra.mrb[28].mxu0 %v1529_v6 }
  0x5c   :  { %813 = vmatmul.mubr.bf16.gmra.mrb[28].mxu1 %v1530_v7  ;;  %1412 = vmatprep.mubr.bf16.mxu0 %v1532_v8 }
  0x5d   :  { %1420 = vmatprep.mubr.bf16.mxu1 %v1533_v9 }
  0x63   :  { %1413 = vmatmul.mubr.bf16.vlgmr.msra.gmra.mrb[32].mxu0 %v1534_v10 }
  0x64   :  { %1421 = vmatmul.mubr.bf16.vlgmr.msra.gmra.mrb[32].mxu1 %v1535_v11  ;;  %1416 = vmatprep.mubr.bf16.mxu0 %v1536_v12 }
  0x65   :  { %1424 = vmatprep.mubr.bf16.mxu1 %v1537_v13 }
  0x6b   :  { %1417 = vmatmul.mubr.bf16.gmra.mrb[36].mxu0 %v1538_v14 }
  0x6c   :  { %1425 = vmatmul.mubr.bf16.gmra.mrb[36].mxu1 %v1539_v15 }
  0xf6   :  { %v1268_v16 = vpop.f32.mrb[0].mxu0 }
  0xf7   :  { %v1332_v17 = vpop.f32.mrb[0].mxu1  ;;  %v1269_v18 = vpop.f32.mrb[1].mxu0 }
  0xf8   :  { %v1270_v19 = vadd.f32 %v1269_v18, %v1268_v16  ;;  %v1333_v20 = vpop.f32.mrb[1].mxu1  ;;  %v1271_v21 = vpop.f32.mrb[2].mxu0 }
  0xf9   :  { %v1334_v22 = vadd.f32 %v1333_v20, %v1332_v17  ;;  %v1335_v23 = vpop.f32.mrb[2].mxu1  ;;  %v1272_v24 = vpop.f32.mrb[3].mxu0 }
  0xfa   :  { %v1273_v25 = vadd.f32 %v1272_v24, %v1271_v21  ;;  %v1336_v26 = vpop.f32.mrb[3].mxu1 }
  0xfb   :  { %v1337_v27 = vadd.f32 %v1336_v26, %v1335_v23  ;;  %v1800_v28 = vadd.f32 %v1334_v22, %v1270_v19 }
  0xfd   :  { %v1802_v29 = vadd.f32 %v1337_v27, %v1273_v25 }
  0xfe   :  { %v1274_v30 = vpop.f32.mrb[4].mxu0 }
  0xff   :  { %v1338_v31 = vpop.f32.mrb[4].mxu1  ;;  %v1275_v32 = vpop.f32.mrb[5].mxu0 }
 0x100   :  { %v1276_v33 = vadd.f32 %v1275_v32, %v1274_v30  ;;  %v1339_v34 = vpop.f32.mrb[5].mxu1  ;;  %v1277_v35 = vpop.f32.mrb[6].mxu0 }
 0x101   :  { %v1340_v36 = vadd.f32 %v1339_v34, %v1338_v31  ;;  %v1341_v37 = vpop.f32.mrb[6].mxu1  ;;  %v1278_v38 = vpop.f32.mrb[7].mxu0 }
 0x102   :  { %v1279_v39 = vadd.f32 %v1278_v38, %v1277_v35  ;;  %v1342_v40 = vpop.f32.mrb[7].mxu1 }
 0x103   :  { %v1343_v41 = vadd.f32 %v1342_v40, %v1341_v37  ;;  %v1804_v42 = vadd.f32 %v1340_v36, %v1276_v33 }
 0x105   :  { %v1806_v43 = vadd.f32 %v1343_v41, %v1279_v39 }
 0x106   :  { %v1280_v44 = vpop.f32.mrb[8].mxu0 }
 0x107   :  { %v1344_v45 = vpop.f32.mrb[8].mxu1  ;;  %v1281_v46 = vpop.f32.mrb[9].mxu0 }
 0x108   :  { %v1282_v47 = vadd.f32 %v1281_v46, %v1280_v44  ;;  %v1345_v48 = vpop.f32.mrb[9].mxu1  ;;  %v1283_v49 = vpop.f32.mrb[10].mxu0 }
 0x109   :  { %v1346_v50 = vadd.f32 %v1345_v48, %v1344_v45  ;;  %v1347_v51 = vpop.f32.mrb[10].mxu1  ;;  %v1284_v52 = vpop.f32.mrb[11].mxu0 }
 0x10a   :  { %v1285_v53 = vadd.f32 %v1284_v52, %v1283_v49  ;;  %v1348_v54 = vpop.f32.mrb[11].mxu1 }
 0x10b   :  { %v1349_v55 = vadd.f32 %v1348_v54, %v1347_v51  ;;  %v1808_v56 = vadd.f32 %v1346_v50, %v1282_v47 }
 0x10d   :  { %v1810_v57 = vadd.f32 %v1349_v55, %v1285_v53 }
 0x10e   :  { %v1286_v58 = vpop.f32.mrb[12].mxu0 }
 0x10f   :  { %v1350_v59 = vpop.f32.mrb[12].mxu1  ;;  %v1287_v60 = vpop.f32.mrb[13].mxu0 }
 0x110   :  { %v1288_v61 = vadd.f32 %v1287_v60, %v1286_v58  ;;  %v1351_v62 = vpop.f32.mrb[13].mxu1  ;;  %v1289_v63 = vpop.f32.mrb[14].mxu0 }
 0x111   :  { %v1352_v0 = vadd.f32 %v1351_v62, %v1350_v59  ;;  %v1353_v1 = vpop.f32.mrb[14].mxu1  ;;  %v1290_v2 = vpop.f32.mrb[15].mxu0 }
 0x112   :  { %v1291_v3 = vadd.f32 %v1290_v2, %v1289_v63  ;;  %v1354_v4 = vpop.f32.mrb[15].mxu1 }
 0x113   :  { %v1355_v5 = vadd.f32 %v1354_v4, %v1353_v1  ;;  %v1812_v6 = vadd.f32 %v1352_v0, %v1288_v61 }
 0x115   :  { %v1814_v7 = vadd.f32 %v1355_v5, %v1291_v3 }
 0x116   :  { %v1292_v8 = vpop.f32.mrb[16].mxu0 }
 0x117   :  { %v1356_v9 = vpop.f32.mrb[16].mxu1  ;;  %v1293_v10 = vpop.f32.mrb[17].mxu0 }
 0x118   :  { %v1294_v11 = vadd.f32 %v1293_v10, %v1292_v8  ;;  %v1357_v12 = vpop.f32.mrb[17].mxu1  ;;  %v1295_v13 = vpop.f32.mrb[18].mxu0 }
 0x119   :  { %v1358_v14 = vadd.f32 %v1357_v12, %v1356_v9  ;;  %v1359_v15 = vpop.f32.mrb[18].mxu1  ;;  %v1296_v16 = vpop.f32.mrb[19].mxu0  ;;  %v1825_v9 = vld [vmem:[%s1880_s2] ss:$0 sm:$0xff] }
 0x11a   :  { %v1297_v17 = vadd.f32 %v1296_v16, %v1295_v13  ;;  %v1360_v18 = vpop.f32.mrb[19].mxu1 }
 0x11b   :  { %v1361_v19 = vadd.f32 %v1360_v18, %v1359_v15  ;;  %v791_v20 = vadd.f32 %v1358_v14, %v1294_v11 }
 0x11d   :  { %v1816_v21 = vadd.f32 %v1361_v19, %v1297_v17 }
 0x11e   :  { %v1298_v22 = vpop.f32.mrb[20].mxu0 }
 0x11f   :  { %v1362_v23 = vpop.f32.mrb[20].mxu1  ;;  %v1299_v24 = vpop.f32.mrb[21].mxu0 }
 0x120   :  { %v1300_v25 = vadd.f32 %v1299_v24, %v1298_v22  ;;  %v1363_v26 = vpop.f32.mrb[21].mxu1  ;;  %v1301_v27 = vpop.f32.mrb[22].mxu0 }
 0x121   :  { %v1364_v30 = vadd.f32 %v1363_v26, %v1362_v23  ;;  %v1365_v31 = vpop.f32.mrb[22].mxu1  ;;  %v1302_v32 = vpop.f32.mrb[23].mxu0 }
 0x122   :  { %v1303_v33 = vadd.f32 %v1302_v32, %v1301_v27  ;;  %v1366_v34 = vpop.f32.mrb[23].mxu1 }
 0x123   :  { %v1367_v35 = vadd.f32 %v1366_v34, %v1365_v31  ;;  %v799_v36 = vadd.f32 %v1364_v30, %v1300_v25 }
 0x125   :  { %v802_v37 = vadd.f32 %v1367_v35, %v1303_v33 }
 0x126   :  { %v1304_v38 = vpop.f32.mrb[24].mxu0 }
 0x127   :  { %v1368_v39 = vpop.f32.mrb[24].mxu1  ;;  %v1305_v40 = vpop.f32.mrb[25].mxu0 }
 0x128   :  { %v1306_v41 = vadd.f32 %v1305_v40, %v1304_v38  ;;  %v1369_v44 = vpop.f32.mrb[25].mxu1  ;;  %v1307_v45 = vpop.f32.mrb[26].mxu0 }
 0x129   :  { %v1370_v46 = vadd.f32 %v1369_v44, %v1368_v39  ;;  %v1371_v47 = vpop.f32.mrb[26].mxu1  ;;  %v1308_v48 = vpop.f32.mrb[27].mxu0 }
 0x12a   :  { %v1309_v49 = vadd.f32 %v1308_v48, %v1307_v45  ;;  %v1372_v50 = vpop.f32.mrb[27].mxu1 }
 0x12b   :  { %v1373_v51 = vadd.f32 %v1372_v50, %v1371_v47  ;;  %v1818_v52 = vadd.f32 %v1370_v46, %v1306_v41 }
 0x12d   :  { %v1820_v53 = vadd.f32 %v1373_v51, %v1309_v49 }
 0x12e   :  { %v1310_v54 = vpop.f32.mrb[28].mxu0 }
 0x12f   :  { %v1374_v55 = vpop.f32.mrb[28].mxu1  ;;  %v1311_v58 = vpop.f32.mrb[29].mxu0 }
 0x130   :  { %v1312_v59 = vadd.f32 %v1311_v58, %v1310_v54  ;;  %v1375_v60 = vpop.f32.mrb[29].mxu1  ;;  %v1313_v61 = vpop.f32.mrb[30].mxu0 }
 0x131   :  { %v1376_v62 = vadd.f32 %v1375_v60, %v1374_v55  ;;  %v1377_v63 = vpop.f32.mrb[30].mxu1  ;;  %v1314_v0 = vpop.f32.mrb[31].mxu0 }
 0x132   :  { %v1315_v1 = vadd.f32 %v1314_v0, %v1313_v61  ;;  %v1378_v2 = vpop.f32.mrb[31].mxu1 }
 0x133   :  { %v1379_v3 = vadd.f32 %v1378_v2, %v1377_v63  ;;  %v815_v4 = vadd.f32 %v1376_v62, %v1312_v59 }
 0x135   :  { %v818_v5 = vadd.f32 %v1379_v3, %v1315_v1 }
 0x136   :  { %v1414_v8 = vpop.f32.mrb[32].mxu0 }
 0x137   :  { %v864_v10 = vadd.f32 %v1414_v8, %v1804_v42  ;;  %v1422_v11 = vpop.f32.mrb[32].mxu1  ;;  %v855_v12 = vpop.f32.mrb[33].mxu0 }
 0x138   :  { %v896_v13 = vadd.f32 %v1422_v11, %v799_v36  ;;  %v856_v14 = vadd.f32 %v855_v12, %v1800_v28  ;;  %v887_v15 = vpop.f32.mrb[33].mxu1  ;;  %v1415_v16 = vpop.f32.mrb[34].mxu0 }
 0x139   :  { %v978_v17 = vadd.f32 %v1825_v9, %v864_v10  ;;  %v888_v18 = vadd.f32 %v887_v15, %v791_v20  ;;  %v867_v19 = vadd.f32 %v1415_v16, %v1806_v43  ;;  %v1423_v22 = vpop.f32.mrb[34].mxu1  ;;  %v858_v23 = vpop.f32.mrb[35].mxu0 }
 0x13a   :  { %v986_v24 = vadd.f32 %v1825_v9, %v896_v13  ;;  %v976_v25 = vadd.f32 %v1825_v9, %v856_v14  ;;  %v899_v26 = vadd.f32 %v1423_v22, %v802_v37  ;;  %v859_v42 = vadd.f32 %v858_v23, %v1802_v29  ;;  %v890_v27 = vpop.f32.mrb[35].mxu1 }
 0x13b   :  { %v984_v30 = vadd.f32 %v1825_v9, %v888_v18  ;;  %v979_v28 = vadd.f32 %v1825_v9, %v867_v19  ;;  %v891_v31 = vadd.f32 %v890_v27, %v1816_v21  ;;  %v994_v32 = vmax.f32 %v978_v17, 0.0 }
 0x13c   :  { %v987_v20 = vadd.f32 %v1825_v9, %v899_v26  ;;  %v977_v43 = vadd.f32 %v1825_v9, %v859_v42  ;;  %v1002_v35 = vmax.f32 %v986_v24, 0.0  ;;  %v992_v36 = vmax.f32 %v976_v25, 0.0 }
 0x13d   :  { %v995_v33 = vmax.f32 %v979_v28, 0.0  ;;  %v985_v34 = vadd.f32 %v1825_v9, %v891_v31  ;;  %v1000_v39 = vmax.f32 %v984_v30, 0.0 }
 0x13e   :  { %v1003_v37 = vmax.f32 %v987_v20, 0.0  ;;  %v993_v38 = vmax.f32 %v977_v43, 0.0  ;;  %v1418_v29 = vpop.f32.mrb[36].mxu0 }
 0x13f   :  { %v1213_v40 = vpack.c.bf16 %v995_v33, %v994_v32  ;;  %v1001_v41 = vmax.f32 %v985_v34, 0.0  ;;  %v880_v44 = vadd.f32 %v1418_v29, %v1812_v6  ;;  %v1426_v45 = vpop.f32.mrb[36].mxu1  ;;  %v871_v21 = vpop.f32.mrb[37].mxu0 }
 0x140   :  { %v1233_v46 = vpack.c.bf16 %v1003_v37, %v1002_v35  ;;  %v1208_v47 = vpack.c.bf16 %v993_v38, %v992_v36  ;;  %v912_v48 = vadd.f32 %v1426_v45, %v815_v4  ;;  %v872_v49 = vadd.f32 %v871_v21, %v1808_v56  ;;  %v903_v50 = vpop.f32.mrb[37].mxu1  ;;  %v1419_v51 = vpop.f32.mrb[38].mxu0 }
 0x141   :  { %1245 = vst [vmem:[%s1881_s3 + $0x8] sm:$0xff] %v1213_v40   ;;  %v1228_v54 = vpack.c.bf16 %v1001_v41, %v1000_v39  ;;  %v982_v55 = vadd.f32 %v1825_v9, %v880_v44  ;;  %v904_v58 = vadd.f32 %v903_v50, %v1818_v52  ;;  %v883_v6 = vadd.f32 %v1419_v51, %v1814_v7  ;;  %v1427_v59 = vpop.f32.mrb[38].mxu1  ;;  %v874_v60 = vpop.f32.mrb[39].mxu0 }
 0x142   :  { %1249 = vst [vmem:[%s1881_s3 + $0x28] sm:$0xff] %v1233_v46   ;;  %1209 = vst [vmem:[%s1881_s3] sm:$0xff] %v1208_v47   ;;  %v990_v56 = vadd.f32 %v1825_v9, %v912_v48  ;;  %v980_v61 = vadd.f32 %v1825_v9, %v872_v49  ;;  %v915_v62 = vadd.f32 %v1427_v59, %v818_v5  ;;  %v906_v52 = vpop.f32.mrb[39].mxu1 }
 0x143   :  { %v875_v63 = vadd.f32 %v874_v60, %v1810_v57  ;;  %1248 = vst [vmem:[%s1881_s3 + $0x20] sm:$0xff] %v1228_v54   ;;  %v988_v7 = vadd.f32 %v1825_v9, %v904_v58  ;;  %v983_v0 = vadd.f32 %v1825_v9, %v883_v6  ;;  %v907_v1 = vadd.f32 %v906_v52, %v1820_v53 }
 0x144   :  { %v991_v2 = vadd.f32 %v1825_v9, %v915_v62  ;;  %v998_v4 = vmax.f32 %v982_v55, 0.0  ;;  %v1006_v57 = vmax.f32 %v990_v56, 0.0  ;;  %v996_v10 = vmax.f32 %v980_v61, 0.0 }
 0x145   :  { %v981_v3 = vadd.f32 %v1825_v9, %v875_v63  ;;  %v999_v8 = vmax.f32 %v983_v0, 0.0  ;;  %v989_v5 = vadd.f32 %v1825_v9, %v907_v1  ;;  %v1004_v13 = vmax.f32 %v988_v7, 0.0 }
 0x146   :  { %v1007_v11 = vmax.f32 %v991_v2, 0.0 }
 0x147   :  { %v997_v12 = vmax.f32 %v981_v3, 0.0  ;;  %v1223_v14 = vpack.c.bf16 %v999_v8, %v998_v4  ;;  %v1005_v15 = vmax.f32 %v989_v5, 0.0 }
 0x148   :  { %v1243_v16 = vpack.c.bf16 %v1007_v11, %v1006_v57 }
 0x149   :  { %v1218_v17 = vpack.c.bf16 %v997_v12, %v996_v10  ;;  %1247 = vst [vmem:[%s1881_s3 + $0x18] sm:$0xff] %v1223_v14   ;;  %v1238_v53 = vpack.c.bf16 %v1005_v15, %v1004_v13 }
 0x14a   :  { %1251 = vst [vmem:[%s1881_s3 + $0x38] sm:$0xff] %v1243_v16  }
 0x14b   :  { %1246 = vst [vmem:[%s1881_s3 + $0x10] sm:$0xff] %v1218_v17   ;;  %1250 = vst [vmem:[%s1881_s3 + $0x30] sm:$0xff] %v1238_v53  }

// kernel: resnet_forward.16
= control target key start
LH: loop header
LB: loop body
LE: loop exit
PB: predicated region body
PF: predicated region fallthrough
CT: control target
= control target key end

     0   :  { %s2033_s1 = inlined_call_operand.vmem [shape: bf16[640,128], index: 1, kind: input, shape index: {}]   ;;  %s2034_s0 = inlined_call_operand.vmem [shape: bf16[128,640], index: 0, kind: input, shape index: {}]   ;;  %s2035_s3 = inlined_call_operand.vmem [shape: bf16[128,128], index: 3, kind: input, shape index: {}]   ;;  %s2036_s2 = inlined_call_operand.vmem [shape: f32[1,128], index: 2, kind: input, shape index: {}]   ;;  %s2037_s4 = inlined_call_operand.vmem [shape: bf16[128,128], index: 4, kind: output, shape index: {}]  }
   0x1   :  { %v1534_v0 = vld [vmem:[%s2033_s1 + $0x40] sm:$0xff]   ;;  %v1538_v4 = vld [vmem:[%s2033_s1 + $0x48] sm:$0xff]   ;;  %v1542_v8 = vld [vmem:[%s2033_s1 + $0x50] sm:$0xff]  }
   0x2   :  { %v1535_v1 = vld [vmem:[%s2033_s1 + $0xc0] sm:$0xff]   ;;  %1342 = vmatprep.subr.bf16.mxu0 %v1534_v0  ;;  %v1539_v5 = vld [vmem:[%s2033_s1 + $0xc8] sm:$0xff]   ;;  %v1543_v9 = vld [vmem:[%s2033_s1 + $0xd0] sm:$0xff]  }
   0x3   :  { %v1536_v2 = vld [vmem:[%s2033_s1] sm:$0xff]   ;;  %1406 = vmatprep.subr.bf16.mxu1 %v1535_v1  ;;  %v1540_v6 = vld [vmem:[%s2033_s1 + $0x8] sm:$0xff]   ;;  %v1544_v10 = vld [vmem:[%s2033_s1 + $0x10] sm:$0xff]  }
   0x4   :  { %v1537_v3 = vld [vmem:[%s2033_s1 + $0x80] sm:$0xff]   ;;  %1343 = vmatpush3.bf16.msra.mxu0 %v1536_v2  ;;  %v1541_v7 = vld [vmem:[%s2033_s1 + $0x88] sm:$0xff]   ;;  %v1545_v11 = vld [vmem:[%s2033_s1 + $0x90] sm:$0xff]  }
   0x5   :  { %1407 = vmatpush3.bf16.msra.mxu1 %v1537_v3  ;;  %1344 = vmatprep.subr.bf16.mxu0 %v1538_v4  ;;  %v1546_v12 = vld [vmem:[%s2033_s1 + $0x58] sm:$0xff]   ;;  %v1550_v16 = vld [vmem:[%s2033_s1 + $0x60] sm:$0xff]   ;;  %v1554_v20 = vld [vmem:[%s2033_s1 + $0x68] sm:$0xff]  }
   0x6   :  { %1408 = vmatprep.subr.bf16.mxu1 %v1539_v5  ;;  %v1547_v13 = vld [vmem:[%s2033_s1 + $0xd8] sm:$0xff]   ;;  %v1551_v17 = vld [vmem:[%s2033_s1 + $0xe0] sm:$0xff]   ;;  %v1555_v21 = vld [vmem:[%s2033_s1 + $0xe8] sm:$0xff]  }
   0x7   :  { %v1548_v14 = vld [vmem:[%s2033_s1 + $0x18] sm:$0xff]   ;;  %v1552_v18 = vld [vmem:[%s2033_s1 + $0x20] sm:$0xff]   ;;  %v1556_v22 = vld [vmem:[%s2033_s1 + $0x28] sm:$0xff]  }
   0x8   :  { %1345 = vmatpush3.bf16.msra.mxu0 %v1540_v6  ;;  %v1549_v15 = vld [vmem:[%s2033_s1 + $0x98] sm:$0xff]   ;;  %v1553_v19 = vld [vmem:[%s2033_s1 + $0xa0] sm:$0xff]   ;;  %v1557_v23 = vld [vmem:[%s2033_s1 + $0xa8] sm:$0xff]  }
   0x9   :  { %1409 = vmatpush3.bf16.msra.mxu1 %v1541_v7  ;;  %1346 = vmatprep.subr.bf16.mxu0 %v1542_v8  ;;  %v1558_v24 = vld [vmem:[%s2033_s1 + $0x70] sm:$0xff]   ;;  %v1562_v28 = vld [vmem:[%s2033_s1 + $0x78] sm:$0xff]   ;;  %v1571_v35 = vld [vmem:[%s2034_s0 + $0xc] ss:$20 sps:$4 sm:$0xff]  }
   0xa   :  { %1410 = vmatprep.subr.bf16.mxu1 %v1543_v9  ;;  %v1559_v25 = vld [vmem:[%s2033_s1 + $0xf0] sm:$0xff]   ;;  %v1563_v29 = vld [vmem:[%s2033_s1 + $0xf8] sm:$0xff]   ;;  %v1572_v36 = vld [vmem:[%s2033_s1 + $0x100] sm:$0xff]   ;;  %759 = vmatprep.mubr.bf16.mxu1 %v1571_v35 }
   0xb   :  { %v1560_v26 = vld [vmem:[%s2033_s1 + $0x30] sm:$0xff]   ;;  %v1564_v30 = vld [vmem:[%s2033_s1 + $0x38] sm:$0xff]   ;;  %v1573_v37 = vld [vmem:[%s2034_s0 + $0x2c] ss:$20 sps:$4 sm:$0xff]  }
   0xc   :  { %1347 = vmatpush3.bf16.msra.mxu0 %v1544_v10  ;;  %v1561_v27 = vld [vmem:[%s2033_s1 + $0xb0] sm:$0xff]   ;;  %v1565_v31 = vld [vmem:[%s2033_s1 + $0xb8] sm:$0xff]   ;;  %v1579_v39 = vld [vmem:[%s2033_s1 + $0x108] sm:$0xff]  }
   0xd   :  { %1411 = vmatpush3.bf16.msra.mxu1 %v1545_v11  ;;  %1348 = vmatprep.subr.bf16.mxu0 %v1546_v12  ;;  %v1566_v32 = vld [vmem:[%s2034_s0] ss:$20 sps:$4 sm:$0xff]   ;;  %v1568_v33 = vld [vmem:[%s2034_s0 + $0x4] ss:$20 sps:$4 sm:$0xff]   ;;  %v1569_v34 = vld [vmem:[%s2034_s0 + $0x8] ss:$20 sps:$4 sm:$0xff]  }
   0xe   :  { %1412 = vmatprep.subr.bf16.mxu1 %v1547_v13  ;;  %662 = vmatprep.mubr.bf16.mxu0 %v1568_v33  ;;  %v1575_v38 = vld [vmem:[%s2034_s0 + $0x34] ss:$20 sps:$4 sm:$0xff]   ;;  %v1578_v41 = vld [vmem:[%s2034_s0 + $0x30] ss:$20 sps:$4 sm:$0xff]   ;;  %v1593_v45 = vld [vmem:[%s2033_s1 + $0x118] sm:$0xff]  }
   0xf   :  { %v1577_v40 = vld [vmem:[%s2034_s0 + $0x28] ss:$20 sps:$4 sm:$0xff]   ;;  %v1586_v44 = vld [vmem:[%s2033_s1 + $0x110] sm:$0xff]   ;;  %v1585_v47 = vld [vmem:[%s2034_s0 + $0x58] ss:$20 sps:$4 sm:$0xff]  }
  0x10   :  { %1349 = vmatpush3.bf16.msra.mxu0 %v1548_v14  ;;  %v1580_v42 = vld [vmem:[%s2034_s0 + $0x54] ss:$20 sps:$4 sm:$0xff]   ;;  %v1582_v43 = vld [vmem:[%s2034_s0 + $0x5c] ss:$20 sps:$4 sm:$0xff]   ;;  %v1589_v49 = vld [vmem:[%s2034_s0 + $0x84] ss:$20 sps:$4 sm:$0xff]  }
  0x11   :  { %1413 = vmatpush3.bf16.msra.mxu1 %v1549_v15  ;;  %1350 = vmatprep.subr.bf16.mxu0 %v1550_v16  ;;  %v1584_v46 = vld [vmem:[%s2034_s0 + $0x50] ss:$20 sps:$4 sm:$0xff]   ;;  %v1607_v51 = vld [vmem:[%s2033_s1 + $0x128] sm:$0xff]   ;;  %v1592_v53 = vld [vmem:[%s2034_s0 + $0x80] ss:$20 sps:$4 sm:$0xff]  }
  0x12   :  { %1414 = vmatprep.subr.bf16.mxu1 %v1551_v17  ;;  %v1587_v48 = vld [vmem:[%s2034_s0 + $0x7c] ss:$20 sps:$4 sm:$0xff]   ;;  %v1600_v50 = vld [vmem:[%s2033_s1 + $0x120] sm:$0xff]   ;;  %v1591_v52 = vld [vmem:[%s2034_s0 + $0x78] ss:$20 sps:$4 sm:$0xff]  }
  0x13   :  { %v1594_v54 = vld [vmem:[%s2034_s0 + $0xa4] ss:$20 sps:$4 sm:$0xff]   ;;  %v1614_v55 = vld [vmem:[%s2033_s1 + $0x130] sm:$0xff]   ;;  %v1596_v56 = vld [vmem:[%s2034_s0 + $0xac] ss:$20 sps:$4 sm:$0xff]  }
  0x14   :  { %1351 = vmatpush3.bf16.msra.mxu0 %v1552_v18  ;;  %v1621_v57 = vld [vmem:[%s2033_s1 + $0x138] sm:$0xff]   ;;  %v1598_v58 = vld [vmem:[%s2034_s0 + $0xa0] ss:$20 sps:$4 sm:$0xff]   ;;  %v1606_v63 = vld [vmem:[%s2034_s0 + $0xd0] ss:$20 sps:$4 sm:$0xff]  }
  0x15   :  { %1415 = vmatpush3.bf16.msra.mxu1 %v1553_v19  ;;  %1352 = vmatprep.subr.bf16.mxu0 %v1554_v20  ;;  %v1599_v59 = vld [vmem:[%s2034_s0 + $0xa8] ss:$20 sps:$4 sm:$0xff]   ;;  %v1601_v60 = vld [vmem:[%s2034_s0 + $0xcc] ss:$20 sps:$4 sm:$0xff]   ;;  %v1612_v2 = vld [vmem:[%s2034_s0 + $0xf0] ss:$20 sps:$4 sm:$0xff]  }
  0x16   :  { %1416 = vmatprep.subr.bf16.mxu1 %v1555_v21  ;;  %v1603_v61 = vld [vmem:[%s2034_s0 + $0xd4] ss:$20 sps:$4 sm:$0xff]   ;;  %v1610_v1 = vld [vmem:[%s2034_s0 + $0xfc] ss:$20 sps:$4 sm:$0xff]   ;;  %v1613_v3 = vld [vmem:[%s2034_s0 + $0xf8] ss:$20 sps:$4 sm:$0xff]  }
  0x17   :  { %v1605_v62 = vld [vmem:[%s2034_s0 + $0xc8] ss:$20 sps:$4 sm:$0xff]   ;;  %v1617_v5 = vld [vmem:[%s2034_s0 + $0x124] ss:$20 sps:$4 sm:$0xff]   ;;  %v1620_v7 = vld [vmem:[%s2034_s0 + $0x120] ss:$20 sps:$4 sm:$0xff]  }
  0x18   :  { %1353 = vmatpush3.bf16.msra.mxu0 %v1556_v22  ;;  %v1608_v0 = vld [vmem:[%s2034_s0 + $0xf4] ss:$20 sps:$4 sm:$0xff]   ;;  %v1615_v4 = vld [vmem:[%s2034_s0 + $0x11c] ss:$20 sps:$4 sm:$0xff]   ;;  %v1619_v6 = vld [vmem:[%s2034_s0 + $0x118] ss:$20 sps:$4 sm:$0xff]  }
  0x19   :  { %1417 = vmatpush3.bf16.msra.mxu1 %v1557_v23  ;;  %1354 = vmatprep.subr.bf16.mxu0 %v1558_v24  ;;  %v1622_v8 = vld [vmem:[%s2034_s0 + $0x10] ss:$20 sps:$4 sm:$0xff]   ;;  %v1624_v10 = vld [vmem:[%s2034_s0 + $0x38] ss:$20 sps:$4 sm:$0xff]   ;;  %v1626_v12 = vld [vmem:[%s2034_s0 + $0x60] ss:$20 sps:$4 sm:$0xff]  }
  0x1a   :  { %1418 = vmatprep.subr.bf16.mxu1 %v1559_v25  ;;  %v1623_v9 = vld [vmem:[%s2034_s0 + $0xb0] ss:$20 sps:$4 sm:$0xff]   ;;  %v1625_v11 = vld [vmem:[%s2034_s0 + $0xd8] ss:$20 sps:$4 sm:$0xff]   ;;  %v1627_v13 = vld [vmem:[%s2034_s0 + $0x100] ss:$20 sps:$4 sm:$0xff]  }
  0x1b   :  { %v1628_v14 = vld [vmem:[%s2034_s0 + $0x88] ss:$20 sps:$4 sm:$0xff]  }
  0x1c   :  { %1355 = vmatpush3.bf16.msra.mxu0 %v1560_v26  ;;  %v1629_v15 = vld [vmem:[%s2034_s0 + $0x128] ss:$20 sps:$4 sm:$0xff]  }
  0x1d   :  { %1419 = vmatpush3.bf16.msra.mxu1 %v1561_v27  ;;  %1356 = vmatprep.subr.bf16.mxu0 %v1562_v28 }
  0x1e   :  { %1420 = vmatprep.subr.bf16.mxu1 %v1563_v29 }
  0x20   :  { %1357 = vmatpush3.bf16.msra.mxu0 %v1564_v30 }
  0x21   :  { %1421 = vmatpush3.bf16.msra.mxu1 %v1565_v31  ;;  %1486 = vmatprep.subr.bf16.mxu0 %v1572_v36 }
  0x22   :  { %1518 = vmatprep.subr.bf16.mxu1 %v1572_v36 }
  0x23   :  { %663 = vmatmul.mubr.bf16.vlgmr.msra.gmra.mrb[0].mxu0 %v1566_v32 }
  0x24   :  { %760 = vmatmul.mubr.bf16.vlgmr.msra.gmra.mrb[0].mxu1 %v1569_v34  ;;  %1487 = vmatpush3.bf16.msra.mxu0 %v1572_v36 }
  0x25   :  { %1526 = vmatpush3.bf16.msra.mxu1 %v1572_v36  ;;  %670 = vmatprep.mubr.bf16.mxu0 %v1573_v37 }
  0x26   :  { %767 = vmatprep.mubr.bf16.mxu1 %v1575_v38  ;;  %1488 = vmatprep.subr.bf16.mxu0 %v1579_v39 }
  0x27   :  { %1519 = vmatprep.subr.bf16.mxu1 %v1579_v39 }
  0x28   :  { %1489 = vmatpush3.bf16.msra.mxu0 %v1579_v39 }
  0x29   :  { %1527 = vmatpush3.bf16.msra.mxu1 %v1579_v39  ;;  %1490 = vmatprep.subr.bf16.mxu0 %v1586_v44 }
  0x2a   :  { %1520 = vmatprep.subr.bf16.mxu1 %v1586_v44 }
  0x2b   :  { %671 = vmatmul.mubr.bf16.gmra.mrb[4].mxu0 %v1577_v40 }
  0x2c   :  { %768 = vmatmul.mubr.bf16.gmra.mrb[4].mxu1 %v1578_v41  ;;  %678 = vmatprep.mubr.bf16.mxu0 %v1580_v42 }
  0x2d   :  { %775 = vmatprep.mubr.bf16.mxu1 %v1582_v43  ;;  %1491 = vmatpush3.bf16.msra.mxu0 %v1586_v44 }
  0x2e   :  { %1528 = vmatpush3.bf16.msra.mxu1 %v1586_v44  ;;  %1492 = vmatprep.subr.bf16.mxu0 %v1593_v45 }
  0x2f   :  { %1521 = vmatprep.subr.bf16.mxu1 %v1593_v45 }
  0x31   :  { %1493 = vmatpush3.bf16.msra.mxu0 %v1593_v45 }
  0x32   :  { %1529 = vmatpush3.bf16.msra.mxu1 %v1593_v45  ;;  %1494 = vmatprep.subr.bf16.mxu0 %v1600_v50 }
  0x33   :  { %679 = vmatmul.mubr.bf16.gmra.mrb[8].mxu0 %v1584_v46  ;;  %1522 = vmatprep.subr.bf16.mxu1 %v1600_v50 }
  0x34   :  { %776 = vmatmul.mubr.bf16.gmra.mrb[8].mxu1 %v1585_v47  ;;  %686 = vmatprep.mubr.bf16.mxu0 %v1587_v48 }
  0x35   :  { %783 = vmatprep.mubr.bf16.mxu1 %v1589_v49  ;;  %1495 = vmatpush3.bf16.msra.mxu0 %v1600_v50 }
  0x36   :  { %1530 = vmatpush3.bf16.msra.mxu1 %v1600_v50  ;;  %1496 = vmatprep.subr.bf16.mxu0 %v1607_v51 }
  0x37   :  { %1523 = vmatprep.subr.bf16.mxu1 %v1607_v51 }
  0x39   :  { %1497 = vmatpush3.bf16.msra.mxu0 %v1607_v51 }
  0x3a   :  { %1531 = vmatpush3.bf16.msra.mxu1 %v1607_v51  ;;  %1498 = vmatprep.subr.bf16.mxu0 %v1614_v55 }
  0x3b   :  { %687 = vmatmul.mubr.bf16.gmra.mrb[12].mxu0 %v1591_v52  ;;  %1524 = vmatprep.subr.bf16.mxu1 %v1614_v55 }
  0x3c   :  { %784 = vmatmul.mubr.bf16.gmra.mrb[12].mxu1 %v1592_v53  ;;  %694 = vmatprep.mubr.bf16.mxu0 %v1594_v54 }
  0x3d   :  { %791 = vmatprep.mubr.bf16.mxu1 %v1596_v56  ;;  %1499 = vmatpush3.bf16.msra.mxu0 %v1614_v55 }
  0x3e   :  { %1532 = vmatpush3.bf16.msra.mxu1 %v1614_v55  ;;  %1500 = vmatprep.subr.bf16.mxu0 %v1621_v57 }
  0x3f   :  { %1525 = vmatprep.subr.bf16.mxu1 %v1621_v57 }
  0x41   :  { %1501 = vmatpush3.bf16.msra.mxu0 %v1621_v57 }
  0x42   :  { %1533 = vmatpush3.bf16.msra.mxu1 %v1621_v57 }
  0x43   :  { %695 = vmatmul.mubr.bf16.gmra.mrb[16].mxu0 %v1598_v58 }
  0x44   :  { %792 = vmatmul.mubr.bf16.gmra.mrb[16].mxu1 %v1599_v59  ;;  %702 = vmatprep.mubr.bf16.mxu0 %v1601_v60 }
  0x45   :  { %799 = vmatprep.mubr.bf16.mxu1 %v1603_v61 }
  0x4b   :  { %703 = vmatmul.mubr.bf16.gmra.mrb[20].mxu0 %v1605_v62 }
  0x4c   :  { %800 = vmatmul.mubr.bf16.gmra.mrb[20].mxu1 %v1606_v63  ;;  %710 = vmatprep.mubr.bf16.mxu0 %v1608_v0 }
  0x4d   :  { %807 = vmatprep.mubr.bf16.mxu1 %v1610_v1 }
  0x53   :  { %711 = vmatmul.mubr.bf16.gmra.mrb[24].mxu0 %v1612_v2 }
  0x54   :  { %808 = vmatmul.mubr.bf16.gmra.mrb[24].mxu1 %v1613_v3  ;;  %718 = vmatprep.mubr.bf16.mxu0 %v1615_v4 }
  0x55   :  { %815 = vmatprep.mubr.bf16.mxu1 %v1617_v5 }
  0x5b   :  { %719 = vmatmul.mubr.bf16.gmra.mrb[28].mxu0 %v1619_v6 }
  0x5c   :  { %816 = vmatmul.mubr.bf16.gmra.mrb[28].mxu1 %v1620_v7  ;;  %1502 = vmatprep.mubr.bf16.mxu0 %v1622_v8 }
  0x5d   :  { %1510 = vmatprep.mubr.bf16.mxu1 %v1623_v9 }
  0x63   :  { %1503 = vmatmul.mubr.bf16.vlgmr.msra.gmra.mrb[32].mxu0 %v1624_v10 }
  0x64   :  { %1511 = vmatmul.mubr.bf16.vlgmr.msra.gmra.mrb[32].mxu1 %v1625_v11  ;;  %1506 = vmatprep.mubr.bf16.mxu0 %v1626_v12 }
  0x65   :  { %1514 = vmatprep.mubr.bf16.mxu1 %v1627_v13 }
  0x6b   :  { %1507 = vmatmul.mubr.bf16.gmra.mrb[36].mxu0 %v1628_v14 }
  0x6c   :  { %1515 = vmatmul.mubr.bf16.gmra.mrb[36].mxu1 %v1629_v15 }
  0xf6   :  { %v1358_v16 = vpop.f32.mrb[0].mxu0 }
  0xf7   :  { %v1422_v17 = vpop.f32.mrb[0].mxu1  ;;  %v1359_v18 = vpop.f32.mrb[1].mxu0 }
  0xf8   :  { %v1360_v19 = vadd.f32 %v1359_v18, %v1358_v16  ;;  %v1423_v20 = vpop.f32.mrb[1].mxu1  ;;  %v1361_v21 = vpop.f32.mrb[2].mxu0 }
  0xf9   :  { %v1424_v22 = vadd.f32 %v1423_v20, %v1422_v17  ;;  %v1425_v23 = vpop.f32.mrb[2].mxu1  ;;  %v1362_v24 = vpop.f32.mrb[3].mxu0 }
  0xfa   :  { %v1363_v25 = vadd.f32 %v1362_v24, %v1361_v21  ;;  %v1426_v26 = vpop.f32.mrb[3].mxu1 }
  0xfb   :  { %v1427_v27 = vadd.f32 %v1426_v26, %v1425_v23  ;;  %v1895_v28 = vadd.f32 %v1424_v22, %v1360_v19 }
  0xfd   :  { %v1897_v29 = vadd.f32 %v1427_v27, %v1363_v25 }
  0xfe   :  { %v1364_v30 = vpop.f32.mrb[4].mxu0 }
  0xff   :  { %v1428_v31 = vpop.f32.mrb[4].mxu1  ;;  %v1365_v32 = vpop.f32.mrb[5].mxu0 }
 0x100   :  { %v1366_v33 = vadd.f32 %v1365_v32, %v1364_v30  ;;  %v1429_v34 = vpop.f32.mrb[5].mxu1  ;;  %v1367_v35 = vpop.f32.mrb[6].mxu0 }
 0x101   :  { %v1430_v36 = vadd.f32 %v1429_v34, %v1428_v31  ;;  %v1431_v37 = vpop.f32.mrb[6].mxu1  ;;  %v1368_v38 = vpop.f32.mrb[7].mxu0 }
 0x102   :  { %v1369_v39 = vadd.f32 %v1368_v38, %v1367_v35  ;;  %v1432_v40 = vpop.f32.mrb[7].mxu1 }
 0x103   :  { %v1433_v41 = vadd.f32 %v1432_v40, %v1431_v37  ;;  %v1899_v42 = vadd.f32 %v1430_v36, %v1366_v33 }
 0x105   :  { %v1901_v43 = vadd.f32 %v1433_v41, %v1369_v39 }
 0x106   :  { %v1370_v44 = vpop.f32.mrb[8].mxu0 }
 0x107   :  { %v1434_v45 = vpop.f32.mrb[8].mxu1  ;;  %v1371_v46 = vpop.f32.mrb[9].mxu0 }
 0x108   :  { %v1372_v47 = vadd.f32 %v1371_v46, %v1370_v44  ;;  %v1435_v48 = vpop.f32.mrb[9].mxu1  ;;  %v1373_v49 = vpop.f32.mrb[10].mxu0 }
 0x109   :  { %v1436_v50 = vadd.f32 %v1435_v48, %v1434_v45  ;;  %v1437_v51 = vpop.f32.mrb[10].mxu1  ;;  %v1374_v52 = vpop.f32.mrb[11].mxu0 }
 0x10a   :  { %v1375_v53 = vadd.f32 %v1374_v52, %v1373_v49  ;;  %v1438_v54 = vpop.f32.mrb[11].mxu1 }
 0x10b   :  { %v1439_v55 = vadd.f32 %v1438_v54, %v1437_v51  ;;  %v1903_v56 = vadd.f32 %v1436_v50, %v1372_v47 }
 0x10d   :  { %v1905_v57 = vadd.f32 %v1439_v55, %v1375_v53 }
 0x10e   :  { %v1376_v58 = vpop.f32.mrb[12].mxu0 }
 0x10f   :  { %v1440_v59 = vpop.f32.mrb[12].mxu1  ;;  %v1377_v60 = vpop.f32.mrb[13].mxu0 }
 0x110   :  { %v1378_v61 = vadd.f32 %v1377_v60, %v1376_v58  ;;  %v1441_v62 = vpop.f32.mrb[13].mxu1  ;;  %v1379_v63 = vpop.f32.mrb[14].mxu0 }
 0x111   :  { %v1442_v0 = vadd.f32 %v1441_v62, %v1440_v59  ;;  %v1443_v1 = vpop.f32.mrb[14].mxu1  ;;  %v1380_v2 = vpop.f32.mrb[15].mxu0 }
 0x112   :  { %v1381_v3 = vadd.f32 %v1380_v2, %v1379_v63  ;;  %v1444_v4 = vpop.f32.mrb[15].mxu1 }
 0x113   :  { %v1445_v5 = vadd.f32 %v1444_v4, %v1443_v1  ;;  %v1907_v6 = vadd.f32 %v1442_v0, %v1378_v61  ;;  %v1332_v4 = vld [vmem:[%s2035_s3 + $0x28] sm:$0xff]  }
 0x115   :  { %v1909_v7 = vadd.f32 %v1445_v5, %v1381_v3  ;;  %v1328_v3 = vld [vmem:[%s2035_s3 + $0x8] sm:$0xff]  }
 0x116   :  { %v1382_v8 = vpop.f32.mrb[16].mxu0 }
 0x117   :  { %v1446_v9 = vpop.f32.mrb[16].mxu1  ;;  %v1383_v10 = vpop.f32.mrb[17].mxu0 }
 0x118   :  { %v1384_v11 = vadd.f32 %v1383_v10, %v1382_v8  ;;  %v1447_v12 = vpop.f32.mrb[17].mxu1  ;;  %v1385_v13 = vpop.f32.mrb[18].mxu0  ;;  %v1257_v8 = vld [vmem:[%s2035_s3] sm:$0xff]  }
 0x119   :  { %v1448_v14 = vadd.f32 %v1447_v12, %v1446_v9  ;;  %v1449_v15 = vpop.f32.mrb[18].mxu1  ;;  %v1386_v16 = vpop.f32.mrb[19].mxu0  ;;  %v1331_v9 = vld [vmem:[%s2035_s3 + $0x20] sm:$0xff]   ;;  %v1262_v12 = vunpack.c.l.bf16 %v1328_v3 }
 0x11a   :  { %v1387_v17 = vadd.f32 %v1386_v16, %v1385_v13  ;;  %v1450_v18 = vpop.f32.mrb[19].mxu1  ;;  %v1278_v13 = vunpack.c.l.bf16 %v1332_v4 }
 0x11b   :  { %v1451_v19 = vadd.f32 %v1450_v18, %v1449_v15  ;;  %v1911_v20 = vadd.f32 %v1448_v14, %v1384_v11  ;;  %v1938_v11 = vld [vmem:[%s2035_s3 + $0x18] sm:$0xff]   ;;  %v1948_v15 = vld [vmem:[%s2035_s3 + $0x10] sm:$0xff]   ;;  %v1955_v18 = vld [vmem:[%s2036_s2] ss:$0 sm:$0xff] }
 0x11c   :  { %v1943_v14 = vld [vmem:[%s2035_s3 + $0x38] sm:$0xff]  }
 0x11d   :  { %v1913_v21 = vadd.f32 %v1451_v19, %v1387_v17  ;;  %v1258_v19 = vunpack.c.l.bf16 %v1257_v8 }
 0x11e   :  { %v1388_v22 = vpop.f32.mrb[20].mxu0 }
 0x11f   :  { %v1452_v23 = vpop.f32.mrb[20].mxu1  ;;  %v1389_v24 = vpop.f32.mrb[21].mxu0 }
 0x120   :  { %v1390_v25 = vadd.f32 %v1389_v24, %v1388_v22  ;;  %v1453_v26 = vpop.f32.mrb[21].mxu1  ;;  %v1391_v27 = vpop.f32.mrb[22].mxu0  ;;  %v1274_v22 = vunpack.c.l.bf16 %v1331_v9  ;;  %v1279_v24 = vunpack.c.h.bf16 %v1332_v4 }
 0x121   :  { %v1454_v30 = vadd.f32 %v1453_v26, %v1452_v23  ;;  %v1455_v31 = vpop.f32.mrb[22].mxu1  ;;  %v1392_v32 = vpop.f32.mrb[23].mxu0  ;;  %v1263_v23 = vunpack.c.h.bf16 %v1328_v3 }
 0x122   :  { %v1393_v33 = vadd.f32 %v1392_v32, %v1391_v27  ;;  %v1456_v34 = vpop.f32.mrb[23].mxu1  ;;  %v1275_v32 = vunpack.c.h.bf16 %v1331_v9 }
 0x123   :  { %v1457_v35 = vadd.f32 %v1456_v34, %v1455_v31  ;;  %v802_v36 = vadd.f32 %v1454_v30, %v1390_v25  ;;  %v1960_v25 = vld [vmem:[%s2035_s3 + $0x30] sm:$0xff]   ;;  %v1259_v31 = vunpack.c.h.bf16 %v1257_v8 }
 0x125   :  { %v1915_v37 = vadd.f32 %v1457_v35, %v1393_v33  ;;  %v1270_v33 = vunpack.c.l.bf16 %v1938_v11 }
 0x126   :  { %v1394_v38 = vpop.f32.mrb[24].mxu0 }
 0x127   :  { %v1458_v39 = vpop.f32.mrb[24].mxu1  ;;  %v1395_v40 = vpop.f32.mrb[25].mxu0 }
 0x128   :  { %v1396_v41 = vadd.f32 %v1395_v40, %v1394_v38  ;;  %v1459_v44 = vpop.f32.mrb[25].mxu1  ;;  %v1397_v45 = vpop.f32.mrb[26].mxu0  ;;  %v1286_v40 = vunpack.c.l.bf16 %v1943_v14 }
 0x129   :  { %v1460_v46 = vadd.f32 %v1459_v44, %v1458_v39  ;;  %v1461_v47 = vpop.f32.mrb[26].mxu1  ;;  %v1398_v48 = vpop.f32.mrb[27].mxu0 }
 0x12a   :  { %v1399_v49 = vadd.f32 %v1398_v48, %v1397_v45  ;;  %v1462_v50 = vpop.f32.mrb[27].mxu1  ;;  %v1282_v48 = vunpack.c.l.bf16 %v1960_v25 }
 0x12b   :  { %v1463_v51 = vadd.f32 %v1462_v50, %v1461_v47  ;;  %v1917_v52 = vadd.f32 %v1460_v46, %v1396_v41  ;;  %v1266_v41 = vunpack.c.l.bf16 %v1948_v15 }
 0x12d   :  { %v1919_v53 = vadd.f32 %v1463_v51, %v1399_v49 }
 0x12e   :  { %v1400_v54 = vpop.f32.mrb[28].mxu0 }
 0x12f   :  { %v1464_v55 = vpop.f32.mrb[28].mxu1  ;;  %v1401_v58 = vpop.f32.mrb[29].mxu0 }
 0x130   :  { %v1402_v59 = vadd.f32 %v1401_v58, %v1400_v54  ;;  %v1465_v60 = vpop.f32.mrb[29].mxu1  ;;  %v1403_v61 = vpop.f32.mrb[30].mxu0 }
 0x131   :  { %v1466_v62 = vadd.f32 %v1465_v60, %v1464_v55  ;;  %v1467_v63 = vpop.f32.mrb[30].mxu1  ;;  %v1404_v0 = vpop.f32.mrb[31].mxu0 }
 0x132   :  { %v1405_v1 = vadd.f32 %v1404_v0, %v1403_v61  ;;  %v1468_v2 = vpop.f32.mrb[31].mxu1 }
 0x133   :  { %v1469_v5 = vadd.f32 %v1468_v2, %v1467_v63  ;;  %v1933_v10 = vadd.f32 %v1466_v62, %v1402_v59 }
 0x135   :  { %v1950_v16 = vadd.f32 %v1469_v5, %v1405_v1 }
 0x136   :  { %v1504_v17 = vpop.f32.mrb[32].mxu0 }
 0x137   :  { %v867_v26 = vadd.f32 %v1504_v17, %v1899_v42  ;;  %v1512_v27 = vpop.f32.mrb[32].mxu1  ;;  %v858_v30 = vpop.f32.mrb[33].mxu0 }
 0x138   :  { %v899_v34 = vadd.f32 %v1512_v27, %v802_v36  ;;  %v859_v35 = vadd.f32 %v858_v30, %v1895_v28  ;;  %v890_v38 = vpop.f32.mrb[33].mxu1  ;;  %v1505_v39 = vpop.f32.mrb[34].mxu0 }
 0x139   :  { %v981_v44 = vadd.f32 %v1955_v18, %v867_v26  ;;  %v891_v45 = vadd.f32 %v890_v38, %v1911_v20  ;;  %v870_v42 = vadd.f32 %v1505_v39, %v1901_v43  ;;  %v1513_v46 = vpop.f32.mrb[34].mxu1  ;;  %v861_v47 = vpop.f32.mrb[35].mxu0 }
 0x13a   :  { %v989_v36 = vadd.f32 %v1955_v18, %v899_v34  ;;  %v979_v28 = vadd.f32 %v1955_v18, %v859_v35  ;;  %v902_v49 = vadd.f32 %v1513_v46, %v1915_v37  ;;  %v862_v50 = vadd.f32 %v861_v47, %v1897_v29  ;;  %v893_v51 = vpop.f32.mrb[35].mxu1 }
 0x13b   :  { %v1029_v54 = vadd.f32 %v1262_v12, %v981_v44  ;;  %v987_v55 = vadd.f32 %v1955_v18, %v891_v45  ;;  %v982_v20 = vadd.f32 %v1955_v18, %v870_v42  ;;  %v894_v43 = vadd.f32 %v893_v51, %v1913_v21 }
 0x13c   :  { %v1037_v58 = vadd.f32 %v1278_v13, %v989_v36  ;;  %v1027_v59 = vadd.f32 %v1258_v19, %v979_v28  ;;  %v990_v60 = vadd.f32 %v1955_v18, %v902_v49  ;;  %v980_v61 = vadd.f32 %v1955_v18, %v862_v50 }
 0x13d   :  { %v1045_v62 = vmax.f32 %v1029_v54, 0.0  ;;  %v1035_v63 = vadd.f32 %v1274_v22, %v987_v55  ;;  %v1030_v0 = vadd.f32 %v1263_v23, %v982_v20  ;;  %v988_v37 = vadd.f32 %v1955_v18, %v894_v43 }
 0x13e   :  { %v1053_v29 = vmax.f32 %v1037_v58, 0.0  ;;  %v1043_v1 = vmax.f32 %v1027_v59, 0.0  ;;  %v1038_v2 = vadd.f32 %v1279_v24, %v990_v60  ;;  %v1028_v3 = vadd.f32 %v1259_v31, %v980_v61  ;;  %v1508_v4 = vpop.f32.mrb[36].mxu0 }
 0x13f   :  { %v1051_v5 = vmax.f32 %v1035_v63, 0.0  ;;  %v1046_v8 = vmax.f32 %v1030_v0, 0.0  ;;  %v1036_v9 = vadd.f32 %v1275_v32, %v988_v37  ;;  %v883_v21 = vadd.f32 %v1508_v4, %v1907_v6  ;;  %v1516_v12 = vpop.f32.mrb[36].mxu1  ;;  %v874_v13 = vpop.f32.mrb[37].mxu0 }
 0x140   :  { %v1054_v17 = vmax.f32 %v1038_v2, 0.0  ;;  %v1044_v19 = vmax.f32 %v1028_v3, 0.0  ;;  %v915_v26 = vadd.f32 %v1516_v12, %v1933_v10  ;;  %v875_v22 = vadd.f32 %v874_v13, %v1903_v56  ;;  %v906_v23 = vpop.f32.mrb[37].mxu1  ;;  %v1509_v27 = vpop.f32.mrb[38].mxu0 }
 0x141   :  { %v1296_v30 = vpack.c.bf16 %v1046_v8, %v1045_v62  ;;  %v1052_v34 = vmax.f32 %v1036_v9, 0.0  ;;  %v985_v24 = vadd.f32 %v1955_v18, %v883_v21  ;;  %v907_v31 = vadd.f32 %v906_v23, %v1917_v52  ;;  %v1517_v35 = vpop.f32.mrb[38].mxu1  ;;  %v877_v32 = vpop.f32.mrb[39].mxu0 }
 0x142   :  { %v1316_v38 = vpack.c.bf16 %v1054_v17, %v1053_v29  ;;  %v1291_v6 = vpack.c.bf16 %v1044_v19, %v1043_v1  ;;  %v993_v39 = vadd.f32 %v1955_v18, %v915_v26  ;;  %v983_v44 = vadd.f32 %v1955_v18, %v875_v22  ;;  %v909_v45 = vpop.f32.mrb[39].mxu1 }
 0x143   :  { %1335 = vst [vmem:[%s2037_s4 + $0x8] sm:$0xff] %v1296_v30   ;;  %v1311_v56 = vpack.c.bf16 %v1052_v34, %v1051_v5  ;;  %v991_v10 = vadd.f32 %v1955_v18, %v907_v31  ;;  %v886_v42 = vadd.f32 %v1509_v27, %v1909_v7  ;;  %v1271_v52 = vunpack.c.h.bf16 %v1938_v11 }
 0x144   :  { %1339 = vst [vmem:[%s2037_s4 + $0x28] sm:$0xff] %v1316_v38   ;;  %1292 = vst [vmem:[%s2037_s4] sm:$0xff] %v1291_v6   ;;  %v918_v46 = vadd.f32 %v1517_v35, %v1950_v16  ;;  %v1287_v47 = vunpack.c.h.bf16 %v1943_v14  ;;  %v878_v36 = vadd.f32 %v877_v32, %v1905_v57  ;;  %v1267_v28 = vunpack.c.h.bf16 %v1948_v15 }
 0x145   :  { %1338 = vst [vmem:[%s2037_s4 + $0x20] sm:$0xff] %v1311_v56   ;;  %v1033_v7 = vadd.f32 %v1270_v33, %v985_v24  ;;  %v986_v49 = vadd.f32 %v1955_v18, %v886_v42  ;;  %v910_v50 = vadd.f32 %v909_v45, %v1919_v53  ;;  %v1283_v51 = vunpack.c.h.bf16 %v1960_v25 }
 0x146   :  { %v1041_v16 = vadd.f32 %v1286_v40, %v993_v39  ;;  %v1031_v57 = vadd.f32 %v1266_v41, %v983_v44  ;;  %v994_v54 = vadd.f32 %v1955_v18, %v918_v46  ;;  %v984_v55 = vadd.f32 %v1955_v18, %v878_v36 }
 0x147   :  { %v1039_v11 = vadd.f32 %v1282_v48, %v991_v10  ;;  %v1034_v33 = vadd.f32 %v1271_v52, %v986_v49  ;;  %v992_v20 = vadd.f32 %v1955_v18, %v910_v50  ;;  %v1049_v58 = vmax.f32 %v1033_v7, 0.0 }
 0x148   :  { %v1042_v43 = vadd.f32 %v1287_v47, %v994_v54  ;;  %v1032_v53 = vadd.f32 %v1267_v28, %v984_v55  ;;  %v1057_v14 = vmax.f32 %v1041_v16, 0.0  ;;  %v1047_v40 = vmax.f32 %v1031_v57, 0.0 }
 0x149   :  { %v1050_v59 = vmax.f32 %v1034_v33, 0.0  ;;  %v1040_v60 = vadd.f32 %v1283_v51, %v992_v20  ;;  %v1055_v41 = vmax.f32 %v1039_v11, 0.0 }
 0x14a   :  { %v1058_v61 = vmax.f32 %v1042_v43, 0.0  ;;  %v1048_v15 = vmax.f32 %v1032_v53, 0.0 }
 0x14b   :  { %v1306_v62 = vpack.c.bf16 %v1050_v59, %v1049_v58  ;;  %v1056_v63 = vmax.f32 %v1040_v60, 0.0 }
 0x14c   :  { %v1326_v0 = vpack.c.bf16 %v1058_v61, %v1057_v14  ;;  %v1301_v37 = vpack.c.bf16 %v1048_v15, %v1047_v40 }
 0x14d   :  { %1337 = vst [vmem:[%s2037_s4 + $0x18] sm:$0xff] %v1306_v62   ;;  %v1321_v25 = vpack.c.bf16 %v1056_v63, %v1055_v41 }
 0x14e   :  { %1341 = vst [vmem:[%s2037_s4 + $0x38] sm:$0xff] %v1326_v0   ;;  %1336 = vst [vmem:[%s2037_s4 + $0x10] sm:$0xff] %v1301_v37  }
 0x14f   :  { %1340 = vst [vmem:[%s2037_s4 + $0x30] sm:$0xff] %v1321_v25  }

// kernel: resnet_forward.18
= control target key start
LH: loop header
LB: loop body
LE: loop exit
PB: predicated region body
PF: predicated region fallthrough
CT: control target
= control target key end

     0   :  { %s1001_s1 = inlined_call_operand.vmem [shape: bf16[640,128], index: 1, kind: input, shape index: {}]   ;;  %s1002_s0 = inlined_call_operand.vmem [shape: bf16[32,640], index: 0, kind: input, shape index: {}]   ;;  %s1003_s2 = inlined_call_operand.vmem [shape: f32[1,128], index: 2, kind: input, shape index: {}]   ;;  %s1004_s3 = inlined_call_operand.vmem [shape: bf16[32,128], index: 3, kind: output, shape index: {}]  }
   0x1   :  { %v768_v0 = vld [vmem:[%s1001_s1 + $0x40] sm:$0xff]   ;;  %v772_v4 = vld [vmem:[%s1001_s1 + $0x48] sm:$0xff]   ;;  %v776_v8 = vld [vmem:[%s1001_s1 + $0x50] sm:$0xff]  }
   0x2   :  { %v769_v1 = vld [vmem:[%s1001_s1 + $0xc0] sm:$0xff]   ;;  %682 = vmatprep.subr.bf16.mxu0 %v768_v0  ;;  %v773_v5 = vld [vmem:[%s1001_s1 + $0xc8] sm:$0xff]   ;;  %v777_v9 = vld [vmem:[%s1001_s1 + $0xd0] sm:$0xff]  }
   0x3   :  { %v770_v2 = vld [vmem:[%s1001_s1] sm:$0xff]   ;;  %710 = vmatprep.subr.bf16.mxu1 %v769_v1  ;;  %v774_v6 = vld [vmem:[%s1001_s1 + $0x8] sm:$0xff]   ;;  %v778_v10 = vld [vmem:[%s1001_s1 + $0x10] sm:$0xff]  }
   0x4   :  { %v771_v3 = vld [vmem:[%s1001_s1 + $0x80] sm:$0xff]   ;;  %683 = vmatpush3.bf16.msra.mxu0 %v770_v2  ;;  %v775_v7 = vld [vmem:[%s1001_s1 + $0x88] sm:$0xff]   ;;  %v779_v11 = vld [vmem:[%s1001_s1 + $0x90] sm:$0xff]  }
   0x5   :  { %711 = vmatpush3.bf16.msra.mxu1 %v771_v3  ;;  %684 = vmatprep.subr.bf16.mxu0 %v772_v4  ;;  %v780_v12 = vld [vmem:[%s1001_s1 + $0x58] sm:$0xff]   ;;  %v784_v16 = vld [vmem:[%s1001_s1 + $0x60] sm:$0xff]   ;;  %v788_v20 = vld [vmem:[%s1001_s1 + $0x68] sm:$0xff]  }
   0x6   :  { %712 = vmatprep.subr.bf16.mxu1 %v773_v5  ;;  %v781_v13 = vld [vmem:[%s1001_s1 + $0xd8] sm:$0xff]   ;;  %v785_v17 = vld [vmem:[%s1001_s1 + $0xe0] sm:$0xff]   ;;  %v789_v21 = vld [vmem:[%s1001_s1 + $0xe8] sm:$0xff]  }
   0x7   :  { %v782_v14 = vld [vmem:[%s1001_s1 + $0x18] sm:$0xff]   ;;  %v786_v18 = vld [vmem:[%s1001_s1 + $0x20] sm:$0xff]   ;;  %v790_v22 = vld [vmem:[%s1001_s1 + $0x28] sm:$0xff]  }
   0x8   :  { %685 = vmatpush3.bf16.msra.mxu0 %v774_v6  ;;  %v783_v15 = vld [vmem:[%s1001_s1 + $0x98] sm:$0xff]   ;;  %v787_v19 = vld [vmem:[%s1001_s1 + $0xa0] sm:$0xff]   ;;  %v791_v23 = vld [vmem:[%s1001_s1 + $0xa8] sm:$0xff]  }
   0x9   :  { %713 = vmatpush3.bf16.msra.mxu1 %v775_v7  ;;  %686 = vmatprep.subr.bf16.mxu0 %v776_v8  ;;  %v792_v24 = vld [vmem:[%s1001_s1 + $0x70] sm:$0xff]   ;;  %v796_v28 = vld [vmem:[%s1001_s1 + $0x78] sm:$0xff]   ;;  %v805_v35 = vld [vmem:[%s1002_s0 + $0xc] ss:$20 sps:$4 sm:$0xff]  }
   0xa   :  { %714 = vmatprep.subr.bf16.mxu1 %v777_v9  ;;  %v793_v25 = vld [vmem:[%s1001_s1 + $0xf0] sm:$0xff]   ;;  %v797_v29 = vld [vmem:[%s1001_s1 + $0xf8] sm:$0xff]   ;;  %v806_v36 = vld [vmem:[%s1001_s1 + $0x100] sm:$0xff]   ;;  %492 = vmatprep.mubr.bf16.mxu1 %v805_v35 }
   0xb   :  { %v794_v26 = vld [vmem:[%s1001_s1 + $0x30] sm:$0xff]   ;;  %v798_v30 = vld [vmem:[%s1001_s1 + $0x38] sm:$0xff]   ;;  %v807_v37 = vld [vmem:[%s1001_s1 + $0x108] sm:$0xff]  }
   0xc   :  { %687 = vmatpush3.bf16.msra.mxu0 %v778_v10  ;;  %v795_v27 = vld [vmem:[%s1001_s1 + $0xb0] sm:$0xff]   ;;  %v799_v31 = vld [vmem:[%s1001_s1 + $0xb8] sm:$0xff]   ;;  %v811_v39 = vld [vmem:[%s1002_s0 + $0x2c] ss:$20 sps:$4 sm:$0xff]  }
   0xd   :  { %715 = vmatpush3.bf16.msra.mxu1 %v779_v11  ;;  %688 = vmatprep.subr.bf16.mxu0 %v780_v12  ;;  %v800_v32 = vld [vmem:[%s1002_s0] ss:$20 sps:$4 sm:$0xff]   ;;  %v802_v33 = vld [vmem:[%s1002_s0 + $0x4] ss:$20 sps:$4 sm:$0xff]   ;;  %v803_v34 = vld [vmem:[%s1002_s0 + $0x8] ss:$20 sps:$4 sm:$0xff]  }
   0xe   :  { %716 = vmatprep.subr.bf16.mxu1 %v781_v13  ;;  %443 = vmatprep.mubr.bf16.mxu0 %v802_v33  ;;  %v808_v38 = vld [vmem:[%s1001_s1 + $0x110] sm:$0xff]   ;;  %v809_v41 = vld [vmem:[%s1001_s1 + $0x118] sm:$0xff]   ;;  %v810_v45 = vld [vmem:[%s1001_s1 + $0x120] sm:$0xff]  }
   0xf   :  { %v813_v40 = vld [vmem:[%s1002_s0 + $0x34] ss:$20 sps:$4 sm:$0xff]   ;;  %v817_v43 = vld [vmem:[%s1002_s0 + $0x30] ss:$20 sps:$4 sm:$0xff]   ;;  %v819_v48 = vld [vmem:[%s1001_s1 + $0x138] sm:$0xff]  }
  0x10   :  { %689 = vmatpush3.bf16.msra.mxu0 %v782_v14  ;;  %v816_v42 = vld [vmem:[%s1002_s0 + $0x28] ss:$20 sps:$4 sm:$0xff]   ;;  %v820_v44 = vld [vmem:[%s1002_s0 + $0x10] ss:$20 sps:$4 sm:$0xff]   ;;  %v821_v49 = vld [vmem:[%s1002_s0 + $0x38] ss:$20 sps:$4 sm:$0xff]  }
  0x11   :  { %717 = vmatpush3.bf16.msra.mxu1 %v783_v15  ;;  %690 = vmatprep.subr.bf16.mxu0 %v784_v16  ;;  %v815_v46 = vld [vmem:[%s1001_s1 + $0x128] sm:$0xff]   ;;  %v818_v47 = vld [vmem:[%s1001_s1 + $0x130] sm:$0xff]   ;;  %v662_v15 = vld [vmem:[%s1003_s2] ss:$0 sm:$0xff] }
  0x12   :  { %718 = vmatprep.subr.bf16.mxu1 %v785_v17 }
  0x14   :  { %691 = vmatpush3.bf16.msra.mxu0 %v786_v18 }
  0x15   :  { %719 = vmatpush3.bf16.msra.mxu1 %v787_v19  ;;  %692 = vmatprep.subr.bf16.mxu0 %v788_v20 }
  0x16   :  { %720 = vmatprep.subr.bf16.mxu1 %v789_v21 }
  0x18   :  { %693 = vmatpush3.bf16.msra.mxu0 %v790_v22 }
  0x19   :  { %721 = vmatpush3.bf16.msra.mxu1 %v791_v23  ;;  %694 = vmatprep.subr.bf16.mxu0 %v792_v24 }
  0x1a   :  { %722 = vmatprep.subr.bf16.mxu1 %v793_v25 }
  0x1c   :  { %695 = vmatpush3.bf16.msra.mxu0 %v794_v26 }
  0x1d   :  { %723 = vmatpush3.bf16.msra.mxu1 %v795_v27  ;;  %696 = vmatprep.subr.bf16.mxu0 %v796_v28 }
  0x1e   :  { %724 = vmatprep.subr.bf16.mxu1 %v797_v29 }
  0x20   :  { %697 = vmatpush3.bf16.msra.mxu0 %v798_v30 }
  0x21   :  { %725 = vmatpush3.bf16.msra.mxu1 %v799_v31  ;;  %748 = vmatprep.subr.bf16.mxu0 %v806_v36 }
  0x23   :  { %444 = vmatmul.mubr.bf16.vlgmr.msra.gmra.mrb[0].mxu0 %v800_v32 }
  0x24   :  { %493 = vmatmul.mubr.bf16.vlgmr.msra.gmra.mrb[0].mxu1 %v803_v34  ;;  %749 = vmatpush3.bf16.msra.mxu0 %v806_v36 }
  0x25   :  { %750 = vmatprep.subr.bf16.mxu0 %v807_v37  ;;  %451 = vmatprep.mubr.bf16.mxu0 %v811_v39 }
  0x26   :  { %500 = vmatprep.mubr.bf16.mxu1 %v813_v40 }
  0x28   :  { %751 = vmatpush3.bf16.msra.mxu0 %v807_v37 }
  0x29   :  { %752 = vmatprep.subr.bf16.mxu0 %v808_v38 }
  0x2b   :  { %452 = vmatmul.mubr.bf16.gmra.mrb[4].mxu0 %v816_v42 }
  0x2c   :  { %501 = vmatmul.mubr.bf16.gmra.mrb[4].mxu1 %v817_v43  ;;  %753 = vmatpush3.bf16.msra.mxu0 %v808_v38 }
  0x2d   :  { %754 = vmatprep.subr.bf16.mxu0 %v809_v41  ;;  %764 = vmatprep.mubr.bf16.mxu0 %v820_v44 }
  0x30   :  { %755 = vmatpush3.bf16.msra.mxu0 %v809_v41 }
  0x31   :  { %756 = vmatprep.subr.bf16.mxu0 %v810_v45 }
  0x34   :  { %757 = vmatpush3.bf16.msra.mxu0 %v810_v45 }
  0x35   :  { %758 = vmatprep.subr.bf16.mxu0 %v815_v46 }
  0x38   :  { %759 = vmatpush3.bf16.msra.mxu0 %v815_v46 }
  0x39   :  { %760 = vmatprep.subr.bf16.mxu0 %v818_v47 }
  0x3c   :  { %761 = vmatpush3.bf16.msra.mxu0 %v818_v47 }
  0x3d   :  { %762 = vmatprep.subr.bf16.mxu0 %v819_v48 }
  0x40   :  { %763 = vmatpush3.bf16.msra.mxu0 %v819_v48 }
  0x43   :  { %765 = vmatmul.mubr.bf16.vlgmr.msra.gmra.mrb[8].mxu0 %v821_v49 }
  0xf6   :  { %v698_v50 = vpop.f32.mrb[0].mxu0 }
  0xf7   :  { %v726_v51 = vpop.f32.mrb[0].mxu1  ;;  %v699_v52 = vpop.f32.mrb[1].mxu0 }
  0xf8   :  { %v700_v53 = vadd.f32 %v699_v52, %v698_v50  ;;  %v727_v54 = vpop.f32.mrb[1].mxu1  ;;  %v701_v55 = vpop.f32.mrb[2].mxu0 }
  0xf9   :  { %v728_v56 = vadd.f32 %v727_v54, %v726_v51  ;;  %v729_v57 = vpop.f32.mrb[2].mxu1  ;;  %v702_v58 = vpop.f32.mrb[3].mxu0 }
  0xfa   :  { %v703_v59 = vadd.f32 %v702_v58, %v701_v55  ;;  %v730_v60 = vpop.f32.mrb[3].mxu1 }
  0xfb   :  { %v731_v61 = vadd.f32 %v730_v60, %v729_v57  ;;  %v495_v62 = vadd.f32 %v728_v56, %v700_v53 }
  0xfd   :  { %v498_v63 = vadd.f32 %v731_v61, %v703_v59 }
  0xfe   :  { %v704_v0 = vpop.f32.mrb[4].mxu0 }
  0xff   :  { %v732_v1 = vpop.f32.mrb[4].mxu1  ;;  %v705_v2 = vpop.f32.mrb[5].mxu0 }
 0x100   :  { %v706_v3 = vadd.f32 %v705_v2, %v704_v0  ;;  %v733_v4 = vpop.f32.mrb[5].mxu1  ;;  %v707_v5 = vpop.f32.mrb[6].mxu0 }
 0x101   :  { %v734_v6 = vadd.f32 %v733_v4, %v732_v1  ;;  %v735_v7 = vpop.f32.mrb[6].mxu1  ;;  %v708_v8 = vpop.f32.mrb[7].mxu0 }
 0x102   :  { %v709_v9 = vadd.f32 %v708_v8, %v707_v5  ;;  %v736_v10 = vpop.f32.mrb[7].mxu1 }
 0x103   :  { %v737_v11 = vadd.f32 %v736_v10, %v735_v7  ;;  %v503_v12 = vadd.f32 %v734_v6, %v706_v3 }
 0x105   :  { %v506_v13 = vadd.f32 %v737_v11, %v709_v9 }
 0x116   :  { %v766_v14 = vpop.f32.mrb[8].mxu0 }
 0x117   :  { %v552_v16 = vadd.f32 %v766_v14, %v503_v12  ;;  %v543_v17 = vpop.f32.mrb[9].mxu0 }
 0x118   :  { %v544_v18 = vadd.f32 %v543_v17, %v495_v62  ;;  %v767_v19 = vpop.f32.mrb[10].mxu0 }
 0x119   :  { %v582_v20 = vadd.f32 %v662_v15, %v552_v16  ;;  %v555_v21 = vadd.f32 %v767_v19, %v506_v13  ;;  %v546_v22 = vpop.f32.mrb[11].mxu0 }
 0x11a   :  { %v580_v23 = vadd.f32 %v662_v15, %v544_v18  ;;  %v547_v24 = vadd.f32 %v546_v22, %v498_v63 }
 0x11b   :  { %v583_v25 = vadd.f32 %v662_v15, %v555_v21  ;;  %v586_v27 = vmax.f32 %v582_v20, 0.0 }
 0x11c   :  { %v581_v26 = vadd.f32 %v662_v15, %v547_v24  ;;  %v584_v29 = vmax.f32 %v580_v23, 0.0 }
 0x11d   :  { %v587_v28 = vmax.f32 %v583_v25, 0.0 }
 0x11e   :  { %v585_v30 = vmax.f32 %v581_v26, 0.0 }
 0x11f   :  { %v679_v31 = vpack.c.bf16 %v587_v28, %v586_v27 }
 0x120   :  { %v674_v32 = vpack.c.bf16 %v585_v30, %v584_v29 }
 0x121   :  { %681 = vst [vmem:[%s1004_s3 + $0x8] sm:$0xff] %v679_v31  }
 0x122   :  { %675 = vst [vmem:[%s1004_s3] sm:$0xff] %v674_v32  }

// kernel: resnet_forward.17
= control target key start
LH: loop header
LB: loop body
LE: loop exit
PB: predicated region body
PF: predicated region fallthrough
CT: control target
= control target key end

     0   :  { %s335_s1 = inlined_call_operand.vmem [shape: bf16[128,128], index: 1, kind: input, shape index: {}]   ;;  %s336_s0 = inlined_call_operand.vmem [shape: bf16[32,128], index: 0, kind: input, shape index: {}]   ;;  %s337_s2 = inlined_call_operand.vmem [shape: f32[1,128], index: 2, kind: input, shape index: {}]   ;;  %s338_s3 = inlined_call_operand.vmem [shape: bf16[32,128], index: 3, kind: output, shape index: {}]  }
   0x1   :  { %v266_v0 = vld [vmem:[%s335_s1] sm:$0xff]   ;;  %v267_v1 = vld [vmem:[%s335_s1 + $0x8] sm:$0xff]   ;;  %v268_v2 = vld [vmem:[%s335_s1 + $0x10] sm:$0xff]  }
   0x2   :  { %246 = vmatprep.subr.bf16.mxu0 %v266_v0  ;;  %v269_v3 = vld [vmem:[%s335_s1 + $0x18] sm:$0xff]   ;;  %v274_v4 = vld [vmem:[%s336_s0] sm:$0xff]   ;;  %v271_v6 = vld [vmem:[%s335_s1 + $0x28] sm:$0xff]  }
   0x3   :  { %247 = vmatpush3.bf16.msra.mxu0 %v266_v0  ;;  %262 = vmatprep.mubr.bf16.mxu0 %v274_v4  ;;  %v270_v5 = vld [vmem:[%s335_s1 + $0x20] sm:$0xff]   ;;  %v272_v7 = vld [vmem:[%s335_s1 + $0x30] sm:$0xff]   ;;  %v273_v8 = vld [vmem:[%s335_s1 + $0x38] sm:$0xff]  }
   0x4   :  { %248 = vmatprep.subr.bf16.mxu0 %v267_v1  ;;  %v275_v9 = vld [vmem:[%s336_s0 + $0x8] sm:$0xff]   ;;  %v216_v11 = vld [vmem:[%s337_s2] ss:$0 sm:$0xff] }
   0x7   :  { %249 = vmatpush3.bf16.msra.mxu0 %v267_v1 }
   0x8   :  { %250 = vmatprep.subr.bf16.mxu0 %v268_v2 }
   0xb   :  { %251 = vmatpush3.bf16.msra.mxu0 %v268_v2 }
   0xc   :  { %252 = vmatprep.subr.bf16.mxu0 %v269_v3 }
   0xf   :  { %253 = vmatpush3.bf16.msra.mxu0 %v269_v3 }
  0x10   :  { %254 = vmatprep.subr.bf16.mxu0 %v270_v5 }
  0x13   :  { %255 = vmatpush3.bf16.msra.mxu0 %v270_v5 }
  0x14   :  { %256 = vmatprep.subr.bf16.mxu0 %v271_v6 }
  0x17   :  { %257 = vmatpush3.bf16.msra.mxu0 %v271_v6 }
  0x18   :  { %258 = vmatprep.subr.bf16.mxu0 %v272_v7 }
  0x1b   :  { %259 = vmatpush3.bf16.msra.mxu0 %v272_v7 }
  0x1c   :  { %260 = vmatprep.subr.bf16.mxu0 %v273_v8 }
  0x1f   :  { %261 = vmatpush3.bf16.msra.mxu0 %v273_v8 }
  0x22   :  { %263 = vmatmul.mubr.bf16.vlgmr.msra.gmra.mrb[0].mxu0 %v275_v9 }
  0xf5   :  { %v264_v10 = vpop.f32.mrb[0].mxu0 }
  0xf6   :  { %v141_v12 = vpop.f32.mrb[1].mxu0  ;;  %v180_v14 = vadd.f32 %v264_v10, %v216_v11 }
  0xf7   :  { %v265_v13 = vpop.f32.mrb[2].mxu0  ;;  %v178_v17 = vadd.f32 %v216_v11, %v141_v12 }
  0xf8   :  { %v181_v15 = vadd.f32 %v265_v13, %v216_v11  ;;  %v144_v16 = vpop.f32.mrb[3].mxu0 }
  0xf9   :  { %v179_v18 = vadd.f32 %v216_v11, %v144_v16 }
  0xfa   :  { %v233_v19 = vpack.c.bf16 %v181_v15, %v180_v14 }
  0xfb   :  { %v228_v20 = vpack.c.bf16 %v179_v18, %v178_v17 }
  0xfc   :  { %235 = vst [vmem:[%s338_s3 + $0x8] sm:$0xff] %v233_v19  }
  0xfd   :  { %229 = vst [vmem:[%s338_s3] sm:$0xff] %v228_v20  }

// kernel: resnet_forward.19
= control target key start
LH: loop header
LB: loop body
LE: loop exit
PB: predicated region body
PF: predicated region fallthrough
CT: control target
= control target key end

     0   :  { %s1698_s1 = inlined_call_operand.vmem [shape: bf16[1152,128], index: 1, kind: input, shape index: {}]   ;;  %s1699_s0 = inlined_call_operand.vmem [shape: bf16[32,1152], index: 0, kind: input, shape index: {}]   ;;  %s1700_s3 = inlined_call_operand.vmem [shape: bf16[32,128], index: 3, kind: input, shape index: {}]   ;;  %s1701_s2 = inlined_call_operand.vmem [shape: f32[1,128], index: 2, kind: input, shape index: {}]   ;;  %s1702_s4 = inlined_call_operand.vmem [shape: bf16[32,128], index: 4, kind: output, shape index: {}]  }
   0x1   :  { %v1290_v0 = vld [vmem:[%s1698_s1 + $0x40] sm:$0xff]   ;;  %v1294_v4 = vld [vmem:[%s1698_s1 + $0x48] sm:$0xff]   ;;  %v1298_v8 = vld [vmem:[%s1698_s1 + $0x50] sm:$0xff]  }
   0x2   :  { %v1291_v1 = vld [vmem:[%s1698_s1 + $0xc0] sm:$0xff]   ;;  %1148 = vmatprep.subr.bf16.mxu0 %v1290_v0  ;;  %v1295_v5 = vld [vmem:[%s1698_s1 + $0xc8] sm:$0xff]   ;;  %v1299_v9 = vld [vmem:[%s1698_s1 + $0xd0] sm:$0xff]  }
   0x3   :  { %v1292_v2 = vld [vmem:[%s1698_s1] sm:$0xff]   ;;  %1176 = vmatprep.subr.bf16.mxu1 %v1291_v1  ;;  %v1296_v6 = vld [vmem:[%s1698_s1 + $0x8] sm:$0xff]   ;;  %v1300_v10 = vld [vmem:[%s1698_s1 + $0x10] sm:$0xff]  }
   0x4   :  { %v1293_v3 = vld [vmem:[%s1698_s1 + $0x80] sm:$0xff]   ;;  %1149 = vmatpush3.bf16.msra.mxu0 %v1292_v2  ;;  %v1297_v7 = vld [vmem:[%s1698_s1 + $0x88] sm:$0xff]   ;;  %v1301_v11 = vld [vmem:[%s1698_s1 + $0x90] sm:$0xff]  }
   0x5   :  { %1177 = vmatpush3.bf16.msra.mxu1 %v1293_v3  ;;  %1150 = vmatprep.subr.bf16.mxu0 %v1294_v4  ;;  %v1302_v12 = vld [vmem:[%s1698_s1 + $0x58] sm:$0xff]   ;;  %v1306_v16 = vld [vmem:[%s1698_s1 + $0x60] sm:$0xff]   ;;  %v1310_v20 = vld [vmem:[%s1698_s1 + $0x68] sm:$0xff]  }
   0x6   :  { %1178 = vmatprep.subr.bf16.mxu1 %v1295_v5  ;;  %v1303_v13 = vld [vmem:[%s1698_s1 + $0xd8] sm:$0xff]   ;;  %v1307_v17 = vld [vmem:[%s1698_s1 + $0xe0] sm:$0xff]   ;;  %v1311_v21 = vld [vmem:[%s1698_s1 + $0xe8] sm:$0xff]  }
   0x7   :  { %v1304_v14 = vld [vmem:[%s1698_s1 + $0x18] sm:$0xff]   ;;  %v1308_v18 = vld [vmem:[%s1698_s1 + $0x20] sm:$0xff]   ;;  %v1312_v22 = vld [vmem:[%s1698_s1 + $0x28] sm:$0xff]  }
   0x8   :  { %1151 = vmatpush3.bf16.msra.mxu0 %v1296_v6  ;;  %v1305_v15 = vld [vmem:[%s1698_s1 + $0x98] sm:$0xff]   ;;  %v1309_v19 = vld [vmem:[%s1698_s1 + $0xa0] sm:$0xff]   ;;  %v1313_v23 = vld [vmem:[%s1698_s1 + $0xa8] sm:$0xff]  }
   0x9   :  { %1179 = vmatpush3.bf16.msra.mxu1 %v1297_v7  ;;  %1152 = vmatprep.subr.bf16.mxu0 %v1298_v8  ;;  %v1314_v24 = vld [vmem:[%s1698_s1 + $0x70] sm:$0xff]   ;;  %v1318_v28 = vld [vmem:[%s1698_s1 + $0x78] sm:$0xff]   ;;  %v1322_v32 = vld [vmem:[%s1699_s0] ss:$36 sps:$4 sm:$0xff]  }
   0xa   :  { %1180 = vmatprep.subr.bf16.mxu1 %v1299_v9  ;;  %v1315_v25 = vld [vmem:[%s1698_s1 + $0xf0] sm:$0xff]   ;;  %v1319_v29 = vld [vmem:[%s1698_s1 + $0xf8] sm:$0xff]   ;;  %v1324_v33 = vld [vmem:[%s1699_s0 + $0x4] ss:$36 sps:$4 sm:$0xff]  }
   0xb   :  { %v1316_v26 = vld [vmem:[%s1698_s1 + $0x30] sm:$0xff]   ;;  %v1320_v30 = vld [vmem:[%s1698_s1 + $0x38] sm:$0xff]   ;;  %v1325_v34 = vld [vmem:[%s1699_s0 + $0x8] ss:$36 sps:$4 sm:$0xff]   ;;  %750 = vmatprep.mubr.bf16.mxu0 %v1324_v33 }
   0xc   :  { %1153 = vmatpush3.bf16.msra.mxu0 %v1300_v10  ;;  %v1317_v27 = vld [vmem:[%s1698_s1 + $0xb0] sm:$0xff]   ;;  %v1321_v31 = vld [vmem:[%s1698_s1 + $0xb8] sm:$0xff]   ;;  %v1328_v36 = vld [vmem:[%s1698_s1 + $0x140] sm:$0xff]  }
   0xd   :  { %1181 = vmatpush3.bf16.msra.mxu1 %v1301_v11  ;;  %1154 = vmatprep.subr.bf16.mxu0 %v1302_v12  ;;  %v1327_v35 = vld [vmem:[%s1699_s0 + $0xc] ss:$36 sps:$4 sm:$0xff]   ;;  %v1329_v37 = vld [vmem:[%s1698_s1 + $0x100] sm:$0xff]   ;;  %v1340_v48 = vld [vmem:[%s1698_s1 + $0x158] sm:$0xff]  }
   0xe   :  { %1182 = vmatprep.subr.bf16.mxu1 %v1303_v13  ;;  %799 = vmatprep.mubr.bf16.mxu1 %v1327_v35  ;;  %v1330_v38 = vld [vmem:[%s1698_s1 + $0x1c0] sm:$0xff]   ;;  %v1332_v40 = vld [vmem:[%s1698_s1 + $0x148] sm:$0xff]   ;;  %v1336_v44 = vld [vmem:[%s1698_s1 + $0x150] sm:$0xff]  }
   0xf   :  { %v1331_v39 = vld [vmem:[%s1698_s1 + $0x180] sm:$0xff]   ;;  %v1333_v41 = vld [vmem:[%s1698_s1 + $0x108] sm:$0xff]   ;;  %v1337_v45 = vld [vmem:[%s1698_s1 + $0x110] sm:$0xff]  }
  0x10   :  { %1155 = vmatpush3.bf16.msra.mxu0 %v1304_v14  ;;  %v1334_v42 = vld [vmem:[%s1698_s1 + $0x1c8] sm:$0xff]   ;;  %v1338_v46 = vld [vmem:[%s1698_s1 + $0x1d0] sm:$0xff]   ;;  %v1341_v49 = vld [vmem:[%s1698_s1 + $0x118] sm:$0xff]  }
  0x11   :  { %1183 = vmatpush3.bf16.msra.mxu1 %v1305_v15  ;;  %1156 = vmatprep.subr.bf16.mxu0 %v1306_v16  ;;  %v1335_v43 = vld [vmem:[%s1698_s1 + $0x188] sm:$0xff]   ;;  %v1339_v47 = vld [vmem:[%s1698_s1 + $0x190] sm:$0xff]   ;;  %v1342_v50 = vld [vmem:[%s1698_s1 + $0x1d8] sm:$0xff]  }
  0x12   :  { %1184 = vmatprep.subr.bf16.mxu1 %v1307_v17  ;;  %v1343_v51 = vld [vmem:[%s1698_s1 + $0x198] sm:$0xff]   ;;  %v1344_v52 = vld [vmem:[%s1698_s1 + $0x160] sm:$0xff]   ;;  %v1348_v56 = vld [vmem:[%s1698_s1 + $0x168] sm:$0xff]  }
  0x13   :  { %v1345_v53 = vld [vmem:[%s1698_s1 + $0x120] sm:$0xff]   ;;  %v1349_v57 = vld [vmem:[%s1699_s0 + $0x4c] ss:$36 sps:$4 sm:$0xff]   ;;  %v1351_v58 = vld [vmem:[%s1699_s0 + $0x54] ss:$36 sps:$4 sm:$0xff]  }
  0x14   :  { %1157 = vmatpush3.bf16.msra.mxu0 %v1308_v18  ;;  %v1346_v54 = vld [vmem:[%s1698_s1 + $0x1e0] sm:$0xff]   ;;  %v1353_v59 = vld [vmem:[%s1698_s1 + $0x128] sm:$0xff]   ;;  %v1355_v61 = vld [vmem:[%s1699_s0 + $0x50] ss:$36 sps:$4 sm:$0xff]  }
  0x15   :  { %1185 = vmatpush3.bf16.msra.mxu1 %v1309_v19  ;;  %1158 = vmatprep.subr.bf16.mxu0 %v1310_v20  ;;  %v1347_v55 = vld [vmem:[%s1698_s1 + $0x1a0] sm:$0xff]   ;;  %v1354_v60 = vld [vmem:[%s1699_s0 + $0x48] ss:$36 sps:$4 sm:$0xff]   ;;  %v1358_v0 = vld [vmem:[%s1698_s1 + $0x170] sm:$0xff]  }
  0x16   :  { %1186 = vmatprep.subr.bf16.mxu1 %v1311_v21  ;;  %v1356_v62 = vld [vmem:[%s1698_s1 + $0x1e8] sm:$0xff]   ;;  %v1359_v1 = vld [vmem:[%s1698_s1 + $0x130] sm:$0xff]   ;;  %v1362_v4 = vld [vmem:[%s1698_s1 + $0x178] sm:$0xff]  }
  0x17   :  { %v1357_v63 = vld [vmem:[%s1698_s1 + $0x1a8] sm:$0xff]   ;;  %v1360_v2 = vld [vmem:[%s1698_s1 + $0x1f0] sm:$0xff]   ;;  %v1363_v5 = vld [vmem:[%s1698_s1 + $0x138] sm:$0xff]  }
  0x18   :  { %1159 = vmatpush3.bf16.msra.mxu0 %v1312_v22  ;;  %v1361_v3 = vld [vmem:[%s1698_s1 + $0x1b0] sm:$0xff]   ;;  %v1364_v6 = vld [vmem:[%s1698_s1 + $0x1f8] sm:$0xff]   ;;  %v1369_v10 = vld [vmem:[%s1698_s1 + $0x200] sm:$0xff]  }
  0x19   :  { %1187 = vmatpush3.bf16.msra.mxu1 %v1313_v23  ;;  %1160 = vmatprep.subr.bf16.mxu0 %v1314_v24  ;;  %v1365_v7 = vld [vmem:[%s1699_s0 + $0x10] ss:$36 sps:$4 sm:$0xff]   ;;  %v1368_v9 = vld [vmem:[%s1698_s1 + $0x1b8] sm:$0xff]   ;;  %v1373_v13 = vld [vmem:[%s1698_s1 + $0x208] sm:$0xff]  }
  0x1a   :  { %1188 = vmatprep.subr.bf16.mxu1 %v1315_v25  ;;  %v1367_v8 = vld [vmem:[%s1699_s0 + $0x14] ss:$36 sps:$4 sm:$0xff]   ;;  %v1372_v12 = vld [vmem:[%s1699_s0 + $0x1c] ss:$36 sps:$4 sm:$0xff]   ;;  %v1378_v17 = vld [vmem:[%s1699_s0 + $0x64] ss:$36 sps:$4 sm:$0xff]  }
  0x1b   :  { %v1370_v11 = vld [vmem:[%s1699_s0 + $0x18] ss:$36 sps:$4 sm:$0xff]   ;;  %v1377_v16 = vld [vmem:[%s1698_s1 + $0x210] sm:$0xff]   ;;  %v1380_v18 = vld [vmem:[%s1699_s0 + $0x60] ss:$36 sps:$4 sm:$0xff]  }
  0x1c   :  { %1161 = vmatpush3.bf16.msra.mxu0 %v1316_v26  ;;  %v1374_v14 = vld [vmem:[%s1699_s0 + $0x5c] ss:$36 sps:$4 sm:$0xff]   ;;  %v1383_v22 = vld [vmem:[%s1698_s1 + $0x228] sm:$0xff]   ;;  %v1384_v23 = vld [vmem:[%s1698_s1 + $0x230] sm:$0xff]  }
  0x1d   :  { %1189 = vmatpush3.bf16.msra.mxu1 %v1317_v27  ;;  %1162 = vmatprep.subr.bf16.mxu0 %v1318_v28  ;;  %v1376_v15 = vld [vmem:[%s1699_s0 + $0x58] ss:$36 sps:$4 sm:$0xff]   ;;  %v1382_v20 = vld [vmem:[%s1698_s1 + $0x220] sm:$0xff]   ;;  %v1387_v25 = vld [vmem:[%s1699_s0 + $0x68] ss:$36 sps:$4 sm:$0xff]  }
  0x1e   :  { %1190 = vmatprep.subr.bf16.mxu1 %v1319_v29  ;;  %v1381_v19 = vld [vmem:[%s1698_s1 + $0x218] sm:$0xff]   ;;  %v1386_v21 = vld [vmem:[%s1699_s0 + $0x20] ss:$36 sps:$4 sm:$0xff]  }
  0x1f   :  { %v1385_v24 = vld [vmem:[%s1698_s1 + $0x238] sm:$0xff]  }
  0x20   :  { %1163 = vmatpush3.bf16.msra.mxu0 %v1320_v30 }
  0x21   :  { %1191 = vmatpush3.bf16.msra.mxu1 %v1321_v31  ;;  %1204 = vmatprep.subr.bf16.mxu0 %v1328_v36 }
  0x22   :  { %1232 = vmatprep.subr.bf16.mxu1 %v1330_v38 }
  0x23   :  { %751 = vmatmul.mubr.bf16.vlgmr.msra.gmra.mrb[0].mxu0 %v1322_v32 }
  0x24   :  { %800 = vmatmul.mubr.bf16.vlgmr.msra.gmra.mrb[0].mxu1 %v1325_v34  ;;  %1205 = vmatpush3.bf16.msra.mxu0 %v1329_v37 }
  0x25   :  { %1233 = vmatpush3.bf16.msra.mxu1 %v1331_v39  ;;  %1206 = vmatprep.subr.bf16.mxu0 %v1332_v40 }
  0x26   :  { %1234 = vmatprep.subr.bf16.mxu1 %v1334_v42  ;;  %758 = vmatprep.mubr.bf16.mxu0 %v1349_v57 }
  0x27   :  { %807 = vmatprep.mubr.bf16.mxu1 %v1351_v58 }
  0x28   :  { %1207 = vmatpush3.bf16.msra.mxu0 %v1333_v41 }
  0x29   :  { %1235 = vmatpush3.bf16.msra.mxu1 %v1335_v43  ;;  %1208 = vmatprep.subr.bf16.mxu0 %v1336_v44 }
  0x2a   :  { %1236 = vmatprep.subr.bf16.mxu1 %v1338_v46 }
  0x2b   :  { %759 = vmatmul.mubr.bf16.gmra.mrb[4].mxu0 %v1354_v60 }
  0x2c   :  { %1209 = vmatpush3.bf16.msra.mxu0 %v1337_v45  ;;  %808 = vmatmul.mubr.bf16.gmra.mrb[4].mxu1 %v1355_v61 }
  0x2d   :  { %1237 = vmatpush3.bf16.msra.mxu1 %v1339_v47  ;;  %1210 = vmatprep.subr.bf16.mxu0 %v1340_v48 }
  0x2e   :  { %1238 = vmatprep.subr.bf16.mxu1 %v1342_v50  ;;  %848 = vmatprep.mubr.bf16.mxu0 %v1367_v8 }
  0x2f   :  { %897 = vmatprep.mubr.bf16.mxu1 %v1372_v12 }
  0x30   :  { %1211 = vmatpush3.bf16.msra.mxu0 %v1341_v49 }
  0x31   :  { %1239 = vmatpush3.bf16.msra.mxu1 %v1343_v51  ;;  %1212 = vmatprep.subr.bf16.mxu0 %v1344_v52 }
  0x32   :  { %1240 = vmatprep.subr.bf16.mxu1 %v1346_v54 }
  0x34   :  { %1213 = vmatpush3.bf16.msra.mxu0 %v1345_v53 }
  0x35   :  { %1241 = vmatpush3.bf16.msra.mxu1 %v1347_v55  ;;  %1214 = vmatprep.subr.bf16.mxu0 %v1348_v56 }
  0x36   :  { %1242 = vmatprep.subr.bf16.mxu1 %v1356_v62 }
  0x38   :  { %1215 = vmatpush3.bf16.msra.mxu0 %v1353_v59 }
  0x39   :  { %1243 = vmatpush3.bf16.msra.mxu1 %v1357_v63  ;;  %1216 = vmatprep.subr.bf16.mxu0 %v1358_v0 }
  0x3a   :  { %1244 = vmatprep.subr.bf16.mxu1 %v1360_v2 }
  0x3c   :  { %1217 = vmatpush3.bf16.msra.mxu0 %v1359_v1 }
  0x3d   :  { %1245 = vmatpush3.bf16.msra.mxu1 %v1361_v3  ;;  %1218 = vmatprep.subr.bf16.mxu0 %v1362_v4 }
  0x3e   :  { %1246 = vmatprep.subr.bf16.mxu1 %v1364_v6 }
  0x40   :  { %1219 = vmatpush3.bf16.msra.mxu0 %v1363_v5 }
  0x41   :  { %1247 = vmatpush3.bf16.msra.mxu1 %v1368_v9  ;;  %1270 = vmatprep.subr.bf16.mxu0 %v1369_v10 }
  0x43   :  { %849 = vmatmul.mubr.bf16.vlgmr.msra.gmra.mrb[8].mxu0 %v1365_v7 }
  0x44   :  { %1271 = vmatpush3.bf16.msra.mxu0 %v1369_v10  ;;  %898 = vmatmul.mubr.bf16.vlgmr.msra.gmra.mrb[8].mxu1 %v1370_v11 }
  0x45   :  { %1272 = vmatprep.subr.bf16.mxu0 %v1373_v13  ;;  %856 = vmatprep.mubr.bf16.mxu0 %v1374_v14 }
  0x46   :  { %905 = vmatprep.mubr.bf16.mxu1 %v1378_v17 }
  0x48   :  { %1273 = vmatpush3.bf16.msra.mxu0 %v1373_v13 }
  0x49   :  { %1274 = vmatprep.subr.bf16.mxu0 %v1377_v16 }
  0x4b   :  { %857 = vmatmul.mubr.bf16.gmra.mrb[12].mxu0 %v1376_v15 }
  0x4c   :  { %1275 = vmatpush3.bf16.msra.mxu0 %v1377_v16  ;;  %906 = vmatmul.mubr.bf16.gmra.mrb[12].mxu1 %v1380_v18 }
  0x4d   :  { %1276 = vmatprep.subr.bf16.mxu0 %v1381_v19  ;;  %1286 = vmatprep.mubr.bf16.mxu0 %v1386_v21 }
  0x50   :  { %1277 = vmatpush3.bf16.msra.mxu0 %v1381_v19 }
  0x51   :  { %1278 = vmatprep.subr.bf16.mxu0 %v1382_v20 }
  0x54   :  { %1279 = vmatpush3.bf16.msra.mxu0 %v1382_v20 }
  0x55   :  { %1280 = vmatprep.subr.bf16.mxu0 %v1383_v22 }
  0x58   :  { %1281 = vmatpush3.bf16.msra.mxu0 %v1383_v22  ;;  %v1146_v22 = vld [vmem:[%s1700_s3 + $0x8] sm:$0xff]  }
  0x59   :  { %1282 = vmatprep.subr.bf16.mxu0 %v1384_v23 }
  0x5c   :  { %1283 = vmatpush3.bf16.msra.mxu0 %v1384_v23  ;;  %v1129_v23 = vld [vmem:[%s1700_s3] sm:$0xff]  }
  0x5d   :  { %1284 = vmatprep.subr.bf16.mxu0 %v1385_v24 }
  0x60   :  { %1285 = vmatpush3.bf16.msra.mxu0 %v1385_v24 }
  0x63   :  { %1287 = vmatmul.mubr.bf16.vlgmr.msra.gmra.mrb[16].mxu0 %v1387_v25  ;;  %v1119_v25 = vld [vmem:[%s1701_s2] ss:$0 sm:$0xff] }
  0xf6   :  { %v1164_v26 = vpop.f32.mrb[0].mxu0 }
  0xf7   :  { %v1192_v27 = vpop.f32.mrb[0].mxu1  ;;  %v1165_v28 = vpop.f32.mrb[1].mxu0 }
  0xf8   :  { %v1166_v29 = vadd.f32 %v1165_v28, %v1164_v26  ;;  %v1193_v30 = vpop.f32.mrb[1].mxu1  ;;  %v1167_v31 = vpop.f32.mrb[2].mxu0 }
  0xf9   :  { %v1194_v32 = vadd.f32 %v1193_v30, %v1192_v27  ;;  %v1195_v33 = vpop.f32.mrb[2].mxu1  ;;  %v1168_v34 = vpop.f32.mrb[3].mxu0  ;;  %v1134_v27 = vunpack.c.l.bf16 %v1146_v22  ;;  %v1130_v30 = vunpack.c.l.bf16 %v1129_v23 }
  0xfa   :  { %v1169_v35 = vadd.f32 %v1168_v34, %v1167_v31  ;;  %v1196_v36 = vpop.f32.mrb[3].mxu1  ;;  %v1135_v34 = vunpack.c.h.bf16 %v1146_v22 }
  0xfb   :  { %v802_v37 = vadd.f32 %v1194_v32, %v1166_v29  ;;  %v1197_v38 = vadd.f32 %v1196_v36, %v1195_v33 }
  0xfd   :  { %v805_v39 = vadd.f32 %v1197_v38, %v1169_v35  ;;  %v1131_v38 = vunpack.c.h.bf16 %v1129_v23 }
  0xfe   :  { %v1170_v40 = vpop.f32.mrb[4].mxu0 }
  0xff   :  { %v1198_v41 = vpop.f32.mrb[4].mxu1  ;;  %v1171_v42 = vpop.f32.mrb[5].mxu0 }
 0x100   :  { %v1199_v43 = vpop.f32.mrb[5].mxu1  ;;  %v1172_v44 = vadd.f32 %v1171_v42, %v1170_v40  ;;  %v1173_v46 = vpop.f32.mrb[6].mxu0 }
 0x101   :  { %v1200_v45 = vadd.f32 %v1199_v43, %v1198_v41  ;;  %v1201_v47 = vpop.f32.mrb[6].mxu1  ;;  %v1174_v48 = vpop.f32.mrb[7].mxu0 }
 0x102   :  { %v1202_v49 = vpop.f32.mrb[7].mxu1  ;;  %v1175_v51 = vadd.f32 %v1174_v48, %v1173_v46 }
 0x103   :  { %v810_v50 = vadd.f32 %v1200_v45, %v1172_v44  ;;  %v1203_v52 = vadd.f32 %v1202_v49, %v1201_v47 }
 0x105   :  { %v813_v53 = vadd.f32 %v1203_v52, %v1175_v51 }
 0x116   :  { %v1220_v54 = vpop.f32.mrb[8].mxu0 }
 0x117   :  { %v1221_v55 = vpop.f32.mrb[9].mxu0  ;;  %v1248_v58 = vpop.f32.mrb[8].mxu1 }
 0x118   :  { %v1222_v56 = vadd.f32 %v1221_v55, %v1220_v54  ;;  %v1223_v57 = vpop.f32.mrb[10].mxu0  ;;  %v1249_v62 = vpop.f32.mrb[9].mxu1 }
 0x119   :  { %v1224_v59 = vpop.f32.mrb[11].mxu0  ;;  %v1250_v63 = vadd.f32 %v1249_v62, %v1248_v58  ;;  %v1251_v0 = vpop.f32.mrb[10].mxu1 }
 0x11a   :  { %v851_v60 = vadd.f32 %v1222_v56, %v802_v37  ;;  %v1225_v61 = vadd.f32 %v1224_v59, %v1223_v57  ;;  %v1252_v2 = vpop.f32.mrb[11].mxu1 }
 0x11b   :  { %v1253_v3 = vadd.f32 %v1252_v2, %v1251_v0 }
 0x11c   :  { %v854_v1 = vadd.f32 %v1225_v61, %v805_v39  ;;  %v900_v4 = vadd.f32 %v1250_v63, %v851_v60 }
 0x11e   :  { %v1226_v5 = vpop.f32.mrb[12].mxu0  ;;  %v903_v7 = vadd.f32 %v1253_v3, %v854_v1 }
 0x11f   :  { %v1227_v6 = vpop.f32.mrb[13].mxu0  ;;  %v1254_v10 = vpop.f32.mrb[12].mxu1 }
 0x120   :  { %v1228_v8 = vadd.f32 %v1227_v6, %v1226_v5  ;;  %v1229_v9 = vpop.f32.mrb[14].mxu0  ;;  %v1255_v14 = vpop.f32.mrb[13].mxu1 }
 0x121   :  { %v1230_v11 = vpop.f32.mrb[15].mxu0  ;;  %v1256_v15 = vadd.f32 %v1255_v14, %v1254_v10  ;;  %v1257_v16 = vpop.f32.mrb[14].mxu1 }
 0x122   :  { %v859_v12 = vadd.f32 %v1228_v8, %v810_v50  ;;  %v1231_v13 = vadd.f32 %v1230_v11, %v1229_v9  ;;  %v1258_v18 = vpop.f32.mrb[15].mxu1 }
 0x123   :  { %v1259_v19 = vadd.f32 %v1258_v18, %v1257_v16 }
 0x124   :  { %v862_v17 = vadd.f32 %v1231_v13, %v813_v53  ;;  %v908_v20 = vadd.f32 %v1256_v15, %v859_v12 }
 0x126   :  { %v911_v21 = vadd.f32 %v1259_v19, %v862_v17 }
 0x136   :  { %v1288_v24 = vpop.f32.mrb[16].mxu0 }
 0x137   :  { %v957_v26 = vadd.f32 %v1288_v24, %v908_v20  ;;  %v948_v28 = vpop.f32.mrb[17].mxu0 }
 0x138   :  { %v949_v29 = vadd.f32 %v948_v28, %v900_v4  ;;  %v1289_v31 = vpop.f32.mrb[18].mxu0 }
 0x139   :  { %v987_v32 = vadd.f32 %v1119_v25, %v957_v26  ;;  %v960_v33 = vadd.f32 %v1289_v31, %v911_v21  ;;  %v951_v35 = vpop.f32.mrb[19].mxu0 }
 0x13a   :  { %v985_v36 = vadd.f32 %v1119_v25, %v949_v29  ;;  %v952_v37 = vadd.f32 %v951_v35, %v903_v7 }
 0x13b   :  { %v999_v39 = vadd.f32 %v1134_v27, %v987_v32  ;;  %v988_v40 = vadd.f32 %v1119_v25, %v960_v33 }
 0x13c   :  { %v997_v41 = vadd.f32 %v1130_v30, %v985_v36  ;;  %v986_v42 = vadd.f32 %v1119_v25, %v952_v37 }
 0x13d   :  { %v1000_v43 = vadd.f32 %v1135_v34, %v988_v40  ;;  %v1003_v45 = vmax.f32 %v999_v39, 0.0 }
 0x13e   :  { %v998_v44 = vadd.f32 %v1131_v38, %v986_v42  ;;  %v1001_v47 = vmax.f32 %v997_v41, 0.0 }
 0x13f   :  { %v1004_v46 = vmax.f32 %v1000_v43, 0.0 }
 0x140   :  { %v1002_v48 = vmax.f32 %v998_v44, 0.0 }
 0x141   :  { %v1144_v49 = vpack.c.bf16 %v1004_v46, %v1003_v45 }
 0x142   :  { %v1139_v50 = vpack.c.bf16 %v1002_v48, %v1001_v47 }
 0x143   :  { %1147 = vst [vmem:[%s1702_s4 + $0x8] sm:$0xff] %v1144_v49  }
 0x144   :  { %1140 = vst [vmem:[%s1702_s4] sm:$0xff] %v1139_v50  }

// kernel: resnet_forward.22
= control target key start
LH: loop header
LB: loop body
LE: loop exit
PB: predicated region body
PF: predicated region fallthrough
CT: control target
= control target key end

     0   :  { %s2106_s15 = smov 0   ;;  %s2108_s16 = smov 0   ;;  %s2319_s0 = inlined_call_operand.vmem [shape: bf16[8,2304], index: 0, kind: input, shape index: {}]   ;;  %s2320_s1 = inlined_call_operand.vmem [shape: bf16[2304,256], index: 1, kind: input, shape index: {}]   ;;  %s2321_s2 = inlined_call_operand.vmem [shape: f32[1,256], index: 2, kind: input, shape index: {}]   ;;  %s2322_s3 = inlined_call_operand.vmem [shape: bf16[8,256], index: 3, kind: input, shape index: {}]   ;;  %s2323_s4 = inlined_call_operand.vmem [shape: bf16[8,256], index: 4, kind: output, shape index: {}]  }
   0x1   :  { %s2110_s17 = smov 0  }
   0x2 LB: > { %s26_s18 = sadd.s32 1, %s2073_s16  ;;  %p1638_p0 = scmp.ge.s32.totalorder %s2077_s17, 1  ;;  %s2077_s17 = sphi %s2110_s17, %s14_s17   ;;  %s2073_s16 = sphi %s2108_s16, %s2325_s16   ;;  %s2069_s15 = sphi %s2106_s15, %s2324_s15  }
   0x3   : > { %p27_p1 = scmp.ge.s32.totalorder %s26_s18, 2  ;;  %p236_p2 = scmp.lt.s32.totalorder %s2077_s17, 3 }
   0x5   : > { %s2327_s18 = smov (%p27_p1, %s26_s18), 0  ;;  %p237_p3 = pnand %p1638_p0, %p236_p2 }
   0x6   : > { %s293_s19 = smul.u32 (!%p237_p3), 9, %s2069_s15  ;;  %p1642_p6 = scmp.ne.s32.totalorder (!%p237_p3), %s2069_s15, 0 }
   0x7   : > { %240 = sbr.rel (%p237_p3) target bundleno = 419 (0x1a3), region = 36 }
   0x8   : > { %s303_s20 = smul.u32 (!%p237_p3), 144, %s2069_s15  ;;  %p296_p4 = scmp.lt.s32.totalorder (!%p237_p3), %s293_s19, 17 }
   0xa   : > { %p305_p5 = scmp.lt.s32.totalorder (!%p237_p3), %s303_s20, 287 }
   0xe   : > { %s2329_s19 = smov (!%p296_p4, %s293_s19), 17  ;;  %s2331_s20 = smov (!%p305_p5, %s303_s20), 287 }
   0xf   : > { %s1639_s21 = sshll.u32 %s2329_s19, 2  ;;  %s1802_s25 = sshll.u32 %s2331_s20, 3  ;;  %v2079_v0 = vmov (!%p1642_p6), 0.0  }
  0x10   : > { %s2131_s24 = scalar_lea.vmem %s2319_s0, %s1639_s21  ;;  %s2136_s28 = scalar_lea.vmem %s2320_s1, %s1802_s25  ;;  %345 = vst [vmem:[#allocation2] sm:$0xff] (!%p1642_p6), %v2079_v0  ;;  %346 = vst [vmem:[#allocation2 + $0x8] sm:$0xff] (!%p1642_p6), %v2079_v0 }
  0x11   : > { %344 = sbr.rel (%p1642_p6) target bundleno = 24 (0x18), region = 40 }
  0x18 PF: > { %v1830_v1 = vld [vmem:[%s2136_s28 + $0x4] ss:$8 sps:$4 sm:$0xff]   ;;  %v1834_v3 = vld [vmem:[%s2136_s28] ss:$8 sps:$4 sm:$0xff]   ;;  %v1836_v5 = vld [vmem:[%s2136_s28 + $0x14] ss:$8 sps:$4 sm:$0xff]  }
  0x19   : > { %v1832_v2 = vld [vmem:[%s2136_s28 + $0x104] ss:$8 sps:$4 sm:$0xff]   ;;  %1250 = vmatprep.subr.bf16.mxu0 %v1830_v1  ;;  %v1835_v4 = vld [vmem:[%s2136_s28 + $0x100] ss:$8 sps:$4 sm:$0xff]   ;;  %v1838_v6 = vld [vmem:[%s2136_s28 + $0x114] ss:$8 sps:$4 sm:$0xff]  }
  0x1a   : > { %1291 = vmatprep.subr.bf16.mxu1 %v1832_v2  ;;  %1251 = vmatpush1.bf16.msra.mxu0 %v1834_v3  ;;  %v1840_v7 = vld [vmem:[%s2136_s28 + $0x10] ss:$8 sps:$4 sm:$0xff]   ;;  %v1842_v9 = vld [vmem:[%s2136_s28 + $0x24] ss:$8 sps:$4 sm:$0xff]   ;;  %v1846_v11 = vld [vmem:[%s2136_s28 + $0x20] ss:$8 sps:$4 sm:$0xff]  }
  0x1b   : > { %1292 = vmatpush1.bf16.msra.mxu1 %v1835_v4  ;;  %1252 = vmatprep.subr.bf16.mxu0 %v1836_v5  ;;  %v1841_v8 = vld [vmem:[%s2136_s28 + $0x110] ss:$8 sps:$4 sm:$0xff]   ;;  %v1844_v10 = vld [vmem:[%s2136_s28 + $0x124] ss:$8 sps:$4 sm:$0xff]   ;;  %v1847_v12 = vld [vmem:[%s2136_s28 + $0x120] ss:$8 sps:$4 sm:$0xff]  }
  0x1c   : > { %1293 = vmatprep.subr.bf16.mxu1 %v1838_v6  ;;  %v1848_v13 = vld [vmem:[%s2136_s28 + $0x34] ss:$8 sps:$4 sm:$0xff]   ;;  %v1852_v15 = vld [vmem:[%s2136_s28 + $0x30] ss:$8 sps:$4 sm:$0xff]   ;;  %v1854_v17 = vld [vmem:[%s2136_s28 + $0x44] ss:$8 sps:$4 sm:$0xff]  }
  0x1d   : > { %v1850_v14 = vld [vmem:[%s2136_s28 + $0x134] ss:$8 sps:$4 sm:$0xff]   ;;  %v1853_v16 = vld [vmem:[%s2136_s28 + $0x130] ss:$8 sps:$4 sm:$0xff]   ;;  %v1856_v18 = vld [vmem:[%s2136_s28 + $0x144] ss:$8 sps:$4 sm:$0xff]  }
  0x1e   : > { %1253 = vmatpush1.bf16.msra.mxu0 %v1840_v7  ;;  %v1858_v19 = vld [vmem:[%s2136_s28 + $0x40] ss:$8 sps:$4 sm:$0xff]   ;;  %v1860_v21 = vld [vmem:[%s2136_s28 + $0x54] ss:$8 sps:$4 sm:$0xff]   ;;  %v1864_v23 = vld [vmem:[%s2136_s28 + $0x50] ss:$8 sps:$4 sm:$0xff]  }
  0x1f   : > { %1294 = vmatpush1.bf16.msra.mxu1 %v1841_v8  ;;  %1254 = vmatprep.subr.bf16.mxu0 %v1842_v9  ;;  %v1859_v20 = vld [vmem:[%s2136_s28 + $0x140] ss:$8 sps:$4 sm:$0xff]   ;;  %v1862_v22 = vld [vmem:[%s2136_s28 + $0x154] ss:$8 sps:$4 sm:$0xff]   ;;  %v1865_v24 = vld [vmem:[%s2136_s28 + $0x150] ss:$8 sps:$4 sm:$0xff]  }
  0x20   : > { %1295 = vmatprep.subr.bf16.mxu1 %v1844_v10  ;;  %v1866_v25 = vld [vmem:[%s2136_s28 + $0x64] ss:$8 sps:$4 sm:$0xff]   ;;  %v1870_v27 = vld [vmem:[%s2136_s28 + $0x60] ss:$8 sps:$4 sm:$0xff]   ;;  %v1872_v29 = vld [vmem:[%s2136_s28 + $0x74] ss:$8 sps:$4 sm:$0xff]  }
  0x21   : > { %v1868_v26 = vld [vmem:[%s2136_s28 + $0x164] ss:$8 sps:$4 sm:$0xff]   ;;  %v1871_v28 = vld [vmem:[%s2136_s28 + $0x160] ss:$8 sps:$4 sm:$0xff]   ;;  %v1874_v30 = vld [vmem:[%s2136_s28 + $0x174] ss:$8 sps:$4 sm:$0xff]  }
  0x22   : > { %1255 = vmatpush1.bf16.msra.mxu0 %v1846_v11  ;;  %v1876_v31 = vld [vmem:[%s2136_s28 + $0x70] ss:$8 sps:$4 sm:$0xff]   ;;  %v1878_v33 = vld [vmem:[%s2136_s28 + $0x84] ss:$8 sps:$4 sm:$0xff]   ;;  %v1882_v35 = vld [vmem:[%s2136_s28 + $0x80] ss:$8 sps:$4 sm:$0xff]  }
  0x23   : > { %1296 = vmatpush1.bf16.msra.mxu1 %v1847_v12  ;;  %1256 = vmatprep.subr.bf16.mxu0 %v1848_v13  ;;  %v1877_v32 = vld [vmem:[%s2136_s28 + $0x170] ss:$8 sps:$4 sm:$0xff]   ;;  %v1880_v34 = vld [vmem:[%s2136_s28 + $0x184] ss:$8 sps:$4 sm:$0xff]   ;;  %v1883_v36 = vld [vmem:[%s2136_s28 + $0x180] ss:$8 sps:$4 sm:$0xff]  }
  0x24   : > { %1297 = vmatprep.subr.bf16.mxu1 %v1850_v14  ;;  %v1884_v37 = vld [vmem:[%s2136_s28 + $0x94] ss:$8 sps:$4 sm:$0xff]   ;;  %v1888_v39 = vld [vmem:[%s2136_s28 + $0x90] ss:$8 sps:$4 sm:$0xff]   ;;  %v1890_v41 = vld [vmem:[%s2136_s28 + $0xa4] ss:$8 sps:$4 sm:$0xff]  }
  0x25   : > { %v1886_v38 = vld [vmem:[%s2136_s28 + $0x194] ss:$8 sps:$4 sm:$0xff]   ;;  %v1889_v40 = vld [vmem:[%s2136_s28 + $0x190] ss:$8 sps:$4 sm:$0xff]   ;;  %v1892_v42 = vld [vmem:[%s2136_s28 + $0x1a4] ss:$8 sps:$4 sm:$0xff]  }
  0x26   : > { %1257 = vmatpush1.bf16.msra.mxu0 %v1852_v15  ;;  %v1894_v43 = vld [vmem:[%s2136_s28 + $0xa0] ss:$8 sps:$4 sm:$0xff]   ;;  %v1896_v45 = vld [vmem:[%s2136_s28 + $0xb4] ss:$8 sps:$4 sm:$0xff]   ;;  %v1900_v50 = vld [vmem:[%s2136_s28 + $0xb0] ss:$8 sps:$4 sm:$0xff]  }
  0x27   : > { %1298 = vmatpush1.bf16.msra.mxu1 %v1853_v16  ;;  %1258 = vmatprep.subr.bf16.mxu0 %v1854_v17  ;;  %v1895_v44 = vld [vmem:[%s2136_s28 + $0x1a0] ss:$8 sps:$4 sm:$0xff]   ;;  %v1898_v46 = vld [vmem:[%s2136_s28 + $0x1b4] ss:$8 sps:$4 sm:$0xff]   ;;  %v1901_v51 = vld [vmem:[%s2136_s28 + $0x1b0] ss:$8 sps:$4 sm:$0xff]  }
  0x28   : > { %1299 = vmatprep.subr.bf16.mxu1 %v1856_v18  ;;  %v349_v47 = vld [vmem:[%s2131_s24] sm:$0xff]  ;;  %v350_v49 = vld [vmem:[%s2131_s24 + $0x8] sm:$0xff]  ;;  %v1908_v57 = vld [vmem:[%s2136_s28 + $0xd4] ss:$8 sps:$4 sm:$0xff]   ;;  %p1796_p7 = scmp.ne.s32.totalorder %s2069_s15, 1 }
  0x29   : > { %v1644_v48 = vcombine.high %v349_v47, %v349_v47  ;;  %v1646_v52 = vcombine.high %v350_v49, %v350_v49  ;;  %v1902_v53 = vld [vmem:[%s2136_s28 + $0xc4] ss:$8 sps:$4 sm:$0xff]   ;;  %v1906_v55 = vld [vmem:[%s2136_s28 + $0xc0] ss:$8 sps:$4 sm:$0xff]   ;;  %v1910_v58 = vld [vmem:[%s2136_s28 + $0x1d4] ss:$8 sps:$4 sm:$0xff]   ;;  %v1643_v7 = vcombine.low %v349_v47, %v349_v47  ;;  %v1645_v8 = vcombine.low %v350_v49, %v350_v49 }
  0x2a   : > { %1259 = vmatpush1.bf16.msra.mxu0 %v1858_v19  ;;  %v1904_v54 = vld [vmem:[%s2136_s28 + $0x1c4] ss:$8 sps:$4 sm:$0xff]   ;;  %v1907_v56 = vld [vmem:[%s2136_s28 + $0x1c0] ss:$8 sps:$4 sm:$0xff]   ;;  %v1912_v59 = vld [vmem:[%s2136_s28 + $0xd0] ss:$8 sps:$4 sm:$0xff]  }
  0x2b   : > { %1300 = vmatpush1.bf16.msra.mxu1 %v1859_v20  ;;  %1260 = vmatprep.subr.bf16.mxu0 %v1860_v21  ;;  %v1913_v60 = vld [vmem:[%s2136_s28 + $0x1d0] ss:$8 sps:$4 sm:$0xff]   ;;  %v1914_v61 = vld [vmem:[%s2136_s28 + $0xe4] ss:$8 sps:$4 sm:$0xff]   ;;  %v1918_v63 = vld [vmem:[%s2136_s28 + $0xe0] ss:$8 sps:$4 sm:$0xff]  }
  0x2c   : > { %1301 = vmatprep.subr.bf16.mxu1 %v1862_v22  ;;  %1282 = vmatprep.mubr.bf16.mxu0 %v1644_v48  ;;  %v1916_v62 = vld [vmem:[%s2136_s28 + $0x1e4] ss:$8 sps:$4 sm:$0xff]   ;;  %v1919_v0 = vld [vmem:[%s2136_s28 + $0x1e0] ss:$8 sps:$4 sm:$0xff]   ;;  %v1920_v1 = vld [vmem:[%s2136_s28 + $0xf4] ss:$8 sps:$4 sm:$0xff]  }
  0x2d   : > { %1323 = vmatprep.mubr.bf16.mxu1 %v1646_v52  ;;  %v1922_v2 = vld [vmem:[%s2136_s28 + $0x1f4] ss:$8 sps:$4 sm:$0xff]   ;;  %v1924_v3 = vld [vmem:[%s2136_s28 + $0xf0] ss:$8 sps:$4 sm:$0xff]   ;;  %v1932_v5 = vld [vmem:[%s2136_s28 + $0x204] ss:$8 sps:$4 sm:$0xff]  }
  0x2e   : > { %1261 = vmatpush1.bf16.msra.mxu0 %v1864_v23  ;;  %v1925_v4 = vld [vmem:[%s2136_s28 + $0x1f0] ss:$8 sps:$4 sm:$0xff]   ;;  %v1935_v6 = vld [vmem:[%s2136_s28 + $0x304] ss:$8 sps:$4 sm:$0xff]   ;;  %v1930_v9 = vld [vmem:[%s2136_s28 + $0x200] ss:$8 sps:$4 sm:$0xff]  }
  0x2f   : > { %1302 = vmatpush1.bf16.msra.mxu1 %v1865_v24  ;;  %1262 = vmatprep.subr.bf16.mxu0 %v1866_v25  ;;  %v1933_v10 = vld [vmem:[%s2136_s28 + $0x300] ss:$8 sps:$4 sm:$0xff]   ;;  %v1938_v11 = vld [vmem:[%s2136_s28 + $0x214] ss:$8 sps:$4 sm:$0xff]   ;;  %v1936_v13 = vld [vmem:[%s2136_s28 + $0x210] ss:$8 sps:$4 sm:$0xff]  }
  0x30   : > { %1303 = vmatprep.subr.bf16.mxu1 %v1868_v26  ;;  %v1941_v12 = vld [vmem:[%s2136_s28 + $0x314] ss:$8 sps:$4 sm:$0xff]   ;;  %v1939_v14 = vld [vmem:[%s2136_s28 + $0x310] ss:$8 sps:$4 sm:$0xff]   ;;  %v1944_v15 = vld [vmem:[%s2136_s28 + $0x224] ss:$8 sps:$4 sm:$0xff]  }
  0x31   : > { %v1947_v16 = vld [vmem:[%s2136_s28 + $0x324] ss:$8 sps:$4 sm:$0xff]   ;;  %v1942_v17 = vld [vmem:[%s2136_s28 + $0x220] ss:$8 sps:$4 sm:$0xff]   ;;  %v1950_v19 = vld [vmem:[%s2136_s28 + $0x234] ss:$8 sps:$4 sm:$0xff]  }
  0x32   : > { %1263 = vmatpush1.bf16.msra.mxu0 %v1870_v27  ;;  %v1945_v18 = vld [vmem:[%s2136_s28 + $0x320] ss:$8 sps:$4 sm:$0xff]   ;;  %v1953_v20 = vld [vmem:[%s2136_s28 + $0x334] ss:$8 sps:$4 sm:$0xff]   ;;  %v1948_v21 = vld [vmem:[%s2136_s28 + $0x230] ss:$8 sps:$4 sm:$0xff]  }
  0x33   : > { %1304 = vmatpush1.bf16.msra.mxu1 %v1871_v28  ;;  %1264 = vmatprep.subr.bf16.mxu0 %v1872_v29  ;;  %v1951_v22 = vld [vmem:[%s2136_s28 + $0x330] ss:$8 sps:$4 sm:$0xff]   ;;  %v1956_v23 = vld [vmem:[%s2136_s28 + $0x244] ss:$8 sps:$4 sm:$0xff]   ;;  %v1954_v25 = vld [vmem:[%s2136_s28 + $0x240] ss:$8 sps:$4 sm:$0xff]  }
  0x34   : > { %1305 = vmatprep.subr.bf16.mxu1 %v1874_v30  ;;  %v1959_v24 = vld [vmem:[%s2136_s28 + $0x344] ss:$8 sps:$4 sm:$0xff]   ;;  %v1957_v26 = vld [vmem:[%s2136_s28 + $0x340] ss:$8 sps:$4 sm:$0xff]   ;;  %v1962_v27 = vld [vmem:[%s2136_s28 + $0x254] ss:$8 sps:$4 sm:$0xff]  }
  0x35   : > { %v1965_v28 = vld [vmem:[%s2136_s28 + $0x354] ss:$8 sps:$4 sm:$0xff]   ;;  %v1960_v29 = vld [vmem:[%s2136_s28 + $0x250] ss:$8 sps:$4 sm:$0xff]   ;;  %v1995_v52 = vld [vmem:[%s2136_s28 + $0x3a4] ss:$8 sps:$4 sm:$0xff]  }
  0x36   : > { %1265 = vmatpush1.bf16.msra.mxu0 %v1876_v31  ;;  %v1963_v30 = vld [vmem:[%s2136_s28 + $0x350] ss:$8 sps:$4 sm:$0xff]   ;;  %v1968_v31 = vld [vmem:[%s2136_s28 + $0x264] ss:$8 sps:$4 sm:$0xff]   ;;  %v1986_v47 = vld [vmem:[%s2136_s28 + $0x294] ss:$8 sps:$4 sm:$0xff]  }
  0x37   : > { %1306 = vmatpush1.bf16.msra.mxu1 %v1877_v32  ;;  %1266 = vmatprep.subr.bf16.mxu0 %v1878_v33  ;;  %v1971_v32 = vld [vmem:[%s2136_s28 + $0x364] ss:$8 sps:$4 sm:$0xff]   ;;  %v2232_v33 = vld [vmem:[%s2131_s24 + $0x10] sm:$0xff] }
  0x38   : > { %1307 = vmatprep.subr.bf16.mxu1 %v1880_v34  ;;  %v1966_v34 = vld [vmem:[%s2136_s28 + $0x260] ss:$8 sps:$4 sm:$0xff]   ;;  %v1989_v48 = vld [vmem:[%s2136_s28 + $0x394] ss:$8 sps:$4 sm:$0xff]   ;;  %v1984_v49 = vld [vmem:[%s2136_s28 + $0x290] ss:$8 sps:$4 sm:$0xff]  }
  0x3a   : > { %1267 = vmatpush1.bf16.msra.mxu0 %v1882_v35  ;;  %v1969_v35 = vld [vmem:[%s2136_s28 + $0x360] ss:$8 sps:$4 sm:$0xff]  }
  0x3b   : > { %1308 = vmatpush1.bf16.msra.mxu1 %v1883_v36  ;;  %1268 = vmatprep.subr.bf16.mxu0 %v1884_v37  ;;  %v1648_v36 = vcombine.high %v2232_v33, %v2232_v33  ;;  %v2239_v37 = vld [vmem:[%s2131_s24 + $0x18] sm:$0xff] }
  0x3c   : > { %1309 = vmatprep.subr.bf16.mxu1 %v1886_v38  ;;  %v1974_v38 = vld [vmem:[%s2136_s28 + $0x274] ss:$8 sps:$4 sm:$0xff]  }
  0x3e   : > { %1269 = vmatpush1.bf16.msra.mxu0 %v1888_v39  ;;  %v1650_v39 = vcombine.high %v2239_v37, %v2239_v37 }
  0x3f   : > { %1310 = vmatpush1.bf16.msra.mxu1 %v1889_v40  ;;  %1270 = vmatprep.subr.bf16.mxu0 %v1890_v41  ;;  %v1977_v40 = vld [vmem:[%s2136_s28 + $0x374] ss:$8 sps:$4 sm:$0xff]   ;;  %v1972_v41 = vld [vmem:[%s2136_s28 + $0x270] ss:$8 sps:$4 sm:$0xff]  }
  0x40   : > { %1311 = vmatprep.subr.bf16.mxu1 %v1892_v42  ;;  %v1975_v42 = vld [vmem:[%s2136_s28 + $0x370] ss:$8 sps:$4 sm:$0xff]  }
  0x42   : > { %1271 = vmatpush1.bf16.msra.mxu0 %v1894_v43  ;;  %v1980_v43 = vld [vmem:[%s2136_s28 + $0x284] ss:$8 sps:$4 sm:$0xff]  }
  0x43   : > { %1312 = vmatpush1.bf16.msra.mxu1 %v1895_v44  ;;  %1272 = vmatprep.subr.bf16.mxu0 %v1896_v45  ;;  %v1983_v44 = vld [vmem:[%s2136_s28 + $0x384] ss:$8 sps:$4 sm:$0xff]   ;;  %v1978_v45 = vld [vmem:[%s2136_s28 + $0x280] ss:$8 sps:$4 sm:$0xff]  }
  0x44   : > { %1313 = vmatprep.subr.bf16.mxu1 %v1898_v46  ;;  %v1981_v46 = vld [vmem:[%s2136_s28 + $0x380] ss:$8 sps:$4 sm:$0xff]  }
  0x46   : > { %1273 = vmatpush1.bf16.msra.mxu0 %v1900_v50  ;;  %v1987_v50 = vld [vmem:[%s2136_s28 + $0x390] ss:$8 sps:$4 sm:$0xff]  }
  0x47   : > { %1314 = vmatpush1.bf16.msra.mxu1 %v1901_v51  ;;  %1274 = vmatprep.subr.bf16.mxu0 %v1902_v53  ;;  %v1992_v51 = vld [vmem:[%s2136_s28 + $0x2a4] ss:$8 sps:$4 sm:$0xff]   ;;  %v1990_v53 = vld [vmem:[%s2136_s28 + $0x2a0] ss:$8 sps:$4 sm:$0xff]  }
  0x48   : > { %1315 = vmatprep.subr.bf16.mxu1 %v1904_v54  ;;  %v1993_v54 = vld [vmem:[%s2136_s28 + $0x3a0] ss:$8 sps:$4 sm:$0xff]  }
  0x4a   : > { %1275 = vmatpush1.bf16.msra.mxu0 %v1906_v55  ;;  %v1998_v55 = vld [vmem:[%s2136_s28 + $0x2b4] ss:$8 sps:$4 sm:$0xff]  }
  0x4b   : > { %1316 = vmatpush1.bf16.msra.mxu1 %v1907_v56  ;;  %1276 = vmatprep.subr.bf16.mxu0 %v1908_v57  ;;  %v2001_v56 = vld [vmem:[%s2136_s28 + $0x3b4] ss:$8 sps:$4 sm:$0xff]   ;;  %v1996_v57 = vld [vmem:[%s2136_s28 + $0x2b0] ss:$8 sps:$4 sm:$0xff]  }
  0x4c   : > { %1317 = vmatprep.subr.bf16.mxu1 %v1910_v58  ;;  %v1999_v58 = vld [vmem:[%s2136_s28 + $0x3b0] ss:$8 sps:$4 sm:$0xff]  }
  0x4e   : > { %1277 = vmatpush1.bf16.msra.mxu0 %v1912_v59  ;;  %v2004_v59 = vld [vmem:[%s2136_s28 + $0x2c4] ss:$8 sps:$4 sm:$0xff]  }
  0x4f   : > { %1318 = vmatpush1.bf16.msra.mxu1 %v1913_v60  ;;  %1278 = vmatprep.subr.bf16.mxu0 %v1914_v61  ;;  %v2007_v60 = vld [vmem:[%s2136_s28 + $0x3c4] ss:$8 sps:$4 sm:$0xff]   ;;  %v2002_v61 = vld [vmem:[%s2136_s28 + $0x2c0] ss:$8 sps:$4 sm:$0xff]  }
  0x50   : > { %1319 = vmatprep.subr.bf16.mxu1 %v1916_v62  ;;  %v2005_v62 = vld [vmem:[%s2136_s28 + $0x3c0] ss:$8 sps:$4 sm:$0xff]  }
  0x52   : > { %1279 = vmatpush1.bf16.msra.mxu0 %v1918_v63  ;;  %v2010_v63 = vld [vmem:[%s2136_s28 + $0x2d4] ss:$8 sps:$4 sm:$0xff]  }
  0x53   : > { %1320 = vmatpush1.bf16.msra.mxu1 %v1919_v0  ;;  %1280 = vmatprep.subr.bf16.mxu0 %v1920_v1  ;;  %v2013_v0 = vld [vmem:[%s2136_s28 + $0x3d4] ss:$8 sps:$4 sm:$0xff]   ;;  %v2008_v1 = vld [vmem:[%s2136_s28 + $0x2d0] ss:$8 sps:$4 sm:$0xff]  }
  0x54   : > { %1321 = vmatprep.subr.bf16.mxu1 %v1922_v2  ;;  %v2011_v2 = vld [vmem:[%s2136_s28 + $0x3d0] ss:$8 sps:$4 sm:$0xff]  }
  0x56   : > { %1281 = vmatpush1.bf16.msra.mxu0 %v1924_v3  ;;  %v2016_v3 = vld [vmem:[%s2136_s28 + $0x2e4] ss:$8 sps:$4 sm:$0xff]  }
  0x57   : > { %1322 = vmatpush1.bf16.msra.mxu1 %v1925_v4  ;;  %1332 = vmatprep.subr.bf16.mxu0 %v1932_v5  ;;  %v2019_v4 = vld [vmem:[%s2136_s28 + $0x3e4] ss:$8 sps:$4 sm:$0xff]   ;;  %v2014_v5 = vld [vmem:[%s2136_s28 + $0x2e0] ss:$8 sps:$4 sm:$0xff]  }
  0x58   : > { %1373 = vmatprep.subr.bf16.mxu1 %v1935_v6  ;;  %v2017_v6 = vld [vmem:[%s2136_s28 + $0x3e0] ss:$8 sps:$4 sm:$0xff]  }
  0x59   : > { %1283 = vmatmul.mubr.bf16.vlgmr.msra.gmra.mrb[0].mxu0 %v1643_v7  ;;  %v2022_v7 = vld [vmem:[%s2136_s28 + $0x2f4] ss:$8 sps:$4 sm:$0xff]  }
  0x5a   : > { %1324 = vmatmul.mubr.bf16.vlgmr.msra.gmra.mrb[0].mxu1 %v1645_v8  ;;  %1333 = vmatpush1.bf16.msra.mxu0 %v1930_v9  ;;  %v2025_v8 = vld [vmem:[%s2136_s28 + $0x3f4] ss:$8 sps:$4 sm:$0xff]   ;;  %v2020_v9 = vld [vmem:[%s2136_s28 + $0x2f0] ss:$8 sps:$4 sm:$0xff]  }
  0x5b   : > { %1374 = vmatpush1.bf16.msra.mxu1 %v1933_v10  ;;  %1334 = vmatprep.subr.bf16.mxu0 %v1938_v11  ;;  %v2023_v10 = vld [vmem:[%s2136_s28 + $0x3f0] ss:$8 sps:$4 sm:$0xff]   ;;  %v2030_v11 = vld [vmem:[%s2136_s28 + $0x404] ss:$8 sps:$4 sm:$0xff]  }
  0x5c   : > { %1375 = vmatprep.subr.bf16.mxu1 %v1941_v12  ;;  %1364 = vmatprep.mubr.bf16.mxu0 %v1648_v36  ;;  %v1647_v12 = vcombine.low %v2232_v33, %v2232_v33 }
  0x5d   : > { %1405 = vmatprep.mubr.bf16.mxu1 %v1650_v39 }
  0x5e   : > { %1335 = vmatpush1.bf16.msra.mxu0 %v1936_v13  ;;  %v1649_v13 = vcombine.low %v2239_v37, %v2239_v37 }
  0x5f   : > { %1376 = vmatpush1.bf16.msra.mxu1 %v1939_v14  ;;  %1336 = vmatprep.subr.bf16.mxu0 %v1944_v15  ;;  %v2028_v14 = vld [vmem:[%s2136_s28 + $0x400] ss:$8 sps:$4 sm:$0xff]   ;;  %v2035_v15 = vld [vmem:[%s2136_s28 + $0x414] ss:$8 sps:$4 sm:$0xff]  }
  0x60   : > { %1377 = vmatprep.subr.bf16.mxu1 %v1947_v16  ;;  %v2033_v16 = vld [vmem:[%s2136_s28 + $0x410] ss:$8 sps:$4 sm:$0xff]  }
  0x62   : > { %1337 = vmatpush1.bf16.msra.mxu0 %v1942_v17  ;;  %v2080_v17 = vmov 0  }
  0x63   : > { %1378 = vmatpush1.bf16.msra.mxu1 %v1945_v18  ;;  %1338 = vmatprep.subr.bf16.mxu0 %v1950_v19  ;;  %v2038_v18 = vld [vmem:[%s2136_s28 + $0x424] ss:$8 sps:$4 sm:$0xff]   ;;  %v2036_v19 = vld [vmem:[%s2136_s28 + $0x420] ss:$8 sps:$4 sm:$0xff]  }
  0x64   : > { %1379 = vmatprep.subr.bf16.mxu1 %v1953_v20  ;;  %v2041_v20 = vld [vmem:[%s2136_s28 + $0x434] ss:$8 sps:$4 sm:$0xff]  }
  0x66   : > { %1339 = vmatpush1.bf16.msra.mxu0 %v1948_v21  ;;  %v2039_v21 = vld [vmem:[%s2136_s28 + $0x430] ss:$8 sps:$4 sm:$0xff]  }
  0x67   : > { %1380 = vmatpush1.bf16.msra.mxu1 %v1951_v22  ;;  %1340 = vmatprep.subr.bf16.mxu0 %v1956_v23  ;;  %v2044_v22 = vld [vmem:[%s2136_s28 + $0x444] ss:$8 sps:$4 sm:$0xff]   ;;  %v2042_v23 = vld [vmem:[%s2136_s28 + $0x440] ss:$8 sps:$4 sm:$0xff]  }
  0x68   : > { %1381 = vmatprep.subr.bf16.mxu1 %v1959_v24  ;;  %v2047_v24 = vld [vmem:[%s2136_s28 + $0x454] ss:$8 sps:$4 sm:$0xff]  }
  0x6a   : > { %1341 = vmatpush1.bf16.msra.mxu0 %v1954_v25  ;;  %v2045_v25 = vld [vmem:[%s2136_s28 + $0x450] ss:$8 sps:$4 sm:$0xff]  }
  0x6b   : > { %1382 = vmatpush1.bf16.msra.mxu1 %v1957_v26  ;;  %1342 = vmatprep.subr.bf16.mxu0 %v1962_v27  ;;  %v2050_v26 = vld [vmem:[%s2136_s28 + $0x464] ss:$8 sps:$4 sm:$0xff]   ;;  %v2048_v27 = vld [vmem:[%s2136_s28 + $0x460] ss:$8 sps:$4 sm:$0xff]  }
  0x6c   : > { %1383 = vmatprep.subr.bf16.mxu1 %v1965_v28  ;;  %v2053_v28 = vld [vmem:[%s2136_s28 + $0x474] ss:$8 sps:$4 sm:$0xff]  }
  0x6e   : > { %1343 = vmatpush1.bf16.msra.mxu0 %v1960_v29  ;;  %v2051_v29 = vld [vmem:[%s2136_s28 + $0x470] ss:$8 sps:$4 sm:$0xff]  }
  0x6f   : > { %1384 = vmatpush1.bf16.msra.mxu1 %v1963_v30  ;;  %1344 = vmatprep.subr.bf16.mxu0 %v1968_v31  ;;  %v2054_v30 = vld [vmem:[%s2131_s24 + $0x20] ss:$0 sps:$4 sm:$0xff]  }
  0x70   : > { %1385 = vmatprep.subr.bf16.mxu1 %v1971_v32 }
  0x72   : > { %1345 = vmatpush1.bf16.msra.mxu0 %v1966_v34 }
  0x73   : > { %1386 = vmatpush1.bf16.msra.mxu1 %v1969_v35  ;;  %1346 = vmatprep.subr.bf16.mxu0 %v1974_v38 }
  0x74   : > { %1387 = vmatprep.subr.bf16.mxu1 %v1977_v40 }
  0x76   : > { %1347 = vmatpush1.bf16.msra.mxu0 %v1972_v41 }
  0x77   : > { %1388 = vmatpush1.bf16.msra.mxu1 %v1975_v42  ;;  %1348 = vmatprep.subr.bf16.mxu0 %v1980_v43 }
  0x78   : > { %1389 = vmatprep.subr.bf16.mxu1 %v1983_v44 }
  0x7a   : > { %1349 = vmatpush1.bf16.msra.mxu0 %v1978_v45 }
  0x7b   : > { %1390 = vmatpush1.bf16.msra.mxu1 %v1981_v46  ;;  %1350 = vmatprep.subr.bf16.mxu0 %v1986_v47 }
  0x7c   : > { %1391 = vmatprep.subr.bf16.mxu1 %v1989_v48 }
  0x7e   : > { %1351 = vmatpush1.bf16.msra.mxu0 %v1984_v49 }
  0x7f   : > { %1392 = vmatpush1.bf16.msra.mxu1 %v1987_v50  ;;  %1352 = vmatprep.subr.bf16.mxu0 %v1992_v51 }
  0x80   : > { %1393 = vmatprep.subr.bf16.mxu1 %v1995_v52 }
  0x82   : > { %1353 = vmatpush1.bf16.msra.mxu0 %v1990_v53  ;;  %v347_v53 = vld [vmem:[#allocation2] sm:$0xff] }
  0x83   : > { %1394 = vmatpush1.bf16.msra.mxu1 %v1993_v54  ;;  %1354 = vmatprep.subr.bf16.mxu0 %v1998_v55 }
  0x84   : > { %1395 = vmatprep.subr.bf16.mxu1 %v2001_v56  ;;  %v348_v56 = vld [vmem:[#allocation2 + $0x8] sm:$0xff] }
  0x86   : > { %1355 = vmatpush1.bf16.msra.mxu0 %v1996_v57 }
  0x87   : > { %1396 = vmatpush1.bf16.msra.mxu1 %v1999_v58  ;;  %1356 = vmatprep.subr.bf16.mxu0 %v2004_v59 }
  0x88   : > { %1397 = vmatprep.subr.bf16.mxu1 %v2007_v60 }
  0x8a   : > { %1357 = vmatpush1.bf16.msra.mxu0 %v2002_v61 }
  0x8b   : > { %1398 = vmatpush1.bf16.msra.mxu1 %v2005_v62  ;;  %1358 = vmatprep.subr.bf16.mxu0 %v2010_v63  ;;  %v1467_v63 = vlaneseq (!%p1796_p7) }
  0x8c   : > { %1399 = vmatprep.subr.bf16.mxu1 %v2013_v0 }
  0x8d   : > { %v1468_v0 = vshrl.u32 (!%p1796_p7), %v1467_v63, 7 }
  0x8e   : > { %1359 = vmatpush1.bf16.msra.mxu0 %v2008_v1  ;;  %v1465_v1 = vld [vmem:[%s2321_s2] sm:$0x3] (!%p1796_p7) }
  0x8f   : > { %1400 = vmatpush1.bf16.msra.mxu1 %v2011_v2  ;;  %1360 = vmatprep.subr.bf16.mxu0 %v2016_v3  ;;  %v1479_v2 = vld [vmem:[%s2322_s3] sm:$0xff] (!%p1796_p7)  ;;  %v1469_v3 = vsub.s32 (!%p1796_p7), 0, %v1468_v0 }
  0x90   : > { %1401 = vmatprep.subr.bf16.mxu1 %v2019_v4  ;;  %v1473_v4 = vsub.s32 (!%p1796_p7), 1, %v1468_v0 }
  0x92   : > { %1361 = vmatpush1.bf16.msra.mxu0 %v2014_v5 }
  0x93   : > { %1402 = vmatpush1.bf16.msra.mxu1 %v2017_v6  ;;  %1362 = vmatprep.subr.bf16.mxu0 %v2022_v7  ;;  %v1470_v7 = vrot.slane (!%p1796_p7), %v1465_v1, %v1469_v3 }
  0x94   : > { %1403 = vmatprep.subr.bf16.mxu1 %v2025_v8  ;;  %v1474_v8 = vrot.slane (!%p1796_p7), %v1465_v1, %v1473_v4 }
  0x96   : > { %1363 = vmatpush1.bf16.msra.mxu0 %v2020_v9  ;;  %v1480_v9 = vunpack.c.l.bf16 (!%p1796_p7), %v1479_v2 }
  0x97   : > { %1404 = vmatpush1.bf16.msra.mxu1 %v2023_v10  ;;  %1414 = vmatprep.subr.bf16.mxu0 %v2030_v11  ;;  %v1481_v10 = vunpack.c.h.bf16 (!%p1796_p7), %v1479_v2 }
  0x99   : > { %1365 = vmatmul.mubr.bf16.vlgmr.msra.gmra.mrb[4].mxu0 %v1647_v12 }
  0x9a   : > { %1406 = vmatmul.mubr.bf16.vlgmr.msra.gmra.mrb[4].mxu1 %v1649_v13  ;;  %1415 = vmatpush1.bf16.msra.mxu0 %v2028_v14 }
  0x9b   : > { %1446 = vmatprep.mubr.bf16.mxu0 %v2080_v17  ;;  %1416 = vmatprep.subr.bf16.mxu0 %v2035_v15 }
  0x9e   : > { %1417 = vmatpush1.bf16.msra.mxu0 %v2033_v16 }
  0x9f   : > { %1418 = vmatprep.subr.bf16.mxu0 %v2038_v18 }
  0xa2   : > { %1419 = vmatpush1.bf16.msra.mxu0 %v2036_v19 }
  0xa3   : > { %1420 = vmatprep.subr.bf16.mxu0 %v2041_v20 }
  0xa6   : > { %1421 = vmatpush1.bf16.msra.mxu0 %v2039_v21 }
  0xa7   : > { %1422 = vmatprep.subr.bf16.mxu0 %v2044_v22 }
  0xaa   : > { %1423 = vmatpush1.bf16.msra.mxu0 %v2042_v23 }
  0xab   : > { %1424 = vmatprep.subr.bf16.mxu0 %v2047_v24 }
  0xae   : > { %1425 = vmatpush1.bf16.msra.mxu0 %v2045_v25 }
  0xaf   : > { %1426 = vmatprep.subr.bf16.mxu0 %v2050_v26 }
  0xb2   : > { %1427 = vmatpush1.bf16.msra.mxu0 %v2048_v27 }
  0xb3   : > { %1428 = vmatprep.subr.bf16.mxu0 %v2053_v28 }
  0xb6   : > { %1429 = vmatpush1.bf16.msra.mxu0 %v2051_v29 }
  0xb9   : > { %1447 = vmatmul.mubr.bf16.vlgmr.msra.gmra.mrb[8].mxu0 %v2054_v30 }
 0x12c   : > { %v1284_v31 = vpop.f32.mrb[0].mxu0 }
 0x12d   : > { %v1325_v32 = vpop.f32.mrb[0].mxu1  ;;  %v1286_v34 = vpop.f32.mrb[1].mxu0 }
 0x12e   : > { %v1326_v33 = vadd.f32 %v1325_v32, %v1284_v31  ;;  %v1327_v35 = vpop.f32.mrb[1].mxu1  ;;  %v1288_v37 = vpop.f32.mrb[2].mxu0 }
 0x12f   : > { %v1328_v36 = vadd.f32 %v1327_v35, %v1286_v34  ;;  %v1329_v38 = vpop.f32.mrb[2].mxu1  ;;  %v1289_v39 = vpop.f32.mrb[3].mxu0 }
 0x130   : > { %v1330_v40 = vpop.f32.mrb[3].mxu1 }
 0x16c   : > { %v1366_v41 = vpop.f32.mrb[4].mxu0 }
 0x16d   : > { %v1407_v42 = vpop.f32.mrb[4].mxu1  ;;  %v1367_v43 = vadd.f32 %v1366_v41, %v1326_v33  ;;  %v1368_v44 = vpop.f32.mrb[5].mxu0 }
 0x16e   : > { %v1409_v45 = vpop.f32.mrb[5].mxu1  ;;  %v1369_v46 = vadd.f32 %v1368_v44, %v1328_v36  ;;  %v1370_v47 = vpop.f32.mrb[6].mxu0 }
 0x16f   : > { %v1411_v48 = vpop.f32.mrb[6].mxu1  ;;  %v1408_v49 = vadd.f32 %v1407_v42, %v1367_v43  ;;  %v1371_v50 = vpop.f32.mrb[7].mxu0 }
 0x170   : > { %v1412_v51 = vpop.f32.mrb[7].mxu1  ;;  %v1410_v52 = vadd.f32 %v1409_v45, %v1369_v46 }
 0x18c   : > { %v1448_v54 = vpop.f32.mrb[8].mxu0  ;;  %1462 = sbr.rel (%p1796_p7) target bundleno = 419 (0x1a3), region = 44 }
 0x18d   : > { %v1449_v55 = vadd.f32 %v1448_v54, %v1408_v49  ;;  %v1450_v57 = vpop.f32.mrb[9].mxu0 }
 0x18e   : > { %v1451_v58 = vadd.f32 %v1450_v57, %v1410_v52  ;;  %v1452_v59 = vpop.f32.mrb[10].mxu0 }
 0x18f   : > { %v1455_v60 = vadd.f32 %v1449_v55, %v347_v53  ;;  %v1453_v61 = vpop.f32.mrb[11].mxu0 }
 0x190   : > { %v1456_v62 = vadd.f32 %v1451_v58, %v348_v56 }
 0x191   : > { %1457 = vst [vmem:[#allocation2] sm:$0xff] %v1455_v60 }
 0x192   : > { %1458 = vst [vmem:[#allocation2 + $0x8] sm:$0xff] %v1456_v62 }
 0x198   : > { %v1463_v5 = vld [vmem:[#allocation2] sm:$0xff] }
 0x199   : > { %v1464_v6 = vld [vmem:[#allocation2 + $0x8] sm:$0xff]  ;;  %v1477_v11 = vadd.f32 %v1470_v7, %v1463_v5 }
 0x19a   : > { %v1478_v12 = vadd.f32 %v1474_v8, %v1464_v6 }
 0x19b   : > { %v1482_v13 = vadd.f32 %v1480_v9, %v1477_v11 }
 0x19c   : > { %v1483_v14 = vadd.f32 %v1481_v10, %v1478_v12 }
 0x19d   : > { %v1484_v15 = vmax.f32 %v1482_v13, 0.0 }
 0x19e   : > { %v1485_v16 = vmax.f32 %v1483_v14, 0.0 }
 0x1a0   : > { %v1803_v17 = vpack.c.bf16 %v1485_v16, %v1484_v15 }
 0x1a2   : > { %1494 = vst [vmem:[%s2323_s4] sm:$0xff] %v1803_v17 }
 0x1a3 PF: > { %s14_s17 = sadd.s32 1, %s2077_s17   ;;  %s2324_s15 = smov %s2073_s16 }
 0x1a4   : > { %p11_p8 = scmp.ge.s32.totalorder %s14_s17, 4   ;;  %s2325_s16 = smov %s2327_s18 }
 0x1a6   :  { %13 = sbr.rel (!%p11_p8) target bundleno = 2 (0x2), region = 83 }

// kernel: resnet_forward.20
= control target key start
LH: loop header
LB: loop body
LE: loop exit
PB: predicated region body
PF: predicated region fallthrough
CT: control target
= control target key end

     0   :  { %v240_v1 = vmov 0   ;;  %v172_v18 = vlaneseq  ;;  %s318_s1 = inlined_call_operand.vmem [shape: bf16[128,256], index: 1, kind: input, shape index: {}]   ;;  %s319_s0 = inlined_call_operand.vmem [shape: bf16[8,128], index: 0, kind: input, shape index: {}]   ;;  %s320_s2 = inlined_call_operand.vmem [shape: f32[1,256], index: 2, kind: input, shape index: {}]   ;;  %s321_s3 = inlined_call_operand.vmem [shape: bf16[8,256], index: 3, kind: output, shape index: {}]  }
   0x1   :  { %v216_v0 = vld [vmem:[%s318_s1 + $0x4] ss:$8 sps:$4 sm:$0xff]   ;;  %152 = vmatprep.mubr.bf16.mxu0 %v240_v1  ;;  %v218_v2 = vld [vmem:[%s318_s1] ss:$8 sps:$4 sm:$0xff]   ;;  %v219_v3 = vld [vmem:[%s318_s1 + $0x14] ss:$8 sps:$4 sm:$0xff]  }
   0x2   :  { %120 = vmatprep.subr.bf16.mxu0 %v216_v0  ;;  %v221_v4 = vld [vmem:[%s318_s1 + $0x10] ss:$8 sps:$4 sm:$0xff]   ;;  %v222_v5 = vld [vmem:[%s318_s1 + $0x24] ss:$8 sps:$4 sm:$0xff]   ;;  %v224_v6 = vld [vmem:[%s318_s1 + $0x20] ss:$8 sps:$4 sm:$0xff]  }
   0x3   :  { %121 = vmatpush1.bf16.msra.mxu0 %v218_v2  ;;  %v225_v7 = vld [vmem:[%s318_s1 + $0x34] ss:$8 sps:$4 sm:$0xff]   ;;  %v227_v8 = vld [vmem:[%s318_s1 + $0x30] ss:$8 sps:$4 sm:$0xff]   ;;  %v228_v9 = vld [vmem:[%s318_s1 + $0x44] ss:$8 sps:$4 sm:$0xff]  }
   0x4   :  { %122 = vmatprep.subr.bf16.mxu0 %v219_v3  ;;  %v230_v10 = vld [vmem:[%s318_s1 + $0x40] ss:$8 sps:$4 sm:$0xff]   ;;  %v231_v11 = vld [vmem:[%s318_s1 + $0x54] ss:$8 sps:$4 sm:$0xff]   ;;  %v233_v12 = vld [vmem:[%s318_s1 + $0x50] ss:$8 sps:$4 sm:$0xff]  }
   0x5   :  { %v234_v13 = vld [vmem:[%s318_s1 + $0x64] ss:$8 sps:$4 sm:$0xff]   ;;  %v236_v14 = vld [vmem:[%s318_s1 + $0x60] ss:$8 sps:$4 sm:$0xff]   ;;  %v237_v15 = vld [vmem:[%s318_s1 + $0x74] ss:$8 sps:$4 sm:$0xff]  }
   0x6   :  { %v239_v16 = vld [vmem:[%s318_s1 + $0x70] ss:$8 sps:$4 sm:$0xff]   ;;  %v23_v17 = vld [vmem:[%s319_s0] sm:$0xf]  ;;  %v173_v19 = vshrl.u32 %v172_v18, 7 }
   0x7   :  { %123 = vmatpush1.bf16.msra.mxu0 %v221_v4  ;;  %v170_v21 = vld [vmem:[%s320_s2] sm:$0x3] }
   0x8   :  { %124 = vmatprep.subr.bf16.mxu0 %v222_v5  ;;  %v174_v20 = vsub.s32 0, %v173_v19  ;;  %v178_v22 = vsub.s32 1, %v173_v19 }
   0xa   :  { %v175_v23 = vrot.slane %v170_v21, %v174_v20  ;;  %v179_v24 = vrot.slane %v170_v21, %v178_v22 }
   0xb   :  { %125 = vmatpush1.bf16.msra.mxu0 %v224_v6 }
   0xc   :  { %126 = vmatprep.subr.bf16.mxu0 %v225_v7 }
   0xf   :  { %127 = vmatpush1.bf16.msra.mxu0 %v227_v8 }
  0x10   :  { %128 = vmatprep.subr.bf16.mxu0 %v228_v9 }
  0x13   :  { %129 = vmatpush1.bf16.msra.mxu0 %v230_v10 }
  0x14   :  { %130 = vmatprep.subr.bf16.mxu0 %v231_v11 }
  0x17   :  { %131 = vmatpush1.bf16.msra.mxu0 %v233_v12 }
  0x18   :  { %132 = vmatprep.subr.bf16.mxu0 %v234_v13 }
  0x1b   :  { %133 = vmatpush1.bf16.msra.mxu0 %v236_v14 }
  0x1c   :  { %134 = vmatprep.subr.bf16.mxu0 %v237_v15 }
  0x1f   :  { %135 = vmatpush1.bf16.msra.mxu0 %v239_v16 }
  0x22   :  { %153 = vmatmul.mubr.bf16.vlgmr.msra.gmra.mrb[0].mxu0 %v23_v17 }
  0xf5   :  { %v154_v25 = vpop.f32.mrb[0].mxu0 }
  0xf6   :  { %v182_v26 = vadd.f32 %v175_v23, %v154_v25  ;;  %v156_v27 = vpop.f32.mrb[1].mxu0 }
  0xf7   :  { %v183_v28 = vadd.f32 %v179_v24, %v156_v27  ;;  %v158_v29 = vpop.f32.mrb[2].mxu0 }
  0xf8   :  { %v159_v30 = vpop.f32.mrb[3].mxu0 }
  0xf9   :  { %v214_v31 = vpack.c.bf16 %v183_v28, %v182_v26 }
  0xfb   :  { %192 = vst [vmem:[%s321_s3] sm:$0xff] %v214_v31 }

// kernel: resnet_forward.21
= control target key start
LH: loop header
LB: loop body
LE: loop exit
PB: predicated region body
PF: predicated region fallthrough
CT: control target
= control target key end

     0   :  { %s2034_s1 = inlined_call_operand.vmem [shape: bf16[1152,256], index: 1, kind: input, shape index: {}]   ;;  %s2035_s0 = inlined_call_operand.vmem [shape: bf16[8,1152], index: 0, kind: input, shape index: {}]   ;;  %s2036_s2 = inlined_call_operand.vmem [shape: f32[1,256], index: 2, kind: input, shape index: {}]   ;;  %s2037_s3 = inlined_call_operand.vmem [shape: bf16[8,256], index: 3, kind: output, shape index: {}]  }
   0x1   :  { %v1323_v0 = vld [vmem:[%s2034_s1 + $0x4] ss:$8 sps:$4 sm:$0xff]   ;;  %v1327_v2 = vld [vmem:[%s2034_s1] ss:$8 sps:$4 sm:$0xff]   ;;  %v1329_v4 = vld [vmem:[%s2034_s1 + $0x14] ss:$8 sps:$4 sm:$0xff]  }
   0x2   :  { %v1325_v1 = vld [vmem:[%s2034_s1 + $0x104] ss:$8 sps:$4 sm:$0xff]   ;;  %924 = vmatprep.subr.bf16.mxu0 %v1323_v0  ;;  %v1328_v3 = vld [vmem:[%s2034_s1 + $0x100] ss:$8 sps:$4 sm:$0xff]   ;;  %v1331_v5 = vld [vmem:[%s2034_s1 + $0x114] ss:$8 sps:$4 sm:$0xff]  }
   0x3   :  { %965 = vmatprep.subr.bf16.mxu1 %v1325_v1  ;;  %925 = vmatpush1.bf16.msra.mxu0 %v1327_v2  ;;  %v1333_v6 = vld [vmem:[%s2034_s1 + $0x10] ss:$8 sps:$4 sm:$0xff]   ;;  %v1335_v8 = vld [vmem:[%s2034_s1 + $0x24] ss:$8 sps:$4 sm:$0xff]   ;;  %v1339_v10 = vld [vmem:[%s2034_s1 + $0x20] ss:$8 sps:$4 sm:$0xff]  }
   0x4   :  { %966 = vmatpush1.bf16.msra.mxu1 %v1328_v3  ;;  %926 = vmatprep.subr.bf16.mxu0 %v1329_v4  ;;  %v1334_v7 = vld [vmem:[%s2034_s1 + $0x110] ss:$8 sps:$4 sm:$0xff]   ;;  %v1337_v9 = vld [vmem:[%s2034_s1 + $0x124] ss:$8 sps:$4 sm:$0xff]   ;;  %v1340_v11 = vld [vmem:[%s2034_s1 + $0x120] ss:$8 sps:$4 sm:$0xff]  }
   0x5   :  { %967 = vmatprep.subr.bf16.mxu1 %v1331_v5  ;;  %v1341_v12 = vld [vmem:[%s2034_s1 + $0x34] ss:$8 sps:$4 sm:$0xff]   ;;  %v1345_v14 = vld [vmem:[%s2034_s1 + $0x30] ss:$8 sps:$4 sm:$0xff]   ;;  %v1347_v16 = vld [vmem:[%s2034_s1 + $0x44] ss:$8 sps:$4 sm:$0xff]  }
   0x6   :  { %v1343_v13 = vld [vmem:[%s2034_s1 + $0x134] ss:$8 sps:$4 sm:$0xff]   ;;  %v1346_v15 = vld [vmem:[%s2034_s1 + $0x130] ss:$8 sps:$4 sm:$0xff]   ;;  %v1349_v17 = vld [vmem:[%s2034_s1 + $0x144] ss:$8 sps:$4 sm:$0xff]  }
   0x7   :  { %927 = vmatpush1.bf16.msra.mxu0 %v1333_v6  ;;  %v1351_v18 = vld [vmem:[%s2034_s1 + $0x40] ss:$8 sps:$4 sm:$0xff]   ;;  %v1353_v20 = vld [vmem:[%s2034_s1 + $0x54] ss:$8 sps:$4 sm:$0xff]   ;;  %v1357_v22 = vld [vmem:[%s2034_s1 + $0x50] ss:$8 sps:$4 sm:$0xff]  }
   0x8   :  { %968 = vmatpush1.bf16.msra.mxu1 %v1334_v7  ;;  %928 = vmatprep.subr.bf16.mxu0 %v1335_v8  ;;  %v1352_v19 = vld [vmem:[%s2034_s1 + $0x140] ss:$8 sps:$4 sm:$0xff]   ;;  %v1355_v21 = vld [vmem:[%s2034_s1 + $0x154] ss:$8 sps:$4 sm:$0xff]   ;;  %v1358_v23 = vld [vmem:[%s2034_s1 + $0x150] ss:$8 sps:$4 sm:$0xff]  }
   0x9   :  { %969 = vmatprep.subr.bf16.mxu1 %v1337_v9  ;;  %v1359_v24 = vld [vmem:[%s2034_s1 + $0x64] ss:$8 sps:$4 sm:$0xff]   ;;  %v1363_v26 = vld [vmem:[%s2034_s1 + $0x60] ss:$8 sps:$4 sm:$0xff]   ;;  %v1365_v28 = vld [vmem:[%s2034_s1 + $0x74] ss:$8 sps:$4 sm:$0xff]  }
   0xa   :  { %v1361_v25 = vld [vmem:[%s2034_s1 + $0x164] ss:$8 sps:$4 sm:$0xff]   ;;  %v1364_v27 = vld [vmem:[%s2034_s1 + $0x160] ss:$8 sps:$4 sm:$0xff]   ;;  %v1367_v29 = vld [vmem:[%s2034_s1 + $0x174] ss:$8 sps:$4 sm:$0xff]  }
   0xb   :  { %929 = vmatpush1.bf16.msra.mxu0 %v1339_v10  ;;  %v1369_v30 = vld [vmem:[%s2034_s1 + $0x70] ss:$8 sps:$4 sm:$0xff]   ;;  %v1371_v32 = vld [vmem:[%s2034_s1 + $0x84] ss:$8 sps:$4 sm:$0xff]   ;;  %v1375_v34 = vld [vmem:[%s2034_s1 + $0x80] ss:$8 sps:$4 sm:$0xff]  }
   0xc   :  { %970 = vmatpush1.bf16.msra.mxu1 %v1340_v11  ;;  %930 = vmatprep.subr.bf16.mxu0 %v1341_v12  ;;  %v1370_v31 = vld [vmem:[%s2034_s1 + $0x170] ss:$8 sps:$4 sm:$0xff]   ;;  %v1373_v33 = vld [vmem:[%s2034_s1 + $0x184] ss:$8 sps:$4 sm:$0xff]   ;;  %v1376_v35 = vld [vmem:[%s2034_s1 + $0x180] ss:$8 sps:$4 sm:$0xff]  }
   0xd   :  { %971 = vmatprep.subr.bf16.mxu1 %v1343_v13  ;;  %v1377_v36 = vld [vmem:[%s2034_s1 + $0x94] ss:$8 sps:$4 sm:$0xff]   ;;  %v1381_v38 = vld [vmem:[%s2034_s1 + $0x90] ss:$8 sps:$4 sm:$0xff]   ;;  %v1383_v40 = vld [vmem:[%s2034_s1 + $0xa4] ss:$8 sps:$4 sm:$0xff]  }
   0xe   :  { %v1379_v37 = vld [vmem:[%s2034_s1 + $0x194] ss:$8 sps:$4 sm:$0xff]   ;;  %v1382_v39 = vld [vmem:[%s2034_s1 + $0x190] ss:$8 sps:$4 sm:$0xff]   ;;  %v1385_v41 = vld [vmem:[%s2034_s1 + $0x1a4] ss:$8 sps:$4 sm:$0xff]  }
   0xf   :  { %931 = vmatpush1.bf16.msra.mxu0 %v1345_v14  ;;  %v1387_v42 = vld [vmem:[%s2034_s1 + $0xa0] ss:$8 sps:$4 sm:$0xff]   ;;  %v1389_v44 = vld [vmem:[%s2034_s1 + $0xb4] ss:$8 sps:$4 sm:$0xff]   ;;  %v1393_v49 = vld [vmem:[%s2034_s1 + $0xb0] ss:$8 sps:$4 sm:$0xff]  }
  0x10   :  { %972 = vmatpush1.bf16.msra.mxu1 %v1346_v15  ;;  %932 = vmatprep.subr.bf16.mxu0 %v1347_v16  ;;  %v1388_v43 = vld [vmem:[%s2034_s1 + $0x1a0] ss:$8 sps:$4 sm:$0xff]   ;;  %v1391_v45 = vld [vmem:[%s2034_s1 + $0x1b4] ss:$8 sps:$4 sm:$0xff]   ;;  %v1394_v50 = vld [vmem:[%s2034_s1 + $0x1b0] ss:$8 sps:$4 sm:$0xff]  }
  0x11   :  { %973 = vmatprep.subr.bf16.mxu1 %v1349_v17  ;;  %v23_v46 = vld [vmem:[%s2035_s0] sm:$0xff]  ;;  %v24_v48 = vld [vmem:[%s2035_s0 + $0x8] sm:$0xff]  ;;  %v1401_v56 = vld [vmem:[%s2034_s1 + $0xd4] ss:$8 sps:$4 sm:$0xff]  }
  0x12   :  { %v1168_v47 = vcombine.high %v23_v46, %v23_v46  ;;  %v1170_v51 = vcombine.high %v24_v48, %v24_v48  ;;  %v1395_v52 = vld [vmem:[%s2034_s1 + $0xc4] ss:$8 sps:$4 sm:$0xff]   ;;  %v1399_v54 = vld [vmem:[%s2034_s1 + $0xc0] ss:$8 sps:$4 sm:$0xff]   ;;  %v1403_v57 = vld [vmem:[%s2034_s1 + $0x1d4] ss:$8 sps:$4 sm:$0xff]   ;;  %v1167_v6 = vcombine.low %v23_v46, %v23_v46  ;;  %v1169_v7 = vcombine.low %v24_v48, %v24_v48 }
  0x13   :  { %933 = vmatpush1.bf16.msra.mxu0 %v1351_v18  ;;  %v1397_v53 = vld [vmem:[%s2034_s1 + $0x1c4] ss:$8 sps:$4 sm:$0xff]   ;;  %v1400_v55 = vld [vmem:[%s2034_s1 + $0x1c0] ss:$8 sps:$4 sm:$0xff]   ;;  %v1405_v58 = vld [vmem:[%s2034_s1 + $0xd0] ss:$8 sps:$4 sm:$0xff]  }
  0x14   :  { %974 = vmatpush1.bf16.msra.mxu1 %v1352_v19  ;;  %934 = vmatprep.subr.bf16.mxu0 %v1353_v20  ;;  %v1406_v59 = vld [vmem:[%s2034_s1 + $0x1d0] ss:$8 sps:$4 sm:$0xff]   ;;  %v1407_v60 = vld [vmem:[%s2034_s1 + $0xe4] ss:$8 sps:$4 sm:$0xff]   ;;  %v1411_v62 = vld [vmem:[%s2034_s1 + $0xe0] ss:$8 sps:$4 sm:$0xff]  }
  0x15   :  { %975 = vmatprep.subr.bf16.mxu1 %v1355_v21  ;;  %956 = vmatprep.mubr.bf16.mxu0 %v1168_v47  ;;  %v1409_v61 = vld [vmem:[%s2034_s1 + $0x1e4] ss:$8 sps:$4 sm:$0xff]   ;;  %v1412_v63 = vld [vmem:[%s2034_s1 + $0x1e0] ss:$8 sps:$4 sm:$0xff]   ;;  %v1413_v0 = vld [vmem:[%s2034_s1 + $0xf4] ss:$8 sps:$4 sm:$0xff]  }
  0x16   :  { %997 = vmatprep.mubr.bf16.mxu1 %v1170_v51  ;;  %v1415_v1 = vld [vmem:[%s2034_s1 + $0x1f4] ss:$8 sps:$4 sm:$0xff]   ;;  %v1417_v2 = vld [vmem:[%s2034_s1 + $0xf0] ss:$8 sps:$4 sm:$0xff]   ;;  %v1425_v4 = vld [vmem:[%s2034_s1 + $0x204] ss:$8 sps:$4 sm:$0xff]  }
  0x17   :  { %935 = vmatpush1.bf16.msra.mxu0 %v1357_v22  ;;  %v1418_v3 = vld [vmem:[%s2034_s1 + $0x1f0] ss:$8 sps:$4 sm:$0xff]   ;;  %v1428_v5 = vld [vmem:[%s2034_s1 + $0x304] ss:$8 sps:$4 sm:$0xff]   ;;  %v1423_v8 = vld [vmem:[%s2034_s1 + $0x200] ss:$8 sps:$4 sm:$0xff]  }
  0x18   :  { %976 = vmatpush1.bf16.msra.mxu1 %v1358_v23  ;;  %936 = vmatprep.subr.bf16.mxu0 %v1359_v24  ;;  %v1426_v9 = vld [vmem:[%s2034_s1 + $0x300] ss:$8 sps:$4 sm:$0xff]   ;;  %v1431_v10 = vld [vmem:[%s2034_s1 + $0x214] ss:$8 sps:$4 sm:$0xff]   ;;  %v1429_v12 = vld [vmem:[%s2034_s1 + $0x210] ss:$8 sps:$4 sm:$0xff]  }
  0x19   :  { %977 = vmatprep.subr.bf16.mxu1 %v1361_v25  ;;  %v1434_v11 = vld [vmem:[%s2034_s1 + $0x314] ss:$8 sps:$4 sm:$0xff]   ;;  %v1432_v13 = vld [vmem:[%s2034_s1 + $0x310] ss:$8 sps:$4 sm:$0xff]   ;;  %v1437_v14 = vld [vmem:[%s2034_s1 + $0x224] ss:$8 sps:$4 sm:$0xff]  }
  0x1a   :  { %v1440_v15 = vld [vmem:[%s2034_s1 + $0x324] ss:$8 sps:$4 sm:$0xff]   ;;  %v1435_v16 = vld [vmem:[%s2034_s1 + $0x220] ss:$8 sps:$4 sm:$0xff]   ;;  %v1443_v18 = vld [vmem:[%s2034_s1 + $0x234] ss:$8 sps:$4 sm:$0xff]  }
  0x1b   :  { %937 = vmatpush1.bf16.msra.mxu0 %v1363_v26  ;;  %v1438_v17 = vld [vmem:[%s2034_s1 + $0x320] ss:$8 sps:$4 sm:$0xff]   ;;  %v1446_v19 = vld [vmem:[%s2034_s1 + $0x334] ss:$8 sps:$4 sm:$0xff]   ;;  %v1441_v20 = vld [vmem:[%s2034_s1 + $0x230] ss:$8 sps:$4 sm:$0xff]  }
  0x1c   :  { %978 = vmatpush1.bf16.msra.mxu1 %v1364_v27  ;;  %938 = vmatprep.subr.bf16.mxu0 %v1365_v28  ;;  %v1444_v21 = vld [vmem:[%s2034_s1 + $0x330] ss:$8 sps:$4 sm:$0xff]   ;;  %v1449_v22 = vld [vmem:[%s2034_s1 + $0x244] ss:$8 sps:$4 sm:$0xff]   ;;  %v1447_v24 = vld [vmem:[%s2034_s1 + $0x240] ss:$8 sps:$4 sm:$0xff]  }
  0x1d   :  { %979 = vmatprep.subr.bf16.mxu1 %v1367_v29  ;;  %v1452_v23 = vld [vmem:[%s2034_s1 + $0x344] ss:$8 sps:$4 sm:$0xff]   ;;  %v1450_v25 = vld [vmem:[%s2034_s1 + $0x340] ss:$8 sps:$4 sm:$0xff]   ;;  %v1455_v26 = vld [vmem:[%s2034_s1 + $0x254] ss:$8 sps:$4 sm:$0xff]  }
  0x1e   :  { %v1458_v27 = vld [vmem:[%s2034_s1 + $0x354] ss:$8 sps:$4 sm:$0xff]   ;;  %v1453_v28 = vld [vmem:[%s2034_s1 + $0x250] ss:$8 sps:$4 sm:$0xff]   ;;  %v1488_v51 = vld [vmem:[%s2034_s1 + $0x3a4] ss:$8 sps:$4 sm:$0xff]  }
  0x1f   :  { %939 = vmatpush1.bf16.msra.mxu0 %v1369_v30  ;;  %v1456_v29 = vld [vmem:[%s2034_s1 + $0x350] ss:$8 sps:$4 sm:$0xff]   ;;  %v1461_v30 = vld [vmem:[%s2034_s1 + $0x264] ss:$8 sps:$4 sm:$0xff]   ;;  %v1479_v46 = vld [vmem:[%s2034_s1 + $0x294] ss:$8 sps:$4 sm:$0xff]  }
  0x20   :  { %980 = vmatpush1.bf16.msra.mxu1 %v1370_v31  ;;  %940 = vmatprep.subr.bf16.mxu0 %v1371_v32  ;;  %v1464_v31 = vld [vmem:[%s2034_s1 + $0x364] ss:$8 sps:$4 sm:$0xff]   ;;  %v1848_v32 = vld [vmem:[%s2035_s0 + $0x10] sm:$0xff] }
  0x21   :  { %981 = vmatprep.subr.bf16.mxu1 %v1373_v33  ;;  %v1459_v33 = vld [vmem:[%s2034_s1 + $0x260] ss:$8 sps:$4 sm:$0xff]   ;;  %v1482_v47 = vld [vmem:[%s2034_s1 + $0x394] ss:$8 sps:$4 sm:$0xff]   ;;  %v1477_v48 = vld [vmem:[%s2034_s1 + $0x290] ss:$8 sps:$4 sm:$0xff]  }
  0x23   :  { %941 = vmatpush1.bf16.msra.mxu0 %v1375_v34  ;;  %v1462_v34 = vld [vmem:[%s2034_s1 + $0x360] ss:$8 sps:$4 sm:$0xff]  }
  0x24   :  { %982 = vmatpush1.bf16.msra.mxu1 %v1376_v35  ;;  %942 = vmatprep.subr.bf16.mxu0 %v1377_v36  ;;  %v1172_v35 = vcombine.high %v1848_v32, %v1848_v32  ;;  %v1861_v36 = vld [vmem:[%s2035_s0 + $0x18] sm:$0xff] }
  0x25   :  { %983 = vmatprep.subr.bf16.mxu1 %v1379_v37  ;;  %v1467_v37 = vld [vmem:[%s2034_s1 + $0x274] ss:$8 sps:$4 sm:$0xff]  }
  0x27   :  { %943 = vmatpush1.bf16.msra.mxu0 %v1381_v38  ;;  %v1174_v38 = vcombine.high %v1861_v36, %v1861_v36 }
  0x28   :  { %984 = vmatpush1.bf16.msra.mxu1 %v1382_v39  ;;  %944 = vmatprep.subr.bf16.mxu0 %v1383_v40  ;;  %v1470_v39 = vld [vmem:[%s2034_s1 + $0x374] ss:$8 sps:$4 sm:$0xff]   ;;  %v1465_v40 = vld [vmem:[%s2034_s1 + $0x270] ss:$8 sps:$4 sm:$0xff]  }
  0x29   :  { %985 = vmatprep.subr.bf16.mxu1 %v1385_v41  ;;  %v1468_v41 = vld [vmem:[%s2034_s1 + $0x370] ss:$8 sps:$4 sm:$0xff]  }
  0x2b   :  { %945 = vmatpush1.bf16.msra.mxu0 %v1387_v42  ;;  %v1473_v42 = vld [vmem:[%s2034_s1 + $0x284] ss:$8 sps:$4 sm:$0xff]  }
  0x2c   :  { %986 = vmatpush1.bf16.msra.mxu1 %v1388_v43  ;;  %946 = vmatprep.subr.bf16.mxu0 %v1389_v44  ;;  %v1476_v43 = vld [vmem:[%s2034_s1 + $0x384] ss:$8 sps:$4 sm:$0xff]   ;;  %v1471_v44 = vld [vmem:[%s2034_s1 + $0x280] ss:$8 sps:$4 sm:$0xff]  }
  0x2d   :  { %987 = vmatprep.subr.bf16.mxu1 %v1391_v45  ;;  %v1474_v45 = vld [vmem:[%s2034_s1 + $0x380] ss:$8 sps:$4 sm:$0xff]  }
  0x2f   :  { %947 = vmatpush1.bf16.msra.mxu0 %v1393_v49  ;;  %v1480_v49 = vld [vmem:[%s2034_s1 + $0x390] ss:$8 sps:$4 sm:$0xff]  }
  0x30   :  { %988 = vmatpush1.bf16.msra.mxu1 %v1394_v50  ;;  %948 = vmatprep.subr.bf16.mxu0 %v1395_v52  ;;  %v1485_v50 = vld [vmem:[%s2034_s1 + $0x2a4] ss:$8 sps:$4 sm:$0xff]   ;;  %v1483_v52 = vld [vmem:[%s2034_s1 + $0x2a0] ss:$8 sps:$4 sm:$0xff]  }
  0x31   :  { %989 = vmatprep.subr.bf16.mxu1 %v1397_v53  ;;  %v1486_v53 = vld [vmem:[%s2034_s1 + $0x3a0] ss:$8 sps:$4 sm:$0xff]  }
  0x33   :  { %949 = vmatpush1.bf16.msra.mxu0 %v1399_v54  ;;  %v1491_v54 = vld [vmem:[%s2034_s1 + $0x2b4] ss:$8 sps:$4 sm:$0xff]  }
  0x34   :  { %990 = vmatpush1.bf16.msra.mxu1 %v1400_v55  ;;  %950 = vmatprep.subr.bf16.mxu0 %v1401_v56  ;;  %v1494_v55 = vld [vmem:[%s2034_s1 + $0x3b4] ss:$8 sps:$4 sm:$0xff]   ;;  %v1489_v56 = vld [vmem:[%s2034_s1 + $0x2b0] ss:$8 sps:$4 sm:$0xff]  }
  0x35   :  { %991 = vmatprep.subr.bf16.mxu1 %v1403_v57  ;;  %v1492_v57 = vld [vmem:[%s2034_s1 + $0x3b0] ss:$8 sps:$4 sm:$0xff]  }
  0x37   :  { %951 = vmatpush1.bf16.msra.mxu0 %v1405_v58  ;;  %v1497_v58 = vld [vmem:[%s2034_s1 + $0x2c4] ss:$8 sps:$4 sm:$0xff]  }
  0x38   :  { %992 = vmatpush1.bf16.msra.mxu1 %v1406_v59  ;;  %952 = vmatprep.subr.bf16.mxu0 %v1407_v60  ;;  %v1500_v59 = vld [vmem:[%s2034_s1 + $0x3c4] ss:$8 sps:$4 sm:$0xff]   ;;  %v1495_v60 = vld [vmem:[%s2034_s1 + $0x2c0] ss:$8 sps:$4 sm:$0xff]  }
  0x39   :  { %993 = vmatprep.subr.bf16.mxu1 %v1409_v61  ;;  %v1498_v61 = vld [vmem:[%s2034_s1 + $0x3c0] ss:$8 sps:$4 sm:$0xff]  }
  0x3b   :  { %953 = vmatpush1.bf16.msra.mxu0 %v1411_v62  ;;  %v1503_v62 = vld [vmem:[%s2034_s1 + $0x2d4] ss:$8 sps:$4 sm:$0xff]  }
  0x3c   :  { %994 = vmatpush1.bf16.msra.mxu1 %v1412_v63  ;;  %954 = vmatprep.subr.bf16.mxu0 %v1413_v0  ;;  %v1506_v63 = vld [vmem:[%s2034_s1 + $0x3d4] ss:$8 sps:$4 sm:$0xff]   ;;  %v1501_v0 = vld [vmem:[%s2034_s1 + $0x2d0] ss:$8 sps:$4 sm:$0xff]  }
  0x3d   :  { %995 = vmatprep.subr.bf16.mxu1 %v1415_v1  ;;  %v1504_v1 = vld [vmem:[%s2034_s1 + $0x3d0] ss:$8 sps:$4 sm:$0xff]  }
  0x3f   :  { %955 = vmatpush1.bf16.msra.mxu0 %v1417_v2  ;;  %v1509_v2 = vld [vmem:[%s2034_s1 + $0x2e4] ss:$8 sps:$4 sm:$0xff]  }
  0x40   :  { %996 = vmatpush1.bf16.msra.mxu1 %v1418_v3  ;;  %1006 = vmatprep.subr.bf16.mxu0 %v1425_v4  ;;  %v1512_v3 = vld [vmem:[%s2034_s1 + $0x3e4] ss:$8 sps:$4 sm:$0xff]   ;;  %v1507_v4 = vld [vmem:[%s2034_s1 + $0x2e0] ss:$8 sps:$4 sm:$0xff]  }
  0x41   :  { %1047 = vmatprep.subr.bf16.mxu1 %v1428_v5  ;;  %v1510_v5 = vld [vmem:[%s2034_s1 + $0x3e0] ss:$8 sps:$4 sm:$0xff]  }
  0x42   :  { %957 = vmatmul.mubr.bf16.vlgmr.msra.gmra.mrb[0].mxu0 %v1167_v6  ;;  %v1515_v6 = vld [vmem:[%s2034_s1 + $0x2f4] ss:$8 sps:$4 sm:$0xff]  }
  0x43   :  { %998 = vmatmul.mubr.bf16.vlgmr.msra.gmra.mrb[0].mxu1 %v1169_v7  ;;  %1007 = vmatpush1.bf16.msra.mxu0 %v1423_v8  ;;  %v1518_v7 = vld [vmem:[%s2034_s1 + $0x3f4] ss:$8 sps:$4 sm:$0xff]   ;;  %v1513_v8 = vld [vmem:[%s2034_s1 + $0x2f0] ss:$8 sps:$4 sm:$0xff]  }
  0x44   :  { %1048 = vmatpush1.bf16.msra.mxu1 %v1426_v9  ;;  %1008 = vmatprep.subr.bf16.mxu0 %v1431_v10  ;;  %v1516_v9 = vld [vmem:[%s2034_s1 + $0x3f0] ss:$8 sps:$4 sm:$0xff]   ;;  %v1523_v10 = vld [vmem:[%s2034_s1 + $0x404] ss:$8 sps:$4 sm:$0xff]  }
  0x45   :  { %1049 = vmatprep.subr.bf16.mxu1 %v1434_v11  ;;  %1038 = vmatprep.mubr.bf16.mxu0 %v1172_v35  ;;  %v1171_v11 = vcombine.low %v1848_v32, %v1848_v32 }
  0x46   :  { %1079 = vmatprep.mubr.bf16.mxu1 %v1174_v38 }
  0x47   :  { %1009 = vmatpush1.bf16.msra.mxu0 %v1429_v12  ;;  %v1173_v12 = vcombine.low %v1861_v36, %v1861_v36 }
  0x48   :  { %1050 = vmatpush1.bf16.msra.mxu1 %v1432_v13  ;;  %1010 = vmatprep.subr.bf16.mxu0 %v1437_v14  ;;  %v1521_v13 = vld [vmem:[%s2034_s1 + $0x400] ss:$8 sps:$4 sm:$0xff]   ;;  %v1528_v14 = vld [vmem:[%s2034_s1 + $0x414] ss:$8 sps:$4 sm:$0xff]  }
  0x49   :  { %1051 = vmatprep.subr.bf16.mxu1 %v1440_v15  ;;  %v1526_v15 = vld [vmem:[%s2034_s1 + $0x410] ss:$8 sps:$4 sm:$0xff]  }
  0x4b   :  { %1011 = vmatpush1.bf16.msra.mxu0 %v1435_v16  ;;  %v1548_v16 = vmov 0  }
  0x4c   :  { %1052 = vmatpush1.bf16.msra.mxu1 %v1438_v17  ;;  %1012 = vmatprep.subr.bf16.mxu0 %v1443_v18  ;;  %v1531_v17 = vld [vmem:[%s2034_s1 + $0x424] ss:$8 sps:$4 sm:$0xff]   ;;  %v1529_v18 = vld [vmem:[%s2034_s1 + $0x420] ss:$8 sps:$4 sm:$0xff]  }
  0x4d   :  { %1053 = vmatprep.subr.bf16.mxu1 %v1446_v19  ;;  %v1534_v19 = vld [vmem:[%s2034_s1 + $0x434] ss:$8 sps:$4 sm:$0xff]  }
  0x4f   :  { %1013 = vmatpush1.bf16.msra.mxu0 %v1441_v20  ;;  %v1532_v20 = vld [vmem:[%s2034_s1 + $0x430] ss:$8 sps:$4 sm:$0xff]  }
  0x50   :  { %1054 = vmatpush1.bf16.msra.mxu1 %v1444_v21  ;;  %1014 = vmatprep.subr.bf16.mxu0 %v1449_v22  ;;  %v1537_v21 = vld [vmem:[%s2034_s1 + $0x444] ss:$8 sps:$4 sm:$0xff]   ;;  %v1535_v22 = vld [vmem:[%s2034_s1 + $0x440] ss:$8 sps:$4 sm:$0xff]  }
  0x51   :  { %1055 = vmatprep.subr.bf16.mxu1 %v1452_v23  ;;  %v1540_v23 = vld [vmem:[%s2034_s1 + $0x454] ss:$8 sps:$4 sm:$0xff]  }
  0x53   :  { %1015 = vmatpush1.bf16.msra.mxu0 %v1447_v24  ;;  %v1538_v24 = vld [vmem:[%s2034_s1 + $0x450] ss:$8 sps:$4 sm:$0xff]  }
  0x54   :  { %1056 = vmatpush1.bf16.msra.mxu1 %v1450_v25  ;;  %1016 = vmatprep.subr.bf16.mxu0 %v1455_v26  ;;  %v1543_v25 = vld [vmem:[%s2034_s1 + $0x464] ss:$8 sps:$4 sm:$0xff]   ;;  %v1541_v26 = vld [vmem:[%s2034_s1 + $0x460] ss:$8 sps:$4 sm:$0xff]  }
  0x55   :  { %1057 = vmatprep.subr.bf16.mxu1 %v1458_v27  ;;  %v1546_v27 = vld [vmem:[%s2034_s1 + $0x474] ss:$8 sps:$4 sm:$0xff]  }
  0x57   :  { %1017 = vmatpush1.bf16.msra.mxu0 %v1453_v28  ;;  %v1544_v28 = vld [vmem:[%s2034_s1 + $0x470] ss:$8 sps:$4 sm:$0xff]  }
  0x58   :  { %1058 = vmatpush1.bf16.msra.mxu1 %v1456_v29  ;;  %1018 = vmatprep.subr.bf16.mxu0 %v1461_v30  ;;  %v1547_v29 = vld [vmem:[%s2035_s0 + $0x20] ss:$0 sps:$4 sm:$0xff]  }
  0x59   :  { %1059 = vmatprep.subr.bf16.mxu1 %v1464_v31 }
  0x5b   :  { %1019 = vmatpush1.bf16.msra.mxu0 %v1459_v33 }
  0x5c   :  { %1060 = vmatpush1.bf16.msra.mxu1 %v1462_v34  ;;  %1020 = vmatprep.subr.bf16.mxu0 %v1467_v37 }
  0x5d   :  { %1061 = vmatprep.subr.bf16.mxu1 %v1470_v39 }
  0x5f   :  { %1021 = vmatpush1.bf16.msra.mxu0 %v1465_v40 }
  0x60   :  { %1062 = vmatpush1.bf16.msra.mxu1 %v1468_v41  ;;  %1022 = vmatprep.subr.bf16.mxu0 %v1473_v42 }
  0x61   :  { %1063 = vmatprep.subr.bf16.mxu1 %v1476_v43 }
  0x63   :  { %1023 = vmatpush1.bf16.msra.mxu0 %v1471_v44 }
  0x64   :  { %1064 = vmatpush1.bf16.msra.mxu1 %v1474_v45  ;;  %1024 = vmatprep.subr.bf16.mxu0 %v1479_v46 }
  0x65   :  { %1065 = vmatprep.subr.bf16.mxu1 %v1482_v47 }
  0x67   :  { %1025 = vmatpush1.bf16.msra.mxu0 %v1477_v48 }
  0x68   :  { %1066 = vmatpush1.bf16.msra.mxu1 %v1480_v49  ;;  %1026 = vmatprep.subr.bf16.mxu0 %v1485_v50 }
  0x69   :  { %1067 = vmatprep.subr.bf16.mxu1 %v1488_v51 }
  0x6b   :  { %1027 = vmatpush1.bf16.msra.mxu0 %v1483_v52  ;;  %v1140_v52 = vlaneseq }
  0x6c   :  { %1068 = vmatpush1.bf16.msra.mxu1 %v1486_v53  ;;  %1028 = vmatprep.subr.bf16.mxu0 %v1491_v54 }
  0x6d   :  { %1069 = vmatprep.subr.bf16.mxu1 %v1494_v55  ;;  %v1141_v53 = vshrl.u32 %v1140_v52, 7  ;;  %v1138_v55 = vld [vmem:[%s2036_s2] sm:$0x3] }
  0x6f   :  { %1029 = vmatpush1.bf16.msra.mxu0 %v1489_v56  ;;  %v1142_v54 = vsub.s32 0, %v1141_v53  ;;  %v1146_v56 = vsub.s32 1, %v1141_v53 }
  0x70   :  { %1070 = vmatpush1.bf16.msra.mxu1 %v1492_v57  ;;  %1030 = vmatprep.subr.bf16.mxu0 %v1497_v58 }
  0x71   :  { %1071 = vmatprep.subr.bf16.mxu1 %v1500_v59  ;;  %v1143_v57 = vrot.slane %v1138_v55, %v1142_v54  ;;  %v1147_v59 = vrot.slane %v1138_v55, %v1146_v56 }
  0x73   :  { %1031 = vmatpush1.bf16.msra.mxu0 %v1495_v60 }
  0x74   :  { %1072 = vmatpush1.bf16.msra.mxu1 %v1498_v61  ;;  %1032 = vmatprep.subr.bf16.mxu0 %v1503_v62 }
  0x75   :  { %1073 = vmatprep.subr.bf16.mxu1 %v1506_v63 }
  0x77   :  { %1033 = vmatpush1.bf16.msra.mxu0 %v1501_v0 }
  0x78   :  { %1074 = vmatpush1.bf16.msra.mxu1 %v1504_v1  ;;  %1034 = vmatprep.subr.bf16.mxu0 %v1509_v2 }
  0x79   :  { %1075 = vmatprep.subr.bf16.mxu1 %v1512_v3 }
  0x7b   :  { %1035 = vmatpush1.bf16.msra.mxu0 %v1507_v4 }
  0x7c   :  { %1076 = vmatpush1.bf16.msra.mxu1 %v1510_v5  ;;  %1036 = vmatprep.subr.bf16.mxu0 %v1515_v6 }
  0x7d   :  { %1077 = vmatprep.subr.bf16.mxu1 %v1518_v7 }
  0x7f   :  { %1037 = vmatpush1.bf16.msra.mxu0 %v1513_v8 }
  0x80   :  { %1078 = vmatpush1.bf16.msra.mxu1 %v1516_v9  ;;  %1088 = vmatprep.subr.bf16.mxu0 %v1523_v10 }
  0x82   :  { %1039 = vmatmul.mubr.bf16.vlgmr.msra.gmra.mrb[4].mxu0 %v1171_v11 }
  0x83   :  { %1080 = vmatmul.mubr.bf16.vlgmr.msra.gmra.mrb[4].mxu1 %v1173_v12  ;;  %1089 = vmatpush1.bf16.msra.mxu0 %v1521_v13 }
  0x84   :  { %1120 = vmatprep.mubr.bf16.mxu0 %v1548_v16  ;;  %1090 = vmatprep.subr.bf16.mxu0 %v1528_v14 }
  0x87   :  { %1091 = vmatpush1.bf16.msra.mxu0 %v1526_v15 }
  0x88   :  { %1092 = vmatprep.subr.bf16.mxu0 %v1531_v17 }
  0x8b   :  { %1093 = vmatpush1.bf16.msra.mxu0 %v1529_v18 }
  0x8c   :  { %1094 = vmatprep.subr.bf16.mxu0 %v1534_v19 }
  0x8f   :  { %1095 = vmatpush1.bf16.msra.mxu0 %v1532_v20 }
  0x90   :  { %1096 = vmatprep.subr.bf16.mxu0 %v1537_v21 }
  0x93   :  { %1097 = vmatpush1.bf16.msra.mxu0 %v1535_v22 }
  0x94   :  { %1098 = vmatprep.subr.bf16.mxu0 %v1540_v23 }
  0x97   :  { %1099 = vmatpush1.bf16.msra.mxu0 %v1538_v24 }
  0x98   :  { %1100 = vmatprep.subr.bf16.mxu0 %v1543_v25 }
  0x9b   :  { %1101 = vmatpush1.bf16.msra.mxu0 %v1541_v26 }
  0x9c   :  { %1102 = vmatprep.subr.bf16.mxu0 %v1546_v27 }
  0x9f   :  { %1103 = vmatpush1.bf16.msra.mxu0 %v1544_v28 }
  0xa2   :  { %1121 = vmatmul.mubr.bf16.vlgmr.msra.gmra.mrb[8].mxu0 %v1547_v29 }
 0x115   :  { %v958_v30 = vpop.f32.mrb[0].mxu0 }
 0x116   :  { %v999_v31 = vpop.f32.mrb[0].mxu1  ;;  %v960_v33 = vpop.f32.mrb[1].mxu0 }
 0x117   :  { %v1000_v32 = vadd.f32 %v999_v31, %v958_v30  ;;  %v1001_v34 = vpop.f32.mrb[1].mxu1  ;;  %v962_v36 = vpop.f32.mrb[2].mxu0 }
 0x118   :  { %v1002_v35 = vadd.f32 %v1001_v34, %v960_v33  ;;  %v1003_v37 = vpop.f32.mrb[2].mxu1  ;;  %v963_v38 = vpop.f32.mrb[3].mxu0 }
 0x119   :  { %v1004_v39 = vpop.f32.mrb[3].mxu1 }
 0x155   :  { %v1040_v40 = vpop.f32.mrb[4].mxu0 }
 0x156   :  { %v1081_v41 = vpop.f32.mrb[4].mxu1  ;;  %v1041_v42 = vadd.f32 %v1040_v40, %v1000_v32  ;;  %v1042_v43 = vpop.f32.mrb[5].mxu0 }
 0x157   :  { %v1083_v44 = vpop.f32.mrb[5].mxu1  ;;  %v1043_v45 = vadd.f32 %v1042_v43, %v1002_v35  ;;  %v1044_v46 = vpop.f32.mrb[6].mxu0 }
 0x158   :  { %v1085_v47 = vpop.f32.mrb[6].mxu1  ;;  %v1082_v48 = vadd.f32 %v1081_v41, %v1041_v42  ;;  %v1045_v49 = vpop.f32.mrb[7].mxu0 }
 0x159   :  { %v1086_v50 = vpop.f32.mrb[7].mxu1  ;;  %v1084_v51 = vadd.f32 %v1083_v44, %v1043_v45 }
 0x175   :  { %v1122_v58 = vpop.f32.mrb[8].mxu0 }
 0x176   :  { %v1123_v60 = vadd.f32 %v1122_v58, %v1082_v48  ;;  %v1124_v61 = vpop.f32.mrb[9].mxu0 }
 0x177   :  { %v1125_v62 = vadd.f32 %v1124_v61, %v1084_v51  ;;  %v1126_v63 = vpop.f32.mrb[10].mxu0 }
 0x178   :  { %v1150_v0 = vadd.f32 %v1143_v57, %v1123_v60  ;;  %v1127_v1 = vpop.f32.mrb[11].mxu0 }
 0x179   :  { %v1151_v2 = vadd.f32 %v1147_v59, %v1125_v62 }
 0x17a   :  { %v1152_v3 = vmax.f32 %v1150_v0, 0.0 }
 0x17b   :  { %v1153_v4 = vmax.f32 %v1151_v2, 0.0 }
 0x17d   :  { %v1321_v5 = vpack.c.bf16 %v1153_v4, %v1152_v3 }
 0x17f   :  { %1162 = vst [vmem:[%s2037_s3] sm:$0xff] %v1321_v5 }

// kernel: resnet_forward.23
= control target key start
LH: loop header
LB: loop body
LE: loop exit
PB: predicated region body
PF: predicated region fallthrough
CT: control target
= control target key end

     0   :  { %s1028_s12 = smov 0   ;;  %s1030_s13 = smov 0   ;;  %s1207_s0 = inlined_call_operand.vmem [shape: bf16[8,256], index: 0, kind: input, shape index: {}]   ;;  %s1208_s1 = inlined_call_operand.vmem [shape: bf16[256,512], index: 1, kind: input, shape index: {}]   ;;  %s1209_s2 = inlined_call_operand.vmem [shape: f32[1,512], index: 2, kind: input, shape index: {}]   ;;  %s1210_s3 = inlined_call_operand.vmem [shape: bf16[8,512], index: 3, kind: output, shape index: {}]  }
   0x1   :  { %s1032_s14 = smov 0   ;;  %s1034_s15 = smov 0  }
   0x2   :  { %s1036_s16 = smov 0  }
   0x3 LB: > { %s28_s17 = sadd.s32 1, %s1002_s15  ;;  %p76_p1 = scmp.ne.s32.totalorder %s994_s13, %s990_s12  ;;  %s1006_s16 = sphi %s1036_s16, %s13_s16   ;;  %s1002_s15 = sphi %s1034_s15, %s1214_s15   ;;  %s998_s14 = sphi %s1032_s14, %s1213_s14   ;;  %s994_s13 = sphi %s1030_s13, %s1212_s13   ;;  %s990_s12 = sphi %s1028_s12, %s1211_s12  }
   0x4   : > { %p30_p0 = scmp.ge.s32.totalorder %s28_s17, 2  ;;  %p77_p2 = scmp.eq.s32.totalorder %s1006_s16, 0 }
   0x5   : > { %s69_s19 = sadd.s32 1, %s994_s13  ;;  %p830_p5 = scmp.ge.s32.totalorder %s1006_s16, 2 }
   0x6   : > { %s1216_s17 = smov (%p30_p0, %s28_s17), 0  ;;  %p78_p3 = por %p77_p2, %p76_p1 }
   0x7   : > { %s65_s18 = ssub.s32 %s1002_s15, %s1216_s17  ;;  %169 = sbr.rel (%p830_p5) target bundleno = 34 (0x22), region = 20 }
   0x8   : > { %p67_p4 = scmp.eq.s32.totalorder %s65_s18, 0 }
   0xa   : > { %s1063_s20 = scalar_select %p67_p4, %s994_s13, %s69_s19  }
   0xe   : > { %172 = sbr.rel (!%p78_p3) target bundleno = 34 (0x22), region = 24  ;;  %s174_s21 = sand.u32 (%p78_p3), 1, %s994_s13  }
   0xf   : > { %s876_s22 = sshll.u32 (%p78_p3), %s1002_s15, 3  ;;  %s831_s23 = sshll.u32 (%p78_p3), %s174_s21, 8 }
  0x10   : > { %s1071_s26 = scalar_lea.vmem (%p78_p3), %s1208_s1, %s876_s22  ;;  %s1076_s27 = scalar_lea.vmem (%p78_p3), [#allocation3], %s831_s23 }
  0x11   : > { %v272_v0 = vld [vmem:[%s1071_s26] sm:$0xff] (%p78_p3)  ;;  %v274_v1 = vld [vmem:[%s1071_s26 + $0x10] sm:$0xff] (%p78_p3) }
  0x12   : > { %v276_v2 = vld [vmem:[%s1071_s26 + $0x20] sm:$0xff] (%p78_p3)  ;;  %273 = vst [vmem:[%s1076_s27] sm:$0xff] (%p78_p3), %v272_v0  ;;  %275 = vst [vmem:[%s1076_s27 + $0x8] sm:$0xff] (%p78_p3), %v274_v1  ;;  %v278_v3 = vld [vmem:[%s1071_s26 + $0x30] sm:$0xff] (%p78_p3) }
  0x13   : > { %277 = vst [vmem:[%s1076_s27 + $0x10] sm:$0xff] (%p78_p3), %v276_v2  ;;  %v280_v4 = vld [vmem:[%s1071_s26 + $0x40] sm:$0xff] (%p78_p3)  ;;  %v282_v5 = vld [vmem:[%s1071_s26 + $0x50] sm:$0xff] (%p78_p3)  ;;  %279 = vst [vmem:[%s1076_s27 + $0x18] sm:$0xff] (%p78_p3), %v278_v3 }
  0x14   : > { %281 = vst [vmem:[%s1076_s27 + $0x20] sm:$0xff] (%p78_p3), %v280_v4  ;;  %283 = vst [vmem:[%s1076_s27 + $0x28] sm:$0xff] (%p78_p3), %v282_v5  ;;  %v284_v6 = vld [vmem:[%s1071_s26 + $0x60] sm:$0xff] (%p78_p3)  ;;  %v286_v7 = vld [vmem:[%s1071_s26 + $0x70] sm:$0xff] (%p78_p3) }
  0x15   : > { %v288_v8 = vld [vmem:[%s1071_s26 + $0x80] sm:$0xff]  ;;  %285 = vst [vmem:[%s1076_s27 + $0x30] sm:$0xff] %v284_v6  ;;  %287 = vst [vmem:[%s1076_s27 + $0x38] sm:$0xff] %v286_v7  ;;  %v290_v9 = vld [vmem:[%s1071_s26 + $0x90] sm:$0xff] }
  0x16   : > { %289 = vst [vmem:[%s1076_s27 + $0x40] sm:$0xff] %v288_v8  ;;  %v292_v10 = vld [vmem:[%s1071_s26 + $0xa0] sm:$0xff]  ;;  %v294_v11 = vld [vmem:[%s1071_s26 + $0xb0] sm:$0xff]  ;;  %291 = vst [vmem:[%s1076_s27 + $0x48] sm:$0xff] %v290_v9 }
  0x17   : > { %293 = vst [vmem:[%s1076_s27 + $0x50] sm:$0xff] %v292_v10  ;;  %295 = vst [vmem:[%s1076_s27 + $0x58] sm:$0xff] %v294_v11  ;;  %v296_v12 = vld [vmem:[%s1071_s26 + $0xc0] sm:$0xff]  ;;  %v298_v13 = vld [vmem:[%s1071_s26 + $0xd0] sm:$0xff] }
  0x18   : > { %v300_v14 = vld [vmem:[%s1071_s26 + $0xe0] sm:$0xff]  ;;  %297 = vst [vmem:[%s1076_s27 + $0x60] sm:$0xff] %v296_v12  ;;  %299 = vst [vmem:[%s1076_s27 + $0x68] sm:$0xff] %v298_v13  ;;  %v302_v15 = vld [vmem:[%s1071_s26 + $0xf0] sm:$0xff] }
  0x19   : > { %301 = vst [vmem:[%s1076_s27 + $0x70] sm:$0xff] %v300_v14  ;;  %v304_v16 = vld [vmem:[%s1071_s26 + $0x100] sm:$0xff]  ;;  %v306_v17 = vld [vmem:[%s1071_s26 + $0x110] sm:$0xff]  ;;  %303 = vst [vmem:[%s1076_s27 + $0x78] sm:$0xff] %v302_v15 }
  0x1a   : > { %305 = vst [vmem:[%s1076_s27 + $0x80] sm:$0xff] %v304_v16  ;;  %307 = vst [vmem:[%s1076_s27 + $0x88] sm:$0xff] %v306_v17  ;;  %v308_v18 = vld [vmem:[%s1071_s26 + $0x120] sm:$0xff]  ;;  %v310_v19 = vld [vmem:[%s1071_s26 + $0x130] sm:$0xff] }
  0x1b   : > { %v312_v20 = vld [vmem:[%s1071_s26 + $0x140] sm:$0xff]  ;;  %309 = vst [vmem:[%s1076_s27 + $0x90] sm:$0xff] %v308_v18  ;;  %311 = vst [vmem:[%s1076_s27 + $0x98] sm:$0xff] %v310_v19  ;;  %v314_v21 = vld [vmem:[%s1071_s26 + $0x150] sm:$0xff] }
  0x1c   : > { %313 = vst [vmem:[%s1076_s27 + $0xa0] sm:$0xff] %v312_v20  ;;  %v316_v22 = vld [vmem:[%s1071_s26 + $0x160] sm:$0xff]  ;;  %v318_v23 = vld [vmem:[%s1071_s26 + $0x170] sm:$0xff]  ;;  %315 = vst [vmem:[%s1076_s27 + $0xa8] sm:$0xff] %v314_v21 }
  0x1d   : > { %317 = vst [vmem:[%s1076_s27 + $0xb0] sm:$0xff] %v316_v22  ;;  %319 = vst [vmem:[%s1076_s27 + $0xb8] sm:$0xff] %v318_v23  ;;  %v320_v24 = vld [vmem:[%s1071_s26 + $0x180] sm:$0xff]  ;;  %v322_v25 = vld [vmem:[%s1071_s26 + $0x190] sm:$0xff] }
  0x1e   : > { %v324_v26 = vld [vmem:[%s1071_s26 + $0x1a0] sm:$0xff]  ;;  %321 = vst [vmem:[%s1076_s27 + $0xc0] sm:$0xff] %v320_v24  ;;  %323 = vst [vmem:[%s1076_s27 + $0xc8] sm:$0xff] %v322_v25  ;;  %v326_v27 = vld [vmem:[%s1071_s26 + $0x1b0] sm:$0xff] }
  0x1f   : > { %325 = vst [vmem:[%s1076_s27 + $0xd0] sm:$0xff] %v324_v26  ;;  %v328_v28 = vld [vmem:[%s1071_s26 + $0x1c0] sm:$0xff]  ;;  %v330_v29 = vld [vmem:[%s1071_s26 + $0x1d0] sm:$0xff]  ;;  %327 = vst [vmem:[%s1076_s27 + $0xd8] sm:$0xff] %v326_v27 }
  0x20   : > { %329 = vst [vmem:[%s1076_s27 + $0xe0] sm:$0xff] %v328_v28  ;;  %331 = vst [vmem:[%s1076_s27 + $0xe8] sm:$0xff] %v330_v29  ;;  %v332_v30 = vld [vmem:[%s1071_s26 + $0x1e0] sm:$0xff]  ;;  %v334_v31 = vld [vmem:[%s1071_s26 + $0x1f0] sm:$0xff] }
  0x21   : > { %333 = vst [vmem:[%s1076_s27 + $0xf0] sm:$0xff] %v332_v30  ;;  %335 = vst [vmem:[%s1076_s27 + $0xf8] sm:$0xff] %v334_v31 }
  0x22 PF: > { %p834_p6 = scmp.ge.s32.totalorder %s1006_s16, 1  ;;  %p348_p7 = scmp.lt.s32.totalorder %s1006_s16, 3 }
  0x24   : > { %p349_p8 = pnand %p834_p6, %p348_p7 }
  0x25   : > { %s355_s28 = sand.u32 (!%p349_p8), 1, %s990_s12   ;;  %v1145_v32 = vld [vmem:[%s1207_s0] sm:$0xff] (!%p349_p8)  ;;  %s836_s6 = sshll.u32 (!%p349_p8), %s998_s14, 1  ;;  %v682_v3 = vlaneseq (!%p349_p8) }
  0x26   : > { %352 = sbr.rel (%p349_p8) target bundleno = 323 (0x143), region = 66  ;;  %s835_s4 = sshll.u32 (!%p349_p8), %s355_s28, 8  ;;  %v840_v33 = vcombine.high (!%p349_p8), %v1145_v32, %v1145_v32  ;;  %v839_v2 = vcombine.low (!%p349_p8), %v1145_v32, %v1145_v32 }
  0x27   : > { %s1149_s5 = scalar_lea.vmem (!%p349_p8), [#allocation3], %s835_s4  ;;  %p408_p9 = scmp.lt.s32.totalorder (!%p349_p8), %s836_s6, 3  ;;  %v683_v4 = vshrl.u32 (!%p349_p8), %v682_v3, 7 }
  0x28   : > { %v918_v34 = vld [vmem:[%s1149_s5 + $0x4] ss:$8 sps:$4 sm:$0xff] (!%p349_p8)   ;;  %662 = vmatprep.mubr.bf16.mxu0 (!%p349_p8), %v840_v33  ;;  %v920_v35 = vld [vmem:[%s1149_s5] ss:$8 sps:$4 sm:$0xff] (!%p349_p8)   ;;  %v921_v36 = vld [vmem:[%s1149_s5 + $0x14] ss:$8 sps:$4 sm:$0xff] (!%p349_p8)  }
  0x29   : > { %630 = vmatprep.subr.bf16.mxu0 (!%p349_p8), %v918_v34  ;;  %v923_v37 = vld [vmem:[%s1149_s5 + $0x10] ss:$8 sps:$4 sm:$0xff] (!%p349_p8)   ;;  %v924_v38 = vld [vmem:[%s1149_s5 + $0x24] ss:$8 sps:$4 sm:$0xff] (!%p349_p8)   ;;  %v926_v39 = vld [vmem:[%s1149_s5 + $0x20] ss:$8 sps:$4 sm:$0xff] (!%p349_p8)  }
  0x2a   : > { %631 = vmatpush1.bf16.msra.mxu0 (!%p349_p8), %v920_v35  ;;  %v927_v40 = vld [vmem:[%s1149_s5 + $0x34] ss:$8 sps:$4 sm:$0xff] (!%p349_p8)   ;;  %v929_v41 = vld [vmem:[%s1149_s5 + $0x30] ss:$8 sps:$4 sm:$0xff] (!%p349_p8)   ;;  %v930_v42 = vld [vmem:[%s1149_s5 + $0x44] ss:$8 sps:$4 sm:$0xff] (!%p349_p8)  }
  0x2b   : > { %632 = vmatprep.subr.bf16.mxu0 (!%p349_p8), %v921_v36  ;;  %v932_v43 = vld [vmem:[%s1149_s5 + $0x40] ss:$8 sps:$4 sm:$0xff] (!%p349_p8)   ;;  %v933_v44 = vld [vmem:[%s1149_s5 + $0x54] ss:$8 sps:$4 sm:$0xff] (!%p349_p8)   ;;  %v935_v45 = vld [vmem:[%s1149_s5 + $0x50] ss:$8 sps:$4 sm:$0xff] (!%p349_p8)  }
  0x2c   : > { %v936_v46 = vld [vmem:[%s1149_s5 + $0x64] ss:$8 sps:$4 sm:$0xff] (!%p349_p8)   ;;  %v938_v47 = vld [vmem:[%s1149_s5 + $0x60] ss:$8 sps:$4 sm:$0xff] (!%p349_p8)   ;;  %v939_v48 = vld [vmem:[%s1149_s5 + $0x74] ss:$8 sps:$4 sm:$0xff] (!%p349_p8)  }
  0x2d   : > { %v941_v49 = vld [vmem:[%s1149_s5 + $0x70] ss:$8 sps:$4 sm:$0xff]   ;;  %v942_v50 = vld [vmem:[%s1149_s5 + $0x84] ss:$8 sps:$4 sm:$0xff]   ;;  %v944_v51 = vld [vmem:[%s1149_s5 + $0x80] ss:$8 sps:$4 sm:$0xff]  }
  0x2e   : > { %633 = vmatpush1.bf16.msra.mxu0 %v923_v37  ;;  %v945_v52 = vld [vmem:[%s1149_s5 + $0x94] ss:$8 sps:$4 sm:$0xff]   ;;  %v947_v53 = vld [vmem:[%s1149_s5 + $0x90] ss:$8 sps:$4 sm:$0xff]   ;;  %v948_v54 = vld [vmem:[%s1149_s5 + $0xa4] ss:$8 sps:$4 sm:$0xff]  }
  0x2f   : > { %634 = vmatprep.subr.bf16.mxu0 %v924_v38  ;;  %v950_v55 = vld [vmem:[%s1149_s5 + $0xa0] ss:$8 sps:$4 sm:$0xff]   ;;  %v951_v56 = vld [vmem:[%s1149_s5 + $0xb4] ss:$8 sps:$4 sm:$0xff]   ;;  %v953_v57 = vld [vmem:[%s1149_s5 + $0xb0] ss:$8 sps:$4 sm:$0xff]  }
  0x30   : > { %v954_v58 = vld [vmem:[%s1149_s5 + $0xc4] ss:$8 sps:$4 sm:$0xff]   ;;  %v956_v59 = vld [vmem:[%s1149_s5 + $0xc0] ss:$8 sps:$4 sm:$0xff]   ;;  %v957_v60 = vld [vmem:[%s1149_s5 + $0xd4] ss:$8 sps:$4 sm:$0xff]  }
  0x31   : > { %v959_v61 = vld [vmem:[%s1149_s5 + $0xd0] ss:$8 sps:$4 sm:$0xff]   ;;  %v960_v62 = vld [vmem:[%s1149_s5 + $0xe4] ss:$8 sps:$4 sm:$0xff]   ;;  %v962_v63 = vld [vmem:[%s1149_s5 + $0xe0] ss:$8 sps:$4 sm:$0xff]  }
  0x32   : > { %635 = vmatpush1.bf16.msra.mxu0 %v926_v39  ;;  %v963_v0 = vld [vmem:[%s1149_s5 + $0xf4] ss:$8 sps:$4 sm:$0xff]   ;;  %v965_v1 = vld [vmem:[%s1149_s5 + $0xf0] ss:$8 sps:$4 sm:$0xff]   ;;  %s1218_s6 = smov (!%p408_p9, %s836_s6), 3  ;;  %v684_v5 = vsub.s32 0, %v683_v4 }
  0x33   : > { %636 = vmatprep.subr.bf16.mxu0 %v927_v40  ;;  %s410_s9 = scalar_lea.vmem %s1209_s2, %s1218_s6  ;;  %v688_v7 = vsub.s32 1, %v683_v4  ;;  %s838_s10 = sshll.u32 %s1218_s6, 2 }
  0x34   : > { %v680_v6 = vld [vmem:[%s410_s9] sm:$0x3]  ;;  %s420_s14 = scalar_lea.vmem %s1210_s3, %s838_s10 }
  0x35   : > { %v685_v8 = vrot.slane %v680_v6, %v684_v5  ;;  %v689_v9 = vrot.slane %v680_v6, %v688_v7 }
  0x36   : > { %637 = vmatpush1.bf16.msra.mxu0 %v929_v41 }
  0x37   : > { %638 = vmatprep.subr.bf16.mxu0 %v930_v42 }
  0x3a   : > { %639 = vmatpush1.bf16.msra.mxu0 %v932_v43 }
  0x3b   : > { %640 = vmatprep.subr.bf16.mxu0 %v933_v44 }
  0x3e   : > { %641 = vmatpush1.bf16.msra.mxu0 %v935_v45 }
  0x3f   : > { %642 = vmatprep.subr.bf16.mxu0 %v936_v46 }
  0x42   : > { %643 = vmatpush1.bf16.msra.mxu0 %v938_v47 }
  0x43   : > { %644 = vmatprep.subr.bf16.mxu0 %v939_v48 }
  0x46   : > { %645 = vmatpush1.bf16.msra.mxu0 %v941_v49 }
  0x47   : > { %646 = vmatprep.subr.bf16.mxu0 %v942_v50 }
  0x4a   : > { %647 = vmatpush1.bf16.msra.mxu0 %v944_v51 }
  0x4b   : > { %648 = vmatprep.subr.bf16.mxu0 %v945_v52 }
  0x4e   : > { %649 = vmatpush1.bf16.msra.mxu0 %v947_v53 }
  0x4f   : > { %650 = vmatprep.subr.bf16.mxu0 %v948_v54 }
  0x52   : > { %651 = vmatpush1.bf16.msra.mxu0 %v950_v55 }
  0x53   : > { %652 = vmatprep.subr.bf16.mxu0 %v951_v56 }
  0x56   : > { %653 = vmatpush1.bf16.msra.mxu0 %v953_v57 }
  0x57   : > { %654 = vmatprep.subr.bf16.mxu0 %v954_v58 }
  0x5a   : > { %655 = vmatpush1.bf16.msra.mxu0 %v956_v59 }
  0x5b   : > { %656 = vmatprep.subr.bf16.mxu0 %v957_v60 }
  0x5e   : > { %657 = vmatpush1.bf16.msra.mxu0 %v959_v61 }
  0x5f   : > { %658 = vmatprep.subr.bf16.mxu0 %v960_v62 }
  0x62   : > { %659 = vmatpush1.bf16.msra.mxu0 %v962_v63 }
  0x63   : > { %660 = vmatprep.subr.bf16.mxu0 %v963_v0 }
  0x66   : > { %661 = vmatpush1.bf16.msra.mxu0 %v965_v1 }
  0x69   : > { %663 = vmatmul.mubr.bf16.vlgmr.msra.gmra.mrb[0].mxu0 %v839_v2 }
 0x13c   : > { %v664_v10 = vpop.f32.mrb[0].mxu0 }
 0x13d   : > { %v692_v11 = vadd.f32 %v685_v8, %v664_v10  ;;  %v666_v12 = vpop.f32.mrb[1].mxu0 }
 0x13e   : > { %v693_v13 = vadd.f32 %v689_v9, %v666_v12  ;;  %v668_v14 = vpop.f32.mrb[2].mxu0 }
 0x13f   : > { %v669_v15 = vpop.f32.mrb[3].mxu0 }
 0x140   : > { %v877_v16 = vpack.c.bf16 %v693_v13, %v692_v11 }
 0x142   : > { %702 = vst [vmem:[%s420_s14] sm:$0xff] %v877_v16 }
 0x143 PF: > { %s13_s16 = sadd.s32 1, %s1006_s16   ;;  %s1211_s12 = smov %s994_s13 }
 0x144   : > { %p10_p10 = scmp.ge.s32.totalorder %s13_s16, 4   ;;  %s1212_s13 = smov %s1063_s20 }
 0x145   : > { %s1213_s14 = smov %s1002_s15  ;;  %s1214_s15 = smov %s1216_s17 }
 0x146   :  { %12 = sbr.rel (!%p10_p10) target bundleno = 3 (0x3), region = 119 }

// kernel: resnet_forward.24
= control target key start
LH: loop header
LB: loop body
LE: loop exit
PB: predicated region body
PF: predicated region fallthrough
CT: control target
= control target key end

     0   :  { %s2678_s12 = smov 0   ;;  %s2680_s13 = smov 0   ;;  %s3244_s0 = inlined_call_operand.vmem [shape: bf16[8,2304], index: 0, kind: input, shape index: {}]   ;;  %s3245_s1 = inlined_call_operand.vmem [shape: bf16[2304,512], index: 1, kind: input, shape index: {}]   ;;  %s3246_s2 = inlined_call_operand.vmem [shape: f32[1,512], index: 2, kind: input, shape index: {}]   ;;  %s3247_s3 = inlined_call_operand.vmem [shape: bf16[8,512], index: 3, kind: output, shape index: {}]  }
   0x1   :  { %s2682_s14 = smov 0   ;;  %s2684_s15 = smov 0  }
   0x2   :  { %s2686_s16 = smov 0   ;;  %s2688_s17 = smov 0  }
   0x3   :  { %s2690_s18 = smov 0  }
   0x4 LB: > { %s25_s19 = sadd.s32 1, %s2646_s16  ;;  %s28_s20 = sadd.s32 1, %s2650_s17  ;;  %s2654_s18 = sphi %s2690_s18, %s13_s18   ;;  %s2650_s17 = sphi %s2688_s17, %s3253_s17   ;;  %s2646_s16 = sphi %s2686_s16, %s3252_s16   ;;  %s2642_s15 = sphi %s2684_s15, %s3251_s15   ;;  %s2638_s14 = sphi %s2682_s14, %s3250_s14   ;;  %s2634_s13 = sphi %s2680_s13, %s3249_s13   ;;  %s2630_s12 = sphi %s2678_s12, %s3248_s12  }
   0x5   : > { %p26_p0 = scmp.ge.s32.totalorder %s25_s19, 2  ;;  %p76_p1 = scmp.ne.s32.totalorder %s2634_s13, %s2630_s12 }
   0x6   : > { %p77_p2 = scmp.eq.s32.totalorder %s2654_s18, 0  ;;  %s69_s24 = sadd.s32 1, %s2634_s13 }
   0x7   : > { %s3255_s19 = smov (%p26_p0, %s25_s19), 0  ;;  %s3257_s20 = smov (!%p26_p0, %s28_s20), %s2650_s17 }
   0x8   : > { %p78_p3 = por %p77_p2, %p76_p1  ;;  %p30_p4 = scmp.ge.s32.totalorder %s3257_s20, 2 }
   0x9   : > { %s64_s21 = ssub.s32 %s2646_s16, %s3255_s19  ;;  %p2146_p6 = scmp.ge.s32.totalorder %s2654_s18, 4 }
   0xa   : > { %s3259_s20 = smov (%p30_p4, %s3257_s20), 0 }
   0xb   : > { %s65_s22 = ssub.s32 %s2650_s17, %s3259_s20  ;;  %156 = sbr.rel (%p2146_p6) target bundleno = 98 (0x62), region = 16 }
   0xc   : > { %s66_s23 = sor.u32 %s65_s22, %s64_s21 }
   0xd   : > { %p67_p5 = scmp.eq.s32.totalorder %s66_s23, 0 }
   0xf   : > { %s2729_s25 = scalar_select %p67_p5, %s2634_s13, %s69_s24  }
  0x12   : > { %172 = sbr.rel (!%p78_p3) target bundleno = 98 (0x62), region = 24  ;;  %s174_s26 = sand.u32 (%p78_p3), 1, %s2634_s13  }
  0x13   : > { %s2315_s27 = smul.u32 (%p78_p3), 1152, %s174_s26  ;;  %s2147_s28 = sshll.u32 (%p78_p3), %s2650_s17, 1 }
  0x14   : > { %s2313_s29 = smul.u32 (%p78_p3), 576, %s2646_s16 }
  0x15   : > { %s2743_s8 = scalar_lea.vmem (%p78_p3), [#allocation3], %s2315_s27 }
  0x16   : > { %s180_s30 = sadd.s32 (%p78_p3), %s2313_s29, %s2147_s28 }
  0x17   : > { %s2149_s4 = sshll.u32 (%p78_p3), %s180_s30, 2 }
  0x18   : > { %s2738_s7 = scalar_lea.vmem (%p78_p3), %s3245_s1, %s2149_s4 }
  0x19   : > { %v496_v0 = vld [vmem:[%s2738_s7] sm:$0xff]  ;;  %v498_v1 = vld [vmem:[%s2738_s7 + $0x10] sm:$0xff] }
  0x1a   : > { %v500_v2 = vld [vmem:[%s2738_s7 + $0x20] sm:$0xff]  ;;  %497 = vst [vmem:[%s2743_s8] sm:$0xff] %v496_v0  ;;  %499 = vst [vmem:[%s2743_s8 + $0x8] sm:$0xff] %v498_v1  ;;  %v502_v3 = vld [vmem:[%s2738_s7 + $0x30] sm:$0xff] }
  0x1b   : > { %501 = vst [vmem:[%s2743_s8 + $0x10] sm:$0xff] %v500_v2  ;;  %v504_v4 = vld [vmem:[%s2738_s7 + $0x40] sm:$0xff]  ;;  %v506_v5 = vld [vmem:[%s2738_s7 + $0x50] sm:$0xff]  ;;  %503 = vst [vmem:[%s2743_s8 + $0x18] sm:$0xff] %v502_v3 }
  0x1c   : > { %505 = vst [vmem:[%s2743_s8 + $0x20] sm:$0xff] %v504_v4  ;;  %507 = vst [vmem:[%s2743_s8 + $0x28] sm:$0xff] %v506_v5  ;;  %v508_v6 = vld [vmem:[%s2738_s7 + $0x60] sm:$0xff]  ;;  %v510_v7 = vld [vmem:[%s2738_s7 + $0x70] sm:$0xff] }
  0x1d   : > { %v512_v8 = vld [vmem:[%s2738_s7 + $0x80] sm:$0xff]  ;;  %509 = vst [vmem:[%s2743_s8 + $0x30] sm:$0xff] %v508_v6  ;;  %511 = vst [vmem:[%s2743_s8 + $0x38] sm:$0xff] %v510_v7  ;;  %v514_v9 = vld [vmem:[%s2738_s7 + $0x90] sm:$0xff] }
  0x1e   : > { %513 = vst [vmem:[%s2743_s8 + $0x40] sm:$0xff] %v512_v8  ;;  %v516_v10 = vld [vmem:[%s2738_s7 + $0xa0] sm:$0xff]  ;;  %v518_v11 = vld [vmem:[%s2738_s7 + $0xb0] sm:$0xff]  ;;  %515 = vst [vmem:[%s2743_s8 + $0x48] sm:$0xff] %v514_v9 }
  0x1f   : > { %517 = vst [vmem:[%s2743_s8 + $0x50] sm:$0xff] %v516_v10  ;;  %519 = vst [vmem:[%s2743_s8 + $0x58] sm:$0xff] %v518_v11  ;;  %v520_v12 = vld [vmem:[%s2738_s7 + $0xc0] sm:$0xff]  ;;  %v522_v13 = vld [vmem:[%s2738_s7 + $0xd0] sm:$0xff] }
  0x20   : > { %v524_v14 = vld [vmem:[%s2738_s7 + $0xe0] sm:$0xff]  ;;  %521 = vst [vmem:[%s2743_s8 + $0x60] sm:$0xff] %v520_v12  ;;  %523 = vst [vmem:[%s2743_s8 + $0x68] sm:$0xff] %v522_v13  ;;  %v526_v15 = vld [vmem:[%s2738_s7 + $0xf0] sm:$0xff] }
  0x21   : > { %525 = vst [vmem:[%s2743_s8 + $0x70] sm:$0xff] %v524_v14  ;;  %v528_v16 = vld [vmem:[%s2738_s7 + $0x100] sm:$0xff]  ;;  %v530_v17 = vld [vmem:[%s2738_s7 + $0x110] sm:$0xff]  ;;  %527 = vst [vmem:[%s2743_s8 + $0x78] sm:$0xff] %v526_v15 }
  0x22   : > { %529 = vst [vmem:[%s2743_s8 + $0x80] sm:$0xff] %v528_v16  ;;  %531 = vst [vmem:[%s2743_s8 + $0x88] sm:$0xff] %v530_v17  ;;  %v532_v18 = vld [vmem:[%s2738_s7 + $0x120] sm:$0xff]  ;;  %v534_v19 = vld [vmem:[%s2738_s7 + $0x130] sm:$0xff] }
  0x23   : > { %v536_v20 = vld [vmem:[%s2738_s7 + $0x140] sm:$0xff]  ;;  %533 = vst [vmem:[%s2743_s8 + $0x90] sm:$0xff] %v532_v18  ;;  %535 = vst [vmem:[%s2743_s8 + $0x98] sm:$0xff] %v534_v19  ;;  %v538_v21 = vld [vmem:[%s2738_s7 + $0x150] sm:$0xff] }
  0x24   : > { %537 = vst [vmem:[%s2743_s8 + $0xa0] sm:$0xff] %v536_v20  ;;  %v540_v22 = vld [vmem:[%s2738_s7 + $0x160] sm:$0xff]  ;;  %v542_v23 = vld [vmem:[%s2738_s7 + $0x170] sm:$0xff]  ;;  %539 = vst [vmem:[%s2743_s8 + $0xa8] sm:$0xff] %v538_v21 }
  0x25   : > { %541 = vst [vmem:[%s2743_s8 + $0xb0] sm:$0xff] %v540_v22  ;;  %543 = vst [vmem:[%s2743_s8 + $0xb8] sm:$0xff] %v542_v23  ;;  %v544_v24 = vld [vmem:[%s2738_s7 + $0x180] sm:$0xff]  ;;  %v546_v25 = vld [vmem:[%s2738_s7 + $0x190] sm:$0xff] }
  0x26   : > { %v548_v26 = vld [vmem:[%s2738_s7 + $0x1a0] sm:$0xff]  ;;  %545 = vst [vmem:[%s2743_s8 + $0xc0] sm:$0xff] %v544_v24  ;;  %547 = vst [vmem:[%s2743_s8 + $0xc8] sm:$0xff] %v546_v25  ;;  %v550_v27 = vld [vmem:[%s2738_s7 + $0x1b0] sm:$0xff] }
  0x27   : > { %549 = vst [vmem:[%s2743_s8 + $0xd0] sm:$0xff] %v548_v26  ;;  %v552_v28 = vld [vmem:[%s2738_s7 + $0x1c0] sm:$0xff]  ;;  %v554_v29 = vld [vmem:[%s2738_s7 + $0x1d0] sm:$0xff]  ;;  %551 = vst [vmem:[%s2743_s8 + $0xd8] sm:$0xff] %v550_v27 }
  0x28   : > { %553 = vst [vmem:[%s2743_s8 + $0xe0] sm:$0xff] %v552_v28  ;;  %555 = vst [vmem:[%s2743_s8 + $0xe8] sm:$0xff] %v554_v29  ;;  %v556_v30 = vld [vmem:[%s2738_s7 + $0x1e0] sm:$0xff]  ;;  %v558_v31 = vld [vmem:[%s2738_s7 + $0x1f0] sm:$0xff] }
  0x29   : > { %v560_v32 = vld [vmem:[%s2738_s7 + $0x200] sm:$0xff]  ;;  %557 = vst [vmem:[%s2743_s8 + $0xf0] sm:$0xff] %v556_v30  ;;  %559 = vst [vmem:[%s2743_s8 + $0xf8] sm:$0xff] %v558_v31  ;;  %v562_v33 = vld [vmem:[%s2738_s7 + $0x210] sm:$0xff] }
  0x2a   : > { %561 = vst [vmem:[%s2743_s8 + $0x100] sm:$0xff] %v560_v32  ;;  %v564_v34 = vld [vmem:[%s2738_s7 + $0x220] sm:$0xff]  ;;  %v566_v35 = vld [vmem:[%s2738_s7 + $0x230] sm:$0xff]  ;;  %563 = vst [vmem:[%s2743_s8 + $0x108] sm:$0xff] %v562_v33 }
  0x2b   : > { %565 = vst [vmem:[%s2743_s8 + $0x110] sm:$0xff] %v564_v34  ;;  %567 = vst [vmem:[%s2743_s8 + $0x118] sm:$0xff] %v566_v35  ;;  %v568_v36 = vld [vmem:[%s2738_s7 + $0x240] sm:$0xff]  ;;  %v570_v37 = vld [vmem:[%s2738_s7 + $0x250] sm:$0xff] }
  0x2c   : > { %v572_v38 = vld [vmem:[%s2738_s7 + $0x260] sm:$0xff]  ;;  %569 = vst [vmem:[%s2743_s8 + $0x120] sm:$0xff] %v568_v36  ;;  %571 = vst [vmem:[%s2743_s8 + $0x128] sm:$0xff] %v570_v37  ;;  %v574_v39 = vld [vmem:[%s2738_s7 + $0x270] sm:$0xff] }
  0x2d   : > { %573 = vst [vmem:[%s2743_s8 + $0x130] sm:$0xff] %v572_v38  ;;  %v576_v40 = vld [vmem:[%s2738_s7 + $0x280] sm:$0xff]  ;;  %v578_v41 = vld [vmem:[%s2738_s7 + $0x290] sm:$0xff]  ;;  %575 = vst [vmem:[%s2743_s8 + $0x138] sm:$0xff] %v574_v39 }
  0x2e   : > { %577 = vst [vmem:[%s2743_s8 + $0x140] sm:$0xff] %v576_v40  ;;  %579 = vst [vmem:[%s2743_s8 + $0x148] sm:$0xff] %v578_v41  ;;  %v580_v42 = vld [vmem:[%s2738_s7 + $0x2a0] sm:$0xff]  ;;  %v582_v43 = vld [vmem:[%s2738_s7 + $0x2b0] sm:$0xff] }
  0x2f   : > { %v584_v44 = vld [vmem:[%s2738_s7 + $0x2c0] sm:$0xff]  ;;  %581 = vst [vmem:[%s2743_s8 + $0x150] sm:$0xff] %v580_v42  ;;  %583 = vst [vmem:[%s2743_s8 + $0x158] sm:$0xff] %v582_v43  ;;  %v586_v45 = vld [vmem:[%s2738_s7 + $0x2d0] sm:$0xff] }
  0x30   : > { %585 = vst [vmem:[%s2743_s8 + $0x160] sm:$0xff] %v584_v44  ;;  %v588_v46 = vld [vmem:[%s2738_s7 + $0x2e0] sm:$0xff]  ;;  %v590_v47 = vld [vmem:[%s2738_s7 + $0x2f0] sm:$0xff]  ;;  %587 = vst [vmem:[%s2743_s8 + $0x168] sm:$0xff] %v586_v45 }
  0x31   : > { %589 = vst [vmem:[%s2743_s8 + $0x170] sm:$0xff] %v588_v46  ;;  %591 = vst [vmem:[%s2743_s8 + $0x178] sm:$0xff] %v590_v47  ;;  %v592_v48 = vld [vmem:[%s2738_s7 + $0x300] sm:$0xff]  ;;  %v594_v49 = vld [vmem:[%s2738_s7 + $0x310] sm:$0xff] }
  0x32   : > { %v596_v50 = vld [vmem:[%s2738_s7 + $0x320] sm:$0xff]  ;;  %593 = vst [vmem:[%s2743_s8 + $0x180] sm:$0xff] %v592_v48  ;;  %595 = vst [vmem:[%s2743_s8 + $0x188] sm:$0xff] %v594_v49  ;;  %v598_v51 = vld [vmem:[%s2738_s7 + $0x330] sm:$0xff] }
  0x33   : > { %597 = vst [vmem:[%s2743_s8 + $0x190] sm:$0xff] %v596_v50  ;;  %v600_v52 = vld [vmem:[%s2738_s7 + $0x340] sm:$0xff]  ;;  %v602_v53 = vld [vmem:[%s2738_s7 + $0x350] sm:$0xff]  ;;  %599 = vst [vmem:[%s2743_s8 + $0x198] sm:$0xff] %v598_v51 }
  0x34   : > { %601 = vst [vmem:[%s2743_s8 + $0x1a0] sm:$0xff] %v600_v52  ;;  %603 = vst [vmem:[%s2743_s8 + $0x1a8] sm:$0xff] %v602_v53  ;;  %v604_v54 = vld [vmem:[%s2738_s7 + $0x360] sm:$0xff]  ;;  %v606_v55 = vld [vmem:[%s2738_s7 + $0x370] sm:$0xff] }
  0x35   : > { %v608_v56 = vld [vmem:[%s2738_s7 + $0x380] sm:$0xff]  ;;  %605 = vst [vmem:[%s2743_s8 + $0x1b0] sm:$0xff] %v604_v54  ;;  %607 = vst [vmem:[%s2743_s8 + $0x1b8] sm:$0xff] %v606_v55  ;;  %v610_v57 = vld [vmem:[%s2738_s7 + $0x390] sm:$0xff] }
  0x36   : > { %609 = vst [vmem:[%s2743_s8 + $0x1c0] sm:$0xff] %v608_v56  ;;  %v612_v58 = vld [vmem:[%s2738_s7 + $0x3a0] sm:$0xff]  ;;  %v614_v59 = vld [vmem:[%s2738_s7 + $0x3b0] sm:$0xff]  ;;  %611 = vst [vmem:[%s2743_s8 + $0x1c8] sm:$0xff] %v610_v57 }
  0x37   : > { %613 = vst [vmem:[%s2743_s8 + $0x1d0] sm:$0xff] %v612_v58  ;;  %615 = vst [vmem:[%s2743_s8 + $0x1d8] sm:$0xff] %v614_v59  ;;  %v616_v60 = vld [vmem:[%s2738_s7 + $0x3c0] sm:$0xff]  ;;  %v618_v61 = vld [vmem:[%s2738_s7 + $0x3d0] sm:$0xff] }
  0x38   : > { %v620_v62 = vld [vmem:[%s2738_s7 + $0x3e0] sm:$0xff]  ;;  %617 = vst [vmem:[%s2743_s8 + $0x1e0] sm:$0xff] %v616_v60  ;;  %619 = vst [vmem:[%s2743_s8 + $0x1e8] sm:$0xff] %v618_v61  ;;  %v622_v63 = vld [vmem:[%s2738_s7 + $0x3f0] sm:$0xff] }
  0x39   : > { %621 = vst [vmem:[%s2743_s8 + $0x1f0] sm:$0xff] %v620_v62  ;;  %v624_v0 = vld [vmem:[%s2738_s7 + $0x400] sm:$0xff]  ;;  %v626_v1 = vld [vmem:[%s2738_s7 + $0x410] sm:$0xff]  ;;  %623 = vst [vmem:[%s2743_s8 + $0x1f8] sm:$0xff] %v622_v63 }
  0x3a   : > { %625 = vst [vmem:[%s2743_s8 + $0x200] sm:$0xff] %v624_v0  ;;  %627 = vst [vmem:[%s2743_s8 + $0x208] sm:$0xff] %v626_v1  ;;  %v628_v2 = vld [vmem:[%s2738_s7 + $0x420] sm:$0xff]  ;;  %v630_v3 = vld [vmem:[%s2738_s7 + $0x430] sm:$0xff] }
  0x3b   : > { %v632_v4 = vld [vmem:[%s2738_s7 + $0x440] sm:$0xff]  ;;  %629 = vst [vmem:[%s2743_s8 + $0x210] sm:$0xff] %v628_v2  ;;  %631 = vst [vmem:[%s2743_s8 + $0x218] sm:$0xff] %v630_v3  ;;  %v634_v5 = vld [vmem:[%s2738_s7 + $0x450] sm:$0xff] }
  0x3c   : > { %633 = vst [vmem:[%s2743_s8 + $0x220] sm:$0xff] %v632_v4  ;;  %v636_v6 = vld [vmem:[%s2738_s7 + $0x460] sm:$0xff]  ;;  %v638_v7 = vld [vmem:[%s2738_s7 + $0x470] sm:$0xff]  ;;  %635 = vst [vmem:[%s2743_s8 + $0x228] sm:$0xff] %v634_v5 }
  0x3d   : > { %637 = vst [vmem:[%s2743_s8 + $0x230] sm:$0xff] %v636_v6  ;;  %639 = vst [vmem:[%s2743_s8 + $0x238] sm:$0xff] %v638_v7  ;;  %v640_v8 = vld [vmem:[%s2738_s7 + $0x480] sm:$0xff]  ;;  %v642_v9 = vld [vmem:[%s2738_s7 + $0x490] sm:$0xff] }
  0x3e   : > { %v644_v10 = vld [vmem:[%s2738_s7 + $0x4a0] sm:$0xff]  ;;  %641 = vst [vmem:[%s2743_s8 + $0x240] sm:$0xff] %v640_v8  ;;  %643 = vst [vmem:[%s2743_s8 + $0x248] sm:$0xff] %v642_v9  ;;  %v646_v11 = vld [vmem:[%s2738_s7 + $0x4b0] sm:$0xff] }
  0x3f   : > { %645 = vst [vmem:[%s2743_s8 + $0x250] sm:$0xff] %v644_v10  ;;  %v648_v12 = vld [vmem:[%s2738_s7 + $0x4c0] sm:$0xff]  ;;  %v650_v13 = vld [vmem:[%s2738_s7 + $0x4d0] sm:$0xff]  ;;  %647 = vst [vmem:[%s2743_s8 + $0x258] sm:$0xff] %v646_v11 }
  0x40   : > { %649 = vst [vmem:[%s2743_s8 + $0x260] sm:$0xff] %v648_v12  ;;  %651 = vst [vmem:[%s2743_s8 + $0x268] sm:$0xff] %v650_v13  ;;  %v652_v14 = vld [vmem:[%s2738_s7 + $0x4e0] sm:$0xff]  ;;  %v654_v15 = vld [vmem:[%s2738_s7 + $0x4f0] sm:$0xff] }
  0x41   : > { %v656_v16 = vld [vmem:[%s2738_s7 + $0x500] sm:$0xff]  ;;  %653 = vst [vmem:[%s2743_s8 + $0x270] sm:$0xff] %v652_v14  ;;  %655 = vst [vmem:[%s2743_s8 + $0x278] sm:$0xff] %v654_v15  ;;  %v658_v17 = vld [vmem:[%s2738_s7 + $0x510] sm:$0xff] }
  0x42   : > { %657 = vst [vmem:[%s2743_s8 + $0x280] sm:$0xff] %v656_v16  ;;  %v660_v18 = vld [vmem:[%s2738_s7 + $0x520] sm:$0xff]  ;;  %v662_v19 = vld [vmem:[%s2738_s7 + $0x530] sm:$0xff]  ;;  %659 = vst [vmem:[%s2743_s8 + $0x288] sm:$0xff] %v658_v17 }
  0x43   : > { %661 = vst [vmem:[%s2743_s8 + $0x290] sm:$0xff] %v660_v18  ;;  %663 = vst [vmem:[%s2743_s8 + $0x298] sm:$0xff] %v662_v19  ;;  %v664_v20 = vld [vmem:[%s2738_s7 + $0x540] sm:$0xff]  ;;  %v666_v21 = vld [vmem:[%s2738_s7 + $0x550] sm:$0xff] }
  0x44   : > { %v668_v22 = vld [vmem:[%s2738_s7 + $0x560] sm:$0xff]  ;;  %665 = vst [vmem:[%s2743_s8 + $0x2a0] sm:$0xff] %v664_v20  ;;  %667 = vst [vmem:[%s2743_s8 + $0x2a8] sm:$0xff] %v666_v21  ;;  %v670_v23 = vld [vmem:[%s2738_s7 + $0x570] sm:$0xff] }
  0x45   : > { %669 = vst [vmem:[%s2743_s8 + $0x2b0] sm:$0xff] %v668_v22  ;;  %v672_v24 = vld [vmem:[%s2738_s7 + $0x580] sm:$0xff]  ;;  %v674_v25 = vld [vmem:[%s2738_s7 + $0x590] sm:$0xff]  ;;  %671 = vst [vmem:[%s2743_s8 + $0x2b8] sm:$0xff] %v670_v23 }
  0x46   : > { %673 = vst [vmem:[%s2743_s8 + $0x2c0] sm:$0xff] %v672_v24  ;;  %675 = vst [vmem:[%s2743_s8 + $0x2c8] sm:$0xff] %v674_v25  ;;  %v676_v26 = vld [vmem:[%s2738_s7 + $0x5a0] sm:$0xff]  ;;  %v678_v27 = vld [vmem:[%s2738_s7 + $0x5b0] sm:$0xff] }
  0x47   : > { %v680_v28 = vld [vmem:[%s2738_s7 + $0x5c0] sm:$0xff]  ;;  %677 = vst [vmem:[%s2743_s8 + $0x2d0] sm:$0xff] %v676_v26  ;;  %679 = vst [vmem:[%s2743_s8 + $0x2d8] sm:$0xff] %v678_v27  ;;  %v682_v29 = vld [vmem:[%s2738_s7 + $0x5d0] sm:$0xff] }
  0x48   : > { %681 = vst [vmem:[%s2743_s8 + $0x2e0] sm:$0xff] %v680_v28  ;;  %v684_v30 = vld [vmem:[%s2738_s7 + $0x5e0] sm:$0xff]  ;;  %v686_v31 = vld [vmem:[%s2738_s7 + $0x5f0] sm:$0xff]  ;;  %683 = vst [vmem:[%s2743_s8 + $0x2e8] sm:$0xff] %v682_v29 }
  0x49   : > { %685 = vst [vmem:[%s2743_s8 + $0x2f0] sm:$0xff] %v684_v30  ;;  %687 = vst [vmem:[%s2743_s8 + $0x2f8] sm:$0xff] %v686_v31  ;;  %v688_v32 = vld [vmem:[%s2738_s7 + $0x600] sm:$0xff]  ;;  %v690_v33 = vld [vmem:[%s2738_s7 + $0x610] sm:$0xff] }
  0x4a   : > { %v692_v34 = vld [vmem:[%s2738_s7 + $0x620] sm:$0xff]  ;;  %689 = vst [vmem:[%s2743_s8 + $0x300] sm:$0xff] %v688_v32  ;;  %691 = vst [vmem:[%s2743_s8 + $0x308] sm:$0xff] %v690_v33  ;;  %v694_v35 = vld [vmem:[%s2738_s7 + $0x630] sm:$0xff] }
  0x4b   : > { %693 = vst [vmem:[%s2743_s8 + $0x310] sm:$0xff] %v692_v34  ;;  %v696_v36 = vld [vmem:[%s2738_s7 + $0x640] sm:$0xff]  ;;  %v698_v37 = vld [vmem:[%s2738_s7 + $0x650] sm:$0xff]  ;;  %695 = vst [vmem:[%s2743_s8 + $0x318] sm:$0xff] %v694_v35 }
  0x4c   : > { %697 = vst [vmem:[%s2743_s8 + $0x320] sm:$0xff] %v696_v36  ;;  %699 = vst [vmem:[%s2743_s8 + $0x328] sm:$0xff] %v698_v37  ;;  %v700_v38 = vld [vmem:[%s2738_s7 + $0x660] sm:$0xff]  ;;  %v702_v39 = vld [vmem:[%s2738_s7 + $0x670] sm:$0xff] }
  0x4d   : > { %v704_v40 = vld [vmem:[%s2738_s7 + $0x680] sm:$0xff]  ;;  %701 = vst [vmem:[%s2743_s8 + $0x330] sm:$0xff] %v700_v38  ;;  %703 = vst [vmem:[%s2743_s8 + $0x338] sm:$0xff] %v702_v39  ;;  %v706_v41 = vld [vmem:[%s2738_s7 + $0x690] sm:$0xff] }
  0x4e   : > { %705 = vst [vmem:[%s2743_s8 + $0x340] sm:$0xff] %v704_v40  ;;  %v708_v42 = vld [vmem:[%s2738_s7 + $0x6a0] sm:$0xff]  ;;  %v710_v43 = vld [vmem:[%s2738_s7 + $0x6b0] sm:$0xff]  ;;  %707 = vst [vmem:[%s2743_s8 + $0x348] sm:$0xff] %v706_v41 }
  0x4f   : > { %709 = vst [vmem:[%s2743_s8 + $0x350] sm:$0xff] %v708_v42  ;;  %711 = vst [vmem:[%s2743_s8 + $0x358] sm:$0xff] %v710_v43  ;;  %v712_v44 = vld [vmem:[%s2738_s7 + $0x6c0] sm:$0xff]  ;;  %v714_v45 = vld [vmem:[%s2738_s7 + $0x6d0] sm:$0xff] }
  0x50   : > { %v716_v46 = vld [vmem:[%s2738_s7 + $0x6e0] sm:$0xff]  ;;  %713 = vst [vmem:[%s2743_s8 + $0x360] sm:$0xff] %v712_v44  ;;  %715 = vst [vmem:[%s2743_s8 + $0x368] sm:$0xff] %v714_v45  ;;  %v718_v47 = vld [vmem:[%s2738_s7 + $0x6f0] sm:$0xff] }
  0x51   : > { %717 = vst [vmem:[%s2743_s8 + $0x370] sm:$0xff] %v716_v46  ;;  %v720_v48 = vld [vmem:[%s2738_s7 + $0x700] sm:$0xff]  ;;  %v722_v49 = vld [vmem:[%s2738_s7 + $0x710] sm:$0xff]  ;;  %719 = vst [vmem:[%s2743_s8 + $0x378] sm:$0xff] %v718_v47 }
  0x52   : > { %721 = vst [vmem:[%s2743_s8 + $0x380] sm:$0xff] %v720_v48  ;;  %723 = vst [vmem:[%s2743_s8 + $0x388] sm:$0xff] %v722_v49  ;;  %v724_v50 = vld [vmem:[%s2738_s7 + $0x720] sm:$0xff]  ;;  %v726_v51 = vld [vmem:[%s2738_s7 + $0x730] sm:$0xff] }
  0x53   : > { %v728_v52 = vld [vmem:[%s2738_s7 + $0x740] sm:$0xff]  ;;  %725 = vst [vmem:[%s2743_s8 + $0x390] sm:$0xff] %v724_v50  ;;  %727 = vst [vmem:[%s2743_s8 + $0x398] sm:$0xff] %v726_v51  ;;  %v730_v53 = vld [vmem:[%s2738_s7 + $0x750] sm:$0xff] }
  0x54   : > { %729 = vst [vmem:[%s2743_s8 + $0x3a0] sm:$0xff] %v728_v52  ;;  %v732_v54 = vld [vmem:[%s2738_s7 + $0x760] sm:$0xff]  ;;  %v734_v55 = vld [vmem:[%s2738_s7 + $0x770] sm:$0xff]  ;;  %731 = vst [vmem:[%s2743_s8 + $0x3a8] sm:$0xff] %v730_v53 }
  0x55   : > { %733 = vst [vmem:[%s2743_s8 + $0x3b0] sm:$0xff] %v732_v54  ;;  %735 = vst [vmem:[%s2743_s8 + $0x3b8] sm:$0xff] %v734_v55  ;;  %v736_v56 = vld [vmem:[%s2738_s7 + $0x780] sm:$0xff]  ;;  %v738_v57 = vld [vmem:[%s2738_s7 + $0x790] sm:$0xff] }
  0x56   : > { %v740_v58 = vld [vmem:[%s2738_s7 + $0x7a0] sm:$0xff]  ;;  %737 = vst [vmem:[%s2743_s8 + $0x3c0] sm:$0xff] %v736_v56  ;;  %739 = vst [vmem:[%s2743_s8 + $0x3c8] sm:$0xff] %v738_v57  ;;  %v742_v59 = vld [vmem:[%s2738_s7 + $0x7b0] sm:$0xff] }
  0x57   : > { %741 = vst [vmem:[%s2743_s8 + $0x3d0] sm:$0xff] %v740_v58  ;;  %v744_v60 = vld [vmem:[%s2738_s7 + $0x7c0] sm:$0xff]  ;;  %v746_v61 = vld [vmem:[%s2738_s7 + $0x7d0] sm:$0xff]  ;;  %743 = vst [vmem:[%s2743_s8 + $0x3d8] sm:$0xff] %v742_v59 }
  0x58   : > { %745 = vst [vmem:[%s2743_s8 + $0x3e0] sm:$0xff] %v744_v60  ;;  %747 = vst [vmem:[%s2743_s8 + $0x3e8] sm:$0xff] %v746_v61  ;;  %v748_v62 = vld [vmem:[%s2738_s7 + $0x7e0] sm:$0xff]  ;;  %v750_v63 = vld [vmem:[%s2738_s7 + $0x7f0] sm:$0xff] }
  0x59   : > { %v752_v0 = vld [vmem:[%s2738_s7 + $0x800] sm:$0xff]  ;;  %749 = vst [vmem:[%s2743_s8 + $0x3f0] sm:$0xff] %v748_v62  ;;  %751 = vst [vmem:[%s2743_s8 + $0x3f8] sm:$0xff] %v750_v63  ;;  %v754_v1 = vld [vmem:[%s2738_s7 + $0x810] sm:$0xff] }
  0x5a   : > { %753 = vst [vmem:[%s2743_s8 + $0x400] sm:$0xff] %v752_v0  ;;  %v756_v2 = vld [vmem:[%s2738_s7 + $0x820] sm:$0xff]  ;;  %v758_v3 = vld [vmem:[%s2738_s7 + $0x830] sm:$0xff]  ;;  %755 = vst [vmem:[%s2743_s8 + $0x408] sm:$0xff] %v754_v1 }
  0x5b   : > { %757 = vst [vmem:[%s2743_s8 + $0x410] sm:$0xff] %v756_v2  ;;  %759 = vst [vmem:[%s2743_s8 + $0x418] sm:$0xff] %v758_v3  ;;  %v760_v4 = vld [vmem:[%s2738_s7 + $0x840] sm:$0xff]  ;;  %v762_v5 = vld [vmem:[%s2738_s7 + $0x850] sm:$0xff] }
  0x5c   : > { %v764_v6 = vld [vmem:[%s2738_s7 + $0x860] sm:$0xff]  ;;  %761 = vst [vmem:[%s2743_s8 + $0x420] sm:$0xff] %v760_v4  ;;  %763 = vst [vmem:[%s2743_s8 + $0x428] sm:$0xff] %v762_v5  ;;  %v766_v7 = vld [vmem:[%s2738_s7 + $0x870] sm:$0xff] }
  0x5d   : > { %765 = vst [vmem:[%s2743_s8 + $0x430] sm:$0xff] %v764_v6  ;;  %v768_v8 = vld [vmem:[%s2738_s7 + $0x880] sm:$0xff]  ;;  %v770_v9 = vld [vmem:[%s2738_s7 + $0x890] sm:$0xff]  ;;  %767 = vst [vmem:[%s2743_s8 + $0x438] sm:$0xff] %v766_v7 }
  0x5e   : > { %769 = vst [vmem:[%s2743_s8 + $0x440] sm:$0xff] %v768_v8  ;;  %771 = vst [vmem:[%s2743_s8 + $0x448] sm:$0xff] %v770_v9  ;;  %v772_v10 = vld [vmem:[%s2738_s7 + $0x8a0] sm:$0xff]  ;;  %v774_v11 = vld [vmem:[%s2738_s7 + $0x8b0] sm:$0xff] }
  0x5f   : > { %v776_v12 = vld [vmem:[%s2738_s7 + $0x8c0] sm:$0xff]  ;;  %773 = vst [vmem:[%s2743_s8 + $0x450] sm:$0xff] %v772_v10  ;;  %775 = vst [vmem:[%s2743_s8 + $0x458] sm:$0xff] %v774_v11  ;;  %v778_v13 = vld [vmem:[%s2738_s7 + $0x8d0] sm:$0xff] }
  0x60   : > { %777 = vst [vmem:[%s2743_s8 + $0x460] sm:$0xff] %v776_v12  ;;  %v780_v14 = vld [vmem:[%s2738_s7 + $0x8e0] sm:$0xff]  ;;  %v782_v15 = vld [vmem:[%s2738_s7 + $0x8f0] sm:$0xff]  ;;  %779 = vst [vmem:[%s2743_s8 + $0x468] sm:$0xff] %v778_v13 }
  0x61   : > { %781 = vst [vmem:[%s2743_s8 + $0x470] sm:$0xff] %v780_v14  ;;  %783 = vst [vmem:[%s2743_s8 + $0x478] sm:$0xff] %v782_v15 }
  0x62 PF: > { %p2150_p7 = scmp.ge.s32.totalorder %s2654_s18, 1  ;;  %p796_p8 = scmp.lt.s32.totalorder %s2654_s18, 5 }
  0x64   : > { %p797_p9 = pnand %p2150_p7, %p796_p8 }
  0x65   : > { %s803_s9 = sand.u32 (!%p797_p9), 1, %s2630_s12   ;;  %s843_s10 = smul.u32 (!%p797_p9), 9, %s2638_s14 }
  0x66   : > { %800 = sbr.rel (%p797_p9) target bundleno = 512 (0x200), region = 66  ;;  %s2152_s21 = sshll.u32 (!%p797_p9), %s2642_s15, 1 }
  0x67   : > { %s2316_s11 = smul.u32 (!%p797_p9), 1152, %s803_s9  ;;  %p846_p10 = scmp.lt.s32.totalorder (!%p797_p9), %s843_s10, 17 }
  0x68   : > { %p856_p11 = scmp.lt.s32.totalorder (!%p797_p9), %s2152_s21, 3  ;;  %p2155_p12 = scmp.ne.s32.totalorder (!%p797_p9), %s2638_s14, 0 }
  0x69   : > { %s3052_s5 = scalar_lea.vmem (!%p797_p9), [#allocation3], %s2316_s11 }
  0x6d   : > { %s3261_s10 = smov (!%p846_p10, %s843_s10), 17  ;;  %s3263_s21 = smov (!%p856_p11, %s2152_s21), 3 }
  0x6e   : > { %s2151_s22 = sshll.u32 %s3261_s10, 2  ;;  %s858_s12 = scalar_lea.vmem %s3246_s2, %s3263_s21  ;;  %v2656_v16 = vmov (!%p2155_p12), 0.0  }
  0x6f   : > { %s3040_s26 = scalar_lea.vmem %s3244_s0, %s2151_s22  ;;  %s2154_s29 = sshll.u32 %s3263_s21, 2  ;;  %875 = vst [vmem:[#allocation2] sm:$0xff] (!%p2155_p12), %v2656_v16  ;;  %876 = vst [vmem:[#allocation2 + $0x8] sm:$0xff] (!%p2155_p12), %v2656_v16 }
  0x70   : > { %s3050_s4 = scalar_lea.vmem %s3247_s3, %s2154_s29  ;;  %874 = sbr.rel (%p2155_p12) target bundleno = 119 (0x77), region = 74 }
  0x77 PF: > { %v2375_v17 = vld [vmem:[%s3052_s5 + $0x4] ss:$8 sps:$4 sm:$0xff]   ;;  %v2379_v19 = vld [vmem:[%s3052_s5] ss:$8 sps:$4 sm:$0xff]   ;;  %v2381_v21 = vld [vmem:[%s3052_s5 + $0x14] ss:$8 sps:$4 sm:$0xff]  }
  0x78   : > { %v2377_v18 = vld [vmem:[%s3052_s5 + $0x104] ss:$8 sps:$4 sm:$0xff]   ;;  %1780 = vmatprep.subr.bf16.mxu0 %v2375_v17  ;;  %v2380_v20 = vld [vmem:[%s3052_s5 + $0x100] ss:$8 sps:$4 sm:$0xff]   ;;  %v2383_v22 = vld [vmem:[%s3052_s5 + $0x114] ss:$8 sps:$4 sm:$0xff]  }
  0x79   : > { %1821 = vmatprep.subr.bf16.mxu1 %v2377_v18  ;;  %1781 = vmatpush1.bf16.msra.mxu0 %v2379_v19  ;;  %v2385_v23 = vld [vmem:[%s3052_s5 + $0x10] ss:$8 sps:$4 sm:$0xff]   ;;  %v2387_v25 = vld [vmem:[%s3052_s5 + $0x24] ss:$8 sps:$4 sm:$0xff]   ;;  %v2391_v27 = vld [vmem:[%s3052_s5 + $0x20] ss:$8 sps:$4 sm:$0xff]  }
  0x7a   : > { %1822 = vmatpush1.bf16.msra.mxu1 %v2380_v20  ;;  %1782 = vmatprep.subr.bf16.mxu0 %v2381_v21  ;;  %v2386_v24 = vld [vmem:[%s3052_s5 + $0x110] ss:$8 sps:$4 sm:$0xff]   ;;  %v2389_v26 = vld [vmem:[%s3052_s5 + $0x124] ss:$8 sps:$4 sm:$0xff]   ;;  %v2392_v28 = vld [vmem:[%s3052_s5 + $0x120] ss:$8 sps:$4 sm:$0xff]  }
  0x7b   : > { %1823 = vmatprep.subr.bf16.mxu1 %v2383_v22  ;;  %v2393_v29 = vld [vmem:[%s3052_s5 + $0x34] ss:$8 sps:$4 sm:$0xff]   ;;  %v2397_v31 = vld [vmem:[%s3052_s5 + $0x30] ss:$8 sps:$4 sm:$0xff]   ;;  %v2399_v33 = vld [vmem:[%s3052_s5 + $0x44] ss:$8 sps:$4 sm:$0xff]  }
  0x7c   : > { %v2395_v30 = vld [vmem:[%s3052_s5 + $0x134] ss:$8 sps:$4 sm:$0xff]   ;;  %v2398_v32 = vld [vmem:[%s3052_s5 + $0x130] ss:$8 sps:$4 sm:$0xff]   ;;  %v2401_v34 = vld [vmem:[%s3052_s5 + $0x144] ss:$8 sps:$4 sm:$0xff]  }
  0x7d   : > { %1783 = vmatpush1.bf16.msra.mxu0 %v2385_v23  ;;  %v2403_v35 = vld [vmem:[%s3052_s5 + $0x40] ss:$8 sps:$4 sm:$0xff]   ;;  %v2405_v37 = vld [vmem:[%s3052_s5 + $0x54] ss:$8 sps:$4 sm:$0xff]   ;;  %v2409_v39 = vld [vmem:[%s3052_s5 + $0x50] ss:$8 sps:$4 sm:$0xff]  }
  0x7e   : > { %1824 = vmatpush1.bf16.msra.mxu1 %v2386_v24  ;;  %1784 = vmatprep.subr.bf16.mxu0 %v2387_v25  ;;  %v2404_v36 = vld [vmem:[%s3052_s5 + $0x140] ss:$8 sps:$4 sm:$0xff]   ;;  %v2407_v38 = vld [vmem:[%s3052_s5 + $0x154] ss:$8 sps:$4 sm:$0xff]   ;;  %v2410_v40 = vld [vmem:[%s3052_s5 + $0x150] ss:$8 sps:$4 sm:$0xff]  }
  0x7f   : > { %1825 = vmatprep.subr.bf16.mxu1 %v2389_v26  ;;  %v2411_v41 = vld [vmem:[%s3052_s5 + $0x64] ss:$8 sps:$4 sm:$0xff]   ;;  %v2415_v43 = vld [vmem:[%s3052_s5 + $0x60] ss:$8 sps:$4 sm:$0xff]   ;;  %v2417_v45 = vld [vmem:[%s3052_s5 + $0x74] ss:$8 sps:$4 sm:$0xff]  }
  0x80   : > { %v2413_v42 = vld [vmem:[%s3052_s5 + $0x164] ss:$8 sps:$4 sm:$0xff]   ;;  %v2416_v44 = vld [vmem:[%s3052_s5 + $0x160] ss:$8 sps:$4 sm:$0xff]   ;;  %v2419_v46 = vld [vmem:[%s3052_s5 + $0x174] ss:$8 sps:$4 sm:$0xff]  }
  0x81   : > { %1785 = vmatpush1.bf16.msra.mxu0 %v2391_v27  ;;  %v2421_v47 = vld [vmem:[%s3052_s5 + $0x70] ss:$8 sps:$4 sm:$0xff]   ;;  %v2423_v49 = vld [vmem:[%s3052_s5 + $0x84] ss:$8 sps:$4 sm:$0xff]   ;;  %v2427_v51 = vld [vmem:[%s3052_s5 + $0x80] ss:$8 sps:$4 sm:$0xff]  }
  0x82   : > { %1826 = vmatpush1.bf16.msra.mxu1 %v2392_v28  ;;  %1786 = vmatprep.subr.bf16.mxu0 %v2393_v29  ;;  %v2422_v48 = vld [vmem:[%s3052_s5 + $0x170] ss:$8 sps:$4 sm:$0xff]   ;;  %v2425_v50 = vld [vmem:[%s3052_s5 + $0x184] ss:$8 sps:$4 sm:$0xff]   ;;  %v2428_v52 = vld [vmem:[%s3052_s5 + $0x180] ss:$8 sps:$4 sm:$0xff]  }
  0x83   : > { %1827 = vmatprep.subr.bf16.mxu1 %v2395_v30  ;;  %v2429_v53 = vld [vmem:[%s3052_s5 + $0x94] ss:$8 sps:$4 sm:$0xff]   ;;  %v2433_v55 = vld [vmem:[%s3052_s5 + $0x90] ss:$8 sps:$4 sm:$0xff]   ;;  %v2435_v57 = vld [vmem:[%s3052_s5 + $0xa4] ss:$8 sps:$4 sm:$0xff]  }
  0x84   : > { %v2431_v54 = vld [vmem:[%s3052_s5 + $0x194] ss:$8 sps:$4 sm:$0xff]   ;;  %v2434_v56 = vld [vmem:[%s3052_s5 + $0x190] ss:$8 sps:$4 sm:$0xff]   ;;  %v2437_v58 = vld [vmem:[%s3052_s5 + $0x1a4] ss:$8 sps:$4 sm:$0xff]  }
  0x85   : > { %1787 = vmatpush1.bf16.msra.mxu0 %v2397_v31  ;;  %v2439_v59 = vld [vmem:[%s3052_s5 + $0xa0] ss:$8 sps:$4 sm:$0xff]   ;;  %v2441_v61 = vld [vmem:[%s3052_s5 + $0xb4] ss:$8 sps:$4 sm:$0xff]   ;;  %v2445_v2 = vld [vmem:[%s3052_s5 + $0xb0] ss:$8 sps:$4 sm:$0xff]  }
  0x86   : > { %1828 = vmatpush1.bf16.msra.mxu1 %v2398_v32  ;;  %1788 = vmatprep.subr.bf16.mxu0 %v2399_v33  ;;  %v2440_v60 = vld [vmem:[%s3052_s5 + $0x1a0] ss:$8 sps:$4 sm:$0xff]   ;;  %v2443_v62 = vld [vmem:[%s3052_s5 + $0x1b4] ss:$8 sps:$4 sm:$0xff]   ;;  %v2446_v3 = vld [vmem:[%s3052_s5 + $0x1b0] ss:$8 sps:$4 sm:$0xff]  }
  0x87   : > { %1829 = vmatprep.subr.bf16.mxu1 %v2401_v34  ;;  %v879_v63 = vld [vmem:[%s3040_s26] sm:$0xff]  ;;  %v880_v1 = vld [vmem:[%s3040_s26 + $0x8] sm:$0xff]  ;;  %v2447_v5 = vld [vmem:[%s3052_s5 + $0xc4] ss:$8 sps:$4 sm:$0xff]   ;;  %p2309_p13 = scmp.ne.s32.totalorder %s2638_s14, 1 }
  0x88   : > { %v2157_v0 = vcombine.high %v879_v63, %v879_v63  ;;  %v2159_v4 = vcombine.high %v880_v1, %v880_v1  ;;  %v2449_v6 = vld [vmem:[%s3052_s5 + $0x1c4] ss:$8 sps:$4 sm:$0xff]   ;;  %v2451_v7 = vld [vmem:[%s3052_s5 + $0xc0] ss:$8 sps:$4 sm:$0xff]   ;;  %v2453_v9 = vld [vmem:[%s3052_s5 + $0xd4] ss:$8 sps:$4 sm:$0xff]   ;;  %v2156_v23 = vcombine.low %v879_v63, %v879_v63  ;;  %v2158_v24 = vcombine.low %v880_v1, %v880_v1 }
  0x89   : > { %1789 = vmatpush1.bf16.msra.mxu0 %v2403_v35  ;;  %v2452_v8 = vld [vmem:[%s3052_s5 + $0x1c0] ss:$8 sps:$4 sm:$0xff]   ;;  %v2455_v10 = vld [vmem:[%s3052_s5 + $0x1d4] ss:$8 sps:$4 sm:$0xff]   ;;  %v2457_v11 = vld [vmem:[%s3052_s5 + $0xd0] ss:$8 sps:$4 sm:$0xff]  }
  0x8a   : > { %1830 = vmatpush1.bf16.msra.mxu1 %v2404_v36  ;;  %1790 = vmatprep.subr.bf16.mxu0 %v2405_v37  ;;  %v2458_v12 = vld [vmem:[%s3052_s5 + $0x1d0] ss:$8 sps:$4 sm:$0xff]   ;;  %v2459_v13 = vld [vmem:[%s3052_s5 + $0xe4] ss:$8 sps:$4 sm:$0xff]   ;;  %v2463_v15 = vld [vmem:[%s3052_s5 + $0xe0] ss:$8 sps:$4 sm:$0xff]  }
  0x8b   : > { %1831 = vmatprep.subr.bf16.mxu1 %v2407_v38  ;;  %1812 = vmatprep.mubr.bf16.mxu0 %v2157_v0  ;;  %v2461_v14 = vld [vmem:[%s3052_s5 + $0x1e4] ss:$8 sps:$4 sm:$0xff]   ;;  %v2464_v16 = vld [vmem:[%s3052_s5 + $0x1e0] ss:$8 sps:$4 sm:$0xff]   ;;  %v2465_v17 = vld [vmem:[%s3052_s5 + $0xf4] ss:$8 sps:$4 sm:$0xff]  }
  0x8c   : > { %1853 = vmatprep.mubr.bf16.mxu1 %v2159_v4  ;;  %v2467_v18 = vld [vmem:[%s3052_s5 + $0x1f4] ss:$8 sps:$4 sm:$0xff]   ;;  %v2469_v19 = vld [vmem:[%s3052_s5 + $0xf0] ss:$8 sps:$4 sm:$0xff]   ;;  %v2477_v21 = vld [vmem:[%s3052_s5 + $0x204] ss:$8 sps:$4 sm:$0xff]  }
  0x8d   : > { %1791 = vmatpush1.bf16.msra.mxu0 %v2409_v39  ;;  %v2470_v20 = vld [vmem:[%s3052_s5 + $0x1f0] ss:$8 sps:$4 sm:$0xff]   ;;  %v2480_v22 = vld [vmem:[%s3052_s5 + $0x304] ss:$8 sps:$4 sm:$0xff]   ;;  %v2475_v25 = vld [vmem:[%s3052_s5 + $0x200] ss:$8 sps:$4 sm:$0xff]  }
  0x8e   : > { %1832 = vmatpush1.bf16.msra.mxu1 %v2410_v40  ;;  %1792 = vmatprep.subr.bf16.mxu0 %v2411_v41  ;;  %v2478_v26 = vld [vmem:[%s3052_s5 + $0x300] ss:$8 sps:$4 sm:$0xff]   ;;  %v2483_v27 = vld [vmem:[%s3052_s5 + $0x214] ss:$8 sps:$4 sm:$0xff]   ;;  %v2481_v29 = vld [vmem:[%s3052_s5 + $0x210] ss:$8 sps:$4 sm:$0xff]  }
  0x8f   : > { %1833 = vmatprep.subr.bf16.mxu1 %v2413_v42  ;;  %v2486_v28 = vld [vmem:[%s3052_s5 + $0x314] ss:$8 sps:$4 sm:$0xff]   ;;  %v2484_v30 = vld [vmem:[%s3052_s5 + $0x310] ss:$8 sps:$4 sm:$0xff]   ;;  %v2489_v31 = vld [vmem:[%s3052_s5 + $0x224] ss:$8 sps:$4 sm:$0xff]  }
  0x90   : > { %v2492_v32 = vld [vmem:[%s3052_s5 + $0x324] ss:$8 sps:$4 sm:$0xff]   ;;  %v2487_v33 = vld [vmem:[%s3052_s5 + $0x220] ss:$8 sps:$4 sm:$0xff]   ;;  %v2495_v35 = vld [vmem:[%s3052_s5 + $0x234] ss:$8 sps:$4 sm:$0xff]  }
  0x91   : > { %1793 = vmatpush1.bf16.msra.mxu0 %v2415_v43  ;;  %v2490_v34 = vld [vmem:[%s3052_s5 + $0x320] ss:$8 sps:$4 sm:$0xff]   ;;  %v2498_v36 = vld [vmem:[%s3052_s5 + $0x334] ss:$8 sps:$4 sm:$0xff]   ;;  %v2493_v37 = vld [vmem:[%s3052_s5 + $0x230] ss:$8 sps:$4 sm:$0xff]  }
  0x92   : > { %1834 = vmatpush1.bf16.msra.mxu1 %v2416_v44  ;;  %1794 = vmatprep.subr.bf16.mxu0 %v2417_v45  ;;  %v2496_v38 = vld [vmem:[%s3052_s5 + $0x330] ss:$8 sps:$4 sm:$0xff]   ;;  %v2501_v39 = vld [vmem:[%s3052_s5 + $0x244] ss:$8 sps:$4 sm:$0xff]   ;;  %v2499_v41 = vld [vmem:[%s3052_s5 + $0x240] ss:$8 sps:$4 sm:$0xff]  }
  0x93   : > { %1835 = vmatprep.subr.bf16.mxu1 %v2419_v46  ;;  %v2504_v40 = vld [vmem:[%s3052_s5 + $0x344] ss:$8 sps:$4 sm:$0xff]   ;;  %v2502_v42 = vld [vmem:[%s3052_s5 + $0x340] ss:$8 sps:$4 sm:$0xff]   ;;  %v2507_v43 = vld [vmem:[%s3052_s5 + $0x254] ss:$8 sps:$4 sm:$0xff]  }
  0x94   : > { %v2510_v44 = vld [vmem:[%s3052_s5 + $0x354] ss:$8 sps:$4 sm:$0xff]   ;;  %v2505_v45 = vld [vmem:[%s3052_s5 + $0x250] ss:$8 sps:$4 sm:$0xff]   ;;  %v2540_v4 = vld [vmem:[%s3052_s5 + $0x3a4] ss:$8 sps:$4 sm:$0xff]  }
  0x95   : > { %1795 = vmatpush1.bf16.msra.mxu0 %v2421_v47  ;;  %v2508_v46 = vld [vmem:[%s3052_s5 + $0x350] ss:$8 sps:$4 sm:$0xff]   ;;  %v2513_v47 = vld [vmem:[%s3052_s5 + $0x264] ss:$8 sps:$4 sm:$0xff]   ;;  %v2531_v63 = vld [vmem:[%s3052_s5 + $0x294] ss:$8 sps:$4 sm:$0xff]  }
  0x96   : > { %1836 = vmatpush1.bf16.msra.mxu1 %v2422_v48  ;;  %1796 = vmatprep.subr.bf16.mxu0 %v2423_v49  ;;  %v2516_v48 = vld [vmem:[%s3052_s5 + $0x364] ss:$8 sps:$4 sm:$0xff]   ;;  %v2534_v0 = vld [vmem:[%s3052_s5 + $0x394] ss:$8 sps:$4 sm:$0xff]   ;;  %v2529_v1 = vld [vmem:[%s3052_s5 + $0x290] ss:$8 sps:$4 sm:$0xff]  }
  0x97   : > { %1837 = vmatprep.subr.bf16.mxu1 %v2425_v50  ;;  %v3148_v49 = vld [vmem:[%s3040_s26 + $0x10] sm:$0xff] }
  0x98   : > { %v2511_v50 = vld [vmem:[%s3052_s5 + $0x260] ss:$8 sps:$4 sm:$0xff]  }
  0x99   : > { %1797 = vmatpush1.bf16.msra.mxu0 %v2427_v51  ;;  %v2514_v51 = vld [vmem:[%s3052_s5 + $0x360] ss:$8 sps:$4 sm:$0xff]  }
  0x9a   : > { %1838 = vmatpush1.bf16.msra.mxu1 %v2428_v52  ;;  %1798 = vmatprep.subr.bf16.mxu0 %v2429_v53  ;;  %v2161_v52 = vcombine.high %v3148_v49, %v3148_v49  ;;  %v3155_v53 = vld [vmem:[%s3040_s26 + $0x18] sm:$0xff] }
  0x9b   : > { %1839 = vmatprep.subr.bf16.mxu1 %v2431_v54  ;;  %v2519_v54 = vld [vmem:[%s3052_s5 + $0x274] ss:$8 sps:$4 sm:$0xff]  }
  0x9d   : > { %1799 = vmatpush1.bf16.msra.mxu0 %v2433_v55  ;;  %v2163_v55 = vcombine.high %v3155_v53, %v3155_v53 }
  0x9e   : > { %1840 = vmatpush1.bf16.msra.mxu1 %v2434_v56  ;;  %1800 = vmatprep.subr.bf16.mxu0 %v2435_v57  ;;  %v2522_v56 = vld [vmem:[%s3052_s5 + $0x374] ss:$8 sps:$4 sm:$0xff]   ;;  %v2517_v57 = vld [vmem:[%s3052_s5 + $0x270] ss:$8 sps:$4 sm:$0xff]  }
  0x9f   : > { %1841 = vmatprep.subr.bf16.mxu1 %v2437_v58  ;;  %v2520_v58 = vld [vmem:[%s3052_s5 + $0x370] ss:$8 sps:$4 sm:$0xff]  }
  0xa1   : > { %1801 = vmatpush1.bf16.msra.mxu0 %v2439_v59  ;;  %v2525_v59 = vld [vmem:[%s3052_s5 + $0x284] ss:$8 sps:$4 sm:$0xff]  }
  0xa2   : > { %1842 = vmatpush1.bf16.msra.mxu1 %v2440_v60  ;;  %1802 = vmatprep.subr.bf16.mxu0 %v2441_v61  ;;  %v2528_v60 = vld [vmem:[%s3052_s5 + $0x384] ss:$8 sps:$4 sm:$0xff]   ;;  %v2523_v61 = vld [vmem:[%s3052_s5 + $0x280] ss:$8 sps:$4 sm:$0xff]  }
  0xa3   : > { %1843 = vmatprep.subr.bf16.mxu1 %v2443_v62  ;;  %v2526_v62 = vld [vmem:[%s3052_s5 + $0x380] ss:$8 sps:$4 sm:$0xff]  }
  0xa5   : > { %1803 = vmatpush1.bf16.msra.mxu0 %v2445_v2  ;;  %v2532_v2 = vld [vmem:[%s3052_s5 + $0x390] ss:$8 sps:$4 sm:$0xff]  }
  0xa6   : > { %1844 = vmatpush1.bf16.msra.mxu1 %v2446_v3  ;;  %1804 = vmatprep.subr.bf16.mxu0 %v2447_v5  ;;  %v2537_v3 = vld [vmem:[%s3052_s5 + $0x2a4] ss:$8 sps:$4 sm:$0xff]   ;;  %v2535_v5 = vld [vmem:[%s3052_s5 + $0x2a0] ss:$8 sps:$4 sm:$0xff]  }
  0xa7   : > { %1845 = vmatprep.subr.bf16.mxu1 %v2449_v6  ;;  %v2538_v6 = vld [vmem:[%s3052_s5 + $0x3a0] ss:$8 sps:$4 sm:$0xff]  }
  0xa9   : > { %1805 = vmatpush1.bf16.msra.mxu0 %v2451_v7  ;;  %v2543_v7 = vld [vmem:[%s3052_s5 + $0x2b4] ss:$8 sps:$4 sm:$0xff]  }
  0xaa   : > { %1846 = vmatpush1.bf16.msra.mxu1 %v2452_v8  ;;  %1806 = vmatprep.subr.bf16.mxu0 %v2453_v9  ;;  %v2546_v8 = vld [vmem:[%s3052_s5 + $0x3b4] ss:$8 sps:$4 sm:$0xff]   ;;  %v2541_v9 = vld [vmem:[%s3052_s5 + $0x2b0] ss:$8 sps:$4 sm:$0xff]  }
  0xab   : > { %1847 = vmatprep.subr.bf16.mxu1 %v2455_v10  ;;  %v2544_v10 = vld [vmem:[%s3052_s5 + $0x3b0] ss:$8 sps:$4 sm:$0xff]  }
  0xad   : > { %1807 = vmatpush1.bf16.msra.mxu0 %v2457_v11  ;;  %v2549_v11 = vld [vmem:[%s3052_s5 + $0x2c4] ss:$8 sps:$4 sm:$0xff]  }
  0xae   : > { %1848 = vmatpush1.bf16.msra.mxu1 %v2458_v12  ;;  %1808 = vmatprep.subr.bf16.mxu0 %v2459_v13  ;;  %v2552_v12 = vld [vmem:[%s3052_s5 + $0x3c4] ss:$8 sps:$4 sm:$0xff]   ;;  %v2547_v13 = vld [vmem:[%s3052_s5 + $0x2c0] ss:$8 sps:$4 sm:$0xff]  }
  0xaf   : > { %1849 = vmatprep.subr.bf16.mxu1 %v2461_v14  ;;  %v2550_v14 = vld [vmem:[%s3052_s5 + $0x3c0] ss:$8 sps:$4 sm:$0xff]  }
  0xb1   : > { %1809 = vmatpush1.bf16.msra.mxu0 %v2463_v15  ;;  %v2555_v15 = vld [vmem:[%s3052_s5 + $0x2d4] ss:$8 sps:$4 sm:$0xff]  }
  0xb2   : > { %1850 = vmatpush1.bf16.msra.mxu1 %v2464_v16  ;;  %1810 = vmatprep.subr.bf16.mxu0 %v2465_v17  ;;  %v2558_v16 = vld [vmem:[%s3052_s5 + $0x3d4] ss:$8 sps:$4 sm:$0xff]   ;;  %v2553_v17 = vld [vmem:[%s3052_s5 + $0x2d0] ss:$8 sps:$4 sm:$0xff]  }
  0xb3   : > { %1851 = vmatprep.subr.bf16.mxu1 %v2467_v18  ;;  %v2556_v18 = vld [vmem:[%s3052_s5 + $0x3d0] ss:$8 sps:$4 sm:$0xff]  }
  0xb5   : > { %1811 = vmatpush1.bf16.msra.mxu0 %v2469_v19  ;;  %v2561_v19 = vld [vmem:[%s3052_s5 + $0x2e4] ss:$8 sps:$4 sm:$0xff]  }
  0xb6   : > { %1852 = vmatpush1.bf16.msra.mxu1 %v2470_v20  ;;  %1862 = vmatprep.subr.bf16.mxu0 %v2477_v21  ;;  %v2564_v20 = vld [vmem:[%s3052_s5 + $0x3e4] ss:$8 sps:$4 sm:$0xff]   ;;  %v2559_v21 = vld [vmem:[%s3052_s5 + $0x2e0] ss:$8 sps:$4 sm:$0xff]  }
  0xb7   : > { %1903 = vmatprep.subr.bf16.mxu1 %v2480_v22  ;;  %v2562_v22 = vld [vmem:[%s3052_s5 + $0x3e0] ss:$8 sps:$4 sm:$0xff]  }
  0xb8   : > { %1813 = vmatmul.mubr.bf16.vlgmr.msra.gmra.mrb[0].mxu0 %v2156_v23  ;;  %v2567_v23 = vld [vmem:[%s3052_s5 + $0x2f4] ss:$8 sps:$4 sm:$0xff]  }
  0xb9   : > { %1854 = vmatmul.mubr.bf16.vlgmr.msra.gmra.mrb[0].mxu1 %v2158_v24  ;;  %1863 = vmatpush1.bf16.msra.mxu0 %v2475_v25  ;;  %v2570_v24 = vld [vmem:[%s3052_s5 + $0x3f4] ss:$8 sps:$4 sm:$0xff]   ;;  %v2565_v25 = vld [vmem:[%s3052_s5 + $0x2f0] ss:$8 sps:$4 sm:$0xff]  }
  0xba   : > { %1904 = vmatpush1.bf16.msra.mxu1 %v2478_v26  ;;  %1864 = vmatprep.subr.bf16.mxu0 %v2483_v27  ;;  %v2568_v26 = vld [vmem:[%s3052_s5 + $0x3f0] ss:$8 sps:$4 sm:$0xff]   ;;  %v2575_v27 = vld [vmem:[%s3052_s5 + $0x404] ss:$8 sps:$4 sm:$0xff]  }
  0xbb   : > { %1905 = vmatprep.subr.bf16.mxu1 %v2486_v28  ;;  %1894 = vmatprep.mubr.bf16.mxu0 %v2161_v52  ;;  %v2160_v28 = vcombine.low %v3148_v49, %v3148_v49 }
  0xbc   : > { %1935 = vmatprep.mubr.bf16.mxu1 %v2163_v55 }
  0xbd   : > { %1865 = vmatpush1.bf16.msra.mxu0 %v2481_v29  ;;  %v2162_v29 = vcombine.low %v3155_v53, %v3155_v53 }
  0xbe   : > { %1906 = vmatpush1.bf16.msra.mxu1 %v2484_v30  ;;  %1866 = vmatprep.subr.bf16.mxu0 %v2489_v31  ;;  %v2573_v30 = vld [vmem:[%s3052_s5 + $0x400] ss:$8 sps:$4 sm:$0xff]   ;;  %v2580_v31 = vld [vmem:[%s3052_s5 + $0x414] ss:$8 sps:$4 sm:$0xff]  }
  0xbf   : > { %1907 = vmatprep.subr.bf16.mxu1 %v2492_v32  ;;  %v2578_v32 = vld [vmem:[%s3052_s5 + $0x410] ss:$8 sps:$4 sm:$0xff]  }
  0xc1   : > { %1867 = vmatpush1.bf16.msra.mxu0 %v2487_v33  ;;  %v2657_v33 = vmov 0  }
  0xc2   : > { %1908 = vmatpush1.bf16.msra.mxu1 %v2490_v34  ;;  %1868 = vmatprep.subr.bf16.mxu0 %v2495_v35  ;;  %v2583_v34 = vld [vmem:[%s3052_s5 + $0x424] ss:$8 sps:$4 sm:$0xff]   ;;  %v2581_v35 = vld [vmem:[%s3052_s5 + $0x420] ss:$8 sps:$4 sm:$0xff]  }
  0xc3   : > { %1909 = vmatprep.subr.bf16.mxu1 %v2498_v36  ;;  %v2586_v36 = vld [vmem:[%s3052_s5 + $0x434] ss:$8 sps:$4 sm:$0xff]  }
  0xc5   : > { %1869 = vmatpush1.bf16.msra.mxu0 %v2493_v37  ;;  %v2584_v37 = vld [vmem:[%s3052_s5 + $0x430] ss:$8 sps:$4 sm:$0xff]  }
  0xc6   : > { %1910 = vmatpush1.bf16.msra.mxu1 %v2496_v38  ;;  %1870 = vmatprep.subr.bf16.mxu0 %v2501_v39  ;;  %v2589_v38 = vld [vmem:[%s3052_s5 + $0x444] ss:$8 sps:$4 sm:$0xff]   ;;  %v2587_v39 = vld [vmem:[%s3052_s5 + $0x440] ss:$8 sps:$4 sm:$0xff]  }
  0xc7   : > { %1911 = vmatprep.subr.bf16.mxu1 %v2504_v40  ;;  %v2592_v40 = vld [vmem:[%s3052_s5 + $0x454] ss:$8 sps:$4 sm:$0xff]  }
  0xc9   : > { %1871 = vmatpush1.bf16.msra.mxu0 %v2499_v41  ;;  %v2590_v41 = vld [vmem:[%s3052_s5 + $0x450] ss:$8 sps:$4 sm:$0xff]  }
  0xca   : > { %1912 = vmatpush1.bf16.msra.mxu1 %v2502_v42  ;;  %1872 = vmatprep.subr.bf16.mxu0 %v2507_v43  ;;  %v2595_v42 = vld [vmem:[%s3052_s5 + $0x464] ss:$8 sps:$4 sm:$0xff]   ;;  %v2593_v43 = vld [vmem:[%s3052_s5 + $0x460] ss:$8 sps:$4 sm:$0xff]  }
  0xcb   : > { %1913 = vmatprep.subr.bf16.mxu1 %v2510_v44  ;;  %v2598_v44 = vld [vmem:[%s3052_s5 + $0x474] ss:$8 sps:$4 sm:$0xff]  }
  0xcd   : > { %1873 = vmatpush1.bf16.msra.mxu0 %v2505_v45  ;;  %v2596_v45 = vld [vmem:[%s3052_s5 + $0x470] ss:$8 sps:$4 sm:$0xff]  }
  0xce   : > { %1914 = vmatpush1.bf16.msra.mxu1 %v2508_v46  ;;  %1874 = vmatprep.subr.bf16.mxu0 %v2513_v47  ;;  %v2599_v46 = vld [vmem:[%s3040_s26 + $0x20] ss:$0 sps:$4 sm:$0xff]  }
  0xcf   : > { %1915 = vmatprep.subr.bf16.mxu1 %v2516_v48 }
  0xd1   : > { %1875 = vmatpush1.bf16.msra.mxu0 %v2511_v50 }
  0xd2   : > { %1916 = vmatpush1.bf16.msra.mxu1 %v2514_v51  ;;  %1876 = vmatprep.subr.bf16.mxu0 %v2519_v54 }
  0xd3   : > { %1917 = vmatprep.subr.bf16.mxu1 %v2522_v56 }
  0xd5   : > { %1877 = vmatpush1.bf16.msra.mxu0 %v2517_v57 }
  0xd6   : > { %1918 = vmatpush1.bf16.msra.mxu1 %v2520_v58  ;;  %1878 = vmatprep.subr.bf16.mxu0 %v2525_v59 }
  0xd7   : > { %1919 = vmatprep.subr.bf16.mxu1 %v2528_v60 }
  0xd9   : > { %1879 = vmatpush1.bf16.msra.mxu0 %v2523_v61 }
  0xda   : > { %1920 = vmatpush1.bf16.msra.mxu1 %v2526_v62  ;;  %1880 = vmatprep.subr.bf16.mxu0 %v2531_v63 }
  0xdb   : > { %1921 = vmatprep.subr.bf16.mxu1 %v2534_v0 }
  0xdd   : > { %1881 = vmatpush1.bf16.msra.mxu0 %v2529_v1 }
  0xde   : > { %1922 = vmatpush1.bf16.msra.mxu1 %v2532_v2  ;;  %1882 = vmatprep.subr.bf16.mxu0 %v2537_v3 }
  0xdf   : > { %1923 = vmatprep.subr.bf16.mxu1 %v2540_v4 }
  0xe1   : > { %1883 = vmatpush1.bf16.msra.mxu0 %v2535_v5  ;;  %v877_v5 = vld [vmem:[#allocation2] sm:$0xff] }
  0xe2   : > { %1924 = vmatpush1.bf16.msra.mxu1 %v2538_v6  ;;  %1884 = vmatprep.subr.bf16.mxu0 %v2543_v7 }
  0xe3   : > { %1925 = vmatprep.subr.bf16.mxu1 %v2546_v8  ;;  %v878_v8 = vld [vmem:[#allocation2 + $0x8] sm:$0xff] }
  0xe5   : > { %1885 = vmatpush1.bf16.msra.mxu0 %v2541_v9 }
  0xe6   : > { %1926 = vmatpush1.bf16.msra.mxu1 %v2544_v10  ;;  %1886 = vmatprep.subr.bf16.mxu0 %v2549_v11 }
  0xe7   : > { %1927 = vmatprep.subr.bf16.mxu1 %v2552_v12 }
  0xe9   : > { %1887 = vmatpush1.bf16.msra.mxu0 %v2547_v13 }
  0xea   : > { %1928 = vmatpush1.bf16.msra.mxu1 %v2550_v14  ;;  %1888 = vmatprep.subr.bf16.mxu0 %v2555_v15  ;;  %v1997_v15 = vlaneseq (!%p2309_p13) }
  0xeb   : > { %1929 = vmatprep.subr.bf16.mxu1 %v2558_v16 }
  0xec   : > { %v1998_v16 = vshrl.u32 (!%p2309_p13), %v1997_v15, 7 }
  0xed   : > { %1889 = vmatpush1.bf16.msra.mxu0 %v2553_v17  ;;  %v1995_v17 = vld [vmem:[%s858_s12] sm:$0x3] (!%p2309_p13) }
  0xee   : > { %1930 = vmatpush1.bf16.msra.mxu1 %v2556_v18  ;;  %1890 = vmatprep.subr.bf16.mxu0 %v2561_v19  ;;  %v1999_v18 = vsub.s32 (!%p2309_p13), 0, %v1998_v16  ;;  %v2003_v19 = vsub.s32 (!%p2309_p13), 1, %v1998_v16 }
  0xef   : > { %1931 = vmatprep.subr.bf16.mxu1 %v2564_v20 }
  0xf1   : > { %1891 = vmatpush1.bf16.msra.mxu0 %v2559_v21 }
  0xf2   : > { %1932 = vmatpush1.bf16.msra.mxu1 %v2562_v22  ;;  %1892 = vmatprep.subr.bf16.mxu0 %v2567_v23  ;;  %v2000_v22 = vrot.slane (!%p2309_p13), %v1995_v17, %v1999_v18  ;;  %v2004_v23 = vrot.slane (!%p2309_p13), %v1995_v17, %v2003_v19 }
  0xf3   : > { %1933 = vmatprep.subr.bf16.mxu1 %v2570_v24 }
  0xf5   : > { %1893 = vmatpush1.bf16.msra.mxu0 %v2565_v25 }
  0xf6   : > { %1934 = vmatpush1.bf16.msra.mxu1 %v2568_v26  ;;  %1944 = vmatprep.subr.bf16.mxu0 %v2575_v27 }
  0xf8   : > { %1895 = vmatmul.mubr.bf16.vlgmr.msra.gmra.mrb[4].mxu0 %v2160_v28 }
  0xf9   : > { %1936 = vmatmul.mubr.bf16.vlgmr.msra.gmra.mrb[4].mxu1 %v2162_v29  ;;  %1945 = vmatpush1.bf16.msra.mxu0 %v2573_v30 }
  0xfa   : > { %1976 = vmatprep.mubr.bf16.mxu0 %v2657_v33  ;;  %1946 = vmatprep.subr.bf16.mxu0 %v2580_v31 }
  0xfd   : > { %1947 = vmatpush1.bf16.msra.mxu0 %v2578_v32 }
  0xfe   : > { %1948 = vmatprep.subr.bf16.mxu0 %v2583_v34 }
 0x101   : > { %1949 = vmatpush1.bf16.msra.mxu0 %v2581_v35 }
 0x102   : > { %1950 = vmatprep.subr.bf16.mxu0 %v2586_v36 }
 0x105   : > { %1951 = vmatpush1.bf16.msra.mxu0 %v2584_v37 }
 0x106   : > { %1952 = vmatprep.subr.bf16.mxu0 %v2589_v38 }
 0x109   : > { %1953 = vmatpush1.bf16.msra.mxu0 %v2587_v39 }
 0x10a   : > { %1954 = vmatprep.subr.bf16.mxu0 %v2592_v40 }
 0x10d   : > { %1955 = vmatpush1.bf16.msra.mxu0 %v2590_v41 }
 0x10e   : > { %1956 = vmatprep.subr.bf16.mxu0 %v2595_v42 }
 0x111   : > { %1957 = vmatpush1.bf16.msra.mxu0 %v2593_v43 }
 0x112   : > { %1958 = vmatprep.subr.bf16.mxu0 %v2598_v44 }
 0x115   : > { %1959 = vmatpush1.bf16.msra.mxu0 %v2596_v45 }
 0x118   : > { %1977 = vmatmul.mubr.bf16.vlgmr.msra.gmra.mrb[8].mxu0 %v2599_v46 }
 0x18b   : > { %v1814_v47 = vpop.f32.mrb[0].mxu0 }
 0x18c   : > { %v1855_v48 = vpop.f32.mrb[0].mxu1  ;;  %v1816_v50 = vpop.f32.mrb[1].mxu0 }
 0x18d   : > { %v1856_v49 = vadd.f32 %v1855_v48, %v1814_v47  ;;  %v1857_v51 = vpop.f32.mrb[1].mxu1  ;;  %v1818_v53 = vpop.f32.mrb[2].mxu0 }
 0x18e   : > { %v1858_v52 = vadd.f32 %v1857_v51, %v1816_v50  ;;  %v1859_v54 = vpop.f32.mrb[2].mxu1  ;;  %v1819_v55 = vpop.f32.mrb[3].mxu0 }
 0x18f   : > { %v1860_v56 = vpop.f32.mrb[3].mxu1 }
 0x1cb   : > { %v1896_v57 = vpop.f32.mrb[4].mxu0 }
 0x1cc   : > { %v1937_v58 = vpop.f32.mrb[4].mxu1  ;;  %v1897_v59 = vadd.f32 %v1896_v57, %v1856_v49  ;;  %v1898_v60 = vpop.f32.mrb[5].mxu0 }
 0x1cd   : > { %v1939_v61 = vpop.f32.mrb[5].mxu1  ;;  %v1899_v62 = vadd.f32 %v1898_v60, %v1858_v52  ;;  %v1900_v63 = vpop.f32.mrb[6].mxu0 }
 0x1ce   : > { %v1941_v0 = vpop.f32.mrb[6].mxu1  ;;  %v1938_v1 = vadd.f32 %v1937_v58, %v1897_v59  ;;  %v1901_v2 = vpop.f32.mrb[7].mxu0 }
 0x1cf   : > { %v1942_v3 = vpop.f32.mrb[7].mxu1  ;;  %v1940_v4 = vadd.f32 %v1939_v61, %v1899_v62 }
 0x1eb   : > { %v1978_v6 = vpop.f32.mrb[8].mxu0  ;;  %1992 = sbr.rel (%p2309_p13) target bundleno = 512 (0x200), region = 78 }
 0x1ec   : > { %v1979_v7 = vadd.f32 %v1978_v6, %v1938_v1  ;;  %v1980_v9 = vpop.f32.mrb[9].mxu0 }
 0x1ed   : > { %v1981_v10 = vadd.f32 %v1980_v9, %v1940_v4  ;;  %v1982_v11 = vpop.f32.mrb[10].mxu0 }
 0x1ee   : > { %v1985_v12 = vadd.f32 %v1979_v7, %v877_v5  ;;  %v1983_v13 = vpop.f32.mrb[11].mxu0 }
 0x1ef   : > { %v1986_v14 = vadd.f32 %v1981_v10, %v878_v8 }
 0x1f0   : > { %1987 = vst [vmem:[#allocation2] sm:$0xff] %v1985_v12 }
 0x1f1   : > { %1988 = vst [vmem:[#allocation2 + $0x8] sm:$0xff] %v1986_v14 }
 0x1f7   : > { %v1993_v20 = vld [vmem:[#allocation2] sm:$0xff] }
 0x1f8   : > { %v1994_v21 = vld [vmem:[#allocation2 + $0x8] sm:$0xff]  ;;  %v2007_v24 = vadd.f32 %v2000_v22, %v1993_v20 }
 0x1f9   : > { %v2008_v25 = vadd.f32 %v2004_v23, %v1994_v21 }
 0x1fa   : > { %v2009_v26 = vmax.f32 %v2007_v24, 0.0 }
 0x1fb   : > { %v2010_v27 = vmax.f32 %v2008_v25, 0.0 }
 0x1fd   : > { %v2314_v28 = vpack.c.bf16 %v2010_v27, %v2009_v26 }
 0x1ff   : > { %2019 = vst [vmem:[%s3050_s4] sm:$0xff] %v2314_v28 }
 0x200 PF: > { %s13_s18 = sadd.s32 1, %s2654_s18   ;;  %s3248_s12 = smov %s2634_s13 }
 0x201   : > { %p10_p0 = scmp.ge.s32.totalorder %s13_s18, 6   ;;  %s3249_s13 = smov %s2729_s25 }
 0x202   : > { %s3250_s14 = smov %s2646_s16  ;;  %s3251_s15 = smov %s2650_s17 }
 0x203   : > { %s3252_s16 = smov %s3255_s19  ;;  %s3253_s17 = smov %s3259_s20 }
 0x204   :  { %12 = sbr.rel (!%p10_p0) target bundleno = 4 (0x4), region = 119 }

// kernel: resnet_forward.25
= control target key start
LH: loop header
LB: loop body
LE: loop exit
PB: predicated region body
PF: predicated region fallthrough
CT: control target
= control target key end

     0   :  { %s3426_s15 = smov 0   ;;  %s3428_s16 = smov 0   ;;  %s4155_s0 = inlined_call_operand.vmem [shape: bf16[8,4608], index: 0, kind: input, shape index: {}]   ;;  %s4156_s1 = inlined_call_operand.vmem [shape: bf16[4608,512], index: 1, kind: input, shape index: {}]   ;;  %s4157_s2 = inlined_call_operand.vmem [shape: f32[1,512], index: 2, kind: input, shape index: {}]   ;;  %s4158_s3 = inlined_call_operand.vmem [shape: bf16[8,512], index: 3, kind: input, shape index: {}]   ;;  %s4159_s4 = inlined_call_operand.vmem [shape: bf16[8,512], index: 4, kind: output, shape index: {}]  }
   0x1   :  { %s3430_s17 = smov 0   ;;  %s3432_s18 = smov 0  }
   0x2   :  { %s3434_s19 = smov 0   ;;  %s3436_s20 = smov 0  }
   0x3   :  { %s3438_s21 = smov 0  }
   0x4 LB: > { %s26_s22 = sadd.s32 1, %s3390_s19  ;;  %s29_s23 = sadd.s32 1, %s3394_s20  ;;  %s3398_s21 = sphi %s3438_s21, %s14_s21   ;;  %s3394_s20 = sphi %s3436_s20, %s4165_s20   ;;  %s3390_s19 = sphi %s3434_s19, %s4164_s19   ;;  %s3386_s18 = sphi %s3432_s18, %s4163_s18   ;;  %s3382_s17 = sphi %s3430_s17, %s4162_s17   ;;  %s3378_s16 = sphi %s3428_s16, %s4161_s16   ;;  %s3374_s15 = sphi %s3426_s15, %s4160_s15  }
   0x5   : > { %p27_p0 = scmp.ge.s32.totalorder %s26_s22, 3  ;;  %p77_p1 = scmp.ne.s32.totalorder %s3378_s16, %s3374_s15 }
   0x6   : > { %p78_p2 = scmp.eq.s32.totalorder %s3398_s21, 0  ;;  %s70_s27 = sadd.s32 1, %s3378_s16 }
   0x7   : > { %s4167_s22 = smov (%p27_p0, %s26_s22), 0  ;;  %s4169_s23 = smov (!%p27_p0, %s29_s23), %s3394_s20 }
   0x8   : > { %p79_p3 = por %p78_p2, %p77_p1  ;;  %p31_p4 = scmp.ge.s32.totalorder %s4169_s23, 2 }
   0x9   : > { %s65_s24 = ssub.s32 %s3390_s19, %s4167_s22  ;;  %p2763_p6 = scmp.ge.s32.totalorder %s3398_s21, 6 }
   0xa   : > { %s4171_s23 = smov (%p31_p4, %s4169_s23), 0 }
   0xb   : > { %s66_s25 = ssub.s32 %s3394_s20, %s4171_s23  ;;  %185 = sbr.rel (%p2763_p6) target bundleno = 122 (0x7a), region = 16 }
   0xc   : > { %s67_s26 = sor.u32 %s66_s25, %s65_s24 }
   0xd   : > { %p68_p5 = scmp.eq.s32.totalorder %s67_s26, 0 }
   0xf   : > { %s3477_s28 = scalar_select %p68_p5, %s3378_s16, %s70_s27  }
  0x12   : > { %201 = sbr.rel (!%p79_p3) target bundleno = 122 (0x7a), region = 24  ;;  %s203_s29 = sand.u32 (%p79_p3), 1, %s3378_s16  }
  0x13   : > { %s2985_s30 = smul.u32 (%p79_p3), 1536, %s203_s29  ;;  %s2764_s5 = sshll.u32 (%p79_p3), %s3394_s20, 1 }
  0x14   : > { %s2983_s6 = smul.u32 (%p79_p3), 768, %s3390_s19 }
  0x15   : > { %s3491_s12 = scalar_lea.vmem (%p79_p3), [#allocation3], %s2985_s30 }
  0x16   : > { %s209_s7 = sadd.s32 (%p79_p3), %s2983_s6, %s2764_s5 }
  0x17   : > { %s2766_s8 = sshll.u32 (%p79_p3), %s209_s7, 2 }
  0x18   : > { %s3486_s11 = scalar_lea.vmem (%p79_p3), %s4156_s1, %s2766_s8 }
  0x19   : > { %v621_v0 = vld [vmem:[%s3486_s11] sm:$0xff]  ;;  %v623_v1 = vld [vmem:[%s3486_s11 + $0x10] sm:$0xff] }
  0x1a   : > { %v625_v2 = vld [vmem:[%s3486_s11 + $0x20] sm:$0xff]  ;;  %622 = vst [vmem:[%s3491_s12] sm:$0xff] %v621_v0  ;;  %624 = vst [vmem:[%s3491_s12 + $0x8] sm:$0xff] %v623_v1  ;;  %v627_v3 = vld [vmem:[%s3486_s11 + $0x30] sm:$0xff] }
  0x1b   : > { %626 = vst [vmem:[%s3491_s12 + $0x10] sm:$0xff] %v625_v2  ;;  %v629_v4 = vld [vmem:[%s3486_s11 + $0x40] sm:$0xff]  ;;  %v631_v5 = vld [vmem:[%s3486_s11 + $0x50] sm:$0xff]  ;;  %628 = vst [vmem:[%s3491_s12 + $0x18] sm:$0xff] %v627_v3 }
  0x1c   : > { %630 = vst [vmem:[%s3491_s12 + $0x20] sm:$0xff] %v629_v4  ;;  %632 = vst [vmem:[%s3491_s12 + $0x28] sm:$0xff] %v631_v5  ;;  %v633_v6 = vld [vmem:[%s3486_s11 + $0x60] sm:$0xff]  ;;  %v635_v7 = vld [vmem:[%s3486_s11 + $0x70] sm:$0xff] }
  0x1d   : > { %v637_v8 = vld [vmem:[%s3486_s11 + $0x80] sm:$0xff]  ;;  %634 = vst [vmem:[%s3491_s12 + $0x30] sm:$0xff] %v633_v6  ;;  %636 = vst [vmem:[%s3491_s12 + $0x38] sm:$0xff] %v635_v7  ;;  %v639_v9 = vld [vmem:[%s3486_s11 + $0x90] sm:$0xff] }
  0x1e   : > { %638 = vst [vmem:[%s3491_s12 + $0x40] sm:$0xff] %v637_v8  ;;  %v641_v10 = vld [vmem:[%s3486_s11 + $0xa0] sm:$0xff]  ;;  %v643_v11 = vld [vmem:[%s3486_s11 + $0xb0] sm:$0xff]  ;;  %640 = vst [vmem:[%s3491_s12 + $0x48] sm:$0xff] %v639_v9 }
  0x1f   : > { %642 = vst [vmem:[%s3491_s12 + $0x50] sm:$0xff] %v641_v10  ;;  %644 = vst [vmem:[%s3491_s12 + $0x58] sm:$0xff] %v643_v11  ;;  %v645_v12 = vld [vmem:[%s3486_s11 + $0xc0] sm:$0xff]  ;;  %v647_v13 = vld [vmem:[%s3486_s11 + $0xd0] sm:$0xff] }
  0x20   : > { %v649_v14 = vld [vmem:[%s3486_s11 + $0xe0] sm:$0xff]  ;;  %646 = vst [vmem:[%s3491_s12 + $0x60] sm:$0xff] %v645_v12  ;;  %648 = vst [vmem:[%s3491_s12 + $0x68] sm:$0xff] %v647_v13  ;;  %v651_v15 = vld [vmem:[%s3486_s11 + $0xf0] sm:$0xff] }
  0x21   : > { %650 = vst [vmem:[%s3491_s12 + $0x70] sm:$0xff] %v649_v14  ;;  %v653_v16 = vld [vmem:[%s3486_s11 + $0x100] sm:$0xff]  ;;  %v655_v17 = vld [vmem:[%s3486_s11 + $0x110] sm:$0xff]  ;;  %652 = vst [vmem:[%s3491_s12 + $0x78] sm:$0xff] %v651_v15 }
  0x22   : > { %654 = vst [vmem:[%s3491_s12 + $0x80] sm:$0xff] %v653_v16  ;;  %656 = vst [vmem:[%s3491_s12 + $0x88] sm:$0xff] %v655_v17  ;;  %v657_v18 = vld [vmem:[%s3486_s11 + $0x120] sm:$0xff]  ;;  %v659_v19 = vld [vmem:[%s3486_s11 + $0x130] sm:$0xff] }
  0x23   : > { %v661_v20 = vld [vmem:[%s3486_s11 + $0x140] sm:$0xff]  ;;  %658 = vst [vmem:[%s3491_s12 + $0x90] sm:$0xff] %v657_v18  ;;  %660 = vst [vmem:[%s3491_s12 + $0x98] sm:$0xff] %v659_v19  ;;  %v663_v21 = vld [vmem:[%s3486_s11 + $0x150] sm:$0xff] }
  0x24   : > { %662 = vst [vmem:[%s3491_s12 + $0xa0] sm:$0xff] %v661_v20  ;;  %v665_v22 = vld [vmem:[%s3486_s11 + $0x160] sm:$0xff]  ;;  %v667_v23 = vld [vmem:[%s3486_s11 + $0x170] sm:$0xff]  ;;  %664 = vst [vmem:[%s3491_s12 + $0xa8] sm:$0xff] %v663_v21 }
  0x25   : > { %666 = vst [vmem:[%s3491_s12 + $0xb0] sm:$0xff] %v665_v22  ;;  %668 = vst [vmem:[%s3491_s12 + $0xb8] sm:$0xff] %v667_v23  ;;  %v669_v24 = vld [vmem:[%s3486_s11 + $0x180] sm:$0xff]  ;;  %v671_v25 = vld [vmem:[%s3486_s11 + $0x190] sm:$0xff] }
  0x26   : > { %v673_v26 = vld [vmem:[%s3486_s11 + $0x1a0] sm:$0xff]  ;;  %670 = vst [vmem:[%s3491_s12 + $0xc0] sm:$0xff] %v669_v24  ;;  %672 = vst [vmem:[%s3491_s12 + $0xc8] sm:$0xff] %v671_v25  ;;  %v675_v27 = vld [vmem:[%s3486_s11 + $0x1b0] sm:$0xff] }
  0x27   : > { %674 = vst [vmem:[%s3491_s12 + $0xd0] sm:$0xff] %v673_v26  ;;  %v677_v28 = vld [vmem:[%s3486_s11 + $0x1c0] sm:$0xff]  ;;  %v679_v29 = vld [vmem:[%s3486_s11 + $0x1d0] sm:$0xff]  ;;  %676 = vst [vmem:[%s3491_s12 + $0xd8] sm:$0xff] %v675_v27 }
  0x28   : > { %678 = vst [vmem:[%s3491_s12 + $0xe0] sm:$0xff] %v677_v28  ;;  %680 = vst [vmem:[%s3491_s12 + $0xe8] sm:$0xff] %v679_v29  ;;  %v681_v30 = vld [vmem:[%s3486_s11 + $0x1e0] sm:$0xff]  ;;  %v683_v31 = vld [vmem:[%s3486_s11 + $0x1f0] sm:$0xff] }
  0x29   : > { %v685_v32 = vld [vmem:[%s3486_s11 + $0x200] sm:$0xff]  ;;  %682 = vst [vmem:[%s3491_s12 + $0xf0] sm:$0xff] %v681_v30  ;;  %684 = vst [vmem:[%s3491_s12 + $0xf8] sm:$0xff] %v683_v31  ;;  %v687_v33 = vld [vmem:[%s3486_s11 + $0x210] sm:$0xff] }
  0x2a   : > { %686 = vst [vmem:[%s3491_s12 + $0x100] sm:$0xff] %v685_v32  ;;  %v689_v34 = vld [vmem:[%s3486_s11 + $0x220] sm:$0xff]  ;;  %v691_v35 = vld [vmem:[%s3486_s11 + $0x230] sm:$0xff]  ;;  %688 = vst [vmem:[%s3491_s12 + $0x108] sm:$0xff] %v687_v33 }
  0x2b   : > { %690 = vst [vmem:[%s3491_s12 + $0x110] sm:$0xff] %v689_v34  ;;  %692 = vst [vmem:[%s3491_s12 + $0x118] sm:$0xff] %v691_v35  ;;  %v693_v36 = vld [vmem:[%s3486_s11 + $0x240] sm:$0xff]  ;;  %v695_v37 = vld [vmem:[%s3486_s11 + $0x250] sm:$0xff] }
  0x2c   : > { %v697_v38 = vld [vmem:[%s3486_s11 + $0x260] sm:$0xff]  ;;  %694 = vst [vmem:[%s3491_s12 + $0x120] sm:$0xff] %v693_v36  ;;  %696 = vst [vmem:[%s3491_s12 + $0x128] sm:$0xff] %v695_v37  ;;  %v699_v39 = vld [vmem:[%s3486_s11 + $0x270] sm:$0xff] }
  0x2d   : > { %698 = vst [vmem:[%s3491_s12 + $0x130] sm:$0xff] %v697_v38  ;;  %v701_v40 = vld [vmem:[%s3486_s11 + $0x280] sm:$0xff]  ;;  %v703_v41 = vld [vmem:[%s3486_s11 + $0x290] sm:$0xff]  ;;  %700 = vst [vmem:[%s3491_s12 + $0x138] sm:$0xff] %v699_v39 }
  0x2e   : > { %702 = vst [vmem:[%s3491_s12 + $0x140] sm:$0xff] %v701_v40  ;;  %704 = vst [vmem:[%s3491_s12 + $0x148] sm:$0xff] %v703_v41  ;;  %v705_v42 = vld [vmem:[%s3486_s11 + $0x2a0] sm:$0xff]  ;;  %v707_v43 = vld [vmem:[%s3486_s11 + $0x2b0] sm:$0xff] }
  0x2f   : > { %v709_v44 = vld [vmem:[%s3486_s11 + $0x2c0] sm:$0xff]  ;;  %706 = vst [vmem:[%s3491_s12 + $0x150] sm:$0xff] %v705_v42  ;;  %708 = vst [vmem:[%s3491_s12 + $0x158] sm:$0xff] %v707_v43  ;;  %v711_v45 = vld [vmem:[%s3486_s11 + $0x2d0] sm:$0xff] }
  0x30   : > { %710 = vst [vmem:[%s3491_s12 + $0x160] sm:$0xff] %v709_v44  ;;  %v713_v46 = vld [vmem:[%s3486_s11 + $0x2e0] sm:$0xff]  ;;  %v715_v47 = vld [vmem:[%s3486_s11 + $0x2f0] sm:$0xff]  ;;  %712 = vst [vmem:[%s3491_s12 + $0x168] sm:$0xff] %v711_v45 }
  0x31   : > { %714 = vst [vmem:[%s3491_s12 + $0x170] sm:$0xff] %v713_v46  ;;  %716 = vst [vmem:[%s3491_s12 + $0x178] sm:$0xff] %v715_v47  ;;  %v717_v48 = vld [vmem:[%s3486_s11 + $0x300] sm:$0xff]  ;;  %v719_v49 = vld [vmem:[%s3486_s11 + $0x310] sm:$0xff] }
  0x32   : > { %v721_v50 = vld [vmem:[%s3486_s11 + $0x320] sm:$0xff]  ;;  %718 = vst [vmem:[%s3491_s12 + $0x180] sm:$0xff] %v717_v48  ;;  %720 = vst [vmem:[%s3491_s12 + $0x188] sm:$0xff] %v719_v49  ;;  %v723_v51 = vld [vmem:[%s3486_s11 + $0x330] sm:$0xff] }
  0x33   : > { %722 = vst [vmem:[%s3491_s12 + $0x190] sm:$0xff] %v721_v50  ;;  %v725_v52 = vld [vmem:[%s3486_s11 + $0x340] sm:$0xff]  ;;  %v727_v53 = vld [vmem:[%s3486_s11 + $0x350] sm:$0xff]  ;;  %724 = vst [vmem:[%s3491_s12 + $0x198] sm:$0xff] %v723_v51 }
  0x34   : > { %726 = vst [vmem:[%s3491_s12 + $0x1a0] sm:$0xff] %v725_v52  ;;  %728 = vst [vmem:[%s3491_s12 + $0x1a8] sm:$0xff] %v727_v53  ;;  %v729_v54 = vld [vmem:[%s3486_s11 + $0x360] sm:$0xff]  ;;  %v731_v55 = vld [vmem:[%s3486_s11 + $0x370] sm:$0xff] }
  0x35   : > { %v733_v56 = vld [vmem:[%s3486_s11 + $0x380] sm:$0xff]  ;;  %730 = vst [vmem:[%s3491_s12 + $0x1b0] sm:$0xff] %v729_v54  ;;  %732 = vst [vmem:[%s3491_s12 + $0x1b8] sm:$0xff] %v731_v55  ;;  %v735_v57 = vld [vmem:[%s3486_s11 + $0x390] sm:$0xff] }
  0x36   : > { %734 = vst [vmem:[%s3491_s12 + $0x1c0] sm:$0xff] %v733_v56  ;;  %v737_v58 = vld [vmem:[%s3486_s11 + $0x3a0] sm:$0xff]  ;;  %v739_v59 = vld [vmem:[%s3486_s11 + $0x3b0] sm:$0xff]  ;;  %736 = vst [vmem:[%s3491_s12 + $0x1c8] sm:$0xff] %v735_v57 }
  0x37   : > { %738 = vst [vmem:[%s3491_s12 + $0x1d0] sm:$0xff] %v737_v58  ;;  %740 = vst [vmem:[%s3491_s12 + $0x1d8] sm:$0xff] %v739_v59  ;;  %v741_v60 = vld [vmem:[%s3486_s11 + $0x3c0] sm:$0xff]  ;;  %v743_v61 = vld [vmem:[%s3486_s11 + $0x3d0] sm:$0xff] }
  0x38   : > { %v745_v62 = vld [vmem:[%s3486_s11 + $0x3e0] sm:$0xff]  ;;  %742 = vst [vmem:[%s3491_s12 + $0x1e0] sm:$0xff] %v741_v60  ;;  %744 = vst [vmem:[%s3491_s12 + $0x1e8] sm:$0xff] %v743_v61  ;;  %v747_v63 = vld [vmem:[%s3486_s11 + $0x3f0] sm:$0xff] }
  0x39   : > { %746 = vst [vmem:[%s3491_s12 + $0x1f0] sm:$0xff] %v745_v62  ;;  %v749_v0 = vld [vmem:[%s3486_s11 + $0x400] sm:$0xff]  ;;  %v751_v1 = vld [vmem:[%s3486_s11 + $0x410] sm:$0xff]  ;;  %748 = vst [vmem:[%s3491_s12 + $0x1f8] sm:$0xff] %v747_v63 }
  0x3a   : > { %750 = vst [vmem:[%s3491_s12 + $0x200] sm:$0xff] %v749_v0  ;;  %752 = vst [vmem:[%s3491_s12 + $0x208] sm:$0xff] %v751_v1  ;;  %v753_v2 = vld [vmem:[%s3486_s11 + $0x420] sm:$0xff]  ;;  %v755_v3 = vld [vmem:[%s3486_s11 + $0x430] sm:$0xff] }
  0x3b   : > { %v757_v4 = vld [vmem:[%s3486_s11 + $0x440] sm:$0xff]  ;;  %754 = vst [vmem:[%s3491_s12 + $0x210] sm:$0xff] %v753_v2  ;;  %756 = vst [vmem:[%s3491_s12 + $0x218] sm:$0xff] %v755_v3  ;;  %v759_v5 = vld [vmem:[%s3486_s11 + $0x450] sm:$0xff] }
  0x3c   : > { %758 = vst [vmem:[%s3491_s12 + $0x220] sm:$0xff] %v757_v4  ;;  %v761_v6 = vld [vmem:[%s3486_s11 + $0x460] sm:$0xff]  ;;  %v763_v7 = vld [vmem:[%s3486_s11 + $0x470] sm:$0xff]  ;;  %760 = vst [vmem:[%s3491_s12 + $0x228] sm:$0xff] %v759_v5 }
  0x3d   : > { %762 = vst [vmem:[%s3491_s12 + $0x230] sm:$0xff] %v761_v6  ;;  %764 = vst [vmem:[%s3491_s12 + $0x238] sm:$0xff] %v763_v7  ;;  %v765_v8 = vld [vmem:[%s3486_s11 + $0x480] sm:$0xff]  ;;  %v767_v9 = vld [vmem:[%s3486_s11 + $0x490] sm:$0xff] }
  0x3e   : > { %v769_v10 = vld [vmem:[%s3486_s11 + $0x4a0] sm:$0xff]  ;;  %766 = vst [vmem:[%s3491_s12 + $0x240] sm:$0xff] %v765_v8  ;;  %768 = vst [vmem:[%s3491_s12 + $0x248] sm:$0xff] %v767_v9  ;;  %v771_v11 = vld [vmem:[%s3486_s11 + $0x4b0] sm:$0xff] }
  0x3f   : > { %770 = vst [vmem:[%s3491_s12 + $0x250] sm:$0xff] %v769_v10  ;;  %v773_v12 = vld [vmem:[%s3486_s11 + $0x4c0] sm:$0xff]  ;;  %v775_v13 = vld [vmem:[%s3486_s11 + $0x4d0] sm:$0xff]  ;;  %772 = vst [vmem:[%s3491_s12 + $0x258] sm:$0xff] %v771_v11 }
  0x40   : > { %774 = vst [vmem:[%s3491_s12 + $0x260] sm:$0xff] %v773_v12  ;;  %776 = vst [vmem:[%s3491_s12 + $0x268] sm:$0xff] %v775_v13  ;;  %v777_v14 = vld [vmem:[%s3486_s11 + $0x4e0] sm:$0xff]  ;;  %v779_v15 = vld [vmem:[%s3486_s11 + $0x4f0] sm:$0xff] }
  0x41   : > { %v781_v16 = vld [vmem:[%s3486_s11 + $0x500] sm:$0xff]  ;;  %778 = vst [vmem:[%s3491_s12 + $0x270] sm:$0xff] %v777_v14  ;;  %780 = vst [vmem:[%s3491_s12 + $0x278] sm:$0xff] %v779_v15  ;;  %v783_v17 = vld [vmem:[%s3486_s11 + $0x510] sm:$0xff] }
  0x42   : > { %782 = vst [vmem:[%s3491_s12 + $0x280] sm:$0xff] %v781_v16  ;;  %v785_v18 = vld [vmem:[%s3486_s11 + $0x520] sm:$0xff]  ;;  %v787_v19 = vld [vmem:[%s3486_s11 + $0x530] sm:$0xff]  ;;  %784 = vst [vmem:[%s3491_s12 + $0x288] sm:$0xff] %v783_v17 }
  0x43   : > { %786 = vst [vmem:[%s3491_s12 + $0x290] sm:$0xff] %v785_v18  ;;  %788 = vst [vmem:[%s3491_s12 + $0x298] sm:$0xff] %v787_v19  ;;  %v789_v20 = vld [vmem:[%s3486_s11 + $0x540] sm:$0xff]  ;;  %v791_v21 = vld [vmem:[%s3486_s11 + $0x550] sm:$0xff] }
  0x44   : > { %v793_v22 = vld [vmem:[%s3486_s11 + $0x560] sm:$0xff]  ;;  %790 = vst [vmem:[%s3491_s12 + $0x2a0] sm:$0xff] %v789_v20  ;;  %792 = vst [vmem:[%s3491_s12 + $0x2a8] sm:$0xff] %v791_v21  ;;  %v795_v23 = vld [vmem:[%s3486_s11 + $0x570] sm:$0xff] }
  0x45   : > { %794 = vst [vmem:[%s3491_s12 + $0x2b0] sm:$0xff] %v793_v22  ;;  %v797_v24 = vld [vmem:[%s3486_s11 + $0x580] sm:$0xff]  ;;  %v799_v25 = vld [vmem:[%s3486_s11 + $0x590] sm:$0xff]  ;;  %796 = vst [vmem:[%s3491_s12 + $0x2b8] sm:$0xff] %v795_v23 }
  0x46   : > { %798 = vst [vmem:[%s3491_s12 + $0x2c0] sm:$0xff] %v797_v24  ;;  %800 = vst [vmem:[%s3491_s12 + $0x2c8] sm:$0xff] %v799_v25  ;;  %v801_v26 = vld [vmem:[%s3486_s11 + $0x5a0] sm:$0xff]  ;;  %v803_v27 = vld [vmem:[%s3486_s11 + $0x5b0] sm:$0xff] }
  0x47   : > { %v805_v28 = vld [vmem:[%s3486_s11 + $0x5c0] sm:$0xff]  ;;  %802 = vst [vmem:[%s3491_s12 + $0x2d0] sm:$0xff] %v801_v26  ;;  %804 = vst [vmem:[%s3491_s12 + $0x2d8] sm:$0xff] %v803_v27  ;;  %v807_v29 = vld [vmem:[%s3486_s11 + $0x5d0] sm:$0xff] }
  0x48   : > { %806 = vst [vmem:[%s3491_s12 + $0x2e0] sm:$0xff] %v805_v28  ;;  %v809_v30 = vld [vmem:[%s3486_s11 + $0x5e0] sm:$0xff]  ;;  %v811_v31 = vld [vmem:[%s3486_s11 + $0x5f0] sm:$0xff]  ;;  %808 = vst [vmem:[%s3491_s12 + $0x2e8] sm:$0xff] %v807_v29 }
  0x49   : > { %810 = vst [vmem:[%s3491_s12 + $0x2f0] sm:$0xff] %v809_v30  ;;  %812 = vst [vmem:[%s3491_s12 + $0x2f8] sm:$0xff] %v811_v31  ;;  %v813_v32 = vld [vmem:[%s3486_s11 + $0x600] sm:$0xff]  ;;  %v815_v33 = vld [vmem:[%s3486_s11 + $0x610] sm:$0xff] }
  0x4a   : > { %v817_v34 = vld [vmem:[%s3486_s11 + $0x620] sm:$0xff]  ;;  %814 = vst [vmem:[%s3491_s12 + $0x300] sm:$0xff] %v813_v32  ;;  %816 = vst [vmem:[%s3491_s12 + $0x308] sm:$0xff] %v815_v33  ;;  %v819_v35 = vld [vmem:[%s3486_s11 + $0x630] sm:$0xff] }
  0x4b   : > { %818 = vst [vmem:[%s3491_s12 + $0x310] sm:$0xff] %v817_v34  ;;  %v821_v36 = vld [vmem:[%s3486_s11 + $0x640] sm:$0xff]  ;;  %v823_v37 = vld [vmem:[%s3486_s11 + $0x650] sm:$0xff]  ;;  %820 = vst [vmem:[%s3491_s12 + $0x318] sm:$0xff] %v819_v35 }
  0x4c   : > { %822 = vst [vmem:[%s3491_s12 + $0x320] sm:$0xff] %v821_v36  ;;  %824 = vst [vmem:[%s3491_s12 + $0x328] sm:$0xff] %v823_v37  ;;  %v825_v38 = vld [vmem:[%s3486_s11 + $0x660] sm:$0xff]  ;;  %v827_v39 = vld [vmem:[%s3486_s11 + $0x670] sm:$0xff] }
  0x4d   : > { %v829_v40 = vld [vmem:[%s3486_s11 + $0x680] sm:$0xff]  ;;  %826 = vst [vmem:[%s3491_s12 + $0x330] sm:$0xff] %v825_v38  ;;  %828 = vst [vmem:[%s3491_s12 + $0x338] sm:$0xff] %v827_v39  ;;  %v831_v41 = vld [vmem:[%s3486_s11 + $0x690] sm:$0xff] }
  0x4e   : > { %830 = vst [vmem:[%s3491_s12 + $0x340] sm:$0xff] %v829_v40  ;;  %v833_v42 = vld [vmem:[%s3486_s11 + $0x6a0] sm:$0xff]  ;;  %v835_v43 = vld [vmem:[%s3486_s11 + $0x6b0] sm:$0xff]  ;;  %832 = vst [vmem:[%s3491_s12 + $0x348] sm:$0xff] %v831_v41 }
  0x4f   : > { %834 = vst [vmem:[%s3491_s12 + $0x350] sm:$0xff] %v833_v42  ;;  %836 = vst [vmem:[%s3491_s12 + $0x358] sm:$0xff] %v835_v43  ;;  %v837_v44 = vld [vmem:[%s3486_s11 + $0x6c0] sm:$0xff]  ;;  %v839_v45 = vld [vmem:[%s3486_s11 + $0x6d0] sm:$0xff] }
  0x50   : > { %v841_v46 = vld [vmem:[%s3486_s11 + $0x6e0] sm:$0xff]  ;;  %838 = vst [vmem:[%s3491_s12 + $0x360] sm:$0xff] %v837_v44  ;;  %840 = vst [vmem:[%s3491_s12 + $0x368] sm:$0xff] %v839_v45  ;;  %v843_v47 = vld [vmem:[%s3486_s11 + $0x6f0] sm:$0xff] }
  0x51   : > { %842 = vst [vmem:[%s3491_s12 + $0x370] sm:$0xff] %v841_v46  ;;  %v845_v48 = vld [vmem:[%s3486_s11 + $0x700] sm:$0xff]  ;;  %v847_v49 = vld [vmem:[%s3486_s11 + $0x710] sm:$0xff]  ;;  %844 = vst [vmem:[%s3491_s12 + $0x378] sm:$0xff] %v843_v47 }
  0x52   : > { %846 = vst [vmem:[%s3491_s12 + $0x380] sm:$0xff] %v845_v48  ;;  %848 = vst [vmem:[%s3491_s12 + $0x388] sm:$0xff] %v847_v49  ;;  %v849_v50 = vld [vmem:[%s3486_s11 + $0x720] sm:$0xff]  ;;  %v851_v51 = vld [vmem:[%s3486_s11 + $0x730] sm:$0xff] }
  0x53   : > { %v853_v52 = vld [vmem:[%s3486_s11 + $0x740] sm:$0xff]  ;;  %850 = vst [vmem:[%s3491_s12 + $0x390] sm:$0xff] %v849_v50  ;;  %852 = vst [vmem:[%s3491_s12 + $0x398] sm:$0xff] %v851_v51  ;;  %v855_v53 = vld [vmem:[%s3486_s11 + $0x750] sm:$0xff] }
  0x54   : > { %854 = vst [vmem:[%s3491_s12 + $0x3a0] sm:$0xff] %v853_v52  ;;  %v857_v54 = vld [vmem:[%s3486_s11 + $0x760] sm:$0xff]  ;;  %v859_v55 = vld [vmem:[%s3486_s11 + $0x770] sm:$0xff]  ;;  %856 = vst [vmem:[%s3491_s12 + $0x3a8] sm:$0xff] %v855_v53 }
  0x55   : > { %858 = vst [vmem:[%s3491_s12 + $0x3b0] sm:$0xff] %v857_v54  ;;  %860 = vst [vmem:[%s3491_s12 + $0x3b8] sm:$0xff] %v859_v55  ;;  %v861_v56 = vld [vmem:[%s3486_s11 + $0x780] sm:$0xff]  ;;  %v863_v57 = vld [vmem:[%s3486_s11 + $0x790] sm:$0xff] }
  0x56   : > { %v865_v58 = vld [vmem:[%s3486_s11 + $0x7a0] sm:$0xff]  ;;  %862 = vst [vmem:[%s3491_s12 + $0x3c0] sm:$0xff] %v861_v56  ;;  %864 = vst [vmem:[%s3491_s12 + $0x3c8] sm:$0xff] %v863_v57  ;;  %v867_v59 = vld [vmem:[%s3486_s11 + $0x7b0] sm:$0xff] }
  0x57   : > { %866 = vst [vmem:[%s3491_s12 + $0x3d0] sm:$0xff] %v865_v58  ;;  %v869_v60 = vld [vmem:[%s3486_s11 + $0x7c0] sm:$0xff]  ;;  %v871_v61 = vld [vmem:[%s3486_s11 + $0x7d0] sm:$0xff]  ;;  %868 = vst [vmem:[%s3491_s12 + $0x3d8] sm:$0xff] %v867_v59 }
  0x58   : > { %870 = vst [vmem:[%s3491_s12 + $0x3e0] sm:$0xff] %v869_v60  ;;  %872 = vst [vmem:[%s3491_s12 + $0x3e8] sm:$0xff] %v871_v61  ;;  %v873_v62 = vld [vmem:[%s3486_s11 + $0x7e0] sm:$0xff]  ;;  %v875_v63 = vld [vmem:[%s3486_s11 + $0x7f0] sm:$0xff] }
  0x59   : > { %v877_v0 = vld [vmem:[%s3486_s11 + $0x800] sm:$0xff]  ;;  %874 = vst [vmem:[%s3491_s12 + $0x3f0] sm:$0xff] %v873_v62  ;;  %876 = vst [vmem:[%s3491_s12 + $0x3f8] sm:$0xff] %v875_v63  ;;  %v879_v1 = vld [vmem:[%s3486_s11 + $0x810] sm:$0xff] }
  0x5a   : > { %878 = vst [vmem:[%s3491_s12 + $0x400] sm:$0xff] %v877_v0  ;;  %v881_v2 = vld [vmem:[%s3486_s11 + $0x820] sm:$0xff]  ;;  %v883_v3 = vld [vmem:[%s3486_s11 + $0x830] sm:$0xff]  ;;  %880 = vst [vmem:[%s3491_s12 + $0x408] sm:$0xff] %v879_v1 }
  0x5b   : > { %882 = vst [vmem:[%s3491_s12 + $0x410] sm:$0xff] %v881_v2  ;;  %884 = vst [vmem:[%s3491_s12 + $0x418] sm:$0xff] %v883_v3  ;;  %v885_v4 = vld [vmem:[%s3486_s11 + $0x840] sm:$0xff]  ;;  %v887_v5 = vld [vmem:[%s3486_s11 + $0x850] sm:$0xff] }
  0x5c   : > { %v889_v6 = vld [vmem:[%s3486_s11 + $0x860] sm:$0xff]  ;;  %886 = vst [vmem:[%s3491_s12 + $0x420] sm:$0xff] %v885_v4  ;;  %888 = vst [vmem:[%s3491_s12 + $0x428] sm:$0xff] %v887_v5  ;;  %v891_v7 = vld [vmem:[%s3486_s11 + $0x870] sm:$0xff] }
  0x5d   : > { %890 = vst [vmem:[%s3491_s12 + $0x430] sm:$0xff] %v889_v6  ;;  %v893_v8 = vld [vmem:[%s3486_s11 + $0x880] sm:$0xff]  ;;  %v895_v9 = vld [vmem:[%s3486_s11 + $0x890] sm:$0xff]  ;;  %892 = vst [vmem:[%s3491_s12 + $0x438] sm:$0xff] %v891_v7 }
  0x5e   : > { %894 = vst [vmem:[%s3491_s12 + $0x440] sm:$0xff] %v893_v8  ;;  %896 = vst [vmem:[%s3491_s12 + $0x448] sm:$0xff] %v895_v9  ;;  %v897_v10 = vld [vmem:[%s3486_s11 + $0x8a0] sm:$0xff]  ;;  %v899_v11 = vld [vmem:[%s3486_s11 + $0x8b0] sm:$0xff] }
  0x5f   : > { %v901_v12 = vld [vmem:[%s3486_s11 + $0x8c0] sm:$0xff]  ;;  %898 = vst [vmem:[%s3491_s12 + $0x450] sm:$0xff] %v897_v10  ;;  %900 = vst [vmem:[%s3491_s12 + $0x458] sm:$0xff] %v899_v11  ;;  %v903_v13 = vld [vmem:[%s3486_s11 + $0x8d0] sm:$0xff] }
  0x60   : > { %902 = vst [vmem:[%s3491_s12 + $0x460] sm:$0xff] %v901_v12  ;;  %v905_v14 = vld [vmem:[%s3486_s11 + $0x8e0] sm:$0xff]  ;;  %v907_v15 = vld [vmem:[%s3486_s11 + $0x8f0] sm:$0xff]  ;;  %904 = vst [vmem:[%s3491_s12 + $0x468] sm:$0xff] %v903_v13 }
  0x61   : > { %906 = vst [vmem:[%s3491_s12 + $0x470] sm:$0xff] %v905_v14  ;;  %908 = vst [vmem:[%s3491_s12 + $0x478] sm:$0xff] %v907_v15  ;;  %v909_v16 = vld [vmem:[%s3486_s11 + $0x900] sm:$0xff]  ;;  %v911_v17 = vld [vmem:[%s3486_s11 + $0x910] sm:$0xff] }
  0x62   : > { %v913_v18 = vld [vmem:[%s3486_s11 + $0x920] sm:$0xff]  ;;  %910 = vst [vmem:[%s3491_s12 + $0x480] sm:$0xff] %v909_v16  ;;  %912 = vst [vmem:[%s3491_s12 + $0x488] sm:$0xff] %v911_v17  ;;  %v915_v19 = vld [vmem:[%s3486_s11 + $0x930] sm:$0xff] }
  0x63   : > { %914 = vst [vmem:[%s3491_s12 + $0x490] sm:$0xff] %v913_v18  ;;  %v917_v20 = vld [vmem:[%s3486_s11 + $0x940] sm:$0xff]  ;;  %v919_v21 = vld [vmem:[%s3486_s11 + $0x950] sm:$0xff]  ;;  %916 = vst [vmem:[%s3491_s12 + $0x498] sm:$0xff] %v915_v19 }
  0x64   : > { %918 = vst [vmem:[%s3491_s12 + $0x4a0] sm:$0xff] %v917_v20  ;;  %920 = vst [vmem:[%s3491_s12 + $0x4a8] sm:$0xff] %v919_v21  ;;  %v921_v22 = vld [vmem:[%s3486_s11 + $0x960] sm:$0xff]  ;;  %v923_v23 = vld [vmem:[%s3486_s11 + $0x970] sm:$0xff] }
  0x65   : > { %v925_v24 = vld [vmem:[%s3486_s11 + $0x980] sm:$0xff]  ;;  %922 = vst [vmem:[%s3491_s12 + $0x4b0] sm:$0xff] %v921_v22  ;;  %924 = vst [vmem:[%s3491_s12 + $0x4b8] sm:$0xff] %v923_v23  ;;  %v927_v25 = vld [vmem:[%s3486_s11 + $0x990] sm:$0xff] }
  0x66   : > { %926 = vst [vmem:[%s3491_s12 + $0x4c0] sm:$0xff] %v925_v24  ;;  %v929_v26 = vld [vmem:[%s3486_s11 + $0x9a0] sm:$0xff]  ;;  %v931_v27 = vld [vmem:[%s3486_s11 + $0x9b0] sm:$0xff]  ;;  %928 = vst [vmem:[%s3491_s12 + $0x4c8] sm:$0xff] %v927_v25 }
  0x67   : > { %930 = vst [vmem:[%s3491_s12 + $0x4d0] sm:$0xff] %v929_v26  ;;  %932 = vst [vmem:[%s3491_s12 + $0x4d8] sm:$0xff] %v931_v27  ;;  %v933_v28 = vld [vmem:[%s3486_s11 + $0x9c0] sm:$0xff]  ;;  %v935_v29 = vld [vmem:[%s3486_s11 + $0x9d0] sm:$0xff] }
  0x68   : > { %v937_v30 = vld [vmem:[%s3486_s11 + $0x9e0] sm:$0xff]  ;;  %934 = vst [vmem:[%s3491_s12 + $0x4e0] sm:$0xff] %v933_v28  ;;  %936 = vst [vmem:[%s3491_s12 + $0x4e8] sm:$0xff] %v935_v29  ;;  %v939_v31 = vld [vmem:[%s3486_s11 + $0x9f0] sm:$0xff] }
  0x69   : > { %938 = vst [vmem:[%s3491_s12 + $0x4f0] sm:$0xff] %v937_v30  ;;  %v941_v32 = vld [vmem:[%s3486_s11 + $0xa00] sm:$0xff]  ;;  %v943_v33 = vld [vmem:[%s3486_s11 + $0xa10] sm:$0xff]  ;;  %940 = vst [vmem:[%s3491_s12 + $0x4f8] sm:$0xff] %v939_v31 }
  0x6a   : > { %942 = vst [vmem:[%s3491_s12 + $0x500] sm:$0xff] %v941_v32  ;;  %944 = vst [vmem:[%s3491_s12 + $0x508] sm:$0xff] %v943_v33  ;;  %v945_v34 = vld [vmem:[%s3486_s11 + $0xa20] sm:$0xff]  ;;  %v947_v35 = vld [vmem:[%s3486_s11 + $0xa30] sm:$0xff] }
  0x6b   : > { %v949_v36 = vld [vmem:[%s3486_s11 + $0xa40] sm:$0xff]  ;;  %946 = vst [vmem:[%s3491_s12 + $0x510] sm:$0xff] %v945_v34  ;;  %948 = vst [vmem:[%s3491_s12 + $0x518] sm:$0xff] %v947_v35  ;;  %v951_v37 = vld [vmem:[%s3486_s11 + $0xa50] sm:$0xff] }
  0x6c   : > { %950 = vst [vmem:[%s3491_s12 + $0x520] sm:$0xff] %v949_v36  ;;  %v953_v38 = vld [vmem:[%s3486_s11 + $0xa60] sm:$0xff]  ;;  %v955_v39 = vld [vmem:[%s3486_s11 + $0xa70] sm:$0xff]  ;;  %952 = vst [vmem:[%s3491_s12 + $0x528] sm:$0xff] %v951_v37 }
  0x6d   : > { %954 = vst [vmem:[%s3491_s12 + $0x530] sm:$0xff] %v953_v38  ;;  %956 = vst [vmem:[%s3491_s12 + $0x538] sm:$0xff] %v955_v39  ;;  %v957_v40 = vld [vmem:[%s3486_s11 + $0xa80] sm:$0xff]  ;;  %v959_v41 = vld [vmem:[%s3486_s11 + $0xa90] sm:$0xff] }
  0x6e   : > { %v961_v42 = vld [vmem:[%s3486_s11 + $0xaa0] sm:$0xff]  ;;  %958 = vst [vmem:[%s3491_s12 + $0x540] sm:$0xff] %v957_v40  ;;  %960 = vst [vmem:[%s3491_s12 + $0x548] sm:$0xff] %v959_v41  ;;  %v963_v43 = vld [vmem:[%s3486_s11 + $0xab0] sm:$0xff] }
  0x6f   : > { %962 = vst [vmem:[%s3491_s12 + $0x550] sm:$0xff] %v961_v42  ;;  %v965_v44 = vld [vmem:[%s3486_s11 + $0xac0] sm:$0xff]  ;;  %v967_v45 = vld [vmem:[%s3486_s11 + $0xad0] sm:$0xff]  ;;  %964 = vst [vmem:[%s3491_s12 + $0x558] sm:$0xff] %v963_v43 }
  0x70   : > { %966 = vst [vmem:[%s3491_s12 + $0x560] sm:$0xff] %v965_v44  ;;  %968 = vst [vmem:[%s3491_s12 + $0x568] sm:$0xff] %v967_v45  ;;  %v969_v46 = vld [vmem:[%s3486_s11 + $0xae0] sm:$0xff]  ;;  %v971_v47 = vld [vmem:[%s3486_s11 + $0xaf0] sm:$0xff] }
  0x71   : > { %v973_v48 = vld [vmem:[%s3486_s11 + $0xb00] sm:$0xff]  ;;  %970 = vst [vmem:[%s3491_s12 + $0x570] sm:$0xff] %v969_v46  ;;  %972 = vst [vmem:[%s3491_s12 + $0x578] sm:$0xff] %v971_v47  ;;  %v975_v49 = vld [vmem:[%s3486_s11 + $0xb10] sm:$0xff] }
  0x72   : > { %974 = vst [vmem:[%s3491_s12 + $0x580] sm:$0xff] %v973_v48  ;;  %v977_v50 = vld [vmem:[%s3486_s11 + $0xb20] sm:$0xff]  ;;  %v979_v51 = vld [vmem:[%s3486_s11 + $0xb30] sm:$0xff]  ;;  %976 = vst [vmem:[%s3491_s12 + $0x588] sm:$0xff] %v975_v49 }
  0x73   : > { %978 = vst [vmem:[%s3491_s12 + $0x590] sm:$0xff] %v977_v50  ;;  %980 = vst [vmem:[%s3491_s12 + $0x598] sm:$0xff] %v979_v51  ;;  %v981_v52 = vld [vmem:[%s3486_s11 + $0xb40] sm:$0xff]  ;;  %v983_v53 = vld [vmem:[%s3486_s11 + $0xb50] sm:$0xff] }
  0x74   : > { %v985_v54 = vld [vmem:[%s3486_s11 + $0xb60] sm:$0xff]  ;;  %982 = vst [vmem:[%s3491_s12 + $0x5a0] sm:$0xff] %v981_v52  ;;  %984 = vst [vmem:[%s3491_s12 + $0x5a8] sm:$0xff] %v983_v53  ;;  %v987_v55 = vld [vmem:[%s3486_s11 + $0xb70] sm:$0xff] }
  0x75   : > { %986 = vst [vmem:[%s3491_s12 + $0x5b0] sm:$0xff] %v985_v54  ;;  %v989_v56 = vld [vmem:[%s3486_s11 + $0xb80] sm:$0xff]  ;;  %v991_v57 = vld [vmem:[%s3486_s11 + $0xb90] sm:$0xff]  ;;  %988 = vst [vmem:[%s3491_s12 + $0x5b8] sm:$0xff] %v987_v55 }
  0x76   : > { %990 = vst [vmem:[%s3491_s12 + $0x5c0] sm:$0xff] %v989_v56  ;;  %992 = vst [vmem:[%s3491_s12 + $0x5c8] sm:$0xff] %v991_v57  ;;  %v993_v58 = vld [vmem:[%s3486_s11 + $0xba0] sm:$0xff]  ;;  %v995_v59 = vld [vmem:[%s3486_s11 + $0xbb0] sm:$0xff] }
  0x77   : > { %v997_v60 = vld [vmem:[%s3486_s11 + $0xbc0] sm:$0xff]  ;;  %994 = vst [vmem:[%s3491_s12 + $0x5d0] sm:$0xff] %v993_v58  ;;  %996 = vst [vmem:[%s3491_s12 + $0x5d8] sm:$0xff] %v995_v59  ;;  %v999_v61 = vld [vmem:[%s3486_s11 + $0xbd0] sm:$0xff] }
  0x78   : > { %998 = vst [vmem:[%s3491_s12 + $0x5e0] sm:$0xff] %v997_v60  ;;  %v1001_v62 = vld [vmem:[%s3486_s11 + $0xbe0] sm:$0xff]  ;;  %v1003_v63 = vld [vmem:[%s3486_s11 + $0xbf0] sm:$0xff]  ;;  %1000 = vst [vmem:[%s3491_s12 + $0x5e8] sm:$0xff] %v999_v61 }
  0x79   : > { %1002 = vst [vmem:[%s3491_s12 + $0x5f0] sm:$0xff] %v1001_v62  ;;  %1004 = vst [vmem:[%s3491_s12 + $0x5f8] sm:$0xff] %v1003_v63 }
  0x7a PF: > { %p2767_p7 = scmp.ge.s32.totalorder %s3398_s21, 1  ;;  %p1030_p8 = scmp.lt.s32.totalorder %s3398_s21, 7 }
  0x7c   : > { %p1031_p9 = pnand %p2767_p7, %p1030_p8 }
  0x7d   : > { %s1037_s13 = sand.u32 (!%p1031_p9), 1, %s3374_s15   ;;  %s1088_s14 = smul.u32 (!%p1031_p9), 12, %s3382_s17 }
  0x7e   : > { %1034 = sbr.rel (%p1031_p9) target bundleno = 573 (0x23d), region = 70  ;;  %s2769_s25 = sshll.u32 (!%p1031_p9), %s3386_s18, 1 }
  0x7f   : > { %s2986_s24 = smul.u32 (!%p1031_p9), 1536, %s1037_s13  ;;  %p1091_p10 = scmp.lt.s32.totalorder (!%p1031_p9), %s1088_s14, 35 }
  0x80   : > { %p1101_p11 = scmp.lt.s32.totalorder (!%p1031_p9), %s2769_s25, 3  ;;  %p2774_p12 = scmp.ne.s32.totalorder (!%p1031_p9), %s3382_s17, 0 }
  0x81   : > { %s3901_s13 = scalar_lea.vmem (!%p1031_p9), [#allocation3], %s2986_s24 }
  0x85   : > { %s4173_s14 = smov (!%p1091_p10, %s1088_s14), 35  ;;  %s4175_s25 = smov (!%p1101_p11, %s2769_s25), 3 }
  0x86   : > { %s2768_s26 = sshll.u32 %s4173_s14, 2  ;;  %s1103_s15 = scalar_lea.vmem %s4157_s2, %s4175_s25  ;;  %v3400_v0 = vmov (!%p2774_p12), 0.0  }
  0x87   : > { %s3884_s30 = scalar_lea.vmem %s4155_s0, %s2768_s26  ;;  %s2771_s7 = sshll.u32 %s4175_s25, 2  ;;  %1129 = vst [vmem:[#allocation2] sm:$0xff] (!%p2774_p12), %v3400_v0  ;;  %1130 = vst [vmem:[#allocation2 + $0x8] sm:$0xff] (!%p2774_p12), %v3400_v0 }
  0x88   : > { %s3894_s9 = scalar_lea.vmem %s4158_s3, %s2771_s7  ;;  %s3899_s12 = scalar_lea.vmem %s4159_s4, %s2771_s7 }
  0x89   : > { %1128 = sbr.rel (%p2774_p12) target bundleno = 144 (0x90), region = 78 }
  0x90 PF: > { %v3044_v1 = vld [vmem:[%s3901_s13 + $0x4] ss:$8 sps:$4 sm:$0xff]   ;;  %v3048_v3 = vld [vmem:[%s3901_s13] ss:$8 sps:$4 sm:$0xff]   ;;  %v3050_v5 = vld [vmem:[%s3901_s13 + $0x14] ss:$8 sps:$4 sm:$0xff]  }
  0x91   : > { %v3046_v2 = vld [vmem:[%s3901_s13 + $0x104] ss:$8 sps:$4 sm:$0xff]   ;;  %2333 = vmatprep.subr.bf16.mxu0 %v3044_v1  ;;  %v3049_v4 = vld [vmem:[%s3901_s13 + $0x100] ss:$8 sps:$4 sm:$0xff]   ;;  %v3052_v6 = vld [vmem:[%s3901_s13 + $0x114] ss:$8 sps:$4 sm:$0xff]  }
  0x92   : > { %2374 = vmatprep.subr.bf16.mxu1 %v3046_v2  ;;  %2334 = vmatpush1.bf16.msra.mxu0 %v3048_v3  ;;  %v3054_v7 = vld [vmem:[%s3901_s13 + $0x10] ss:$8 sps:$4 sm:$0xff]   ;;  %v3056_v9 = vld [vmem:[%s3901_s13 + $0x24] ss:$8 sps:$4 sm:$0xff]   ;;  %v3060_v11 = vld [vmem:[%s3901_s13 + $0x20] ss:$8 sps:$4 sm:$0xff]  }
  0x93   : > { %2375 = vmatpush1.bf16.msra.mxu1 %v3049_v4  ;;  %2335 = vmatprep.subr.bf16.mxu0 %v3050_v5  ;;  %v3055_v8 = vld [vmem:[%s3901_s13 + $0x110] ss:$8 sps:$4 sm:$0xff]   ;;  %v3058_v10 = vld [vmem:[%s3901_s13 + $0x124] ss:$8 sps:$4 sm:$0xff]   ;;  %v3061_v12 = vld [vmem:[%s3901_s13 + $0x120] ss:$8 sps:$4 sm:$0xff]  }
  0x94   : > { %2376 = vmatprep.subr.bf16.mxu1 %v3052_v6  ;;  %v3062_v13 = vld [vmem:[%s3901_s13 + $0x34] ss:$8 sps:$4 sm:$0xff]   ;;  %v3066_v15 = vld [vmem:[%s3901_s13 + $0x30] ss:$8 sps:$4 sm:$0xff]   ;;  %v3068_v17 = vld [vmem:[%s3901_s13 + $0x44] ss:$8 sps:$4 sm:$0xff]  }
  0x95   : > { %v3064_v14 = vld [vmem:[%s3901_s13 + $0x134] ss:$8 sps:$4 sm:$0xff]   ;;  %v3067_v16 = vld [vmem:[%s3901_s13 + $0x130] ss:$8 sps:$4 sm:$0xff]   ;;  %v3070_v18 = vld [vmem:[%s3901_s13 + $0x144] ss:$8 sps:$4 sm:$0xff]  }
  0x96   : > { %2336 = vmatpush1.bf16.msra.mxu0 %v3054_v7  ;;  %v3072_v19 = vld [vmem:[%s3901_s13 + $0x40] ss:$8 sps:$4 sm:$0xff]   ;;  %v3074_v21 = vld [vmem:[%s3901_s13 + $0x54] ss:$8 sps:$4 sm:$0xff]   ;;  %v3078_v23 = vld [vmem:[%s3901_s13 + $0x50] ss:$8 sps:$4 sm:$0xff]  }
  0x97   : > { %2377 = vmatpush1.bf16.msra.mxu1 %v3055_v8  ;;  %2337 = vmatprep.subr.bf16.mxu0 %v3056_v9  ;;  %v3073_v20 = vld [vmem:[%s3901_s13 + $0x140] ss:$8 sps:$4 sm:$0xff]   ;;  %v3076_v22 = vld [vmem:[%s3901_s13 + $0x154] ss:$8 sps:$4 sm:$0xff]   ;;  %v3079_v24 = vld [vmem:[%s3901_s13 + $0x150] ss:$8 sps:$4 sm:$0xff]  }
  0x98   : > { %2378 = vmatprep.subr.bf16.mxu1 %v3058_v10  ;;  %v3080_v25 = vld [vmem:[%s3901_s13 + $0x64] ss:$8 sps:$4 sm:$0xff]   ;;  %v3084_v27 = vld [vmem:[%s3901_s13 + $0x60] ss:$8 sps:$4 sm:$0xff]   ;;  %v3086_v29 = vld [vmem:[%s3901_s13 + $0x74] ss:$8 sps:$4 sm:$0xff]  }
  0x99   : > { %v3082_v26 = vld [vmem:[%s3901_s13 + $0x164] ss:$8 sps:$4 sm:$0xff]   ;;  %v3085_v28 = vld [vmem:[%s3901_s13 + $0x160] ss:$8 sps:$4 sm:$0xff]   ;;  %v3088_v30 = vld [vmem:[%s3901_s13 + $0x174] ss:$8 sps:$4 sm:$0xff]  }
  0x9a   : > { %2338 = vmatpush1.bf16.msra.mxu0 %v3060_v11  ;;  %v3090_v31 = vld [vmem:[%s3901_s13 + $0x70] ss:$8 sps:$4 sm:$0xff]   ;;  %v3092_v33 = vld [vmem:[%s3901_s13 + $0x84] ss:$8 sps:$4 sm:$0xff]   ;;  %v3096_v35 = vld [vmem:[%s3901_s13 + $0x80] ss:$8 sps:$4 sm:$0xff]  }
  0x9b   : > { %2379 = vmatpush1.bf16.msra.mxu1 %v3061_v12  ;;  %2339 = vmatprep.subr.bf16.mxu0 %v3062_v13  ;;  %v3091_v32 = vld [vmem:[%s3901_s13 + $0x170] ss:$8 sps:$4 sm:$0xff]   ;;  %v3094_v34 = vld [vmem:[%s3901_s13 + $0x184] ss:$8 sps:$4 sm:$0xff]   ;;  %v3097_v36 = vld [vmem:[%s3901_s13 + $0x180] ss:$8 sps:$4 sm:$0xff]  }
  0x9c   : > { %2380 = vmatprep.subr.bf16.mxu1 %v3064_v14  ;;  %v3098_v37 = vld [vmem:[%s3901_s13 + $0x94] ss:$8 sps:$4 sm:$0xff]   ;;  %v3102_v39 = vld [vmem:[%s3901_s13 + $0x90] ss:$8 sps:$4 sm:$0xff]   ;;  %v3104_v41 = vld [vmem:[%s3901_s13 + $0xa4] ss:$8 sps:$4 sm:$0xff]  }
  0x9d   : > { %v3100_v38 = vld [vmem:[%s3901_s13 + $0x194] ss:$8 sps:$4 sm:$0xff]   ;;  %v3103_v40 = vld [vmem:[%s3901_s13 + $0x190] ss:$8 sps:$4 sm:$0xff]   ;;  %v3106_v42 = vld [vmem:[%s3901_s13 + $0x1a4] ss:$8 sps:$4 sm:$0xff]  }
  0x9e   : > { %2340 = vmatpush1.bf16.msra.mxu0 %v3066_v15  ;;  %v3108_v43 = vld [vmem:[%s3901_s13 + $0xa0] ss:$8 sps:$4 sm:$0xff]   ;;  %v3110_v45 = vld [vmem:[%s3901_s13 + $0xb4] ss:$8 sps:$4 sm:$0xff]   ;;  %v3114_v50 = vld [vmem:[%s3901_s13 + $0xb0] ss:$8 sps:$4 sm:$0xff]  }
  0x9f   : > { %2381 = vmatpush1.bf16.msra.mxu1 %v3067_v16  ;;  %2341 = vmatprep.subr.bf16.mxu0 %v3068_v17  ;;  %v3109_v44 = vld [vmem:[%s3901_s13 + $0x1a0] ss:$8 sps:$4 sm:$0xff]   ;;  %v3112_v46 = vld [vmem:[%s3901_s13 + $0x1b4] ss:$8 sps:$4 sm:$0xff]   ;;  %v3115_v51 = vld [vmem:[%s3901_s13 + $0x1b0] ss:$8 sps:$4 sm:$0xff]  }
  0xa0   : > { %2382 = vmatprep.subr.bf16.mxu1 %v3070_v18  ;;  %v1133_v47 = vld [vmem:[%s3884_s30] sm:$0xff]  ;;  %v1134_v49 = vld [vmem:[%s3884_s30 + $0x8] sm:$0xff]  ;;  %v3116_v53 = vld [vmem:[%s3901_s13 + $0xc4] ss:$8 sps:$4 sm:$0xff]   ;;  %p2979_p13 = scmp.ne.s32.totalorder %s3382_s17, 2 }
  0xa1   : > { %v2776_v48 = vcombine.high %v1133_v47, %v1133_v47  ;;  %v2778_v52 = vcombine.high %v1134_v49, %v1134_v49  ;;  %v3118_v54 = vld [vmem:[%s3901_s13 + $0x1c4] ss:$8 sps:$4 sm:$0xff]   ;;  %v3120_v55 = vld [vmem:[%s3901_s13 + $0xc0] ss:$8 sps:$4 sm:$0xff]   ;;  %v3122_v57 = vld [vmem:[%s3901_s13 + $0xd4] ss:$8 sps:$4 sm:$0xff]   ;;  %v2775_v7 = vcombine.low %v1133_v47, %v1133_v47  ;;  %v2777_v8 = vcombine.low %v1134_v49, %v1134_v49 }
  0xa2   : > { %2342 = vmatpush1.bf16.msra.mxu0 %v3072_v19  ;;  %v3121_v56 = vld [vmem:[%s3901_s13 + $0x1c0] ss:$8 sps:$4 sm:$0xff]   ;;  %v3124_v58 = vld [vmem:[%s3901_s13 + $0x1d4] ss:$8 sps:$4 sm:$0xff]   ;;  %v3126_v59 = vld [vmem:[%s3901_s13 + $0xd0] ss:$8 sps:$4 sm:$0xff]  }
  0xa3   : > { %2383 = vmatpush1.bf16.msra.mxu1 %v3073_v20  ;;  %2343 = vmatprep.subr.bf16.mxu0 %v3074_v21  ;;  %v3127_v60 = vld [vmem:[%s3901_s13 + $0x1d0] ss:$8 sps:$4 sm:$0xff]   ;;  %v3128_v61 = vld [vmem:[%s3901_s13 + $0xe4] ss:$8 sps:$4 sm:$0xff]   ;;  %v3132_v63 = vld [vmem:[%s3901_s13 + $0xe0] ss:$8 sps:$4 sm:$0xff]  }
  0xa4   : > { %2384 = vmatprep.subr.bf16.mxu1 %v3076_v22  ;;  %2365 = vmatprep.mubr.bf16.mxu0 %v2776_v48  ;;  %v3130_v62 = vld [vmem:[%s3901_s13 + $0x1e4] ss:$8 sps:$4 sm:$0xff]   ;;  %v3133_v0 = vld [vmem:[%s3901_s13 + $0x1e0] ss:$8 sps:$4 sm:$0xff]   ;;  %v3134_v1 = vld [vmem:[%s3901_s13 + $0xf4] ss:$8 sps:$4 sm:$0xff]  }
  0xa5   : > { %2406 = vmatprep.mubr.bf16.mxu1 %v2778_v52  ;;  %v3136_v2 = vld [vmem:[%s3901_s13 + $0x1f4] ss:$8 sps:$4 sm:$0xff]   ;;  %v3138_v3 = vld [vmem:[%s3901_s13 + $0xf0] ss:$8 sps:$4 sm:$0xff]   ;;  %v3146_v5 = vld [vmem:[%s3901_s13 + $0x204] ss:$8 sps:$4 sm:$0xff]  }
  0xa6   : > { %2344 = vmatpush1.bf16.msra.mxu0 %v3078_v23  ;;  %v3139_v4 = vld [vmem:[%s3901_s13 + $0x1f0] ss:$8 sps:$4 sm:$0xff]   ;;  %v3149_v6 = vld [vmem:[%s3901_s13 + $0x304] ss:$8 sps:$4 sm:$0xff]   ;;  %v3144_v9 = vld [vmem:[%s3901_s13 + $0x200] ss:$8 sps:$4 sm:$0xff]  }
  0xa7   : > { %2385 = vmatpush1.bf16.msra.mxu1 %v3079_v24  ;;  %2345 = vmatprep.subr.bf16.mxu0 %v3080_v25  ;;  %v3147_v10 = vld [vmem:[%s3901_s13 + $0x300] ss:$8 sps:$4 sm:$0xff]   ;;  %v3152_v11 = vld [vmem:[%s3901_s13 + $0x214] ss:$8 sps:$4 sm:$0xff]   ;;  %v3150_v13 = vld [vmem:[%s3901_s13 + $0x210] ss:$8 sps:$4 sm:$0xff]  }
  0xa8   : > { %2386 = vmatprep.subr.bf16.mxu1 %v3082_v26  ;;  %v3155_v12 = vld [vmem:[%s3901_s13 + $0x314] ss:$8 sps:$4 sm:$0xff]   ;;  %v3153_v14 = vld [vmem:[%s3901_s13 + $0x310] ss:$8 sps:$4 sm:$0xff]   ;;  %v3158_v15 = vld [vmem:[%s3901_s13 + $0x224] ss:$8 sps:$4 sm:$0xff]  }
  0xa9   : > { %v3161_v16 = vld [vmem:[%s3901_s13 + $0x324] ss:$8 sps:$4 sm:$0xff]   ;;  %v3156_v17 = vld [vmem:[%s3901_s13 + $0x220] ss:$8 sps:$4 sm:$0xff]   ;;  %v3164_v19 = vld [vmem:[%s3901_s13 + $0x234] ss:$8 sps:$4 sm:$0xff]  }
  0xaa   : > { %2346 = vmatpush1.bf16.msra.mxu0 %v3084_v27  ;;  %v3159_v18 = vld [vmem:[%s3901_s13 + $0x320] ss:$8 sps:$4 sm:$0xff]   ;;  %v3167_v20 = vld [vmem:[%s3901_s13 + $0x334] ss:$8 sps:$4 sm:$0xff]   ;;  %v3162_v21 = vld [vmem:[%s3901_s13 + $0x230] ss:$8 sps:$4 sm:$0xff]  }
  0xab   : > { %2387 = vmatpush1.bf16.msra.mxu1 %v3085_v28  ;;  %2347 = vmatprep.subr.bf16.mxu0 %v3086_v29  ;;  %v3165_v22 = vld [vmem:[%s3901_s13 + $0x330] ss:$8 sps:$4 sm:$0xff]   ;;  %v3170_v23 = vld [vmem:[%s3901_s13 + $0x244] ss:$8 sps:$4 sm:$0xff]   ;;  %v3168_v25 = vld [vmem:[%s3901_s13 + $0x240] ss:$8 sps:$4 sm:$0xff]  }
  0xac   : > { %2388 = vmatprep.subr.bf16.mxu1 %v3088_v30  ;;  %v3173_v24 = vld [vmem:[%s3901_s13 + $0x344] ss:$8 sps:$4 sm:$0xff]   ;;  %v3171_v26 = vld [vmem:[%s3901_s13 + $0x340] ss:$8 sps:$4 sm:$0xff]   ;;  %v3176_v27 = vld [vmem:[%s3901_s13 + $0x254] ss:$8 sps:$4 sm:$0xff]  }
  0xad   : > { %v3179_v28 = vld [vmem:[%s3901_s13 + $0x354] ss:$8 sps:$4 sm:$0xff]   ;;  %v3174_v29 = vld [vmem:[%s3901_s13 + $0x250] ss:$8 sps:$4 sm:$0xff]   ;;  %v3209_v52 = vld [vmem:[%s3901_s13 + $0x3a4] ss:$8 sps:$4 sm:$0xff]  }
  0xae   : > { %2348 = vmatpush1.bf16.msra.mxu0 %v3090_v31  ;;  %v3177_v30 = vld [vmem:[%s3901_s13 + $0x350] ss:$8 sps:$4 sm:$0xff]   ;;  %v3182_v31 = vld [vmem:[%s3901_s13 + $0x264] ss:$8 sps:$4 sm:$0xff]   ;;  %v3200_v47 = vld [vmem:[%s3901_s13 + $0x294] ss:$8 sps:$4 sm:$0xff]  }
  0xaf   : > { %2389 = vmatpush1.bf16.msra.mxu1 %v3091_v32  ;;  %2349 = vmatprep.subr.bf16.mxu0 %v3092_v33  ;;  %v3185_v32 = vld [vmem:[%s3901_s13 + $0x364] ss:$8 sps:$4 sm:$0xff]   ;;  %v3203_v48 = vld [vmem:[%s3901_s13 + $0x394] ss:$8 sps:$4 sm:$0xff]   ;;  %v3198_v49 = vld [vmem:[%s3901_s13 + $0x290] ss:$8 sps:$4 sm:$0xff]  }
  0xb0   : > { %2390 = vmatprep.subr.bf16.mxu1 %v3094_v34  ;;  %v3997_v33 = vld [vmem:[%s3884_s30 + $0x10] sm:$0xff]  ;;  %v4000_v34 = vld [vmem:[%s3884_s30 + $0x18] sm:$0xff] }
  0xb2   : > { %2350 = vmatpush1.bf16.msra.mxu0 %v3096_v35  ;;  %v3180_v35 = vld [vmem:[%s3901_s13 + $0x260] ss:$8 sps:$4 sm:$0xff]  }
  0xb3   : > { %2391 = vmatpush1.bf16.msra.mxu1 %v3097_v36  ;;  %2351 = vmatprep.subr.bf16.mxu0 %v3098_v37  ;;  %v3183_v36 = vld [vmem:[%s3901_s13 + $0x360] ss:$8 sps:$4 sm:$0xff]   ;;  %v2780_v37 = vcombine.high %v3997_v33, %v3997_v33 }
  0xb4   : > { %2392 = vmatprep.subr.bf16.mxu1 %v3100_v38  ;;  %v2782_v38 = vcombine.high %v4000_v34, %v4000_v34 }
  0xb6   : > { %2352 = vmatpush1.bf16.msra.mxu0 %v3102_v39  ;;  %v3188_v39 = vld [vmem:[%s3901_s13 + $0x274] ss:$8 sps:$4 sm:$0xff]  }
  0xb7   : > { %2393 = vmatpush1.bf16.msra.mxu1 %v3103_v40  ;;  %2353 = vmatprep.subr.bf16.mxu0 %v3104_v41  ;;  %v3191_v40 = vld [vmem:[%s3901_s13 + $0x374] ss:$8 sps:$4 sm:$0xff]   ;;  %v3186_v41 = vld [vmem:[%s3901_s13 + $0x270] ss:$8 sps:$4 sm:$0xff]  }
  0xb8   : > { %2394 = vmatprep.subr.bf16.mxu1 %v3106_v42  ;;  %v3189_v42 = vld [vmem:[%s3901_s13 + $0x370] ss:$8 sps:$4 sm:$0xff]  }
  0xba   : > { %2354 = vmatpush1.bf16.msra.mxu0 %v3108_v43  ;;  %v3194_v43 = vld [vmem:[%s3901_s13 + $0x284] ss:$8 sps:$4 sm:$0xff]  }
  0xbb   : > { %2395 = vmatpush1.bf16.msra.mxu1 %v3109_v44  ;;  %2355 = vmatprep.subr.bf16.mxu0 %v3110_v45  ;;  %v3197_v44 = vld [vmem:[%s3901_s13 + $0x384] ss:$8 sps:$4 sm:$0xff]   ;;  %v3192_v45 = vld [vmem:[%s3901_s13 + $0x280] ss:$8 sps:$4 sm:$0xff]  }
  0xbc   : > { %2396 = vmatprep.subr.bf16.mxu1 %v3112_v46  ;;  %v3195_v46 = vld [vmem:[%s3901_s13 + $0x380] ss:$8 sps:$4 sm:$0xff]  }
  0xbe   : > { %2356 = vmatpush1.bf16.msra.mxu0 %v3114_v50  ;;  %v3201_v50 = vld [vmem:[%s3901_s13 + $0x390] ss:$8 sps:$4 sm:$0xff]  }
  0xbf   : > { %2397 = vmatpush1.bf16.msra.mxu1 %v3115_v51  ;;  %2357 = vmatprep.subr.bf16.mxu0 %v3116_v53  ;;  %v3206_v51 = vld [vmem:[%s3901_s13 + $0x2a4] ss:$8 sps:$4 sm:$0xff]   ;;  %v3204_v53 = vld [vmem:[%s3901_s13 + $0x2a0] ss:$8 sps:$4 sm:$0xff]  }
  0xc0   : > { %2398 = vmatprep.subr.bf16.mxu1 %v3118_v54  ;;  %v3207_v54 = vld [vmem:[%s3901_s13 + $0x3a0] ss:$8 sps:$4 sm:$0xff]  }
  0xc2   : > { %2358 = vmatpush1.bf16.msra.mxu0 %v3120_v55  ;;  %v3212_v55 = vld [vmem:[%s3901_s13 + $0x2b4] ss:$8 sps:$4 sm:$0xff]  }
  0xc3   : > { %2399 = vmatpush1.bf16.msra.mxu1 %v3121_v56  ;;  %2359 = vmatprep.subr.bf16.mxu0 %v3122_v57  ;;  %v3215_v56 = vld [vmem:[%s3901_s13 + $0x3b4] ss:$8 sps:$4 sm:$0xff]   ;;  %v3210_v57 = vld [vmem:[%s3901_s13 + $0x2b0] ss:$8 sps:$4 sm:$0xff]  }
  0xc4   : > { %2400 = vmatprep.subr.bf16.mxu1 %v3124_v58  ;;  %v3213_v58 = vld [vmem:[%s3901_s13 + $0x3b0] ss:$8 sps:$4 sm:$0xff]  }
  0xc6   : > { %2360 = vmatpush1.bf16.msra.mxu0 %v3126_v59  ;;  %v3218_v59 = vld [vmem:[%s3901_s13 + $0x2c4] ss:$8 sps:$4 sm:$0xff]  }
  0xc7   : > { %2401 = vmatpush1.bf16.msra.mxu1 %v3127_v60  ;;  %2361 = vmatprep.subr.bf16.mxu0 %v3128_v61  ;;  %v3221_v60 = vld [vmem:[%s3901_s13 + $0x3c4] ss:$8 sps:$4 sm:$0xff]   ;;  %v3216_v61 = vld [vmem:[%s3901_s13 + $0x2c0] ss:$8 sps:$4 sm:$0xff]  }
  0xc8   : > { %2402 = vmatprep.subr.bf16.mxu1 %v3130_v62  ;;  %v3219_v62 = vld [vmem:[%s3901_s13 + $0x3c0] ss:$8 sps:$4 sm:$0xff]  }
  0xca   : > { %2362 = vmatpush1.bf16.msra.mxu0 %v3132_v63  ;;  %v3224_v63 = vld [vmem:[%s3901_s13 + $0x2d4] ss:$8 sps:$4 sm:$0xff]  }
  0xcb   : > { %2403 = vmatpush1.bf16.msra.mxu1 %v3133_v0  ;;  %2363 = vmatprep.subr.bf16.mxu0 %v3134_v1  ;;  %v3227_v0 = vld [vmem:[%s3901_s13 + $0x3d4] ss:$8 sps:$4 sm:$0xff]   ;;  %v3222_v1 = vld [vmem:[%s3901_s13 + $0x2d0] ss:$8 sps:$4 sm:$0xff]  }
  0xcc   : > { %2404 = vmatprep.subr.bf16.mxu1 %v3136_v2  ;;  %v3225_v2 = vld [vmem:[%s3901_s13 + $0x3d0] ss:$8 sps:$4 sm:$0xff]  }
  0xce   : > { %2364 = vmatpush1.bf16.msra.mxu0 %v3138_v3  ;;  %v3230_v3 = vld [vmem:[%s3901_s13 + $0x2e4] ss:$8 sps:$4 sm:$0xff]  }
  0xcf   : > { %2405 = vmatpush1.bf16.msra.mxu1 %v3139_v4  ;;  %2415 = vmatprep.subr.bf16.mxu0 %v3146_v5  ;;  %v3233_v4 = vld [vmem:[%s3901_s13 + $0x3e4] ss:$8 sps:$4 sm:$0xff]   ;;  %v3228_v5 = vld [vmem:[%s3901_s13 + $0x2e0] ss:$8 sps:$4 sm:$0xff]  }
  0xd0   : > { %2456 = vmatprep.subr.bf16.mxu1 %v3149_v6  ;;  %v3231_v6 = vld [vmem:[%s3901_s13 + $0x3e0] ss:$8 sps:$4 sm:$0xff]  }
  0xd1   : > { %2366 = vmatmul.mubr.bf16.vlgmr.msra.gmra.mrb[0].mxu0 %v2775_v7  ;;  %v3236_v7 = vld [vmem:[%s3901_s13 + $0x2f4] ss:$8 sps:$4 sm:$0xff]  }
  0xd2   : > { %2407 = vmatmul.mubr.bf16.vlgmr.msra.gmra.mrb[0].mxu1 %v2777_v8  ;;  %2416 = vmatpush1.bf16.msra.mxu0 %v3144_v9  ;;  %v3239_v8 = vld [vmem:[%s3901_s13 + $0x3f4] ss:$8 sps:$4 sm:$0xff]   ;;  %v3234_v9 = vld [vmem:[%s3901_s13 + $0x2f0] ss:$8 sps:$4 sm:$0xff]  }
  0xd3   : > { %2457 = vmatpush1.bf16.msra.mxu1 %v3147_v10  ;;  %2417 = vmatprep.subr.bf16.mxu0 %v3152_v11  ;;  %v3237_v10 = vld [vmem:[%s3901_s13 + $0x3f0] ss:$8 sps:$4 sm:$0xff]   ;;  %v3246_v11 = vld [vmem:[%s3901_s13 + $0x404] ss:$8 sps:$4 sm:$0xff]  }
  0xd4   : > { %2458 = vmatprep.subr.bf16.mxu1 %v3155_v12  ;;  %2447 = vmatprep.mubr.bf16.mxu0 %v2780_v37  ;;  %v3249_v12 = vld [vmem:[%s3901_s13 + $0x504] ss:$8 sps:$4 sm:$0xff]   ;;  %v3276_v37 = vld [vmem:[%s3901_s13 + $0x454] ss:$8 sps:$4 sm:$0xff]  }
  0xd5   : > { %2488 = vmatprep.mubr.bf16.mxu1 %v2782_v38  ;;  %v3279_v38 = vld [vmem:[%s3901_s13 + $0x554] ss:$8 sps:$4 sm:$0xff]  }
  0xd6   : > { %2418 = vmatpush1.bf16.msra.mxu0 %v3150_v13  ;;  %v2779_v13 = vcombine.low %v3997_v33, %v3997_v33  ;;  %v3270_v33 = vld [vmem:[%s3901_s13 + $0x444] ss:$8 sps:$4 sm:$0xff]  }
  0xd7   : > { %2459 = vmatpush1.bf16.msra.mxu1 %v3153_v14  ;;  %2419 = vmatprep.subr.bf16.mxu0 %v3158_v15  ;;  %v2781_v14 = vcombine.low %v4000_v34, %v4000_v34  ;;  %v3244_v15 = vld [vmem:[%s3901_s13 + $0x400] ss:$8 sps:$4 sm:$0xff]   ;;  %v3273_v34 = vld [vmem:[%s3901_s13 + $0x544] ss:$8 sps:$4 sm:$0xff]  }
  0xd8   : > { %2460 = vmatprep.subr.bf16.mxu1 %v3161_v16  ;;  %v3247_v16 = vld [vmem:[%s3901_s13 + $0x500] ss:$8 sps:$4 sm:$0xff]  }
  0xda   : > { %2420 = vmatpush1.bf16.msra.mxu0 %v3156_v17  ;;  %v3252_v17 = vld [vmem:[%s3901_s13 + $0x414] ss:$8 sps:$4 sm:$0xff]  }
  0xdb   : > { %2461 = vmatpush1.bf16.msra.mxu1 %v3159_v18  ;;  %2421 = vmatprep.subr.bf16.mxu0 %v3164_v19  ;;  %v3255_v18 = vld [vmem:[%s3901_s13 + $0x514] ss:$8 sps:$4 sm:$0xff]  }
  0xdc   : > { %2462 = vmatprep.subr.bf16.mxu1 %v3167_v20  ;;  %v4055_v19 = vld [vmem:[%s3884_s30 + $0x20] sm:$0xff]  ;;  %v4058_v20 = vld [vmem:[%s3884_s30 + $0x28] sm:$0xff] }
  0xde   : > { %2422 = vmatpush1.bf16.msra.mxu0 %v3162_v21  ;;  %v2784_v21 = vcombine.high %v4055_v19, %v4055_v19 }
  0xdf   : > { %2463 = vmatpush1.bf16.msra.mxu1 %v3165_v22  ;;  %2423 = vmatprep.subr.bf16.mxu0 %v3170_v23  ;;  %v2786_v22 = vcombine.high %v4058_v20, %v4058_v20  ;;  %v3250_v23 = vld [vmem:[%s3901_s13 + $0x410] ss:$8 sps:$4 sm:$0xff]  }
  0xe0   : > { %2464 = vmatprep.subr.bf16.mxu1 %v3173_v24  ;;  %v3253_v24 = vld [vmem:[%s3901_s13 + $0x510] ss:$8 sps:$4 sm:$0xff]  }
  0xe2   : > { %2424 = vmatpush1.bf16.msra.mxu0 %v3168_v25  ;;  %v3258_v25 = vld [vmem:[%s3901_s13 + $0x424] ss:$8 sps:$4 sm:$0xff]  }
  0xe3   : > { %2465 = vmatpush1.bf16.msra.mxu1 %v3171_v26  ;;  %2425 = vmatprep.subr.bf16.mxu0 %v3176_v27  ;;  %v3261_v26 = vld [vmem:[%s3901_s13 + $0x524] ss:$8 sps:$4 sm:$0xff]   ;;  %v3256_v27 = vld [vmem:[%s3901_s13 + $0x420] ss:$8 sps:$4 sm:$0xff]  }
  0xe4   : > { %2466 = vmatprep.subr.bf16.mxu1 %v3179_v28  ;;  %v3259_v28 = vld [vmem:[%s3901_s13 + $0x520] ss:$8 sps:$4 sm:$0xff]  }
  0xe6   : > { %2426 = vmatpush1.bf16.msra.mxu0 %v3174_v29  ;;  %v3264_v29 = vld [vmem:[%s3901_s13 + $0x434] ss:$8 sps:$4 sm:$0xff]  }
  0xe7   : > { %2467 = vmatpush1.bf16.msra.mxu1 %v3177_v30  ;;  %2427 = vmatprep.subr.bf16.mxu0 %v3182_v31  ;;  %v3267_v30 = vld [vmem:[%s3901_s13 + $0x534] ss:$8 sps:$4 sm:$0xff]   ;;  %v3262_v31 = vld [vmem:[%s3901_s13 + $0x430] ss:$8 sps:$4 sm:$0xff]  }
  0xe8   : > { %2468 = vmatprep.subr.bf16.mxu1 %v3185_v32  ;;  %v3265_v32 = vld [vmem:[%s3901_s13 + $0x530] ss:$8 sps:$4 sm:$0xff]  }
  0xea   : > { %2428 = vmatpush1.bf16.msra.mxu0 %v3180_v35  ;;  %v3268_v35 = vld [vmem:[%s3901_s13 + $0x440] ss:$8 sps:$4 sm:$0xff]  }
  0xeb   : > { %2469 = vmatpush1.bf16.msra.mxu1 %v3183_v36  ;;  %2429 = vmatprep.subr.bf16.mxu0 %v3188_v39  ;;  %v3271_v36 = vld [vmem:[%s3901_s13 + $0x540] ss:$8 sps:$4 sm:$0xff]   ;;  %v3274_v39 = vld [vmem:[%s3901_s13 + $0x450] ss:$8 sps:$4 sm:$0xff]  }
  0xec   : > { %2470 = vmatprep.subr.bf16.mxu1 %v3191_v40  ;;  %v3277_v40 = vld [vmem:[%s3901_s13 + $0x550] ss:$8 sps:$4 sm:$0xff]  }
  0xee   : > { %2430 = vmatpush1.bf16.msra.mxu0 %v3186_v41  ;;  %v3282_v41 = vld [vmem:[%s3901_s13 + $0x464] ss:$8 sps:$4 sm:$0xff]  }
  0xef   : > { %2471 = vmatpush1.bf16.msra.mxu1 %v3189_v42  ;;  %2431 = vmatprep.subr.bf16.mxu0 %v3194_v43  ;;  %v3285_v42 = vld [vmem:[%s3901_s13 + $0x564] ss:$8 sps:$4 sm:$0xff]   ;;  %v3280_v43 = vld [vmem:[%s3901_s13 + $0x460] ss:$8 sps:$4 sm:$0xff]  }
  0xf0   : > { %2472 = vmatprep.subr.bf16.mxu1 %v3197_v44  ;;  %v3283_v44 = vld [vmem:[%s3901_s13 + $0x560] ss:$8 sps:$4 sm:$0xff]  }
  0xf2   : > { %2432 = vmatpush1.bf16.msra.mxu0 %v3192_v45  ;;  %v3288_v45 = vld [vmem:[%s3901_s13 + $0x474] ss:$8 sps:$4 sm:$0xff]  }
  0xf3   : > { %2473 = vmatpush1.bf16.msra.mxu1 %v3195_v46  ;;  %2433 = vmatprep.subr.bf16.mxu0 %v3200_v47  ;;  %v3291_v46 = vld [vmem:[%s3901_s13 + $0x574] ss:$8 sps:$4 sm:$0xff]   ;;  %v3286_v47 = vld [vmem:[%s3901_s13 + $0x470] ss:$8 sps:$4 sm:$0xff]  }
  0xf4   : > { %2474 = vmatprep.subr.bf16.mxu1 %v3203_v48  ;;  %v3289_v48 = vld [vmem:[%s3901_s13 + $0x570] ss:$8 sps:$4 sm:$0xff]  }
  0xf6   : > { %2434 = vmatpush1.bf16.msra.mxu0 %v3198_v49  ;;  %v3294_v49 = vld [vmem:[%s3901_s13 + $0x484] ss:$8 sps:$4 sm:$0xff]  }
  0xf7   : > { %2475 = vmatpush1.bf16.msra.mxu1 %v3201_v50  ;;  %2435 = vmatprep.subr.bf16.mxu0 %v3206_v51  ;;  %v3297_v50 = vld [vmem:[%s3901_s13 + $0x584] ss:$8 sps:$4 sm:$0xff]   ;;  %v3292_v51 = vld [vmem:[%s3901_s13 + $0x480] ss:$8 sps:$4 sm:$0xff]  }
  0xf8   : > { %2476 = vmatprep.subr.bf16.mxu1 %v3209_v52  ;;  %v3295_v52 = vld [vmem:[%s3901_s13 + $0x580] ss:$8 sps:$4 sm:$0xff]  }
  0xfa   : > { %2436 = vmatpush1.bf16.msra.mxu0 %v3204_v53  ;;  %v3300_v53 = vld [vmem:[%s3901_s13 + $0x494] ss:$8 sps:$4 sm:$0xff]  }
  0xfb   : > { %2477 = vmatpush1.bf16.msra.mxu1 %v3207_v54  ;;  %2437 = vmatprep.subr.bf16.mxu0 %v3212_v55  ;;  %v3303_v54 = vld [vmem:[%s3901_s13 + $0x594] ss:$8 sps:$4 sm:$0xff]   ;;  %v3298_v55 = vld [vmem:[%s3901_s13 + $0x490] ss:$8 sps:$4 sm:$0xff]  }
  0xfc   : > { %2478 = vmatprep.subr.bf16.mxu1 %v3215_v56  ;;  %v3301_v56 = vld [vmem:[%s3901_s13 + $0x590] ss:$8 sps:$4 sm:$0xff]  }
  0xfe   : > { %2438 = vmatpush1.bf16.msra.mxu0 %v3210_v57  ;;  %v3306_v57 = vld [vmem:[%s3901_s13 + $0x4a4] ss:$8 sps:$4 sm:$0xff]  }
  0xff   : > { %2479 = vmatpush1.bf16.msra.mxu1 %v3213_v58  ;;  %2439 = vmatprep.subr.bf16.mxu0 %v3218_v59  ;;  %v3309_v58 = vld [vmem:[%s3901_s13 + $0x5a4] ss:$8 sps:$4 sm:$0xff]   ;;  %v3304_v59 = vld [vmem:[%s3901_s13 + $0x4a0] ss:$8 sps:$4 sm:$0xff]  }
 0x100   : > { %2480 = vmatprep.subr.bf16.mxu1 %v3221_v60  ;;  %v3307_v60 = vld [vmem:[%s3901_s13 + $0x5a0] ss:$8 sps:$4 sm:$0xff]  }
 0x102   : > { %2440 = vmatpush1.bf16.msra.mxu0 %v3216_v61  ;;  %v3312_v61 = vld [vmem:[%s3901_s13 + $0x4b4] ss:$8 sps:$4 sm:$0xff]  }
 0x103   : > { %2481 = vmatpush1.bf16.msra.mxu1 %v3219_v62  ;;  %2441 = vmatprep.subr.bf16.mxu0 %v3224_v63  ;;  %v3315_v62 = vld [vmem:[%s3901_s13 + $0x5b4] ss:$8 sps:$4 sm:$0xff]   ;;  %v3310_v63 = vld [vmem:[%s3901_s13 + $0x4b0] ss:$8 sps:$4 sm:$0xff]  }
 0x104   : > { %2482 = vmatprep.subr.bf16.mxu1 %v3227_v0  ;;  %v3313_v0 = vld [vmem:[%s3901_s13 + $0x5b0] ss:$8 sps:$4 sm:$0xff]  }
 0x106   : > { %2442 = vmatpush1.bf16.msra.mxu0 %v3222_v1  ;;  %v3318_v1 = vld [vmem:[%s3901_s13 + $0x4c4] ss:$8 sps:$4 sm:$0xff]  }
 0x107   : > { %2483 = vmatpush1.bf16.msra.mxu1 %v3225_v2  ;;  %2443 = vmatprep.subr.bf16.mxu0 %v3230_v3  ;;  %v3321_v2 = vld [vmem:[%s3901_s13 + $0x5c4] ss:$8 sps:$4 sm:$0xff]   ;;  %v3316_v3 = vld [vmem:[%s3901_s13 + $0x4c0] ss:$8 sps:$4 sm:$0xff]  }
 0x108   : > { %2484 = vmatprep.subr.bf16.mxu1 %v3233_v4  ;;  %v3319_v4 = vld [vmem:[%s3901_s13 + $0x5c0] ss:$8 sps:$4 sm:$0xff]  }
 0x10a   : > { %2444 = vmatpush1.bf16.msra.mxu0 %v3228_v5  ;;  %v3324_v5 = vld [vmem:[%s3901_s13 + $0x4d4] ss:$8 sps:$4 sm:$0xff]  }
 0x10b   : > { %2485 = vmatpush1.bf16.msra.mxu1 %v3231_v6  ;;  %2445 = vmatprep.subr.bf16.mxu0 %v3236_v7  ;;  %v3327_v6 = vld [vmem:[%s3901_s13 + $0x5d4] ss:$8 sps:$4 sm:$0xff]   ;;  %v3322_v7 = vld [vmem:[%s3901_s13 + $0x4d0] ss:$8 sps:$4 sm:$0xff]  }
 0x10c   : > { %2486 = vmatprep.subr.bf16.mxu1 %v3239_v8  ;;  %v3325_v8 = vld [vmem:[%s3901_s13 + $0x5d0] ss:$8 sps:$4 sm:$0xff]  }
 0x10e   : > { %2446 = vmatpush1.bf16.msra.mxu0 %v3234_v9  ;;  %v3330_v9 = vld [vmem:[%s3901_s13 + $0x4e4] ss:$8 sps:$4 sm:$0xff]  }
 0x10f   : > { %2487 = vmatpush1.bf16.msra.mxu1 %v3237_v10  ;;  %2497 = vmatprep.subr.bf16.mxu0 %v3246_v11  ;;  %v3333_v10 = vld [vmem:[%s3901_s13 + $0x5e4] ss:$8 sps:$4 sm:$0xff]   ;;  %v3328_v11 = vld [vmem:[%s3901_s13 + $0x4e0] ss:$8 sps:$4 sm:$0xff]  }
 0x110   : > { %2538 = vmatprep.subr.bf16.mxu1 %v3249_v12  ;;  %v3331_v12 = vld [vmem:[%s3901_s13 + $0x5e0] ss:$8 sps:$4 sm:$0xff]  }
 0x111   : > { %2448 = vmatmul.mubr.bf16.vlgmr.msra.gmra.mrb[4].mxu0 %v2779_v13  ;;  %v3336_v13 = vld [vmem:[%s3901_s13 + $0x4f4] ss:$8 sps:$4 sm:$0xff]  }
 0x112   : > { %2489 = vmatmul.mubr.bf16.vlgmr.msra.gmra.mrb[4].mxu1 %v2781_v14  ;;  %2498 = vmatpush1.bf16.msra.mxu0 %v3244_v15  ;;  %v3339_v14 = vld [vmem:[%s3901_s13 + $0x5f4] ss:$8 sps:$4 sm:$0xff]   ;;  %v3334_v15 = vld [vmem:[%s3901_s13 + $0x4f0] ss:$8 sps:$4 sm:$0xff]  }
 0x113   : > { %2539 = vmatpush1.bf16.msra.mxu1 %v3247_v16  ;;  %2499 = vmatprep.subr.bf16.mxu0 %v3252_v17  ;;  %v3337_v16 = vld [vmem:[%s3901_s13 + $0x5f0] ss:$8 sps:$4 sm:$0xff]   ;;  %v2783_v17 = vcombine.low %v4055_v19, %v4055_v19 }
 0x114   : > { %2540 = vmatprep.subr.bf16.mxu1 %v3255_v18  ;;  %2529 = vmatprep.mubr.bf16.mxu0 %v2784_v21  ;;  %v2785_v18 = vcombine.low %v4058_v20, %v4058_v20 }
 0x115   : > { %2570 = vmatprep.mubr.bf16.mxu1 %v2786_v22 }
 0x116   : > { %2500 = vmatpush1.bf16.msra.mxu0 %v3250_v23 }
 0x117   : > { %2541 = vmatpush1.bf16.msra.mxu1 %v3253_v24  ;;  %2501 = vmatprep.subr.bf16.mxu0 %v3258_v25 }
 0x118   : > { %2542 = vmatprep.subr.bf16.mxu1 %v3261_v26 }
 0x11a   : > { %2502 = vmatpush1.bf16.msra.mxu0 %v3256_v27 }
 0x11b   : > { %2543 = vmatpush1.bf16.msra.mxu1 %v3259_v28  ;;  %2503 = vmatprep.subr.bf16.mxu0 %v3264_v29 }
 0x11c   : > { %2544 = vmatprep.subr.bf16.mxu1 %v3267_v30 }
 0x11e   : > { %2504 = vmatpush1.bf16.msra.mxu0 %v3262_v31 }
 0x11f   : > { %2545 = vmatpush1.bf16.msra.mxu1 %v3265_v32  ;;  %2505 = vmatprep.subr.bf16.mxu0 %v3270_v33 }
 0x120   : > { %2546 = vmatprep.subr.bf16.mxu1 %v3273_v34 }
 0x122   : > { %2506 = vmatpush1.bf16.msra.mxu0 %v3268_v35 }
 0x123   : > { %2547 = vmatpush1.bf16.msra.mxu1 %v3271_v36  ;;  %2507 = vmatprep.subr.bf16.mxu0 %v3276_v37 }
 0x124   : > { %2548 = vmatprep.subr.bf16.mxu1 %v3279_v38 }
 0x126   : > { %2508 = vmatpush1.bf16.msra.mxu0 %v3274_v39 }
 0x127   : > { %2549 = vmatpush1.bf16.msra.mxu1 %v3277_v40  ;;  %2509 = vmatprep.subr.bf16.mxu0 %v3282_v41 }
 0x128   : > { %2550 = vmatprep.subr.bf16.mxu1 %v3285_v42 }
 0x12a   : > { %2510 = vmatpush1.bf16.msra.mxu0 %v3280_v43 }
 0x12b   : > { %2551 = vmatpush1.bf16.msra.mxu1 %v3283_v44  ;;  %2511 = vmatprep.subr.bf16.mxu0 %v3288_v45 }
 0x12c   : > { %2552 = vmatprep.subr.bf16.mxu1 %v3291_v46  ;;  %v1131_v46 = vld [vmem:[#allocation2] sm:$0xff] }
 0x12e   : > { %2512 = vmatpush1.bf16.msra.mxu0 %v3286_v47 }
 0x12f   : > { %2553 = vmatpush1.bf16.msra.mxu1 %v3289_v48  ;;  %2513 = vmatprep.subr.bf16.mxu0 %v3294_v49 }
 0x130   : > { %2554 = vmatprep.subr.bf16.mxu1 %v3297_v50 }
 0x132   : > { %2514 = vmatpush1.bf16.msra.mxu0 %v3292_v51  ;;  %v1132_v51 = vld [vmem:[#allocation2 + $0x8] sm:$0xff] }
 0x133   : > { %2555 = vmatpush1.bf16.msra.mxu1 %v3295_v52  ;;  %2515 = vmatprep.subr.bf16.mxu0 %v3300_v53 }
 0x134   : > { %2556 = vmatprep.subr.bf16.mxu1 %v3303_v54 }
 0x136   : > { %2516 = vmatpush1.bf16.msra.mxu0 %v3298_v55 }
 0x137   : > { %2557 = vmatpush1.bf16.msra.mxu1 %v3301_v56  ;;  %2517 = vmatprep.subr.bf16.mxu0 %v3306_v57  ;;  %v2591_v57 = vlaneseq (!%p2979_p13) }
 0x138   : > { %2558 = vmatprep.subr.bf16.mxu1 %v3309_v58 }
 0x139   : > { %v2592_v58 = vshrl.u32 (!%p2979_p13), %v2591_v57, 7 }
 0x13a   : > { %2518 = vmatpush1.bf16.msra.mxu0 %v3304_v59  ;;  %v2589_v59 = vld [vmem:[%s1103_s15] sm:$0x3] (!%p2979_p13) }
 0x13b   : > { %2559 = vmatpush1.bf16.msra.mxu1 %v3307_v60  ;;  %2519 = vmatprep.subr.bf16.mxu0 %v3312_v61  ;;  %v2603_v60 = vld [vmem:[%s3894_s9] sm:$0xff] (!%p2979_p13)  ;;  %v2593_v61 = vsub.s32 (!%p2979_p13), 0, %v2592_v58 }
 0x13c   : > { %2560 = vmatprep.subr.bf16.mxu1 %v3315_v62  ;;  %v2597_v62 = vsub.s32 (!%p2979_p13), 1, %v2592_v58 }
 0x13e   : > { %2520 = vmatpush1.bf16.msra.mxu0 %v3310_v63 }
 0x13f   : > { %2561 = vmatpush1.bf16.msra.mxu1 %v3313_v0  ;;  %2521 = vmatprep.subr.bf16.mxu0 %v3318_v1  ;;  %v2594_v1 = vrot.slane (!%p2979_p13), %v2589_v59, %v2593_v61 }
 0x140   : > { %2562 = vmatprep.subr.bf16.mxu1 %v3321_v2  ;;  %v2598_v2 = vrot.slane (!%p2979_p13), %v2589_v59, %v2597_v62 }
 0x142   : > { %2522 = vmatpush1.bf16.msra.mxu0 %v3316_v3  ;;  %v2604_v3 = vunpack.c.l.bf16 (!%p2979_p13), %v2603_v60 }
 0x143   : > { %2563 = vmatpush1.bf16.msra.mxu1 %v3319_v4  ;;  %2523 = vmatprep.subr.bf16.mxu0 %v3324_v5  ;;  %v2605_v4 = vunpack.c.h.bf16 (!%p2979_p13), %v2603_v60 }
 0x144   : > { %2564 = vmatprep.subr.bf16.mxu1 %v3327_v6 }
 0x146   : > { %2524 = vmatpush1.bf16.msra.mxu0 %v3322_v7 }
 0x147   : > { %2565 = vmatpush1.bf16.msra.mxu1 %v3325_v8  ;;  %2525 = vmatprep.subr.bf16.mxu0 %v3330_v9 }
 0x148   : > { %2566 = vmatprep.subr.bf16.mxu1 %v3333_v10 }
 0x14a   : > { %2526 = vmatpush1.bf16.msra.mxu0 %v3328_v11 }
 0x14b   : > { %2567 = vmatpush1.bf16.msra.mxu1 %v3331_v12  ;;  %2527 = vmatprep.subr.bf16.mxu0 %v3336_v13 }
 0x14c   : > { %2568 = vmatprep.subr.bf16.mxu1 %v3339_v14 }
 0x14e   : > { %2528 = vmatpush1.bf16.msra.mxu0 %v3334_v15 }
 0x14f   : > { %2569 = vmatpush1.bf16.msra.mxu1 %v3337_v16 }
 0x151   : > { %2530 = vmatmul.mubr.bf16.vlgmr.msra.gmra.mrb[8].mxu0 %v2783_v17 }
 0x152   : > { %2571 = vmatmul.mubr.bf16.vlgmr.msra.gmra.mrb[8].mxu1 %v2785_v18 }
 0x1a4   : > { %v2367_v21 = vpop.f32.mrb[0].mxu0 }
 0x1a5   : > { %v2408_v22 = vpop.f32.mrb[0].mxu1  ;;  %v2369_v24 = vpop.f32.mrb[1].mxu0 }
 0x1a6   : > { %v2409_v23 = vadd.f32 %v2408_v22, %v2367_v21  ;;  %v2410_v25 = vpop.f32.mrb[1].mxu1  ;;  %v2371_v27 = vpop.f32.mrb[2].mxu0 }
 0x1a7   : > { %v2411_v26 = vadd.f32 %v2410_v25, %v2369_v24  ;;  %v2412_v28 = vpop.f32.mrb[2].mxu1  ;;  %v2372_v29 = vpop.f32.mrb[3].mxu0 }
 0x1a8   : > { %v2413_v30 = vpop.f32.mrb[3].mxu1 }
 0x1e4   : > { %v2449_v31 = vpop.f32.mrb[4].mxu0 }
 0x1e5   : > { %v2490_v32 = vpop.f32.mrb[4].mxu1  ;;  %v2450_v19 = vadd.f32 %v2449_v31, %v2409_v23  ;;  %v2451_v33 = vpop.f32.mrb[5].mxu0 }
 0x1e6   : > { %v2492_v34 = vpop.f32.mrb[5].mxu1  ;;  %v2452_v20 = vadd.f32 %v2451_v33, %v2411_v26  ;;  %v2453_v35 = vpop.f32.mrb[6].mxu0 }
 0x1e7   : > { %v2494_v36 = vpop.f32.mrb[6].mxu1  ;;  %v2491_v37 = vadd.f32 %v2490_v32, %v2450_v19  ;;  %v2454_v38 = vpop.f32.mrb[7].mxu0 }
 0x1e8   : > { %v2495_v39 = vpop.f32.mrb[7].mxu1  ;;  %v2493_v40 = vadd.f32 %v2492_v34, %v2452_v20 }
 0x224   : > { %v2531_v41 = vpop.f32.mrb[8].mxu0 }
 0x225   : > { %v2572_v42 = vpop.f32.mrb[8].mxu1  ;;  %v2532_v43 = vadd.f32 %v2531_v41, %v2491_v37  ;;  %v2533_v44 = vpop.f32.mrb[9].mxu0 }
 0x226   : > { %v2574_v45 = vpop.f32.mrb[9].mxu1  ;;  %v2534_v47 = vadd.f32 %v2533_v44, %v2493_v40  ;;  %v2535_v48 = vpop.f32.mrb[10].mxu0  ;;  %2586 = sbr.rel (%p2979_p13) target bundleno = 573 (0x23d), region = 82 }
 0x227   : > { %v2576_v49 = vpop.f32.mrb[10].mxu1  ;;  %v2573_v50 = vadd.f32 %v2572_v42, %v2532_v43  ;;  %v2536_v52 = vpop.f32.mrb[11].mxu0 }
 0x228   : > { %v2577_v53 = vpop.f32.mrb[11].mxu1  ;;  %v2575_v54 = vadd.f32 %v2574_v45, %v2534_v47 }
 0x229   : > { %v2579_v55 = vadd.f32 %v2573_v50, %v1131_v46 }
 0x22a   : > { %v2580_v56 = vadd.f32 %v2575_v54, %v1132_v51 }
 0x22b   : > { %2581 = vst [vmem:[#allocation2] sm:$0xff] %v2579_v55 }
 0x22c   : > { %2582 = vst [vmem:[#allocation2 + $0x8] sm:$0xff] %v2580_v56 }
 0x232   : > { %v2587_v63 = vld [vmem:[#allocation2] sm:$0xff] }
 0x233   : > { %v2588_v0 = vld [vmem:[#allocation2 + $0x8] sm:$0xff]  ;;  %v2601_v5 = vadd.f32 %v2594_v1, %v2587_v63 }
 0x234   : > { %v2602_v6 = vadd.f32 %v2598_v2, %v2588_v0 }
 0x235   : > { %v2606_v7 = vadd.f32 %v2604_v3, %v2601_v5 }
 0x236   : > { %v2607_v8 = vadd.f32 %v2605_v4, %v2602_v6 }
 0x237   : > { %v2608_v9 = vmax.f32 %v2606_v7, 0.0 }
 0x238   : > { %v2609_v10 = vmax.f32 %v2607_v8, 0.0 }
 0x23a   : > { %v2984_v11 = vpack.c.bf16 %v2609_v10, %v2608_v9 }
 0x23c   : > { %2618 = vst [vmem:[%s3899_s12] sm:$0xff] %v2984_v11 }
 0x23d PF: > { %s14_s21 = sadd.s32 1, %s3398_s21   ;;  %s4160_s15 = smov %s3378_s16 }
 0x23e   : > { %p11_p0 = scmp.ge.s32.totalorder %s14_s21, 8   ;;  %s4161_s16 = smov %s3477_s28 }
 0x23f   : > { %s4162_s17 = smov %s3390_s19  ;;  %s4163_s18 = smov %s3394_s20 }
 0x240   : > { %s4164_s19 = smov %s4167_s22  ;;  %s4165_s20 = smov %s4171_s23 }
 0x241   :  { %13 = sbr.rel (!%p11_p0) target bundleno = 4 (0x4), region = 126 }

</bundles_post_ra>
